<compile_context>
chip_gen: v7x
topology: tpu7x:2x2x1
jax: 0.10.0
libtpu: 0.0.40
codegen_flags: <defaults>
</compile_context>

<pallas_src>
import math
from functools import partial

import numpy as np
import jax
import jax.numpy as jnp
from jax.experimental import pallas as pl
from jax.experimental.pallas import tpu as pltpu  # noqa: F401  (kept for TPU-specific params if needed)

# ---------------- small config consistent with the module ----------------
BATCH = 2
N_BANDS = 40          # n_bands (small; divisible by seq_size)
SEQ_SIZE = 5
IN_CHANS = 1
EMBED_DIM = 32
DEPTH = 2
NUM_HEADS = 4
DEC_EMBED_DIM = 32
DEC_DEPTH = 2
DEC_NUM_HEADS = 4
MLP_RATIO = 4.0
NUM_SEQ = N_BANDS // SEQ_SIZE                 # 8 sequences
MLP_HIDDEN = int(EMBED_DIM * MLP_RATIO)       # 128
DEC_MLP_HIDDEN = int(DEC_EMBED_DIM * MLP_RATIO)

BLOCK_KEYS = ("ln1_w", "ln1_b", "qkv_w", "qkv_b", "proj_w", "proj_b",
              "ln2_w", "ln2_b", "fc1_w", "fc1_b", "fc2_w", "fc2_b")


# ---------------- in-kernel helpers (pure fns traced inside the kernel) ----------------
def _ln(x, w, b, eps=1e-5):
    mu = jnp.mean(x, axis=-1, keepdims=True)
    var = jnp.mean((x - mu) ** 2, axis=-1, keepdims=True)
    return (x - mu) * jax.lax.rsqrt(var + eps) * w + b


def _erf_approx(x):
    # TODO(synk): exact erf GELU approximated with Abramowitz&Stegun 7.1.26
    # (max abs err ~1.5e-7); lax.erf may lack a Mosaic lowering.
    a1, a2, a3, a4, a5 = 0.254829592, -0.284496736, 1.421413741, -1.453152027, 1.061405429
    p = 0.3275911
    ax = jnp.abs(x)
    t = 1.0 / (1.0 + p * ax)
    poly = ((((a5 * t + a4) * t + a3) * t + a2) * t + a1) * t
    y = 1.0 - poly * jnp.exp(-ax * ax)
    return jnp.where(x >= 0, y, -y)


def _gelu(x):
    return 0.5 * x * (1.0 + _erf_approx(x * 0.7071067811865476))


# ---------------- fused MAE forward kernel ----------------
def _make_mae_kernel(B, L, K, S, D, Dd, depth, dec_depth, nh_enc, nh_dec):
    n_mask = L - K          # mask tokens per sample (= L + 1 - (1 + K))
    Lx = 1 + K              # encoder tokens (cls + kept)
    Ly = 1 + L              # decoder tokens (cls + all)

    def block(x2d, tok, wts, num_heads):
        (ln1_w, ln1_b, qkv_w, qkv_b, proj_w, proj_b,
         ln2_w, ln2_b, fc1_w, fc1_b, fc2_w, fc2_b) = wts
        dim = x2d.shape[1]
        hd = dim // num_heads
        scale = 1.0 / math.sqrt(hd)

        # ---- attention (token-wise matmuls on flattened rows; per-batch softmax) ----
        h = _ln(x2d, ln1_w, ln1_b)
        qkv = jnp.dot(h, qkv_w, preferred_element_type=jnp.float32) + qkv_b
        q = qkv[:, :dim] * scale
        k = qkv[:, dim:2 * dim]
        v = qkv[:, 2 * dim:]

        per_batch = []
        for b in range(B):                      # unrolled, B is tiny (no grid overhead)
            r0, r1 = b * tok, (b + 1) * tok
            qb, kb, vb = q[r0:r1, :], k[r0:r1, :], v[r0:r1, :]
            heads = []
            for hh in range(num_heads):
                c0, c1 = hh * hd, (hh + 1) * hd
                s = jax.lax.dot_general(qb[:, c0:c1], kb[:, c0:c1],
                                        (((1,), (1,)), ((), ())),
                                        preferred_element_type=jnp.float32)   # (tok, tok)
                s = s - jnp.max(s, axis=-1, keepdims=True)
                p = jnp.exp(s)
                p = p * pl.reciprocal(jnp.sum(p, axis=-1, keepdims=True), approx=True)
                heads.append(jnp.dot(p, vb[:, c0:c1],
                                     preferred_element_type=jnp.float32))     # (tok, hd)
            per_batch.append(jnp.concatenate(heads, axis=1))                  # (tok, dim)
        attn = jnp.concatenate(per_batch, axis=0)                             # (B*tok, dim)
        # single proj matmul on concatenated head outputs
        x2d = x2d + jnp.dot(attn, proj_w, preferred_element_type=jnp.float32) + proj_b

        # ---- MLP ----
        h2 = _ln(x2d, ln2_w, ln2_b)
        h2 = jnp.dot(h2, fc1_w, preferred_element_type=jnp.float32) + fc1_b
        h2 = _gelu(h2)
        h2 = jnp.dot(h2, fc2_w, preferred_element_type=jnp.float32) + fc2_b
        return x2d + h2

    def kernel(*refs):
        (patches_ref, keep_oh_ref, restore_oh_ref, mask_ref,
         seq_w_ref, seq_b_ref, pos_ref, cls_ref) = refs[:8]
        enc_stack = refs[8:20]                                   # 12 stacked (depth, ...) refs
        norm_w_ref, norm_b_ref = refs[20:22]
        dec_w_ref, dec_b_ref, mtok_ref, dpos_ref = refs[22:26]
        dec_stack = refs[26:38]
        dnorm_w_ref, dnorm_b_ref, pred_w_ref, pred_b_ref = refs[38:42]
        loss_ref, pred_ref, latent_ref = refs[42:45]

        # ---------- encoder: patch embed + pos + keep-gather + cls ----------
        patches = patches_ref[...]                                            # (B*L, S)
        tokens = jnp.dot(patches, seq_w_ref[...],
                         preferred_element_type=jnp.float32) + seq_b_ref[...]  # (B*L, D)
        pos = pos_ref[...]                                                     # (L, D)
        cls_tok = cls_ref[...]                                                 # (1, D)
        keep_oh = keep_oh_ref[...]                                             # (B*K, L)
        rows = []
        for b in range(B):
            xb = tokens[b * L:(b + 1) * L, :] + pos                            # (L, D)
            xk = jnp.dot(keep_oh[b * K:(b + 1) * K, :], xb,
                         preferred_element_type=jnp.float32)                   # (K, D)
            rows.append(jnp.concatenate([cls_tok, xk], axis=0))                # (Lx, D)
        x = jnp.concatenate(rows, axis=0)                                      # (B*Lx, D)

        for layer in range(depth):
            x = block(x, Lx, [enc_stack[i][layer] for i in range(12)], nh_enc)
        latent2d = _ln(x, norm_w_ref[...], norm_b_ref[...])
        latent_ref[...] = latent2d.astype(latent_ref.dtype)

        # ---------- decoder: embed + unshuffle + mask tokens + pos ----------
        y = jnp.dot(latent2d, dec_w_ref[...],
                    preferred_element_type=jnp.float32) + dec_b_ref[...]       # (B*Lx, Dd)
        mtok = jnp.broadcast_to(mtok_ref[...], (n_mask, Dd))                   # hoisted
        restore_oh = restore_oh_ref[...]                                       # (B*L, L)
        dpos = dpos_ref[...]                                                   # (Ly, Dd)
        rows = []
        for b in range(B):
            yb = y[b * Lx:(b + 1) * Lx, :]                                     # (Lx, Dd)
            ycat = jnp.concatenate([yb[1:, :], mtok], axis=0)                  # (L, Dd)
            yres = jnp.dot(restore_oh[b * L:(b + 1) * L, :], ycat,
                           preferred_element_type=jnp.float32)                 # (L, Dd)
            rows.append(jnp.concatenate([yb[:1, :], yres], axis=0) + dpos)     # (Ly, Dd)
        yd = jnp.concatenate(rows, axis=0)                                     # (B*Ly, Dd)

        for layer in range(dec_depth):
            yd = block(yd, Ly, [dec_stack[i][layer] for i in range(12)], nh_dec)
        yd = _ln(yd, dnorm_w_ref[...], dnorm_b_ref[...])
        pred_full = jnp.dot(yd, pred_w_ref[...],
                            preferred_element_type=jnp.float32) + pred_b_ref[...]  # (B*Ly, S)

        pred2d = jnp.concatenate(
            [pred_full[b * Ly + 1:(b + 1) * Ly, :] for b in range(B)], axis=0)      # (B*L, S)
        pred_ref[...] = pred2d.astype(pred_ref.dtype)

        # ---------- masked MSE loss ----------
        d2 = (pred2d - patches) ** 2                                           # (B*L, S)
        m = mask_ref[...]                                                      # (B*L, 1)
        num = jnp.sum(jnp.sum(d2 * m, axis=1, keepdims=True), axis=0, keepdims=True)
        tot = jnp.sum(jnp.sum(d2, axis=1, keepdims=True), axis=0, keepdims=True)
        msum = jnp.sum(m, axis=0, keepdims=True)                               # (1, 1)
        masked = num / jnp.maximum(msum * float(S), 1.0)
        unmasked = tot * (1.0 / float(d2.shape[0] * d2.shape[1]))
        loss_ref[...] = jnp.where(msum > 0, masked, unmasked)

    return kernel


# ---------------- parameter init (deterministic, matches module shapes) ----------------
def get_1d_sincos_pos_embed(embed_dim, length, cls_token=False):
    pos = np.arange(length, dtype=np.float64)
    omega = np.arange(embed_dim // 2, dtype=np.float64) / (embed_dim / 2.0)
    omega = 1.0 / (10000.0 ** omega)
    out = np.einsum("m,d->md", pos, omega)
    emb = np.concatenate([np.sin(out), np.cos(out)], axis=1)
    if cls_token:
        emb = np.concatenate([np.zeros((1, embed_dim)), emb], axis=0)
    return emb.astype(np.float32)


def xavier(key, shape):
    fan_in, fan_out = shape
    a = math.sqrt(6.0 / (fan_in + fan_out))
    return jax.random.uniform(key, shape, jnp.float32, -a, a)


def init_block(key, dim, hidden):
    k = jax.random.split(key, 4)
    return {
        "ln1_w": jnp.ones((1, dim), jnp.float32), "ln1_b": jnp.zeros((1, dim), jnp.float32),
        "qkv_w": xavier(k[0], (dim, 3 * dim)), "qkv_b": jnp.zeros((1, 3 * dim), jnp.float32),
        "proj_w": xavier(k[1], (dim, dim)), "proj_b": jnp.zeros((1, dim), jnp.float32),
        "ln2_w": jnp.ones((1, dim), jnp.float32), "ln2_b": jnp.zeros((1, dim), jnp.float32),
        "fc1_w": xavier(k[2], (dim, hidden)), "fc1_b": jnp.zeros((1, hidden), jnp.float32),
        "fc2_w": xavier(k[3], (hidden, dim)), "fc2_b": jnp.zeros((1, dim), jnp.float32),
    }


def init_block_stack(key, dim, hidden, depth):
    blocks = [init_block(k, dim, hidden) for k in jax.random.split(key, depth)]
    return {name: jnp.stack([blk[name] for blk in blocks], axis=0) for name in BLOCK_KEYS}


def init_params(key):
    ks = iter(jax.random.split(key, 16))
    p = {}
    # SeqEmbed: Conv1d(in_chans, embed_dim, seq_size, stride=seq_size) in matmul form
    p["seq_w"] = xavier(next(ks), (SEQ_SIZE * IN_CHANS, EMBED_DIM))
    p["seq_b"] = jnp.zeros((1, EMBED_DIM), jnp.float32)
    p["cls_token"] = 0.02 * jax.random.normal(next(ks), (1, EMBED_DIM), jnp.float32)
    p["pos_embed"] = jnp.asarray(get_1d_sincos_pos_embed(EMBED_DIM, NUM_SEQ, cls_token=True))
    p["enc_blocks"] = init_block_stack(next(ks), EMBED_DIM, MLP_HIDDEN, DEPTH)
    p["norm_w"] = jnp.ones((1, EMBED_DIM), jnp.float32)
    p["norm_b"] = jnp.zeros((1, EMBED_DIM), jnp.float32)
    p["dec_embed_w"] = xavier(next(ks), (EMBED_DIM, DEC_EMBED_DIM))
    p["dec_embed_b"] = jnp.zeros((1, DEC_EMBED_DIM), jnp.float32)
    p["mask_token"] = 0.02 * jax.random.normal(next(ks), (1, DEC_EMBED_DIM), jnp.float32)
    p["dec_pos_embed"] = jnp.asarray(
        get_1d_sincos_pos_embed(DEC_EMBED_DIM, NUM_SEQ, cls_token=True))
    p["dec_blocks"] = init_block_stack(next(ks), DEC_EMBED_DIM, DEC_MLP_HIDDEN, DEC_DEPTH)
    p["dec_norm_w"] = jnp.ones((1, DEC_EMBED_DIM), jnp.float32)
    p["dec_norm_b"] = jnp.zeros((1, DEC_EMBED_DIM), jnp.float32)
    p["pred_w"] = xavier(next(ks), (DEC_EMBED_DIM, SEQ_SIZE * IN_CHANS))
    p["pred_b"] = jnp.zeros((1, SEQ_SIZE * IN_CHANS), jnp.float32)
    return p


# ---------------- full forward (glue in JAX, all compute in one Pallas kernel) ----------------
@partial(jax.jit, static_argnames=("mask_ratio",))
def mae_forward(params, spectra, rng, mask_ratio=0.75):
    B = spectra.shape[0]
    L, S, D, Dd = NUM_SEQ, SEQ_SIZE * IN_CHANS, EMBED_DIM, DEC_EMBED_DIM
    K = int(L * (1 - mask_ratio))                    # len_keep (static)

    # random masking bookkeeping (argsort has no clean Pallas equivalent; tiny glue)
    noise = jax.random.uniform(rng, (B, L))
    ids_shuffle = jnp.argsort(noise, axis=1)
    ids_restore = jnp.argsort(ids_shuffle, axis=1)
    ids_keep = ids_shuffle[:, :K]
    mask = (ids_restore >= K).astype(jnp.float32)                      # (B, L)

    lane = jnp.arange(L, dtype=ids_keep.dtype)
    keep_oh = (ids_keep[:, :, None] == lane[None, None, :]).astype(jnp.float32)
    keep_oh = keep_oh.reshape(B * K, L)                                # gather matrix
    restore_oh = (ids_restore[:, :, None] == lane[None, None, :]).astype(jnp.float32)
    restore_oh = restore_oh.reshape(B * L, L)                          # unshuffle matrix

    patches = spectra.reshape(B * L, S)
    mask_rows = mask.reshape(B * L, 1)
    cls_tok = params["cls_token"] + params["pos_embed"][:1, :]         # fold cls + pos once

    args = [patches, keep_oh, restore_oh, mask_rows,
            params["seq_w"], params["seq_b"], params["pos_embed"][1:, :], cls_tok]
    args += [params["enc_blocks"][k] for k in BLOCK_KEYS]
    args += [params["norm_w"], params["norm_b"],
             params["dec_embed_w"], params["dec_embed_b"],
             params["mask_token"], params["dec_pos_embed"]]
    args += [params["dec_blocks"][k] for k in BLOCK_KEYS]
    args += [params["dec_norm_w"], params["dec_norm_b"],
             params["pred_w"], params["pred_b"]]

    loss11, pred2d, latent2d = pl.pallas_call(
        _make_mae_kernel(B, L, K, S, D, Dd, DEPTH, DEC_DEPTH, NUM_HEADS, DEC_NUM_HEADS),
        out_shape=(jax.ShapeDtypeStruct((1, 1), jnp.float32),
                   jax.ShapeDtypeStruct((B * L, S), jnp.float32),
                   jax.ShapeDtypeStruct((B * (1 + K), D), jnp.float32)),
    )(*args)

    loss = loss11[0, 0]
    pred = pred2d.reshape(B, L, S)
    latent = latent2d.reshape(B, 1 + K, D)
    return loss, pred, mask, latent


if __name__ == "__main__":
    key = jax.random.PRNGKey(0)
    k_spec, k_mask, k_par = jax.random.split(key, 3)
    spectra = jax.random.normal(k_spec, (BATCH, N_BANDS), jnp.float32)
    params = init_params(k_par)

    loss, pred, mask, latent = mae_forward(params, spectra, k_mask, mask_ratio=0.75)
    jax.block_until_ready((loss, pred, mask, latent))

    assert pred.shape == (BATCH, NUM_SEQ, SEQ_SIZE * IN_CHANS)
    assert mask.shape == (BATCH, NUM_SEQ)
    assert latent.shape == (BATCH, 1 + int(NUM_SEQ * 0.25), EMBED_DIM)
    assert loss.shape == ()
    assert bool(jnp.isfinite(loss))
    print("KERNEL_OK")
</pallas_src>

<mosaic_0001>
module attributes {stable_mosaic.version = 11 : i64} {
  func.func @kernel(%arg0: memref<16x5xf32, #tpu.memory_space<vmem>>, %arg1: memref<4x8xf32, #tpu.memory_space<vmem>>, %arg2: memref<16x8xf32, #tpu.memory_space<vmem>>, %arg3: memref<16x1xf32, #tpu.memory_space<vmem>>, %arg4: memref<5x32xf32, #tpu.memory_space<vmem>>, %arg5: memref<1x32xf32, #tpu.memory_space<vmem>>, %arg6: memref<8x32xf32, #tpu.memory_space<vmem>>, %arg7: memref<1x32xf32, #tpu.memory_space<vmem>>, %arg8: memref<2x1x32xf32, #tpu.memory_space<vmem>>, %arg9: memref<2x1x32xf32, #tpu.memory_space<vmem>>, %arg10: memref<2x32x96xf32, #tpu.memory_space<vmem>>, %arg11: memref<2x1x96xf32, #tpu.memory_space<vmem>>, %arg12: memref<2x32x32xf32, #tpu.memory_space<vmem>>, %arg13: memref<2x1x32xf32, #tpu.memory_space<vmem>>, %arg14: memref<2x1x32xf32, #tpu.memory_space<vmem>>, %arg15: memref<2x1x32xf32, #tpu.memory_space<vmem>>, %arg16: memref<2x32x128xf32, #tpu.memory_space<vmem>>, %arg17: memref<2x1x128xf32, #tpu.memory_space<vmem>>, %arg18: memref<2x128x32xf32, #tpu.memory_space<vmem>>, %arg19: memref<2x1x32xf32, #tpu.memory_space<vmem>>, %arg20: memref<1x32xf32, #tpu.memory_space<vmem>>, %arg21: memref<1x32xf32, #tpu.memory_space<vmem>>, %arg22: memref<32x32xf32, #tpu.memory_space<vmem>>, %arg23: memref<1x32xf32, #tpu.memory_space<vmem>>, %arg24: memref<1x32xf32, #tpu.memory_space<vmem>>, %arg25: memref<9x32xf32, #tpu.memory_space<vmem>>, %arg26: memref<2x1x32xf32, #tpu.memory_space<vmem>>, %arg27: memref<2x1x32xf32, #tpu.memory_space<vmem>>, %arg28: memref<2x32x96xf32, #tpu.memory_space<vmem>>, %arg29: memref<2x1x96xf32, #tpu.memory_space<vmem>>, %arg30: memref<2x32x32xf32, #tpu.memory_space<vmem>>, %arg31: memref<2x1x32xf32, #tpu.memory_space<vmem>>, %arg32: memref<2x1x32xf32, #tpu.memory_space<vmem>>, %arg33: memref<2x1x32xf32, #tpu.memory_space<vmem>>, %arg34: memref<2x32x128xf32, #tpu.memory_space<vmem>>, %arg35: memref<2x1x128xf32, #tpu.memory_space<vmem>>, %arg36: memref<2x128x32xf32, #tpu.memory_space<vmem>>, %arg37: memref<2x1x32xf32, #tpu.memory_space<vmem>>, %arg38: memref<1x32xf32, #tpu.memory_space<vmem>>, %arg39: memref<1x32xf32, #tpu.memory_space<vmem>>, %arg40: memref<32x5xf32, #tpu.memory_space<vmem>>, %arg41: memref<1x5xf32, #tpu.memory_space<vmem>>, %arg42: memref<1x1xf32, #tpu.memory_space<vmem>>, %arg43: memref<16x5xf32, #tpu.memory_space<vmem>>, %arg44: memref<6x32xf32, #tpu.memory_space<vmem>>) attributes {dimension_semantics = [], scalar_prefetch = 0 : i64, scratch_operands = 0 : i64, tpu.core_type = #tpu.core_type<tc>} {
    %c0 = arith.constant 0 : index
    %c0_0 = arith.constant 0 : index
    %0 = vector.load %arg0[%c0, %c0_0] : memref<16x5xf32, #tpu.memory_space<vmem>>, vector<16x5xf32>
    %c0_1 = arith.constant 0 : index
    %c0_2 = arith.constant 0 : index
    %1 = vector.load %arg4[%c0_1, %c0_2] : memref<5x32xf32, #tpu.memory_space<vmem>>, vector<5x32xf32>
    %cst = arith.constant dense<0.000000e+00> : vector<16x32xf32>
    %2 = tpu.matmul %0, %1, %cst {dimension_numbers = #tpu.dot_dimension_numbers<[1], [0], [0], [1], [0, 0, 1, 1], [], []>} : vector<16x5xf32>, vector<5x32xf32>, vector<16x32xf32> -> vector<16x32xf32>
    %c0_3 = arith.constant 0 : index
    %c0_4 = arith.constant 0 : index
    %3 = vector.load %arg5[%c0_3, %c0_4] : memref<1x32xf32, #tpu.memory_space<vmem>>, vector<1x32xf32>
    %4 = vector.broadcast %3 : vector<1x32xf32> to vector<16x32xf32>
    %5 = arith.addf %2, %4 : vector<16x32xf32>
    %c0_5 = arith.constant 0 : index
    %c0_6 = arith.constant 0 : index
    %6 = vector.load %arg6[%c0_5, %c0_6] : memref<8x32xf32, #tpu.memory_space<vmem>>, vector<8x32xf32>
    %c0_7 = arith.constant 0 : index
    %c0_8 = arith.constant 0 : index
    %7 = vector.load %arg7[%c0_7, %c0_8] : memref<1x32xf32, #tpu.memory_space<vmem>>, vector<1x32xf32>
    %c0_9 = arith.constant 0 : index
    %c0_10 = arith.constant 0 : index
    %8 = vector.load %arg1[%c0_9, %c0_10] : memref<4x8xf32, #tpu.memory_space<vmem>>, vector<4x8xf32>
    %9 = vector.extract_strided_slice %5 {offsets = [0, 0], sizes = [8, 32], strides = [1, 1]} : vector<16x32xf32> to vector<8x32xf32>
    %10 = arith.addf %9, %6 : vector<8x32xf32>
    %11 = vector.extract_strided_slice %8 {offsets = [0, 0], sizes = [2, 8], strides = [1, 1]} : vector<4x8xf32> to vector<2x8xf32>
    %cst_11 = arith.constant dense<0.000000e+00> : vector<2x32xf32>
    %12 = tpu.matmul %11, %10, %cst_11 {dimension_numbers = #tpu.dot_dimension_numbers<[1], [0], [0], [1], [0, 0, 1, 1], [], []>} : vector<2x8xf32>, vector<8x32xf32>, vector<2x32xf32> -> vector<2x32xf32>
    %13 = tpu.concatenate %7, %12 in 0 : vector<1x32xf32>, vector<2x32xf32> -> vector<3x32xf32>
    %14 = vector.extract_strided_slice %5 {offsets = [8, 0], sizes = [8, 32], strides = [1, 1]} : vector<16x32xf32> to vector<8x32xf32>
    %15 = arith.addf %14, %6 : vector<8x32xf32>
    %16 = vector.extract_strided_slice %8 {offsets = [2, 0], sizes = [2, 8], strides = [1, 1]} : vector<4x8xf32> to vector<2x8xf32>
    %cst_12 = arith.constant dense<0.000000e+00> : vector<2x32xf32>
    %17 = tpu.matmul %16, %15, %cst_12 {dimension_numbers = #tpu.dot_dimension_numbers<[1], [0], [0], [1], [0, 0, 1, 1], [], []>} : vector<2x8xf32>, vector<8x32xf32>, vector<2x32xf32> -> vector<2x32xf32>
    %18 = tpu.concatenate %7, %17 in 0 : vector<1x32xf32>, vector<2x32xf32> -> vector<3x32xf32>
    %19 = tpu.concatenate %13, %18 in 0 : vector<3x32xf32>, vector<3x32xf32> -> vector<6x32xf32>
    %c0_13 = arith.constant 0 : index
    %c0_14 = arith.constant 0 : index
    %c0_15 = arith.constant 0 : index
    %20 = vector.load %arg8[%c0_13, %c0_14, %c0_15] : memref<2x1x32xf32, #tpu.memory_space<vmem>>, vector<1x1x32xf32>
    %21 = vector.shape_cast %20 : vector<1x1x32xf32> to vector<1x32xf32>
    %c0_16 = arith.constant 0 : index
    %c0_17 = arith.constant 0 : index
    %c0_18 = arith.constant 0 : index
    %22 = vector.load %arg9[%c0_16, %c0_17, %c0_18] : memref<2x1x32xf32, #tpu.memory_space<vmem>>, vector<1x1x32xf32>
    %23 = vector.shape_cast %22 : vector<1x1x32xf32> to vector<1x32xf32>
    %c0_19 = arith.constant 0 : index
    %c0_20 = arith.constant 0 : index
    %c0_21 = arith.constant 0 : index
    %24 = vector.load %arg10[%c0_19, %c0_20, %c0_21] : memref<2x32x96xf32, #tpu.memory_space<vmem>>, vector<1x32x96xf32>
    %25 = vector.shape_cast %24 : vector<1x32x96xf32> to vector<32x96xf32>
    %c0_22 = arith.constant 0 : index
    %c0_23 = arith.constant 0 : index
    %c0_24 = arith.constant 0 : index
    %26 = vector.load %arg11[%c0_22, %c0_23, %c0_24] : memref<2x1x96xf32, #tpu.memory_space<vmem>>, vector<1x1x96xf32>
    %27 = vector.shape_cast %26 : vector<1x1x96xf32> to vector<1x96xf32>
    %c0_25 = arith.constant 0 : index
    %c0_26 = arith.constant 0 : index
    %c0_27 = arith.constant 0 : index
    %28 = vector.load %arg12[%c0_25, %c0_26, %c0_27] : memref<2x32x32xf32, #tpu.memory_space<vmem>>, vector<1x32x32xf32>
    %29 = vector.shape_cast %28 : vector<1x32x32xf32> to vector<32x32xf32>
    %c0_28 = arith.constant 0 : index
    %c0_29 = arith.constant 0 : index
    %c0_30 = arith.constant 0 : index
    %30 = vector.load %arg13[%c0_28, %c0_29, %c0_30] : memref<2x1x32xf32, #tpu.memory_space<vmem>>, vector<1x1x32xf32>
    %31 = vector.shape_cast %30 : vector<1x1x32xf32> to vector<1x32xf32>
    %c0_31 = arith.constant 0 : index
    %c0_32 = arith.constant 0 : index
    %c0_33 = arith.constant 0 : index
    %32 = vector.load %arg14[%c0_31, %c0_32, %c0_33] : memref<2x1x32xf32, #tpu.memory_space<vmem>>, vector<1x1x32xf32>
    %33 = vector.shape_cast %32 : vector<1x1x32xf32> to vector<1x32xf32>
    %c0_34 = arith.constant 0 : index
    %c0_35 = arith.constant 0 : index
    %c0_36 = arith.constant 0 : index
    %34 = vector.load %arg15[%c0_34, %c0_35, %c0_36] : memref<2x1x32xf32, #tpu.memory_space<vmem>>, vector<1x1x32xf32>
    %35 = vector.shape_cast %34 : vector<1x1x32xf32> to vector<1x32xf32>
    %c0_37 = arith.constant 0 : index
    %c0_38 = arith.constant 0 : index
    %c0_39 = arith.constant 0 : index
    %36 = vector.load %arg16[%c0_37, %c0_38, %c0_39] : memref<2x32x128xf32, #tpu.memory_space<vmem>>, vector<1x32x128xf32>
    %37 = vector.shape_cast %36 : vector<1x32x128xf32> to vector<32x128xf32>
    %c0_40 = arith.constant 0 : index
    %c0_41 = arith.constant 0 : index
    %c0_42 = arith.constant 0 : index
    %38 = vector.load %arg17[%c0_40, %c0_41, %c0_42] : memref<2x1x128xf32, #tpu.memory_space<vmem>>, vector<1x1x128xf32>
    %39 = vector.shape_cast %38 : vector<1x1x128xf32> to vector<1x128xf32>
    %c0_43 = arith.constant 0 : index
    %c0_44 = arith.constant 0 : index
    %c0_45 = arith.constant 0 : index
    %40 = vector.load %arg18[%c0_43, %c0_44, %c0_45] : memref<2x128x32xf32, #tpu.memory_space<vmem>>, vector<1x128x32xf32>
    %41 = vector.shape_cast %40 : vector<1x128x32xf32> to vector<128x32xf32>
    %c0_46 = arith.constant 0 : index
    %c0_47 = arith.constant 0 : index
    %c0_48 = arith.constant 0 : index
    %42 = vector.load %arg19[%c0_46, %c0_47, %c0_48] : memref<2x1x32xf32, #tpu.memory_space<vmem>>, vector<1x1x32xf32>
    %43 = vector.shape_cast %42 : vector<1x1x32xf32> to vector<1x32xf32>
    %cst_49 = arith.constant dense<0.000000e+00> : vector<6xf32>
    %44 = vector.multi_reduction <add>, %19, %cst_49 [1] : vector<6x32xf32> to vector<6xf32>
    %45 = vector.shape_cast %44 : vector<6xf32> to vector<6x1xf32>
    %cst_50 = arith.constant 3.200000e+01 : f32
    %46 = vector.broadcast %cst_50 : f32 to vector<6x1xf32>
    %47 = arith.divf %45, %46 : vector<6x1xf32>
    %48 = vector.broadcast %47 : vector<6x1xf32> to vector<6x32xf32>
    %49 = arith.subf %19, %48 : vector<6x32xf32>
    %50 = arith.mulf %49, %49 : vector<6x32xf32>
    %cst_51 = arith.constant dense<0.000000e+00> : vector<6xf32>
    %51 = vector.multi_reduction <add>, %50, %cst_51 [1] : vector<6x32xf32> to vector<6xf32>
    %52 = vector.shape_cast %51 : vector<6xf32> to vector<6x1xf32>
    %cst_52 = arith.constant 3.200000e+01 : f32
    %53 = vector.broadcast %cst_52 : f32 to vector<6x1xf32>
    %54 = arith.divf %52, %53 : vector<6x1xf32>
    %55 = vector.broadcast %47 : vector<6x1xf32> to vector<6x32xf32>
    %56 = arith.subf %19, %55 : vector<6x32xf32>
    %cst_53 = arith.constant 9.99999974E-6 : f32
    %57 = vector.broadcast %cst_53 : f32 to vector<6x1xf32>
    %58 = arith.addf %54, %57 : vector<6x1xf32>
    %59 = math.rsqrt %58 : vector<6x1xf32>
    %60 = vector.broadcast %59 : vector<6x1xf32> to vector<6x32xf32>
    %61 = arith.mulf %56, %60 : vector<6x32xf32>
    %62 = vector.broadcast %21 : vector<1x32xf32> to vector<6x32xf32>
    %63 = arith.mulf %61, %62 : vector<6x32xf32>
    %64 = vector.broadcast %23 : vector<1x32xf32> to vector<6x32xf32>
    %65 = arith.addf %63, %64 : vector<6x32xf32>
    %cst_54 = arith.constant dense<0.000000e+00> : vector<6x96xf32>
    %66 = tpu.matmul %65, %25, %cst_54 {dimension_numbers = #tpu.dot_dimension_numbers<[1], [0], [0], [1], [0, 0, 1, 1], [], []>} : vector<6x32xf32>, vector<32x96xf32>, vector<6x96xf32> -> vector<6x96xf32>
    %67 = vector.broadcast %27 : vector<1x96xf32> to vector<6x96xf32>
    %68 = arith.addf %66, %67 : vector<6x96xf32>
    %69 = vector.extract_strided_slice %68 {offsets = [0, 0], sizes = [6, 32], strides = [1, 1]} : vector<6x96xf32> to vector<6x32xf32>
    %cst_55 = arith.constant 0.353553385 : f32
    %70 = vector.broadcast %cst_55 : f32 to vector<6x32xf32>
    %71 = arith.mulf %69, %70 : vector<6x32xf32>
    %72 = vector.extract_strided_slice %68 {offsets = [0, 32], sizes = [6, 32], strides = [1, 1]} : vector<6x96xf32> to vector<6x32xf32>
    %73 = vector.extract_strided_slice %68 {offsets = [0, 64], sizes = [6, 32], strides = [1, 1]} : vector<6x96xf32> to vector<6x32xf32>
    %74 = vector.extract_strided_slice %71 {offsets = [0, 0], sizes = [3, 32], strides = [1, 1]} : vector<6x32xf32> to vector<3x32xf32>
    %75 = vector.extract_strided_slice %72 {offsets = [0, 0], sizes = [3, 32], strides = [1, 1]} : vector<6x32xf32> to vector<3x32xf32>
    %76 = vector.extract_strided_slice %73 {offsets = [0, 0], sizes = [3, 32], strides = [1, 1]} : vector<6x32xf32> to vector<3x32xf32>
    %77 = vector.extract_strided_slice %74 {offsets = [0, 0], sizes = [3, 8], strides = [1, 1]} : vector<3x32xf32> to vector<3x8xf32>
    %78 = vector.extract_strided_slice %75 {offsets = [0, 0], sizes = [3, 8], strides = [1, 1]} : vector<3x32xf32> to vector<3x8xf32>
    %cst_56 = arith.constant dense<0.000000e+00> : vector<3x3xf32>
    %79 = tpu.matmul %77, %78, %cst_56 {dimension_numbers = #tpu.dot_dimension_numbers<[1], [1], [0], [0], [0, 0, 1, 0], [], []>} : vector<3x8xf32>, vector<3x8xf32>, vector<3x3xf32> -> vector<3x3xf32>
    %cst_57 = arith.constant dense<0xFF800000> : vector<3xf32>
    %80 = vector.multi_reduction <maximumf>, %79, %cst_57 [1] : vector<3x3xf32> to vector<3xf32>
    %81 = vector.shape_cast %80 : vector<3xf32> to vector<3x1xf32>
    %82 = vector.broadcast %81 : vector<3x1xf32> to vector<3x3xf32>
    %83 = arith.subf %79, %82 : vector<3x3xf32>
    %84 = math.exp %83 : vector<3x3xf32>
    %cst_58 = arith.constant dense<0.000000e+00> : vector<3xf32>
    %85 = vector.multi_reduction <add>, %84, %cst_58 [1] : vector<3x3xf32> to vector<3xf32>
    %86 = vector.shape_cast %85 : vector<3xf32> to vector<3x1xf32>
    %87 = tpu.reciprocal %86 {approx = true} : vector<3x1xf32> -> vector<3x1xf32>
    %88 = vector.broadcast %87 : vector<3x1xf32> to vector<3x3xf32>
    %89 = arith.mulf %84, %88 : vector<3x3xf32>
    %90 = vector.extract_strided_slice %76 {offsets = [0, 0], sizes = [3, 8], strides = [1, 1]} : vector<3x32xf32> to vector<3x8xf32>
    %cst_59 = arith.constant dense<0.000000e+00> : vector<3x8xf32>
    %91 = tpu.matmul %89, %90, %cst_59 {dimension_numbers = #tpu.dot_dimension_numbers<[1], [0], [0], [1], [0, 0, 1, 1], [], []>} : vector<3x3xf32>, vector<3x8xf32>, vector<3x8xf32> -> vector<3x8xf32>
    %92 = vector.extract_strided_slice %74 {offsets = [0, 8], sizes = [3, 8], strides = [1, 1]} : vector<3x32xf32> to vector<3x8xf32>
    %93 = vector.extract_strided_slice %75 {offsets = [0, 8], sizes = [3, 8], strides = [1, 1]} : vector<3x32xf32> to vector<3x8xf32>
    %cst_60 = arith.constant dense<0.000000e+00> : vector<3x3xf32>
    %94 = tpu.matmul %92, %93, %cst_60 {dimension_numbers = #tpu.dot_dimension_numbers<[1], [1], [0], [0], [0, 0, 1, 0], [], []>} : vector<3x8xf32>, vector<3x8xf32>, vector<3x3xf32> -> vector<3x3xf32>
    %cst_61 = arith.constant dense<0xFF800000> : vector<3xf32>
    %95 = vector.multi_reduction <maximumf>, %94, %cst_61 [1] : vector<3x3xf32> to vector<3xf32>
    %96 = vector.shape_cast %95 : vector<3xf32> to vector<3x1xf32>
    %97 = vector.broadcast %96 : vector<3x1xf32> to vector<3x3xf32>
    %98 = arith.subf %94, %97 : vector<3x3xf32>
    %99 = math.exp %98 : vector<3x3xf32>
    %cst_62 = arith.constant dense<0.000000e+00> : vector<3xf32>
    %100 = vector.multi_reduction <add>, %99, %cst_62 [1] : vector<3x3xf32> to vector<3xf32>
    %101 = vector.shape_cast %100 : vector<3xf32> to vector<3x1xf32>
    %102 = tpu.reciprocal %101 {approx = true} : vector<3x1xf32> -> vector<3x1xf32>
    %103 = vector.broadcast %102 : vector<3x1xf32> to vector<3x3xf32>
    %104 = arith.mulf %99, %103 : vector<3x3xf32>
    %105 = vector.extract_strided_slice %76 {offsets = [0, 8], sizes = [3, 8], strides = [1, 1]} : vector<3x32xf32> to vector<3x8xf32>
    %cst_63 = arith.constant dense<0.000000e+00> : vector<3x8xf32>
    %106 = tpu.matmul %104, %105, %cst_63 {dimension_numbers = #tpu.dot_dimension_numbers<[1], [0], [0], [1], [0, 0, 1, 1], [], []>} : vector<3x3xf32>, vector<3x8xf32>, vector<3x8xf32> -> vector<3x8xf32>
    %107 = vector.extract_strided_slice %74 {offsets = [0, 16], sizes = [3, 8], strides = [1, 1]} : vector<3x32xf32> to vector<3x8xf32>
    %108 = vector.extract_strided_slice %75 {offsets = [0, 16], sizes = [3, 8], strides = [1, 1]} : vector<3x32xf32> to vector<3x8xf32>
    %cst_64 = arith.constant dense<0.000000e+00> : vector<3x3xf32>
    %109 = tpu.matmul %107, %108, %cst_64 {dimension_numbers = #tpu.dot_dimension_numbers<[1], [1], [0], [0], [0, 0, 1, 0], [], []>} : vector<3x8xf32>, vector<3x8xf32>, vector<3x3xf32> -> vector<3x3xf32>
    %cst_65 = arith.constant dense<0xFF800000> : vector<3xf32>
    %110 = vector.multi_reduction <maximumf>, %109, %cst_65 [1] : vector<3x3xf32> to vector<3xf32>
    %111 = vector.shape_cast %110 : vector<3xf32> to vector<3x1xf32>
    %112 = vector.broadcast %111 : vector<3x1xf32> to vector<3x3xf32>
    %113 = arith.subf %109, %112 : vector<3x3xf32>
    %114 = math.exp %113 : vector<3x3xf32>
    %cst_66 = arith.constant dense<0.000000e+00> : vector<3xf32>
    %115 = vector.multi_reduction <add>, %114, %cst_66 [1] : vector<3x3xf32> to vector<3xf32>
    %116 = vector.shape_cast %115 : vector<3xf32> to vector<3x1xf32>
    %117 = tpu.reciprocal %116 {approx = true} : vector<3x1xf32> -> vector<3x1xf32>
    %118 = vector.broadcast %117 : vector<3x1xf32> to vector<3x3xf32>
    %119 = arith.mulf %114, %118 : vector<3x3xf32>
    %120 = vector.extract_strided_slice %76 {offsets = [0, 16], sizes = [3, 8], strides = [1, 1]} : vector<3x32xf32> to vector<3x8xf32>
    %cst_67 = arith.constant dense<0.000000e+00> : vector<3x8xf32>
    %121 = tpu.matmul %119, %120, %cst_67 {dimension_numbers = #tpu.dot_dimension_numbers<[1], [0], [0], [1], [0, 0, 1, 1], [], []>} : vector<3x3xf32>, vector<3x8xf32>, vector<3x8xf32> -> vector<3x8xf32>
    %122 = vector.extract_strided_slice %74 {offsets = [0, 24], sizes = [3, 8], strides = [1, 1]} : vector<3x32xf32> to vector<3x8xf32>
    %123 = vector.extract_strided_slice %75 {offsets = [0, 24], sizes = [3, 8], strides = [1, 1]} : vector<3x32xf32> to vector<3x8xf32>
    %cst_68 = arith.constant dense<0.000000e+00> : vector<3x3xf32>
    %124 = tpu.matmul %122, %123, %cst_68 {dimension_numbers = #tpu.dot_dimension_numbers<[1], [1], [0], [0], [0, 0, 1, 0], [], []>} : vector<3x8xf32>, vector<3x8xf32>, vector<3x3xf32> -> vector<3x3xf32>
    %cst_69 = arith.constant dense<0xFF800000> : vector<3xf32>
    %125 = vector.multi_reduction <maximumf>, %124, %cst_69 [1] : vector<3x3xf32> to vector<3xf32>
    %126 = vector.shape_cast %125 : vector<3xf32> to vector<3x1xf32>
    %127 = vector.broadcast %126 : vector<3x1xf32> to vector<3x3xf32>
    %128 = arith.subf %124, %127 : vector<3x3xf32>
    %129 = math.exp %128 : vector<3x3xf32>
    %cst_70 = arith.constant dense<0.000000e+00> : vector<3xf32>
    %130 = vector.multi_reduction <add>, %129, %cst_70 [1] : vector<3x3xf32> to vector<3xf32>
    %131 = vector.shape_cast %130 : vector<3xf32> to vector<3x1xf32>
    %132 = tpu.reciprocal %131 {approx = true} : vector<3x1xf32> -> vector<3x1xf32>
    %133 = vector.broadcast %132 : vector<3x1xf32> to vector<3x3xf32>
    %134 = arith.mulf %129, %133 : vector<3x3xf32>
    %135 = vector.extract_strided_slice %76 {offsets = [0, 24], sizes = [3, 8], strides = [1, 1]} : vector<3x32xf32> to vector<3x8xf32>
    %cst_71 = arith.constant dense<0.000000e+00> : vector<3x8xf32>
    %136 = tpu.matmul %134, %135, %cst_71 {dimension_numbers = #tpu.dot_dimension_numbers<[1], [0], [0], [1], [0, 0, 1, 1], [], []>} : vector<3x3xf32>, vector<3x8xf32>, vector<3x8xf32> -> vector<3x8xf32>
    %137 = tpu.concatenate %91, %106, %121, %136 in 1 : vector<3x8xf32>, vector<3x8xf32>, vector<3x8xf32>, vector<3x8xf32> -> vector<3x32xf32>
    %138 = vector.extract_strided_slice %71 {offsets = [3, 0], sizes = [3, 32], strides = [1, 1]} : vector<6x32xf32> to vector<3x32xf32>
    %139 = vector.extract_strided_slice %72 {offsets = [3, 0], sizes = [3, 32], strides = [1, 1]} : vector<6x32xf32> to vector<3x32xf32>
    %140 = vector.extract_strided_slice %73 {offsets = [3, 0], sizes = [3, 32], strides = [1, 1]} : vector<6x32xf32> to vector<3x32xf32>
    %141 = vector.extract_strided_slice %138 {offsets = [0, 0], sizes = [3, 8], strides = [1, 1]} : vector<3x32xf32> to vector<3x8xf32>
    %142 = vector.extract_strided_slice %139 {offsets = [0, 0], sizes = [3, 8], strides = [1, 1]} : vector<3x32xf32> to vector<3x8xf32>
    %cst_72 = arith.constant dense<0.000000e+00> : vector<3x3xf32>
    %143 = tpu.matmul %141, %142, %cst_72 {dimension_numbers = #tpu.dot_dimension_numbers<[1], [1], [0], [0], [0, 0, 1, 0], [], []>} : vector<3x8xf32>, vector<3x8xf32>, vector<3x3xf32> -> vector<3x3xf32>
    %cst_73 = arith.constant dense<0xFF800000> : vector<3xf32>
    %144 = vector.multi_reduction <maximumf>, %143, %cst_73 [1] : vector<3x3xf32> to vector<3xf32>
    %145 = vector.shape_cast %144 : vector<3xf32> to vector<3x1xf32>
    %146 = vector.broadcast %145 : vector<3x1xf32> to vector<3x3xf32>
    %147 = arith.subf %143, %146 : vector<3x3xf32>
    %148 = math.exp %147 : vector<3x3xf32>
    %cst_74 = arith.constant dense<0.000000e+00> : vector<3xf32>
    %149 = vector.multi_reduction <add>, %148, %cst_74 [1] : vector<3x3xf32> to vector<3xf32>
    %150 = vector.shape_cast %149 : vector<3xf32> to vector<3x1xf32>
    %151 = tpu.reciprocal %150 {approx = true} : vector<3x1xf32> -> vector<3x1xf32>
    %152 = vector.broadcast %151 : vector<3x1xf32> to vector<3x3xf32>
    %153 = arith.mulf %148, %152 : vector<3x3xf32>
    %154 = vector.extract_strided_slice %140 {offsets = [0, 0], sizes = [3, 8], strides = [1, 1]} : vector<3x32xf32> to vector<3x8xf32>
    %cst_75 = arith.constant dense<0.000000e+00> : vector<3x8xf32>
    %155 = tpu.matmul %153, %154, %cst_75 {dimension_numbers = #tpu.dot_dimension_numbers<[1], [0], [0], [1], [0, 0, 1, 1], [], []>} : vector<3x3xf32>, vector<3x8xf32>, vector<3x8xf32> -> vector<3x8xf32>
    %156 = vector.extract_strided_slice %138 {offsets = [0, 8], sizes = [3, 8], strides = [1, 1]} : vector<3x32xf32> to vector<3x8xf32>
    %157 = vector.extract_strided_slice %139 {offsets = [0, 8], sizes = [3, 8], strides = [1, 1]} : vector<3x32xf32> to vector<3x8xf32>
    %cst_76 = arith.constant dense<0.000000e+00> : vector<3x3xf32>
    %158 = tpu.matmul %156, %157, %cst_76 {dimension_numbers = #tpu.dot_dimension_numbers<[1], [1], [0], [0], [0, 0, 1, 0], [], []>} : vector<3x8xf32>, vector<3x8xf32>, vector<3x3xf32> -> vector<3x3xf32>
    %cst_77 = arith.constant dense<0xFF800000> : vector<3xf32>
    %159 = vector.multi_reduction <maximumf>, %158, %cst_77 [1] : vector<3x3xf32> to vector<3xf32>
    %160 = vector.shape_cast %159 : vector<3xf32> to vector<3x1xf32>
    %161 = vector.broadcast %160 : vector<3x1xf32> to vector<3x3xf32>
    %162 = arith.subf %158, %161 : vector<3x3xf32>
    %163 = math.exp %162 : vector<3x3xf32>
    %cst_78 = arith.constant dense<0.000000e+00> : vector<3xf32>
    %164 = vector.multi_reduction <add>, %163, %cst_78 [1] : vector<3x3xf32> to vector<3xf32>
    %165 = vector.shape_cast %164 : vector<3xf32> to vector<3x1xf32>
    %166 = tpu.reciprocal %165 {approx = true} : vector<3x1xf32> -> vector<3x1xf32>
    %167 = vector.broadcast %166 : vector<3x1xf32> to vector<3x3xf32>
    %168 = arith.mulf %163, %167 : vector<3x3xf32>
    %169 = vector.extract_strided_slice %140 {offsets = [0, 8], sizes = [3, 8], strides = [1, 1]} : vector<3x32xf32> to vector<3x8xf32>
    %cst_79 = arith.constant dense<0.000000e+00> : vector<3x8xf32>
    %170 = tpu.matmul %168, %169, %cst_79 {dimension_numbers = #tpu.dot_dimension_numbers<[1], [0], [0], [1], [0, 0, 1, 1], [], []>} : vector<3x3xf32>, vector<3x8xf32>, vector<3x8xf32> -> vector<3x8xf32>
    %171 = vector.extract_strided_slice %138 {offsets = [0, 16], sizes = [3, 8], strides = [1, 1]} : vector<3x32xf32> to vector<3x8xf32>
    %172 = vector.extract_strided_slice %139 {offsets = [0, 16], sizes = [3, 8], strides = [1, 1]} : vector<3x32xf32> to vector<3x8xf32>
    %cst_80 = arith.constant dense<0.000000e+00> : vector<3x3xf32>
    %173 = tpu.matmul %171, %172, %cst_80 {dimension_numbers = #tpu.dot_dimension_numbers<[1], [1], [0], [0], [0, 0, 1, 0], [], []>} : vector<3x8xf32>, vector<3x8xf32>, vector<3x3xf32> -> vector<3x3xf32>
    %cst_81 = arith.constant dense<0xFF800000> : vector<3xf32>
    %174 = vector.multi_reduction <maximumf>, %173, %cst_81 [1] : vector<3x3xf32> to vector<3xf32>
    %175 = vector.shape_cast %174 : vector<3xf32> to vector<3x1xf32>
    %176 = vector.broadcast %175 : vector<3x1xf32> to vector<3x3xf32>
    %177 = arith.subf %173, %176 : vector<3x3xf32>
    %178 = math.exp %177 : vector<3x3xf32>
    %cst_82 = arith.constant dense<0.000000e+00> : vector<3xf32>
    %179 = vector.multi_reduction <add>, %178, %cst_82 [1] : vector<3x3xf32> to vector<3xf32>
    %180 = vector.shape_cast %179 : vector<3xf32> to vector<3x1xf32>
    %181 = tpu.reciprocal %180 {approx = true} : vector<3x1xf32> -> vector<3x1xf32>
    %182 = vector.broadcast %181 : vector<3x1xf32> to vector<3x3xf32>
    %183 = arith.mulf %178, %182 : vector<3x3xf32>
    %184 = vector.extract_strided_slice %140 {offsets = [0, 16], sizes = [3, 8], strides = [1, 1]} : vector<3x32xf32> to vector<3x8xf32>
    %cst_83 = arith.constant dense<0.000000e+00> : vector<3x8xf32>
    %185 = tpu.matmul %183, %184, %cst_83 {dimension_numbers = #tpu.dot_dimension_numbers<[1], [0], [0], [1], [0, 0, 1, 1], [], []>} : vector<3x3xf32>, vector<3x8xf32>, vector<3x8xf32> -> vector<3x8xf32>
    %186 = vector.extract_strided_slice %138 {offsets = [0, 24], sizes = [3, 8], strides = [1, 1]} : vector<3x32xf32> to vector<3x8xf32>
    %187 = vector.extract_strided_slice %139 {offsets = [0, 24], sizes = [3, 8], strides = [1, 1]} : vector<3x32xf32> to vector<3x8xf32>
    %cst_84 = arith.constant dense<0.000000e+00> : vector<3x3xf32>
    %188 = tpu.matmul %186, %187, %cst_84 {dimension_numbers = #tpu.dot_dimension_numbers<[1], [1], [0], [0], [0, 0, 1, 0], [], []>} : vector<3x8xf32>, vector<3x8xf32>, vector<3x3xf32> -> vector<3x3xf32>
    %cst_85 = arith.constant dense<0xFF800000> : vector<3xf32>
    %189 = vector.multi_reduction <maximumf>, %188, %cst_85 [1] : vector<3x3xf32> to vector<3xf32>
    %190 = vector.shape_cast %189 : vector<3xf32> to vector<3x1xf32>
    %191 = vector.broadcast %190 : vector<3x1xf32> to vector<3x3xf32>
    %192 = arith.subf %188, %191 : vector<3x3xf32>
    %193 = math.exp %192 : vector<3x3xf32>
    %cst_86 = arith.constant dense<0.000000e+00> : vector<3xf32>
    %194 = vector.multi_reduction <add>, %193, %cst_86 [1] : vector<3x3xf32> to vector<3xf32>
    %195 = vector.shape_cast %194 : vector<3xf32> to vector<3x1xf32>
    %196 = tpu.reciprocal %195 {approx = true} : vector<3x1xf32> -> vector<3x1xf32>
    %197 = vector.broadcast %196 : vector<3x1xf32> to vector<3x3xf32>
    %198 = arith.mulf %193, %197 : vector<3x3xf32>
    %199 = vector.extract_strided_slice %140 {offsets = [0, 24], sizes = [3, 8], strides = [1, 1]} : vector<3x32xf32> to vector<3x8xf32>
    %cst_87 = arith.constant dense<0.000000e+00> : vector<3x8xf32>
    %200 = tpu.matmul %198, %199, %cst_87 {dimension_numbers = #tpu.dot_dimension_numbers<[1], [0], [0], [1], [0, 0, 1, 1], [], []>} : vector<3x3xf32>, vector<3x8xf32>, vector<3x8xf32> -> vector<3x8xf32>
    %201 = tpu.concatenate %155, %170, %185, %200 in 1 : vector<3x8xf32>, vector<3x8xf32>, vector<3x8xf32>, vector<3x8xf32> -> vector<3x32xf32>
    %202 = tpu.concatenate %137, %201 in 0 : vector<3x32xf32>, vector<3x32xf32> -> vector<6x32xf32>
    %cst_88 = arith.constant dense<0.000000e+00> : vector<6x32xf32>
    %203 = tpu.matmul %202, %29, %cst_88 {dimension_numbers = #tpu.dot_dimension_numbers<[1], [0], [0], [1], [0, 0, 1, 1], [], []>} : vector<6x32xf32>, vector<32x32xf32>, vector<6x32xf32> -> vector<6x32xf32>
    %204 = arith.addf %19, %203 : vector<6x32xf32>
    %205 = vector.broadcast %31 : vector<1x32xf32> to vector<6x32xf32>
    %206 = arith.addf %204, %205 : vector<6x32xf32>
    %cst_89 = arith.constant dense<0.000000e+00> : vector<6xf32>
    %207 = vector.multi_reduction <add>, %206, %cst_89 [1] : vector<6x32xf32> to vector<6xf32>
    %208 = vector.shape_cast %207 : vector<6xf32> to vector<6x1xf32>
    %cst_90 = arith.constant 3.200000e+01 : f32
    %209 = vector.broadcast %cst_90 : f32 to vector<6x1xf32>
    %210 = arith.divf %208, %209 : vector<6x1xf32>
    %211 = vector.broadcast %210 : vector<6x1xf32> to vector<6x32xf32>
    %212 = arith.subf %206, %211 : vector<6x32xf32>
    %213 = arith.mulf %212, %212 : vector<6x32xf32>
    %cst_91 = arith.constant dense<0.000000e+00> : vector<6xf32>
    %214 = vector.multi_reduction <add>, %213, %cst_91 [1] : vector<6x32xf32> to vector<6xf32>
    %215 = vector.shape_cast %214 : vector<6xf32> to vector<6x1xf32>
    %cst_92 = arith.constant 3.200000e+01 : f32
    %216 = vector.broadcast %cst_92 : f32 to vector<6x1xf32>
    %217 = arith.divf %215, %216 : vector<6x1xf32>
    %218 = vector.broadcast %210 : vector<6x1xf32> to vector<6x32xf32>
    %219 = arith.subf %206, %218 : vector<6x32xf32>
    %cst_93 = arith.constant 9.99999974E-6 : f32
    %220 = vector.broadcast %cst_93 : f32 to vector<6x1xf32>
    %221 = arith.addf %217, %220 : vector<6x1xf32>
    %222 = math.rsqrt %221 : vector<6x1xf32>
    %223 = vector.broadcast %222 : vector<6x1xf32> to vector<6x32xf32>
    %224 = arith.mulf %219, %223 : vector<6x32xf32>
    %225 = vector.broadcast %33 : vector<1x32xf32> to vector<6x32xf32>
    %226 = arith.mulf %224, %225 : vector<6x32xf32>
    %227 = vector.broadcast %35 : vector<1x32xf32> to vector<6x32xf32>
    %228 = arith.addf %226, %227 : vector<6x32xf32>
    %cst_94 = arith.constant dense<0.000000e+00> : vector<6x128xf32>
    %229 = tpu.matmul %228, %37, %cst_94 {dimension_numbers = #tpu.dot_dimension_numbers<[1], [0], [0], [1], [0, 0, 1, 1], [], []>} : vector<6x32xf32>, vector<32x128xf32>, vector<6x128xf32> -> vector<6x128xf32>
    %230 = vector.broadcast %39 : vector<1x128xf32> to vector<6x128xf32>
    %231 = arith.addf %229, %230 : vector<6x128xf32>
    %cst_95 = arith.constant 5.000000e-01 : f32
    %232 = vector.broadcast %cst_95 : f32 to vector<6x128xf32>
    %233 = arith.mulf %232, %231 : vector<6x128xf32>
    %cst_96 = arith.constant 0.707106769 : f32
    %234 = vector.broadcast %cst_96 : f32 to vector<6x128xf32>
    %235 = arith.mulf %231, %234 : vector<6x128xf32>
    %236 = math.absf %235 : vector<6x128xf32>
    %cst_97 = arith.constant 0.327591091 : f32
    %237 = vector.broadcast %cst_97 : f32 to vector<6x128xf32>
    %238 = arith.mulf %237, %236 : vector<6x128xf32>
    %cst_98 = arith.constant 1.000000e+00 : f32
    %239 = vector.broadcast %cst_98 : f32 to vector<6x128xf32>
    %240 = arith.addf %239, %238 : vector<6x128xf32>
    %cst_99 = arith.constant 1.000000e+00 : f32
    %241 = vector.broadcast %cst_99 : f32 to vector<6x128xf32>
    %242 = arith.divf %241, %240 : vector<6x128xf32>
    %cst_100 = arith.constant 1.06140542 : f32
    %243 = vector.broadcast %cst_100 : f32 to vector<6x128xf32>
    %244 = arith.mulf %243, %242 : vector<6x128xf32>
    %cst_101 = arith.constant -1.45315206 : f32
    %245 = vector.broadcast %cst_101 : f32 to vector<6x128xf32>
    %246 = arith.addf %244, %245 : vector<6x128xf32>
    %247 = arith.mulf %246, %242 : vector<6x128xf32>
    %cst_102 = arith.constant 1.42141378 : f32
    %248 = vector.broadcast %cst_102 : f32 to vector<6x128xf32>
    %249 = arith.addf %247, %248 : vector<6x128xf32>
    %250 = arith.mulf %249, %242 : vector<6x128xf32>
    %cst_103 = arith.constant -0.284496725 : f32
    %251 = vector.broadcast %cst_103 : f32 to vector<6x128xf32>
    %252 = arith.addf %250, %251 : vector<6x128xf32>
    %253 = arith.mulf %252, %242 : vector<6x128xf32>
    %cst_104 = arith.constant 0.254829586 : f32
    %254 = vector.broadcast %cst_104 : f32 to vector<6x128xf32>
    %255 = arith.addf %253, %254 : vector<6x128xf32>
    %256 = arith.mulf %255, %242 : vector<6x128xf32>
    %cst_105 = arith.constant 0.000000e+00 : f32
    %257 = vector.broadcast %cst_105 : f32 to vector<6x128xf32>
    %258 = arith.subf %257, %236 : vector<6x128xf32>
    %259 = arith.mulf %258, %236 : vector<6x128xf32>
    %260 = math.exp %259 : vector<6x128xf32>
    %261 = arith.mulf %256, %260 : vector<6x128xf32>
    %cst_106 = arith.constant 1.000000e+00 : f32
    %262 = vector.broadcast %cst_106 : f32 to vector<6x128xf32>
    %263 = arith.subf %262, %261 : vector<6x128xf32>
    %cst_107 = arith.constant 0.000000e+00 : f32
    %264 = vector.broadcast %cst_107 : f32 to vector<6x128xf32>
    %265 = arith.cmpf oge, %235, %264 : vector<6x128xf32>
    %cst_108 = arith.constant 0.000000e+00 : f32
    %266 = vector.broadcast %cst_108 : f32 to vector<6x128xf32>
    %267 = arith.subf %266, %263 : vector<6x128xf32>
    %268 = arith.select %265, %263, %267 : vector<6x128xi1>, vector<6x128xf32>
    %cst_109 = arith.constant 1.000000e+00 : f32
    %269 = vector.broadcast %cst_109 : f32 to vector<6x128xf32>
    %270 = arith.addf %269, %268 : vector<6x128xf32>
    %271 = arith.mulf %233, %270 : vector<6x128xf32>
    %cst_110 = arith.constant dense<0.000000e+00> : vector<6x32xf32>
    %272 = tpu.matmul %271, %41, %cst_110 {dimension_numbers = #tpu.dot_dimension_numbers<[1], [0], [0], [1], [0, 0, 1, 1], [], []>} : vector<6x128xf32>, vector<128x32xf32>, vector<6x32xf32> -> vector<6x32xf32>
    %273 = vector.broadcast %43 : vector<1x32xf32> to vector<6x32xf32>
    %274 = arith.addf %272, %273 : vector<6x32xf32>
    %275 = arith.addf %206, %274 : vector<6x32xf32>
    %c1 = arith.constant 1 : index
    %c0_111 = arith.constant 0 : index
    %c0_112 = arith.constant 0 : index
    %276 = vector.load %arg8[%c1, %c0_111, %c0_112] : memref<2x1x32xf32, #tpu.memory_space<vmem>>, vector<1x1x32xf32>
    %277 = vector.shape_cast %276 : vector<1x1x32xf32> to vector<1x32xf32>
    %c1_113 = arith.constant 1 : index
    %c0_114 = arith.constant 0 : index
    %c0_115 = arith.constant 0 : index
    %278 = vector.load %arg9[%c1_113, %c0_114, %c0_115] : memref<2x1x32xf32, #tpu.memory_space<vmem>>, vector<1x1x32xf32>
    %279 = vector.shape_cast %278 : vector<1x1x32xf32> to vector<1x32xf32>
    %c1_116 = arith.constant 1 : index
    %c0_117 = arith.constant 0 : index
    %c0_118 = arith.constant 0 : index
    %280 = vector.load %arg10[%c1_116, %c0_117, %c0_118] : memref<2x32x96xf32, #tpu.memory_space<vmem>>, vector<1x32x96xf32>
    %281 = vector.shape_cast %280 : vector<1x32x96xf32> to vector<32x96xf32>
    %c1_119 = arith.constant 1 : index
    %c0_120 = arith.constant 0 : index
    %c0_121 = arith.constant 0 : index
    %282 = vector.load %arg11[%c1_119, %c0_120, %c0_121] : memref<2x1x96xf32, #tpu.memory_space<vmem>>, vector<1x1x96xf32>
    %283 = vector.shape_cast %282 : vector<1x1x96xf32> to vector<1x96xf32>
    %c1_122 = arith.constant 1 : index
    %c0_123 = arith.constant 0 : index
    %c0_124 = arith.constant 0 : index
    %284 = vector.load %arg12[%c1_122, %c0_123, %c0_124] : memref<2x32x32xf32, #tpu.memory_space<vmem>>, vector<1x32x32xf32>
    %285 = vector.shape_cast %284 : vector<1x32x32xf32> to vector<32x32xf32>
    %c1_125 = arith.constant 1 : index
    %c0_126 = arith.constant 0 : index
    %c0_127 = arith.constant 0 : index
    %286 = vector.load %arg13[%c1_125, %c0_126, %c0_127] : memref<2x1x32xf32, #tpu.memory_space<vmem>>, vector<1x1x32xf32>
    %287 = vector.shape_cast %286 : vector<1x1x32xf32> to vector<1x32xf32>
    %c1_128 = arith.constant 1 : index
    %c0_129 = arith.constant 0 : index
    %c0_130 = arith.constant 0 : index
    %288 = vector.load %arg14[%c1_128, %c0_129, %c0_130] : memref<2x1x32xf32, #tpu.memory_space<vmem>>, vector<1x1x32xf32>
    %289 = vector.shape_cast %288 : vector<1x1x32xf32> to vector<1x32xf32>
    %c1_131 = arith.constant 1 : index
    %c0_132 = arith.constant 0 : index
    %c0_133 = arith.constant 0 : index
    %290 = vector.load %arg15[%c1_131, %c0_132, %c0_133] : memref<2x1x32xf32, #tpu.memory_space<vmem>>, vector<1x1x32xf32>
    %291 = vector.shape_cast %290 : vector<1x1x32xf32> to vector<1x32xf32>
    %c1_134 = arith.constant 1 : index
    %c0_135 = arith.constant 0 : index
    %c0_136 = arith.constant 0 : index
    %292 = vector.load %arg16[%c1_134, %c0_135, %c0_136] : memref<2x32x128xf32, #tpu.memory_space<vmem>>, vector<1x32x128xf32>
    %293 = vector.shape_cast %292 : vector<1x32x128xf32> to vector<32x128xf32>
    %c1_137 = arith.constant 1 : index
    %c0_138 = arith.constant 0 : index
    %c0_139 = arith.constant 0 : index
    %294 = vector.load %arg17[%c1_137, %c0_138, %c0_139] : memref<2x1x128xf32, #tpu.memory_space<vmem>>, vector<1x1x128xf32>
    %295 = vector.shape_cast %294 : vector<1x1x128xf32> to vector<1x128xf32>
    %c1_140 = arith.constant 1 : index
    %c0_141 = arith.constant 0 : index
    %c0_142 = arith.constant 0 : index
    %296 = vector.load %arg18[%c1_140, %c0_141, %c0_142] : memref<2x128x32xf32, #tpu.memory_space<vmem>>, vector<1x128x32xf32>
    %297 = vector.shape_cast %296 : vector<1x128x32xf32> to vector<128x32xf32>
    %c1_143 = arith.constant 1 : index
    %c0_144 = arith.constant 0 : index
    %c0_145 = arith.constant 0 : index
    %298 = vector.load %arg19[%c1_143, %c0_144, %c0_145] : memref<2x1x32xf32, #tpu.memory_space<vmem>>, vector<1x1x32xf32>
    %299 = vector.shape_cast %298 : vector<1x1x32xf32> to vector<1x32xf32>
    %cst_146 = arith.constant dense<0.000000e+00> : vector<6xf32>
    %300 = vector.multi_reduction <add>, %275, %cst_146 [1] : vector<6x32xf32> to vector<6xf32>
    %301 = vector.shape_cast %300 : vector<6xf32> to vector<6x1xf32>
    %cst_147 = arith.constant 3.200000e+01 : f32
    %302 = vector.broadcast %cst_147 : f32 to vector<6x1xf32>
    %303 = arith.divf %301, %302 : vector<6x1xf32>
    %304 = vector.broadcast %303 : vector<6x1xf32> to vector<6x32xf32>
    %305 = arith.subf %275, %304 : vector<6x32xf32>
    %306 = arith.mulf %305, %305 : vector<6x32xf32>
    %cst_148 = arith.constant dense<0.000000e+00> : vector<6xf32>
    %307 = vector.multi_reduction <add>, %306, %cst_148 [1] : vector<6x32xf32> to vector<6xf32>
    %308 = vector.shape_cast %307 : vector<6xf32> to vector<6x1xf32>
    %cst_149 = arith.constant 3.200000e+01 : f32
    %309 = vector.broadcast %cst_149 : f32 to vector<6x1xf32>
    %310 = arith.divf %308, %309 : vector<6x1xf32>
    %311 = vector.broadcast %303 : vector<6x1xf32> to vector<6x32xf32>
    %312 = arith.subf %275, %311 : vector<6x32xf32>
    %cst_150 = arith.constant 9.99999974E-6 : f32
    %313 = vector.broadcast %cst_150 : f32 to vector<6x1xf32>
    %314 = arith.addf %310, %313 : vector<6x1xf32>
    %315 = math.rsqrt %314 : vector<6x1xf32>
    %316 = vector.broadcast %315 : vector<6x1xf32> to vector<6x32xf32>
    %317 = arith.mulf %312, %316 : vector<6x32xf32>
    %318 = vector.broadcast %277 : vector<1x32xf32> to vector<6x32xf32>
    %319 = arith.mulf %317, %318 : vector<6x32xf32>
    %320 = vector.broadcast %279 : vector<1x32xf32> to vector<6x32xf32>
    %321 = arith.addf %319, %320 : vector<6x32xf32>
    %cst_151 = arith.constant dense<0.000000e+00> : vector<6x96xf32>
    %322 = tpu.matmul %321, %281, %cst_151 {dimension_numbers = #tpu.dot_dimension_numbers<[1], [0], [0], [1], [0, 0, 1, 1], [], []>} : vector<6x32xf32>, vector<32x96xf32>, vector<6x96xf32> -> vector<6x96xf32>
    %323 = vector.broadcast %283 : vector<1x96xf32> to vector<6x96xf32>
    %324 = arith.addf %322, %323 : vector<6x96xf32>
    %325 = vector.extract_strided_slice %324 {offsets = [0, 0], sizes = [6, 32], strides = [1, 1]} : vector<6x96xf32> to vector<6x32xf32>
    %cst_152 = arith.constant 0.353553385 : f32
    %326 = vector.broadcast %cst_152 : f32 to vector<6x32xf32>
    %327 = arith.mulf %325, %326 : vector<6x32xf32>
    %328 = vector.extract_strided_slice %324 {offsets = [0, 32], sizes = [6, 32], strides = [1, 1]} : vector<6x96xf32> to vector<6x32xf32>
    %329 = vector.extract_strided_slice %324 {offsets = [0, 64], sizes = [6, 32], strides = [1, 1]} : vector<6x96xf32> to vector<6x32xf32>
    %330 = vector.extract_strided_slice %327 {offsets = [0, 0], sizes = [3, 32], strides = [1, 1]} : vector<6x32xf32> to vector<3x32xf32>
    %331 = vector.extract_strided_slice %328 {offsets = [0, 0], sizes = [3, 32], strides = [1, 1]} : vector<6x32xf32> to vector<3x32xf32>
    %332 = vector.extract_strided_slice %329 {offsets = [0, 0], sizes = [3, 32], strides = [1, 1]} : vector<6x32xf32> to vector<3x32xf32>
    %333 = vector.extract_strided_slice %330 {offsets = [0, 0], sizes = [3, 8], strides = [1, 1]} : vector<3x32xf32> to vector<3x8xf32>
    %334 = vector.extract_strided_slice %331 {offsets = [0, 0], sizes = [3, 8], strides = [1, 1]} : vector<3x32xf32> to vector<3x8xf32>
    %cst_153 = arith.constant dense<0.000000e+00> : vector<3x3xf32>
    %335 = tpu.matmul %333, %334, %cst_153 {dimension_numbers = #tpu.dot_dimension_numbers<[1], [1], [0], [0], [0, 0, 1, 0], [], []>} : vector<3x8xf32>, vector<3x8xf32>, vector<3x3xf32> -> vector<3x3xf32>
    %cst_154 = arith.constant dense<0xFF800000> : vector<3xf32>
    %336 = vector.multi_reduction <maximumf>, %335, %cst_154 [1] : vector<3x3xf32> to vector<3xf32>
    %337 = vector.shape_cast %336 : vector<3xf32> to vector<3x1xf32>
    %338 = vector.broadcast %337 : vector<3x1xf32> to vector<3x3xf32>
    %339 = arith.subf %335, %338 : vector<3x3xf32>
    %340 = math.exp %339 : vector<3x3xf32>
    %cst_155 = arith.constant dense<0.000000e+00> : vector<3xf32>
    %341 = vector.multi_reduction <add>, %340, %cst_155 [1] : vector<3x3xf32> to vector<3xf32>
    %342 = vector.shape_cast %341 : vector<3xf32> to vector<3x1xf32>
    %343 = tpu.reciprocal %342 {approx = true} : vector<3x1xf32> -> vector<3x1xf32>
    %344 = vector.broadcast %343 : vector<3x1xf32> to vector<3x3xf32>
    %345 = arith.mulf %340, %344 : vector<3x3xf32>
    %346 = vector.extract_strided_slice %332 {offsets = [0, 0], sizes = [3, 8], strides = [1, 1]} : vector<3x32xf32> to vector<3x8xf32>
    %cst_156 = arith.constant dense<0.000000e+00> : vector<3x8xf32>
    %347 = tpu.matmul %345, %346, %cst_156 {dimension_numbers = #tpu.dot_dimension_numbers<[1], [0], [0], [1], [0, 0, 1, 1], [], []>} : vector<3x3xf32>, vector<3x8xf32>, vector<3x8xf32> -> vector<3x8xf32>
    %348 = vector.extract_strided_slice %330 {offsets = [0, 8], sizes = [3, 8], strides = [1, 1]} : vector<3x32xf32> to vector<3x8xf32>
    %349 = vector.extract_strided_slice %331 {offsets = [0, 8], sizes = [3, 8], strides = [1, 1]} : vector<3x32xf32> to vector<3x8xf32>
    %cst_157 = arith.constant dense<0.000000e+00> : vector<3x3xf32>
    %350 = tpu.matmul %348, %349, %cst_157 {dimension_numbers = #tpu.dot_dimension_numbers<[1], [1], [0], [0], [0, 0, 1, 0], [], []>} : vector<3x8xf32>, vector<3x8xf32>, vector<3x3xf32> -> vector<3x3xf32>
    %cst_158 = arith.constant dense<0xFF800000> : vector<3xf32>
    %351 = vector.multi_reduction <maximumf>, %350, %cst_158 [1] : vector<3x3xf32> to vector<3xf32>
    %352 = vector.shape_cast %351 : vector<3xf32> to vector<3x1xf32>
    %353 = vector.broadcast %352 : vector<3x1xf32> to vector<3x3xf32>
    %354 = arith.subf %350, %353 : vector<3x3xf32>
    %355 = math.exp %354 : vector<3x3xf32>
    %cst_159 = arith.constant dense<0.000000e+00> : vector<3xf32>
    %356 = vector.multi_reduction <add>, %355, %cst_159 [1] : vector<3x3xf32> to vector<3xf32>
    %357 = vector.shape_cast %356 : vector<3xf32> to vector<3x1xf32>
    %358 = tpu.reciprocal %357 {approx = true} : vector<3x1xf32> -> vector<3x1xf32>
    %359 = vector.broadcast %358 : vector<3x1xf32> to vector<3x3xf32>
    %360 = arith.mulf %355, %359 : vector<3x3xf32>
    %361 = vector.extract_strided_slice %332 {offsets = [0, 8], sizes = [3, 8], strides = [1, 1]} : vector<3x32xf32> to vector<3x8xf32>
    %cst_160 = arith.constant dense<0.000000e+00> : vector<3x8xf32>
    %362 = tpu.matmul %360, %361, %cst_160 {dimension_numbers = #tpu.dot_dimension_numbers<[1], [0], [0], [1], [0, 0, 1, 1], [], []>} : vector<3x3xf32>, vector<3x8xf32>, vector<3x8xf32> -> vector<3x8xf32>
    %363 = vector.extract_strided_slice %330 {offsets = [0, 16], sizes = [3, 8], strides = [1, 1]} : vector<3x32xf32> to vector<3x8xf32>
    %364 = vector.extract_strided_slice %331 {offsets = [0, 16], sizes = [3, 8], strides = [1, 1]} : vector<3x32xf32> to vector<3x8xf32>
    %cst_161 = arith.constant dense<0.000000e+00> : vector<3x3xf32>
    %365 = tpu.matmul %363, %364, %cst_161 {dimension_numbers = #tpu.dot_dimension_numbers<[1], [1], [0], [0], [0, 0, 1, 0], [], []>} : vector<3x8xf32>, vector<3x8xf32>, vector<3x3xf32> -> vector<3x3xf32>
    %cst_162 = arith.constant dense<0xFF800000> : vector<3xf32>
    %366 = vector.multi_reduction <maximumf>, %365, %cst_162 [1] : vector<3x3xf32> to vector<3xf32>
    %367 = vector.shape_cast %366 : vector<3xf32> to vector<3x1xf32>
    %368 = vector.broadcast %367 : vector<3x1xf32> to vector<3x3xf32>
    %369 = arith.subf %365, %368 : vector<3x3xf32>
    %370 = math.exp %369 : vector<3x3xf32>
    %cst_163 = arith.constant dense<0.000000e+00> : vector<3xf32>
    %371 = vector.multi_reduction <add>, %370, %cst_163 [1] : vector<3x3xf32> to vector<3xf32>
    %372 = vector.shape_cast %371 : vector<3xf32> to vector<3x1xf32>
    %373 = tpu.reciprocal %372 {approx = true} : vector<3x1xf32> -> vector<3x1xf32>
    %374 = vector.broadcast %373 : vector<3x1xf32> to vector<3x3xf32>
    %375 = arith.mulf %370, %374 : vector<3x3xf32>
    %376 = vector.extract_strided_slice %332 {offsets = [0, 16], sizes = [3, 8], strides = [1, 1]} : vector<3x32xf32> to vector<3x8xf32>
    %cst_164 = arith.constant dense<0.000000e+00> : vector<3x8xf32>
    %377 = tpu.matmul %375, %376, %cst_164 {dimension_numbers = #tpu.dot_dimension_numbers<[1], [0], [0], [1], [0, 0, 1, 1], [], []>} : vector<3x3xf32>, vector<3x8xf32>, vector<3x8xf32> -> vector<3x8xf32>
    %378 = vector.extract_strided_slice %330 {offsets = [0, 24], sizes = [3, 8], strides = [1, 1]} : vector<3x32xf32> to vector<3x8xf32>
    %379 = vector.extract_strided_slice %331 {offsets = [0, 24], sizes = [3, 8], strides = [1, 1]} : vector<3x32xf32> to vector<3x8xf32>
    %cst_165 = arith.constant dense<0.000000e+00> : vector<3x3xf32>
    %380 = tpu.matmul %378, %379, %cst_165 {dimension_numbers = #tpu.dot_dimension_numbers<[1], [1], [0], [0], [0, 0, 1, 0], [], []>} : vector<3x8xf32>, vector<3x8xf32>, vector<3x3xf32> -> vector<3x3xf32>
    %cst_166 = arith.constant dense<0xFF800000> : vector<3xf32>
    %381 = vector.multi_reduction <maximumf>, %380, %cst_166 [1] : vector<3x3xf32> to vector<3xf32>
    %382 = vector.shape_cast %381 : vector<3xf32> to vector<3x1xf32>
    %383 = vector.broadcast %382 : vector<3x1xf32> to vector<3x3xf32>
    %384 = arith.subf %380, %383 : vector<3x3xf32>
    %385 = math.exp %384 : vector<3x3xf32>
    %cst_167 = arith.constant dense<0.000000e+00> : vector<3xf32>
    %386 = vector.multi_reduction <add>, %385, %cst_167 [1] : vector<3x3xf32> to vector<3xf32>
    %387 = vector.shape_cast %386 : vector<3xf32> to vector<3x1xf32>
    %388 = tpu.reciprocal %387 {approx = true} : vector<3x1xf32> -> vector<3x1xf32>
    %389 = vector.broadcast %388 : vector<3x1xf32> to vector<3x3xf32>
    %390 = arith.mulf %385, %389 : vector<3x3xf32>
    %391 = vector.extract_strided_slice %332 {offsets = [0, 24], sizes = [3, 8], strides = [1, 1]} : vector<3x32xf32> to vector<3x8xf32>
    %cst_168 = arith.constant dense<0.000000e+00> : vector<3x8xf32>
    %392 = tpu.matmul %390, %391, %cst_168 {dimension_numbers = #tpu.dot_dimension_numbers<[1], [0], [0], [1], [0, 0, 1, 1], [], []>} : vector<3x3xf32>, vector<3x8xf32>, vector<3x8xf32> -> vector<3x8xf32>
    %393 = tpu.concatenate %347, %362, %377, %392 in 1 : vector<3x8xf32>, vector<3x8xf32>, vector<3x8xf32>, vector<3x8xf32> -> vector<3x32xf32>
    %394 = vector.extract_strided_slice %327 {offsets = [3, 0], sizes = [3, 32], strides = [1, 1]} : vector<6x32xf32> to vector<3x32xf32>
    %395 = vector.extract_strided_slice %328 {offsets = [3, 0], sizes = [3, 32], strides = [1, 1]} : vector<6x32xf32> to vector<3x32xf32>
    %396 = vector.extract_strided_slice %329 {offsets = [3, 0], sizes = [3, 32], strides = [1, 1]} : vector<6x32xf32> to vector<3x32xf32>
    %397 = vector.extract_strided_slice %394 {offsets = [0, 0], sizes = [3, 8], strides = [1, 1]} : vector<3x32xf32> to vector<3x8xf32>
    %398 = vector.extract_strided_slice %395 {offsets = [0, 0], sizes = [3, 8], strides = [1, 1]} : vector<3x32xf32> to vector<3x8xf32>
    %cst_169 = arith.constant dense<0.000000e+00> : vector<3x3xf32>
    %399 = tpu.matmul %397, %398, %cst_169 {dimension_numbers = #tpu.dot_dimension_numbers<[1], [1], [0], [0], [0, 0, 1, 0], [], []>} : vector<3x8xf32>, vector<3x8xf32>, vector<3x3xf32> -> vector<3x3xf32>
    %cst_170 = arith.constant dense<0xFF800000> : vector<3xf32>
    %400 = vector.multi_reduction <maximumf>, %399, %cst_170 [1] : vector<3x3xf32> to vector<3xf32>
    %401 = vector.shape_cast %400 : vector<3xf32> to vector<3x1xf32>
    %402 = vector.broadcast %401 : vector<3x1xf32> to vector<3x3xf32>
    %403 = arith.subf %399, %402 : vector<3x3xf32>
    %404 = math.exp %403 : vector<3x3xf32>
    %cst_171 = arith.constant dense<0.000000e+00> : vector<3xf32>
    %405 = vector.multi_reduction <add>, %404, %cst_171 [1] : vector<3x3xf32> to vector<3xf32>
    %406 = vector.shape_cast %405 : vector<3xf32> to vector<3x1xf32>
    %407 = tpu.reciprocal %406 {approx = true} : vector<3x1xf32> -> vector<3x1xf32>
    %408 = vector.broadcast %407 : vector<3x1xf32> to vector<3x3xf32>
    %409 = arith.mulf %404, %408 : vector<3x3xf32>
    %410 = vector.extract_strided_slice %396 {offsets = [0, 0], sizes = [3, 8], strides = [1, 1]} : vector<3x32xf32> to vector<3x8xf32>
    %cst_172 = arith.constant dense<0.000000e+00> : vector<3x8xf32>
    %411 = tpu.matmul %409, %410, %cst_172 {dimension_numbers = #tpu.dot_dimension_numbers<[1], [0], [0], [1], [0, 0, 1, 1], [], []>} : vector<3x3xf32>, vector<3x8xf32>, vector<3x8xf32> -> vector<3x8xf32>
    %412 = vector.extract_strided_slice %394 {offsets = [0, 8], sizes = [3, 8], strides = [1, 1]} : vector<3x32xf32> to vector<3x8xf32>
    %413 = vector.extract_strided_slice %395 {offsets = [0, 8], sizes = [3, 8], strides = [1, 1]} : vector<3x32xf32> to vector<3x8xf32>
    %cst_173 = arith.constant dense<0.000000e+00> : vector<3x3xf32>
    %414 = tpu.matmul %412, %413, %cst_173 {dimension_numbers = #tpu.dot_dimension_numbers<[1], [1], [0], [0], [0, 0, 1, 0], [], []>} : vector<3x8xf32>, vector<3x8xf32>, vector<3x3xf32> -> vector<3x3xf32>
    %cst_174 = arith.constant dense<0xFF800000> : vector<3xf32>
    %415 = vector.multi_reduction <maximumf>, %414, %cst_174 [1] : vector<3x3xf32> to vector<3xf32>
    %416 = vector.shape_cast %415 : vector<3xf32> to vector<3x1xf32>
    %417 = vector.broadcast %416 : vector<3x1xf32> to vector<3x3xf32>
    %418 = arith.subf %414, %417 : vector<3x3xf32>
    %419 = math.exp %418 : vector<3x3xf32>
    %cst_175 = arith.constant dense<0.000000e+00> : vector<3xf32>
    %420 = vector.multi_reduction <add>, %419, %cst_175 [1] : vector<3x3xf32> to vector<3xf32>
    %421 = vector.shape_cast %420 : vector<3xf32> to vector<3x1xf32>
    %422 = tpu.reciprocal %421 {approx = true} : vector<3x1xf32> -> vector<3x1xf32>
    %423 = vector.broadcast %422 : vector<3x1xf32> to vector<3x3xf32>
    %424 = arith.mulf %419, %423 : vector<3x3xf32>
    %425 = vector.extract_strided_slice %396 {offsets = [0, 8], sizes = [3, 8], strides = [1, 1]} : vector<3x32xf32> to vector<3x8xf32>
    %cst_176 = arith.constant dense<0.000000e+00> : vector<3x8xf32>
    %426 = tpu.matmul %424, %425, %cst_176 {dimension_numbers = #tpu.dot_dimension_numbers<[1], [0], [0], [1], [0, 0, 1, 1], [], []>} : vector<3x3xf32>, vector<3x8xf32>, vector<3x8xf32> -> vector<3x8xf32>
    %427 = vector.extract_strided_slice %394 {offsets = [0, 16], sizes = [3, 8], strides = [1, 1]} : vector<3x32xf32> to vector<3x8xf32>
    %428 = vector.extract_strided_slice %395 {offsets = [0, 16], sizes = [3, 8], strides = [1, 1]} : vector<3x32xf32> to vector<3x8xf32>
    %cst_177 = arith.constant dense<0.000000e+00> : vector<3x3xf32>
    %429 = tpu.matmul %427, %428, %cst_177 {dimension_numbers = #tpu.dot_dimension_numbers<[1], [1], [0], [0], [0, 0, 1, 0], [], []>} : vector<3x8xf32>, vector<3x8xf32>, vector<3x3xf32> -> vector<3x3xf32>
    %cst_178 = arith.constant dense<0xFF800000> : vector<3xf32>
    %430 = vector.multi_reduction <maximumf>, %429, %cst_178 [1] : vector<3x3xf32> to vector<3xf32>
    %431 = vector.shape_cast %430 : vector<3xf32> to vector<3x1xf32>
    %432 = vector.broadcast %431 : vector<3x1xf32> to vector<3x3xf32>
    %433 = arith.subf %429, %432 : vector<3x3xf32>
    %434 = math.exp %433 : vector<3x3xf32>
    %cst_179 = arith.constant dense<0.000000e+00> : vector<3xf32>
    %435 = vector.multi_reduction <add>, %434, %cst_179 [1] : vector<3x3xf32> to vector<3xf32>
    %436 = vector.shape_cast %435 : vector<3xf32> to vector<3x1xf32>
    %437 = tpu.reciprocal %436 {approx = true} : vector<3x1xf32> -> vector<3x1xf32>
    %438 = vector.broadcast %437 : vector<3x1xf32> to vector<3x3xf32>
    %439 = arith.mulf %434, %438 : vector<3x3xf32>
    %440 = vector.extract_strided_slice %396 {offsets = [0, 16], sizes = [3, 8], strides = [1, 1]} : vector<3x32xf32> to vector<3x8xf32>
    %cst_180 = arith.constant dense<0.000000e+00> : vector<3x8xf32>
    %441 = tpu.matmul %439, %440, %cst_180 {dimension_numbers = #tpu.dot_dimension_numbers<[1], [0], [0], [1], [0, 0, 1, 1], [], []>} : vector<3x3xf32>, vector<3x8xf32>, vector<3x8xf32> -> vector<3x8xf32>
    %442 = vector.extract_strided_slice %394 {offsets = [0, 24], sizes = [3, 8], strides = [1, 1]} : vector<3x32xf32> to vector<3x8xf32>
    %443 = vector.extract_strided_slice %395 {offsets = [0, 24], sizes = [3, 8], strides = [1, 1]} : vector<3x32xf32> to vector<3x8xf32>
    %cst_181 = arith.constant dense<0.000000e+00> : vector<3x3xf32>
    %444 = tpu.matmul %442, %443, %cst_181 {dimension_numbers = #tpu.dot_dimension_numbers<[1], [1], [0], [0], [0, 0, 1, 0], [], []>} : vector<3x8xf32>, vector<3x8xf32>, vector<3x3xf32> -> vector<3x3xf32>
    %cst_182 = arith.constant dense<0xFF800000> : vector<3xf32>
    %445 = vector.multi_reduction <maximumf>, %444, %cst_182 [1] : vector<3x3xf32> to vector<3xf32>
    %446 = vector.shape_cast %445 : vector<3xf32> to vector<3x1xf32>
    %447 = vector.broadcast %446 : vector<3x1xf32> to vector<3x3xf32>
    %448 = arith.subf %444, %447 : vector<3x3xf32>
    %449 = math.exp %448 : vector<3x3xf32>
    %cst_183 = arith.constant dense<0.000000e+00> : vector<3xf32>
    %450 = vector.multi_reduction <add>, %449, %cst_183 [1] : vector<3x3xf32> to vector<3xf32>
    %451 = vector.shape_cast %450 : vector<3xf32> to vector<3x1xf32>
    %452 = tpu.reciprocal %451 {approx = true} : vector<3x1xf32> -> vector<3x1xf32>
    %453 = vector.broadcast %452 : vector<3x1xf32> to vector<3x3xf32>
    %454 = arith.mulf %449, %453 : vector<3x3xf32>
    %455 = vector.extract_strided_slice %396 {offsets = [0, 24], sizes = [3, 8], strides = [1, 1]} : vector<3x32xf32> to vector<3x8xf32>
    %cst_184 = arith.constant dense<0.000000e+00> : vector<3x8xf32>
    %456 = tpu.matmul %454, %455, %cst_184 {dimension_numbers = #tpu.dot_dimension_numbers<[1], [0], [0], [1], [0, 0, 1, 1], [], []>} : vector<3x3xf32>, vector<3x8xf32>, vector<3x8xf32> -> vector<3x8xf32>
    %457 = tpu.concatenate %411, %426, %441, %456 in 1 : vector<3x8xf32>, vector<3x8xf32>, vector<3x8xf32>, vector<3x8xf32> -> vector<3x32xf32>
    %458 = tpu.concatenate %393, %457 in 0 : vector<3x32xf32>, vector<3x32xf32> -> vector<6x32xf32>
    %cst_185 = arith.constant dense<0.000000e+00> : vector<6x32xf32>
    %459 = tpu.matmul %458, %285, %cst_185 {dimension_numbers = #tpu.dot_dimension_numbers<[1], [0], [0], [1], [0, 0, 1, 1], [], []>} : vector<6x32xf32>, vector<32x32xf32>, vector<6x32xf32> -> vector<6x32xf32>
    %460 = arith.addf %275, %459 : vector<6x32xf32>
    %461 = vector.broadcast %287 : vector<1x32xf32> to vector<6x32xf32>
    %462 = arith.addf %460, %461 : vector<6x32xf32>
    %cst_186 = arith.constant dense<0.000000e+00> : vector<6xf32>
    %463 = vector.multi_reduction <add>, %462, %cst_186 [1] : vector<6x32xf32> to vector<6xf32>
    %464 = vector.shape_cast %463 : vector<6xf32> to vector<6x1xf32>
    %cst_187 = arith.constant 3.200000e+01 : f32
    %465 = vector.broadcast %cst_187 : f32 to vector<6x1xf32>
    %466 = arith.divf %464, %465 : vector<6x1xf32>
    %467 = vector.broadcast %466 : vector<6x1xf32> to vector<6x32xf32>
    %468 = arith.subf %462, %467 : vector<6x32xf32>
    %469 = arith.mulf %468, %468 : vector<6x32xf32>
    %cst_188 = arith.constant dense<0.000000e+00> : vector<6xf32>
    %470 = vector.multi_reduction <add>, %469, %cst_188 [1] : vector<6x32xf32> to vector<6xf32>
    %471 = vector.shape_cast %470 : vector<6xf32> to vector<6x1xf32>
    %cst_189 = arith.constant 3.200000e+01 : f32
    %472 = vector.broadcast %cst_189 : f32 to vector<6x1xf32>
    %473 = arith.divf %471, %472 : vector<6x1xf32>
    %474 = vector.broadcast %466 : vector<6x1xf32> to vector<6x32xf32>
    %475 = arith.subf %462, %474 : vector<6x32xf32>
    %cst_190 = arith.constant 9.99999974E-6 : f32
    %476 = vector.broadcast %cst_190 : f32 to vector<6x1xf32>
    %477 = arith.addf %473, %476 : vector<6x1xf32>
    %478 = math.rsqrt %477 : vector<6x1xf32>
    %479 = vector.broadcast %478 : vector<6x1xf32> to vector<6x32xf32>
    %480 = arith.mulf %475, %479 : vector<6x32xf32>
    %481 = vector.broadcast %289 : vector<1x32xf32> to vector<6x32xf32>
    %482 = arith.mulf %480, %481 : vector<6x32xf32>
    %483 = vector.broadcast %291 : vector<1x32xf32> to vector<6x32xf32>
    %484 = arith.addf %482, %483 : vector<6x32xf32>
    %cst_191 = arith.constant dense<0.000000e+00> : vector<6x128xf32>
    %485 = tpu.matmul %484, %293, %cst_191 {dimension_numbers = #tpu.dot_dimension_numbers<[1], [0], [0], [1], [0, 0, 1, 1], [], []>} : vector<6x32xf32>, vector<32x128xf32>, vector<6x128xf32> -> vector<6x128xf32>
    %486 = vector.broadcast %295 : vector<1x128xf32> to vector<6x128xf32>
    %487 = arith.addf %485, %486 : vector<6x128xf32>
    %cst_192 = arith.constant 5.000000e-01 : f32
    %488 = vector.broadcast %cst_192 : f32 to vector<6x128xf32>
    %489 = arith.mulf %488, %487 : vector<6x128xf32>
    %cst_193 = arith.constant 0.707106769 : f32
    %490 = vector.broadcast %cst_193 : f32 to vector<6x128xf32>
    %491 = arith.mulf %487, %490 : vector<6x128xf32>
    %492 = math.absf %491 : vector<6x128xf32>
    %cst_194 = arith.constant 0.327591091 : f32
    %493 = vector.broadcast %cst_194 : f32 to vector<6x128xf32>
    %494 = arith.mulf %493, %492 : vector<6x128xf32>
    %cst_195 = arith.constant 1.000000e+00 : f32
    %495 = vector.broadcast %cst_195 : f32 to vector<6x128xf32>
    %496 = arith.addf %495, %494 : vector<6x128xf32>
    %cst_196 = arith.constant 1.000000e+00 : f32
    %497 = vector.broadcast %cst_196 : f32 to vector<6x128xf32>
    %498 = arith.divf %497, %496 : vector<6x128xf32>
    %cst_197 = arith.constant 1.06140542 : f32
    %499 = vector.broadcast %cst_197 : f32 to vector<6x128xf32>
    %500 = arith.mulf %499, %498 : vector<6x128xf32>
    %cst_198 = arith.constant -1.45315206 : f32
    %501 = vector.broadcast %cst_198 : f32 to vector<6x128xf32>
    %502 = arith.addf %500, %501 : vector<6x128xf32>
    %503 = arith.mulf %502, %498 : vector<6x128xf32>
    %cst_199 = arith.constant 1.42141378 : f32
    %504 = vector.broadcast %cst_199 : f32 to vector<6x128xf32>
    %505 = arith.addf %503, %504 : vector<6x128xf32>
    %506 = arith.mulf %505, %498 : vector<6x128xf32>
    %cst_200 = arith.constant -0.284496725 : f32
    %507 = vector.broadcast %cst_200 : f32 to vector<6x128xf32>
    %508 = arith.addf %506, %507 : vector<6x128xf32>
    %509 = arith.mulf %508, %498 : vector<6x128xf32>
    %cst_201 = arith.constant 0.254829586 : f32
    %510 = vector.broadcast %cst_201 : f32 to vector<6x128xf32>
    %511 = arith.addf %509, %510 : vector<6x128xf32>
    %512 = arith.mulf %511, %498 : vector<6x128xf32>
    %cst_202 = arith.constant 0.000000e+00 : f32
    %513 = vector.broadcast %cst_202 : f32 to vector<6x128xf32>
    %514 = arith.subf %513, %492 : vector<6x128xf32>
    %515 = arith.mulf %514, %492 : vector<6x128xf32>
    %516 = math.exp %515 : vector<6x128xf32>
    %517 = arith.mulf %512, %516 : vector<6x128xf32>
    %cst_203 = arith.constant 1.000000e+00 : f32
    %518 = vector.broadcast %cst_203 : f32 to vector<6x128xf32>
    %519 = arith.subf %518, %517 : vector<6x128xf32>
    %cst_204 = arith.constant 0.000000e+00 : f32
    %520 = vector.broadcast %cst_204 : f32 to vector<6x128xf32>
    %521 = arith.cmpf oge, %491, %520 : vector<6x128xf32>
    %cst_205 = arith.constant 0.000000e+00 : f32
    %522 = vector.broadcast %cst_205 : f32 to vector<6x128xf32>
    %523 = arith.subf %522, %519 : vector<6x128xf32>
    %524 = arith.select %521, %519, %523 : vector<6x128xi1>, vector<6x128xf32>
    %cst_206 = arith.constant 1.000000e+00 : f32
    %525 = vector.broadcast %cst_206 : f32 to vector<6x128xf32>
    %526 = arith.addf %525, %524 : vector<6x128xf32>
    %527 = arith.mulf %489, %526 : vector<6x128xf32>
    %cst_207 = arith.constant dense<0.000000e+00> : vector<6x32xf32>
    %528 = tpu.matmul %527, %297, %cst_207 {dimension_numbers = #tpu.dot_dimension_numbers<[1], [0], [0], [1], [0, 0, 1, 1], [], []>} : vector<6x128xf32>, vector<128x32xf32>, vector<6x32xf32> -> vector<6x32xf32>
    %529 = vector.broadcast %299 : vector<1x32xf32> to vector<6x32xf32>
    %530 = arith.addf %528, %529 : vector<6x32xf32>
    %531 = arith.addf %462, %530 : vector<6x32xf32>
    %c0_208 = arith.constant 0 : index
    %c0_209 = arith.constant 0 : index
    %532 = vector.load %arg20[%c0_208, %c0_209] : memref<1x32xf32, #tpu.memory_space<vmem>>, vector<1x32xf32>
    %c0_210 = arith.constant 0 : index
    %c0_211 = arith.constant 0 : index
    %533 = vector.load %arg21[%c0_210, %c0_211] : memref<1x32xf32, #tpu.memory_space<vmem>>, vector<1x32xf32>
    %cst_212 = arith.constant dense<0.000000e+00> : vector<6xf32>
    %534 = vector.multi_reduction <add>, %531, %cst_212 [1] : vector<6x32xf32> to vector<6xf32>
    %535 = vector.shape_cast %534 : vector<6xf32> to vector<6x1xf32>
    %cst_213 = arith.constant 3.200000e+01 : f32
    %536 = vector.broadcast %cst_213 : f32 to vector<6x1xf32>
    %537 = arith.divf %535, %536 : vector<6x1xf32>
    %538 = vector.broadcast %537 : vector<6x1xf32> to vector<6x32xf32>
    %539 = arith.subf %531, %538 : vector<6x32xf32>
    %540 = arith.mulf %539, %539 : vector<6x32xf32>
    %cst_214 = arith.constant dense<0.000000e+00> : vector<6xf32>
    %541 = vector.multi_reduction <add>, %540, %cst_214 [1] : vector<6x32xf32> to vector<6xf32>
    %542 = vector.shape_cast %541 : vector<6xf32> to vector<6x1xf32>
    %cst_215 = arith.constant 3.200000e+01 : f32
    %543 = vector.broadcast %cst_215 : f32 to vector<6x1xf32>
    %544 = arith.divf %542, %543 : vector<6x1xf32>
    %545 = vector.broadcast %537 : vector<6x1xf32> to vector<6x32xf32>
    %546 = arith.subf %531, %545 : vector<6x32xf32>
    %cst_216 = arith.constant 9.99999974E-6 : f32
    %547 = vector.broadcast %cst_216 : f32 to vector<6x1xf32>
    %548 = arith.addf %544, %547 : vector<6x1xf32>
    %549 = math.rsqrt %548 : vector<6x1xf32>
    %550 = vector.broadcast %549 : vector<6x1xf32> to vector<6x32xf32>
    %551 = arith.mulf %546, %550 : vector<6x32xf32>
    %552 = vector.broadcast %532 : vector<1x32xf32> to vector<6x32xf32>
    %553 = arith.mulf %551, %552 : vector<6x32xf32>
    %554 = vector.broadcast %533 : vector<1x32xf32> to vector<6x32xf32>
    %555 = arith.addf %553, %554 : vector<6x32xf32>
    %c0_217 = arith.constant 0 : index
    %c0_218 = arith.constant 0 : index
    %556 = vector.load %arg44[%c0_217, %c0_218] : memref<6x32xf32, #tpu.memory_space<vmem>>, vector<6x32xf32>
    tpu.vector_store %arg44[%c0_217, %c0_218], %555 {strides = array<i32>} : memref<6x32xf32, #tpu.memory_space<vmem>>, vector<6x32xf32>,
    %c0_219 = arith.constant 0 : index
    %c0_220 = arith.constant 0 : index
    %557 = vector.load %arg22[%c0_219, %c0_220] : memref<32x32xf32, #tpu.memory_space<vmem>>, vector<32x32xf32>
    %cst_221 = arith.constant dense<0.000000e+00> : vector<6x32xf32>
    %558 = tpu.matmul %555, %557, %cst_221 {dimension_numbers = #tpu.dot_dimension_numbers<[1], [0], [0], [1], [0, 0, 1, 1], [], []>} : vector<6x32xf32>, vector<32x32xf32>, vector<6x32xf32> -> vector<6x32xf32>
    %c0_222 = arith.constant 0 : index
    %c0_223 = arith.constant 0 : index
    %559 = vector.load %arg23[%c0_222, %c0_223] : memref<1x32xf32, #tpu.memory_space<vmem>>, vector<1x32xf32>
    %560 = vector.broadcast %559 : vector<1x32xf32> to vector<6x32xf32>
    %561 = arith.addf %558, %560 : vector<6x32xf32>
    %c0_224 = arith.constant 0 : index
    %c0_225 = arith.constant 0 : index
    %562 = vector.load %arg24[%c0_224, %c0_225] : memref<1x32xf32, #tpu.memory_space<vmem>>, vector<1x32xf32>
    %563 = vector.shape_cast %562 : vector<1x32xf32> to vector<1x32xf32>
    %564 = vector.broadcast %563 : vector<1x32xf32> to vector<6x32xf32>
    %c0_226 = arith.constant 0 : index
    %c0_227 = arith.constant 0 : index
    %565 = vector.load %arg2[%c0_226, %c0_227] : memref<16x8xf32, #tpu.memory_space<vmem>>, vector<16x8xf32>
    %c0_228 = arith.constant 0 : index
    %c0_229 = arith.constant 0 : index
    %566 = vector.load %arg25[%c0_228, %c0_229] : memref<9x32xf32, #tpu.memory_space<vmem>>, vector<9x32xf32>
    %567 = vector.extract_strided_slice %561 {offsets = [0, 0], sizes = [3, 32], strides = [1, 1]} : vector<6x32xf32> to vector<3x32xf32>
    %568 = vector.extract_strided_slice %567 {offsets = [1, 0], sizes = [2, 32], strides = [1, 1]} : vector<3x32xf32> to vector<2x32xf32>
    %569 = tpu.concatenate %568, %564 in 0 : vector<2x32xf32>, vector<6x32xf32> -> vector<8x32xf32>
    %570 = vector.extract_strided_slice %565 {offsets = [0, 0], sizes = [8, 8], strides = [1, 1]} : vector<16x8xf32> to vector<8x8xf32>
    %cst_230 = arith.constant dense<0.000000e+00> : vector<8x32xf32>
    %571 = tpu.matmul %570, %569, %cst_230 {dimension_numbers = #tpu.dot_dimension_numbers<[1], [0], [0], [1], [0, 0, 1, 1], [], []>} : vector<8x8xf32>, vector<8x32xf32>, vector<8x32xf32> -> vector<8x32xf32>
    %572 = vector.extract_strided_slice %567 {offsets = [0, 0], sizes = [1, 32], strides = [1, 1]} : vector<3x32xf32> to vector<1x32xf32>
    %573 = tpu.concatenate %572, %571 in 0 : vector<1x32xf32>, vector<8x32xf32> -> vector<9x32xf32>
    %574 = arith.addf %573, %566 : vector<9x32xf32>
    %575 = vector.extract_strided_slice %561 {offsets = [3, 0], sizes = [3, 32], strides = [1, 1]} : vector<6x32xf32> to vector<3x32xf32>
    %576 = vector.extract_strided_slice %575 {offsets = [1, 0], sizes = [2, 32], strides = [1, 1]} : vector<3x32xf32> to vector<2x32xf32>
    %577 = tpu.concatenate %576, %564 in 0 : vector<2x32xf32>, vector<6x32xf32> -> vector<8x32xf32>
    %578 = vector.extract_strided_slice %565 {offsets = [8, 0], sizes = [8, 8], strides = [1, 1]} : vector<16x8xf32> to vector<8x8xf32>
    %cst_231 = arith.constant dense<0.000000e+00> : vector<8x32xf32>
    %579 = tpu.matmul %578, %577, %cst_231 {dimension_numbers = #tpu.dot_dimension_numbers<[1], [0], [0], [1], [0, 0, 1, 1], [], []>} : vector<8x8xf32>, vector<8x32xf32>, vector<8x32xf32> -> vector<8x32xf32>
    %580 = vector.extract_strided_slice %575 {offsets = [0, 0], sizes = [1, 32], strides = [1, 1]} : vector<3x32xf32> to vector<1x32xf32>
    %581 = tpu.concatenate %580, %579 in 0 : vector<1x32xf32>, vector<8x32xf32> -> vector<9x32xf32>
    %582 = arith.addf %581, %566 : vector<9x32xf32>
    %583 = tpu.concatenate %574, %582 in 0 : vector<9x32xf32>, vector<9x32xf32> -> vector<18x32xf32>
    %c0_232 = arith.constant 0 : index
    %c0_233 = arith.constant 0 : index
    %c0_234 = arith.constant 0 : index
    %584 = vector.load %arg26[%c0_232, %c0_233, %c0_234] : memref<2x1x32xf32, #tpu.memory_space<vmem>>, vector<1x1x32xf32>
    %585 = vector.shape_cast %584 : vector<1x1x32xf32> to vector<1x32xf32>
    %c0_235 = arith.constant 0 : index
    %c0_236 = arith.constant 0 : index
    %c0_237 = arith.constant 0 : index
    %586 = vector.load %arg27[%c0_235, %c0_236, %c0_237] : memref<2x1x32xf32, #tpu.memory_space<vmem>>, vector<1x1x32xf32>
    %587 = vector.shape_cast %586 : vector<1x1x32xf32> to vector<1x32xf32>
    %c0_238 = arith.constant 0 : index
    %c0_239 = arith.constant 0 : index
    %c0_240 = arith.constant 0 : index
    %588 = vector.load %arg28[%c0_238, %c0_239, %c0_240] : memref<2x32x96xf32, #tpu.memory_space<vmem>>, vector<1x32x96xf32>
    %589 = vector.shape_cast %588 : vector<1x32x96xf32> to vector<32x96xf32>
    %c0_241 = arith.constant 0 : index
    %c0_242 = arith.constant 0 : index
    %c0_243 = arith.constant 0 : index
    %590 = vector.load %arg29[%c0_241, %c0_242, %c0_243] : memref<2x1x96xf32, #tpu.memory_space<vmem>>, vector<1x1x96xf32>
    %591 = vector.shape_cast %590 : vector<1x1x96xf32> to vector<1x96xf32>
    %c0_244 = arith.constant 0 : index
    %c0_245 = arith.constant 0 : index
    %c0_246 = arith.constant 0 : index
    %592 = vector.load %arg30[%c0_244, %c0_245, %c0_246] : memref<2x32x32xf32, #tpu.memory_space<vmem>>, vector<1x32x32xf32>
    %593 = vector.shape_cast %592 : vector<1x32x32xf32> to vector<32x32xf32>
    %c0_247 = arith.constant 0 : index
    %c0_248 = arith.constant 0 : index
    %c0_249 = arith.constant 0 : index
    %594 = vector.load %arg31[%c0_247, %c0_248, %c0_249] : memref<2x1x32xf32, #tpu.memory_space<vmem>>, vector<1x1x32xf32>
    %595 = vector.shape_cast %594 : vector<1x1x32xf32> to vector<1x32xf32>
    %c0_250 = arith.constant 0 : index
    %c0_251 = arith.constant 0 : index
    %c0_252 = arith.constant 0 : index
    %596 = vector.load %arg32[%c0_250, %c0_251, %c0_252] : memref<2x1x32xf32, #tpu.memory_space<vmem>>, vector<1x1x32xf32>
    %597 = vector.shape_cast %596 : vector<1x1x32xf32> to vector<1x32xf32>
    %c0_253 = arith.constant 0 : index
    %c0_254 = arith.constant 0 : index
    %c0_255 = arith.constant 0 : index
    %598 = vector.load %arg33[%c0_253, %c0_254, %c0_255] : memref<2x1x32xf32, #tpu.memory_space<vmem>>, vector<1x1x32xf32>
    %599 = vector.shape_cast %598 : vector<1x1x32xf32> to vector<1x32xf32>
    %c0_256 = arith.constant 0 : index
    %c0_257 = arith.constant 0 : index
    %c0_258 = arith.constant 0 : index
    %600 = vector.load %arg34[%c0_256, %c0_257, %c0_258] : memref<2x32x128xf32, #tpu.memory_space<vmem>>, vector<1x32x128xf32>
    %601 = vector.shape_cast %600 : vector<1x32x128xf32> to vector<32x128xf32>
    %c0_259 = arith.constant 0 : index
    %c0_260 = arith.constant 0 : index
    %c0_261 = arith.constant 0 : index
    %602 = vector.load %arg35[%c0_259, %c0_260, %c0_261] : memref<2x1x128xf32, #tpu.memory_space<vmem>>, vector<1x1x128xf32>
    %603 = vector.shape_cast %602 : vector<1x1x128xf32> to vector<1x128xf32>
    %c0_262 = arith.constant 0 : index
    %c0_263 = arith.constant 0 : index
    %c0_264 = arith.constant 0 : index
    %604 = vector.load %arg36[%c0_262, %c0_263, %c0_264] : memref<2x128x32xf32, #tpu.memory_space<vmem>>, vector<1x128x32xf32>
    %605 = vector.shape_cast %604 : vector<1x128x32xf32> to vector<128x32xf32>
    %c0_265 = arith.constant 0 : index
    %c0_266 = arith.constant 0 : index
    %c0_267 = arith.constant 0 : index
    %606 = vector.load %arg37[%c0_265, %c0_266, %c0_267] : memref<2x1x32xf32, #tpu.memory_space<vmem>>, vector<1x1x32xf32>
    %607 = vector.shape_cast %606 : vector<1x1x32xf32> to vector<1x32xf32>
    %cst_268 = arith.constant dense<0.000000e+00> : vector<18xf32>
    %608 = vector.multi_reduction <add>, %583, %cst_268 [1] : vector<18x32xf32> to vector<18xf32>
    %609 = vector.shape_cast %608 : vector<18xf32> to vector<18x1xf32>
    %cst_269 = arith.constant 3.200000e+01 : f32
    %610 = vector.broadcast %cst_269 : f32 to vector<18x1xf32>
    %611 = arith.divf %609, %610 : vector<18x1xf32>
    %612 = vector.broadcast %611 : vector<18x1xf32> to vector<18x32xf32>
    %613 = arith.subf %583, %612 : vector<18x32xf32>
    %614 = arith.mulf %613, %613 : vector<18x32xf32>
    %cst_270 = arith.constant dense<0.000000e+00> : vector<18xf32>
    %615 = vector.multi_reduction <add>, %614, %cst_270 [1] : vector<18x32xf32> to vector<18xf32>
    %616 = vector.shape_cast %615 : vector<18xf32> to vector<18x1xf32>
    %cst_271 = arith.constant 3.200000e+01 : f32
    %617 = vector.broadcast %cst_271 : f32 to vector<18x1xf32>
    %618 = arith.divf %616, %617 : vector<18x1xf32>
    %619 = vector.broadcast %611 : vector<18x1xf32> to vector<18x32xf32>
    %620 = arith.subf %583, %619 : vector<18x32xf32>
    %cst_272 = arith.constant 9.99999974E-6 : f32
    %621 = vector.broadcast %cst_272 : f32 to vector<18x1xf32>
    %622 = arith.addf %618, %621 : vector<18x1xf32>
    %623 = math.rsqrt %622 : vector<18x1xf32>
    %624 = vector.broadcast %623 : vector<18x1xf32> to vector<18x32xf32>
    %625 = arith.mulf %620, %624 : vector<18x32xf32>
    %626 = vector.broadcast %585 : vector<1x32xf32> to vector<18x32xf32>
    %627 = arith.mulf %625, %626 : vector<18x32xf32>
    %628 = vector.broadcast %587 : vector<1x32xf32> to vector<18x32xf32>
    %629 = arith.addf %627, %628 : vector<18x32xf32>
    %cst_273 = arith.constant dense<0.000000e+00> : vector<18x96xf32>
    %630 = tpu.matmul %629, %589, %cst_273 {dimension_numbers = #tpu.dot_dimension_numbers<[1], [0], [0], [1], [0, 0, 1, 1], [], []>} : vector<18x32xf32>, vector<32x96xf32>, vector<18x96xf32> -> vector<18x96xf32>
    %631 = vector.broadcast %591 : vector<1x96xf32> to vector<18x96xf32>
    %632 = arith.addf %630, %631 : vector<18x96xf32>
    %633 = vector.extract_strided_slice %632 {offsets = [0, 0], sizes = [18, 32], strides = [1, 1]} : vector<18x96xf32> to vector<18x32xf32>
    %cst_274 = arith.constant 0.353553385 : f32
    %634 = vector.broadcast %cst_274 : f32 to vector<18x32xf32>
    %635 = arith.mulf %633, %634 : vector<18x32xf32>
    %636 = vector.extract_strided_slice %632 {offsets = [0, 32], sizes = [18, 32], strides = [1, 1]} : vector<18x96xf32> to vector<18x32xf32>
    %637 = vector.extract_strided_slice %632 {offsets = [0, 64], sizes = [18, 32], strides = [1, 1]} : vector<18x96xf32> to vector<18x32xf32>
    %638 = vector.extract_strided_slice %635 {offsets = [0, 0], sizes = [9, 32], strides = [1, 1]} : vector<18x32xf32> to vector<9x32xf32>
    %639 = vector.extract_strided_slice %636 {offsets = [0, 0], sizes = [9, 32], strides = [1, 1]} : vector<18x32xf32> to vector<9x32xf32>
    %640 = vector.extract_strided_slice %637 {offsets = [0, 0], sizes = [9, 32], strides = [1, 1]} : vector<18x32xf32> to vector<9x32xf32>
    %641 = vector.extract_strided_slice %638 {offsets = [0, 0], sizes = [9, 8], strides = [1, 1]} : vector<9x32xf32> to vector<9x8xf32>
    %642 = vector.extract_strided_slice %639 {offsets = [0, 0], sizes = [9, 8], strides = [1, 1]} : vector<9x32xf32> to vector<9x8xf32>
    %cst_275 = arith.constant dense<0.000000e+00> : vector<9x9xf32>
    %643 = tpu.matmul %641, %642, %cst_275 {dimension_numbers = #tpu.dot_dimension_numbers<[1], [1], [0], [0], [0, 0, 1, 0], [], []>} : vector<9x8xf32>, vector<9x8xf32>, vector<9x9xf32> -> vector<9x9xf32>
    %cst_276 = arith.constant dense<0xFF800000> : vector<9xf32>
    %644 = vector.multi_reduction <maximumf>, %643, %cst_276 [1] : vector<9x9xf32> to vector<9xf32>
    %645 = vector.shape_cast %644 : vector<9xf32> to vector<9x1xf32>
    %646 = vector.broadcast %645 : vector<9x1xf32> to vector<9x9xf32>
    %647 = arith.subf %643, %646 : vector<9x9xf32>
    %648 = math.exp %647 : vector<9x9xf32>
    %cst_277 = arith.constant dense<0.000000e+00> : vector<9xf32>
    %649 = vector.multi_reduction <add>, %648, %cst_277 [1] : vector<9x9xf32> to vector<9xf32>
    %650 = vector.shape_cast %649 : vector<9xf32> to vector<9x1xf32>
    %651 = tpu.reciprocal %650 {approx = true} : vector<9x1xf32> -> vector<9x1xf32>
    %652 = vector.broadcast %651 : vector<9x1xf32> to vector<9x9xf32>
    %653 = arith.mulf %648, %652 : vector<9x9xf32>
    %654 = vector.extract_strided_slice %640 {offsets = [0, 0], sizes = [9, 8], strides = [1, 1]} : vector<9x32xf32> to vector<9x8xf32>
    %cst_278 = arith.constant dense<0.000000e+00> : vector<9x8xf32>
    %655 = tpu.matmul %653, %654, %cst_278 {dimension_numbers = #tpu.dot_dimension_numbers<[1], [0], [0], [1], [0, 0, 1, 1], [], []>} : vector<9x9xf32>, vector<9x8xf32>, vector<9x8xf32> -> vector<9x8xf32>
    %656 = vector.extract_strided_slice %638 {offsets = [0, 8], sizes = [9, 8], strides = [1, 1]} : vector<9x32xf32> to vector<9x8xf32>
    %657 = vector.extract_strided_slice %639 {offsets = [0, 8], sizes = [9, 8], strides = [1, 1]} : vector<9x32xf32> to vector<9x8xf32>
    %cst_279 = arith.constant dense<0.000000e+00> : vector<9x9xf32>
    %658 = tpu.matmul %656, %657, %cst_279 {dimension_numbers = #tpu.dot_dimension_numbers<[1], [1], [0], [0], [0, 0, 1, 0], [], []>} : vector<9x8xf32>, vector<9x8xf32>, vector<9x9xf32> -> vector<9x9xf32>
    %cst_280 = arith.constant dense<0xFF800000> : vector<9xf32>
    %659 = vector.multi_reduction <maximumf>, %658, %cst_280 [1] : vector<9x9xf32> to vector<9xf32>
    %660 = vector.shape_cast %659 : vector<9xf32> to vector<9x1xf32>
    %661 = vector.broadcast %660 : vector<9x1xf32> to vector<9x9xf32>
    %662 = arith.subf %658, %661 : vector<9x9xf32>
    %663 = math.exp %662 : vector<9x9xf32>
    %cst_281 = arith.constant dense<0.000000e+00> : vector<9xf32>
    %664 = vector.multi_reduction <add>, %663, %cst_281 [1] : vector<9x9xf32> to vector<9xf32>
    %665 = vector.shape_cast %664 : vector<9xf32> to vector<9x1xf32>
    %666 = tpu.reciprocal %665 {approx = true} : vector<9x1xf32> -> vector<9x1xf32>
    %667 = vector.broadcast %666 : vector<9x1xf32> to vector<9x9xf32>
    %668 = arith.mulf %663, %667 : vector<9x9xf32>
    %669 = vector.extract_strided_slice %640 {offsets = [0, 8], sizes = [9, 8], strides = [1, 1]} : vector<9x32xf32> to vector<9x8xf32>
    %cst_282 = arith.constant dense<0.000000e+00> : vector<9x8xf32>
    %670 = tpu.matmul %668, %669, %cst_282 {dimension_numbers = #tpu.dot_dimension_numbers<[1], [0], [0], [1], [0, 0, 1, 1], [], []>} : vector<9x9xf32>, vector<9x8xf32>, vector<9x8xf32> -> vector<9x8xf32>
    %671 = vector.extract_strided_slice %638 {offsets = [0, 16], sizes = [9, 8], strides = [1, 1]} : vector<9x32xf32> to vector<9x8xf32>
    %672 = vector.extract_strided_slice %639 {offsets = [0, 16], sizes = [9, 8], strides = [1, 1]} : vector<9x32xf32> to vector<9x8xf32>
    %cst_283 = arith.constant dense<0.000000e+00> : vector<9x9xf32>
    %673 = tpu.matmul %671, %672, %cst_283 {dimension_numbers = #tpu.dot_dimension_numbers<[1], [1], [0], [0], [0, 0, 1, 0], [], []>} : vector<9x8xf32>, vector<9x8xf32>, vector<9x9xf32> -> vector<9x9xf32>
    %cst_284 = arith.constant dense<0xFF800000> : vector<9xf32>
    %674 = vector.multi_reduction <maximumf>, %673, %cst_284 [1] : vector<9x9xf32> to vector<9xf32>
    %675 = vector.shape_cast %674 : vector<9xf32> to vector<9x1xf32>
    %676 = vector.broadcast %675 : vector<9x1xf32> to vector<9x9xf32>
    %677 = arith.subf %673, %676 : vector<9x9xf32>
    %678 = math.exp %677 : vector<9x9xf32>
    %cst_285 = arith.constant dense<0.000000e+00> : vector<9xf32>
    %679 = vector.multi_reduction <add>, %678, %cst_285 [1] : vector<9x9xf32> to vector<9xf32>
    %680 = vector.shape_cast %679 : vector<9xf32> to vector<9x1xf32>
    %681 = tpu.reciprocal %680 {approx = true} : vector<9x1xf32> -> vector<9x1xf32>
    %682 = vector.broadcast %681 : vector<9x1xf32> to vector<9x9xf32>
    %683 = arith.mulf %678, %682 : vector<9x9xf32>
    %684 = vector.extract_strided_slice %640 {offsets = [0, 16], sizes = [9, 8], strides = [1, 1]} : vector<9x32xf32> to vector<9x8xf32>
    %cst_286 = arith.constant dense<0.000000e+00> : vector<9x8xf32>
    %685 = tpu.matmul %683, %684, %cst_286 {dimension_numbers = #tpu.dot_dimension_numbers<[1], [0], [0], [1], [0, 0, 1, 1], [], []>} : vector<9x9xf32>, vector<9x8xf32>, vector<9x8xf32> -> vector<9x8xf32>
    %686 = vector.extract_strided_slice %638 {offsets = [0, 24], sizes = [9, 8], strides = [1, 1]} : vector<9x32xf32> to vector<9x8xf32>
    %687 = vector.extract_strided_slice %639 {offsets = [0, 24], sizes = [9, 8], strides = [1, 1]} : vector<9x32xf32> to vector<9x8xf32>
    %cst_287 = arith.constant dense<0.000000e+00> : vector<9x9xf32>
    %688 = tpu.matmul %686, %687, %cst_287 {dimension_numbers = #tpu.dot_dimension_numbers<[1], [1], [0], [0], [0, 0, 1, 0], [], []>} : vector<9x8xf32>, vector<9x8xf32>, vector<9x9xf32> -> vector<9x9xf32>
    %cst_288 = arith.constant dense<0xFF800000> : vector<9xf32>
    %689 = vector.multi_reduction <maximumf>, %688, %cst_288 [1] : vector<9x9xf32> to vector<9xf32>
    %690 = vector.shape_cast %689 : vector<9xf32> to vector<9x1xf32>
    %691 = vector.broadcast %690 : vector<9x1xf32> to vector<9x9xf32>
    %692 = arith.subf %688, %691 : vector<9x9xf32>
    %693 = math.exp %692 : vector<9x9xf32>
    %cst_289 = arith.constant dense<0.000000e+00> : vector<9xf32>
    %694 = vector.multi_reduction <add>, %693, %cst_289 [1] : vector<9x9xf32> to vector<9xf32>
    %695 = vector.shape_cast %694 : vector<9xf32> to vector<9x1xf32>
    %696 = tpu.reciprocal %695 {approx = true} : vector<9x1xf32> -> vector<9x1xf32>
    %697 = vector.broadcast %696 : vector<9x1xf32> to vector<9x9xf32>
    %698 = arith.mulf %693, %697 : vector<9x9xf32>
    %699 = vector.extract_strided_slice %640 {offsets = [0, 24], sizes = [9, 8], strides = [1, 1]} : vector<9x32xf32> to vector<9x8xf32>
    %cst_290 = arith.constant dense<0.000000e+00> : vector<9x8xf32>
    %700 = tpu.matmul %698, %699, %cst_290 {dimension_numbers = #tpu.dot_dimension_numbers<[1], [0], [0], [1], [0, 0, 1, 1], [], []>} : vector<9x9xf32>, vector<9x8xf32>, vector<9x8xf32> -> vector<9x8xf32>
    %701 = tpu.concatenate %655, %670, %685, %700 in 1 : vector<9x8xf32>, vector<9x8xf32>, vector<9x8xf32>, vector<9x8xf32> -> vector<9x32xf32>
    %702 = vector.extract_strided_slice %635 {offsets = [9, 0], sizes = [9, 32], strides = [1, 1]} : vector<18x32xf32> to vector<9x32xf32>
    %703 = vector.extract_strided_slice %636 {offsets = [9, 0], sizes = [9, 32], strides = [1, 1]} : vector<18x32xf32> to vector<9x32xf32>
    %704 = vector.extract_strided_slice %637 {offsets = [9, 0], sizes = [9, 32], strides = [1, 1]} : vector<18x32xf32> to vector<9x32xf32>
    %705 = vector.extract_strided_slice %702 {offsets = [0, 0], sizes = [9, 8], strides = [1, 1]} : vector<9x32xf32> to vector<9x8xf32>
    %706 = vector.extract_strided_slice %703 {offsets = [0, 0], sizes = [9, 8], strides = [1, 1]} : vector<9x32xf32> to vector<9x8xf32>
    %cst_291 = arith.constant dense<0.000000e+00> : vector<9x9xf32>
    %707 = tpu.matmul %705, %706, %cst_291 {dimension_numbers = #tpu.dot_dimension_numbers<[1], [1], [0], [0], [0, 0, 1, 0], [], []>} : vector<9x8xf32>, vector<9x8xf32>, vector<9x9xf32> -> vector<9x9xf32>
    %cst_292 = arith.constant dense<0xFF800000> : vector<9xf32>
    %708 = vector.multi_reduction <maximumf>, %707, %cst_292 [1] : vector<9x9xf32> to vector<9xf32>
    %709 = vector.shape_cast %708 : vector<9xf32> to vector<9x1xf32>
    %710 = vector.broadcast %709 : vector<9x1xf32> to vector<9x9xf32>
    %711 = arith.subf %707, %710 : vector<9x9xf32>
    %712 = math.exp %711 : vector<9x9xf32>
    %cst_293 = arith.constant dense<0.000000e+00> : vector<9xf32>
    %713 = vector.multi_reduction <add>, %712, %cst_293 [1] : vector<9x9xf32> to vector<9xf32>
    %714 = vector.shape_cast %713 : vector<9xf32> to vector<9x1xf32>
    %715 = tpu.reciprocal %714 {approx = true} : vector<9x1xf32> -> vector<9x1xf32>
    %716 = vector.broadcast %715 : vector<9x1xf32> to vector<9x9xf32>
    %717 = arith.mulf %712, %716 : vector<9x9xf32>
    %718 = vector.extract_strided_slice %704 {offsets = [0, 0], sizes = [9, 8], strides = [1, 1]} : vector<9x32xf32> to vector<9x8xf32>
    %cst_294 = arith.constant dense<0.000000e+00> : vector<9x8xf32>
    %719 = tpu.matmul %717, %718, %cst_294 {dimension_numbers = #tpu.dot_dimension_numbers<[1], [0], [0], [1], [0, 0, 1, 1], [], []>} : vector<9x9xf32>, vector<9x8xf32>, vector<9x8xf32> -> vector<9x8xf32>
    %720 = vector.extract_strided_slice %702 {offsets = [0, 8], sizes = [9, 8], strides = [1, 1]} : vector<9x32xf32> to vector<9x8xf32>
    %721 = vector.extract_strided_slice %703 {offsets = [0, 8], sizes = [9, 8], strides = [1, 1]} : vector<9x32xf32> to vector<9x8xf32>
    %cst_295 = arith.constant dense<0.000000e+00> : vector<9x9xf32>
    %722 = tpu.matmul %720, %721, %cst_295 {dimension_numbers = #tpu.dot_dimension_numbers<[1], [1], [0], [0], [0, 0, 1, 0], [], []>} : vector<9x8xf32>, vector<9x8xf32>, vector<9x9xf32> -> vector<9x9xf32>
    %cst_296 = arith.constant dense<0xFF800000> : vector<9xf32>
    %723 = vector.multi_reduction <maximumf>, %722, %cst_296 [1] : vector<9x9xf32> to vector<9xf32>
    %724 = vector.shape_cast %723 : vector<9xf32> to vector<9x1xf32>
    %725 = vector.broadcast %724 : vector<9x1xf32> to vector<9x9xf32>
    %726 = arith.subf %722, %725 : vector<9x9xf32>
    %727 = math.exp %726 : vector<9x9xf32>
    %cst_297 = arith.constant dense<0.000000e+00> : vector<9xf32>
    %728 = vector.multi_reduction <add>, %727, %cst_297 [1] : vector<9x9xf32> to vector<9xf32>
    %729 = vector.shape_cast %728 : vector<9xf32> to vector<9x1xf32>
    %730 = tpu.reciprocal %729 {approx = true} : vector<9x1xf32> -> vector<9x1xf32>
    %731 = vector.broadcast %730 : vector<9x1xf32> to vector<9x9xf32>
    %732 = arith.mulf %727, %731 : vector<9x9xf32>
    %733 = vector.extract_strided_slice %704 {offsets = [0, 8], sizes = [9, 8], strides = [1, 1]} : vector<9x32xf32> to vector<9x8xf32>
    %cst_298 = arith.constant dense<0.000000e+00> : vector<9x8xf32>
    %734 = tpu.matmul %732, %733, %cst_298 {dimension_numbers = #tpu.dot_dimension_numbers<[1], [0], [0], [1], [0, 0, 1, 1], [], []>} : vector<9x9xf32>, vector<9x8xf32>, vector<9x8xf32> -> vector<9x8xf32>
    %735 = vector.extract_strided_slice %702 {offsets = [0, 16], sizes = [9, 8], strides = [1, 1]} : vector<9x32xf32> to vector<9x8xf32>
    %736 = vector.extract_strided_slice %703 {offsets = [0, 16], sizes = [9, 8], strides = [1, 1]} : vector<9x32xf32> to vector<9x8xf32>
    %cst_299 = arith.constant dense<0.000000e+00> : vector<9x9xf32>
    %737 = tpu.matmul %735, %736, %cst_299 {dimension_numbers = #tpu.dot_dimension_numbers<[1], [1], [0], [0], [0, 0, 1, 0], [], []>} : vector<9x8xf32>, vector<9x8xf32>, vector<9x9xf32> -> vector<9x9xf32>
    %cst_300 = arith.constant dense<0xFF800000> : vector<9xf32>
    %738 = vector.multi_reduction <maximumf>, %737, %cst_300 [1] : vector<9x9xf32> to vector<9xf32>
    %739 = vector.shape_cast %738 : vector<9xf32> to vector<9x1xf32>
    %740 = vector.broadcast %739 : vector<9x1xf32> to vector<9x9xf32>
    %741 = arith.subf %737, %740 : vector<9x9xf32>
    %742 = math.exp %741 : vector<9x9xf32>
    %cst_301 = arith.constant dense<0.000000e+00> : vector<9xf32>
    %743 = vector.multi_reduction <add>, %742, %cst_301 [1] : vector<9x9xf32> to vector<9xf32>
    %744 = vector.shape_cast %743 : vector<9xf32> to vector<9x1xf32>
    %745 = tpu.reciprocal %744 {approx = true} : vector<9x1xf32> -> vector<9x1xf32>
    %746 = vector.broadcast %745 : vector<9x1xf32> to vector<9x9xf32>
    %747 = arith.mulf %742, %746 : vector<9x9xf32>
    %748 = vector.extract_strided_slice %704 {offsets = [0, 16], sizes = [9, 8], strides = [1, 1]} : vector<9x32xf32> to vector<9x8xf32>
    %cst_302 = arith.constant dense<0.000000e+00> : vector<9x8xf32>
    %749 = tpu.matmul %747, %748, %cst_302 {dimension_numbers = #tpu.dot_dimension_numbers<[1], [0], [0], [1], [0, 0, 1, 1], [], []>} : vector<9x9xf32>, vector<9x8xf32>, vector<9x8xf32> -> vector<9x8xf32>
    %750 = vector.extract_strided_slice %702 {offsets = [0, 24], sizes = [9, 8], strides = [1, 1]} : vector<9x32xf32> to vector<9x8xf32>
    %751 = vector.extract_strided_slice %703 {offsets = [0, 24], sizes = [9, 8], strides = [1, 1]} : vector<9x32xf32> to vector<9x8xf32>
    %cst_303 = arith.constant dense<0.000000e+00> : vector<9x9xf32>
    %752 = tpu.matmul %750, %751, %cst_303 {dimension_numbers = #tpu.dot_dimension_numbers<[1], [1], [0], [0], [0, 0, 1, 0], [], []>} : vector<9x8xf32>, vector<9x8xf32>, vector<9x9xf32> -> vector<9x9xf32>
    %cst_304 = arith.constant dense<0xFF800000> : vector<9xf32>
    %753 = vector.multi_reduction <maximumf>, %752, %cst_304 [1] : vector<9x9xf32> to vector<9xf32>
    %754 = vector.shape_cast %753 : vector<9xf32> to vector<9x1xf32>
    %755 = vector.broadcast %754 : vector<9x1xf32> to vector<9x9xf32>
    %756 = arith.subf %752, %755 : vector<9x9xf32>
    %757 = math.exp %756 : vector<9x9xf32>
    %cst_305 = arith.constant dense<0.000000e+00> : vector<9xf32>
    %758 = vector.multi_reduction <add>, %757, %cst_305 [1] : vector<9x9xf32> to vector<9xf32>
    %759 = vector.shape_cast %758 : vector<9xf32> to vector<9x1xf32>
    %760 = tpu.reciprocal %759 {approx = true} : vector<9x1xf32> -> vector<9x1xf32>
    %761 = vector.broadcast %760 : vector<9x1xf32> to vector<9x9xf32>
    %762 = arith.mulf %757, %761 : vector<9x9xf32>
    %763 = vector.extract_strided_slice %704 {offsets = [0, 24], sizes = [9, 8], strides = [1, 1]} : vector<9x32xf32> to vector<9x8xf32>
    %cst_306 = arith.constant dense<0.000000e+00> : vector<9x8xf32>
    %764 = tpu.matmul %762, %763, %cst_306 {dimension_numbers = #tpu.dot_dimension_numbers<[1], [0], [0], [1], [0, 0, 1, 1], [], []>} : vector<9x9xf32>, vector<9x8xf32>, vector<9x8xf32> -> vector<9x8xf32>
    %765 = tpu.concatenate %719, %734, %749, %764 in 1 : vector<9x8xf32>, vector<9x8xf32>, vector<9x8xf32>, vector<9x8xf32> -> vector<9x32xf32>
    %766 = tpu.concatenate %701, %765 in 0 : vector<9x32xf32>, vector<9x32xf32> -> vector<18x32xf32>
    %cst_307 = arith.constant dense<0.000000e+00> : vector<18x32xf32>
    %767 = tpu.matmul %766, %593, %cst_307 {dimension_numbers = #tpu.dot_dimension_numbers<[1], [0], [0], [1], [0, 0, 1, 1], [], []>} : vector<18x32xf32>, vector<32x32xf32>, vector<18x32xf32> -> vector<18x32xf32>
    %768 = arith.addf %583, %767 : vector<18x32xf32>
    %769 = vector.broadcast %595 : vector<1x32xf32> to vector<18x32xf32>
    %770 = arith.addf %768, %769 : vector<18x32xf32>
    %cst_308 = arith.constant dense<0.000000e+00> : vector<18xf32>
    %771 = vector.multi_reduction <add>, %770, %cst_308 [1] : vector<18x32xf32> to vector<18xf32>
    %772 = vector.shape_cast %771 : vector<18xf32> to vector<18x1xf32>
    %cst_309 = arith.constant 3.200000e+01 : f32
    %773 = vector.broadcast %cst_309 : f32 to vector<18x1xf32>
    %774 = arith.divf %772, %773 : vector<18x1xf32>
    %775 = vector.broadcast %774 : vector<18x1xf32> to vector<18x32xf32>
    %776 = arith.subf %770, %775 : vector<18x32xf32>
    %777 = arith.mulf %776, %776 : vector<18x32xf32>
    %cst_310 = arith.constant dense<0.000000e+00> : vector<18xf32>
    %778 = vector.multi_reduction <add>, %777, %cst_310 [1] : vector<18x32xf32> to vector<18xf32>
    %779 = vector.shape_cast %778 : vector<18xf32> to vector<18x1xf32>
    %cst_311 = arith.constant 3.200000e+01 : f32
    %780 = vector.broadcast %cst_311 : f32 to vector<18x1xf32>
    %781 = arith.divf %779, %780 : vector<18x1xf32>
    %782 = vector.broadcast %774 : vector<18x1xf32> to vector<18x32xf32>
    %783 = arith.subf %770, %782 : vector<18x32xf32>
    %cst_312 = arith.constant 9.99999974E-6 : f32
    %784 = vector.broadcast %cst_312 : f32 to vector<18x1xf32>
    %785 = arith.addf %781, %784 : vector<18x1xf32>
    %786 = math.rsqrt %785 : vector<18x1xf32>
    %787 = vector.broadcast %786 : vector<18x1xf32> to vector<18x32xf32>
    %788 = arith.mulf %783, %787 : vector<18x32xf32>
    %789 = vector.broadcast %597 : vector<1x32xf32> to vector<18x32xf32>
    %790 = arith.mulf %788, %789 : vector<18x32xf32>
    %791 = vector.broadcast %599 : vector<1x32xf32> to vector<18x32xf32>
    %792 = arith.addf %790, %791 : vector<18x32xf32>
    %cst_313 = arith.constant dense<0.000000e+00> : vector<18x128xf32>
    %793 = tpu.matmul %792, %601, %cst_313 {dimension_numbers = #tpu.dot_dimension_numbers<[1], [0], [0], [1], [0, 0, 1, 1], [], []>} : vector<18x32xf32>, vector<32x128xf32>, vector<18x128xf32> -> vector<18x128xf32>
    %794 = vector.broadcast %603 : vector<1x128xf32> to vector<18x128xf32>
    %795 = arith.addf %793, %794 : vector<18x128xf32>
    %cst_314 = arith.constant 5.000000e-01 : f32
    %796 = vector.broadcast %cst_314 : f32 to vector<18x128xf32>
    %797 = arith.mulf %796, %795 : vector<18x128xf32>
    %cst_315 = arith.constant 0.707106769 : f32
    %798 = vector.broadcast %cst_315 : f32 to vector<18x128xf32>
    %799 = arith.mulf %795, %798 : vector<18x128xf32>
    %800 = math.absf %799 : vector<18x128xf32>
    %cst_316 = arith.constant 0.327591091 : f32
    %801 = vector.broadcast %cst_316 : f32 to vector<18x128xf32>
    %802 = arith.mulf %801, %800 : vector<18x128xf32>
    %cst_317 = arith.constant 1.000000e+00 : f32
    %803 = vector.broadcast %cst_317 : f32 to vector<18x128xf32>
    %804 = arith.addf %803, %802 : vector<18x128xf32>
    %cst_318 = arith.constant 1.000000e+00 : f32
    %805 = vector.broadcast %cst_318 : f32 to vector<18x128xf32>
    %806 = arith.divf %805, %804 : vector<18x128xf32>
    %cst_319 = arith.constant 1.06140542 : f32
    %807 = vector.broadcast %cst_319 : f32 to vector<18x128xf32>
    %808 = arith.mulf %807, %806 : vector<18x128xf32>
    %cst_320 = arith.constant -1.45315206 : f32
    %809 = vector.broadcast %cst_320 : f32 to vector<18x128xf32>
    %810 = arith.addf %808, %809 : vector<18x128xf32>
    %811 = arith.mulf %810, %806 : vector<18x128xf32>
    %cst_321 = arith.constant 1.42141378 : f32
    %812 = vector.broadcast %cst_321 : f32 to vector<18x128xf32>
    %813 = arith.addf %811, %812 : vector<18x128xf32>
    %814 = arith.mulf %813, %806 : vector<18x128xf32>
    %cst_322 = arith.constant -0.284496725 : f32
    %815 = vector.broadcast %cst_322 : f32 to vector<18x128xf32>
    %816 = arith.addf %814, %815 : vector<18x128xf32>
    %817 = arith.mulf %816, %806 : vector<18x128xf32>
    %cst_323 = arith.constant 0.254829586 : f32
    %818 = vector.broadcast %cst_323 : f32 to vector<18x128xf32>
    %819 = arith.addf %817, %818 : vector<18x128xf32>
    %820 = arith.mulf %819, %806 : vector<18x128xf32>
    %cst_324 = arith.constant 0.000000e+00 : f32
    %821 = vector.broadcast %cst_324 : f32 to vector<18x128xf32>
    %822 = arith.subf %821, %800 : vector<18x128xf32>
    %823 = arith.mulf %822, %800 : vector<18x128xf32>
    %824 = math.exp %823 : vector<18x128xf32>
    %825 = arith.mulf %820, %824 : vector<18x128xf32>
    %cst_325 = arith.constant 1.000000e+00 : f32
    %826 = vector.broadcast %cst_325 : f32 to vector<18x128xf32>
    %827 = arith.subf %826, %825 : vector<18x128xf32>
    %cst_326 = arith.constant 0.000000e+00 : f32
    %828 = vector.broadcast %cst_326 : f32 to vector<18x128xf32>
    %829 = arith.cmpf oge, %799, %828 : vector<18x128xf32>
    %cst_327 = arith.constant 0.000000e+00 : f32
    %830 = vector.broadcast %cst_327 : f32 to vector<18x128xf32>
    %831 = arith.subf %830, %827 : vector<18x128xf32>
    %832 = arith.select %829, %827, %831 : vector<18x128xi1>, vector<18x128xf32>
    %cst_328 = arith.constant 1.000000e+00 : f32
    %833 = vector.broadcast %cst_328 : f32 to vector<18x128xf32>
    %834 = arith.addf %833, %832 : vector<18x128xf32>
    %835 = arith.mulf %797, %834 : vector<18x128xf32>
    %cst_329 = arith.constant dense<0.000000e+00> : vector<18x32xf32>
    %836 = tpu.matmul %835, %605, %cst_329 {dimension_numbers = #tpu.dot_dimension_numbers<[1], [0], [0], [1], [0, 0, 1, 1], [], []>} : vector<18x128xf32>, vector<128x32xf32>, vector<18x32xf32> -> vector<18x32xf32>
    %837 = vector.broadcast %607 : vector<1x32xf32> to vector<18x32xf32>
    %838 = arith.addf %836, %837 : vector<18x32xf32>
    %839 = arith.addf %770, %838 : vector<18x32xf32>
    %c1_330 = arith.constant 1 : index
    %c0_331 = arith.constant 0 : index
    %c0_332 = arith.constant 0 : index
    %840 = vector.load %arg26[%c1_330, %c0_331, %c0_332] : memref<2x1x32xf32, #tpu.memory_space<vmem>>, vector<1x1x32xf32>
    %841 = vector.shape_cast %840 : vector<1x1x32xf32> to vector<1x32xf32>
    %c1_333 = arith.constant 1 : index
    %c0_334 = arith.constant 0 : index
    %c0_335 = arith.constant 0 : index
    %842 = vector.load %arg27[%c1_333, %c0_334, %c0_335] : memref<2x1x32xf32, #tpu.memory_space<vmem>>, vector<1x1x32xf32>
    %843 = vector.shape_cast %842 : vector<1x1x32xf32> to vector<1x32xf32>
    %c1_336 = arith.constant 1 : index
    %c0_337 = arith.constant 0 : index
    %c0_338 = arith.constant 0 : index
    %844 = vector.load %arg28[%c1_336, %c0_337, %c0_338] : memref<2x32x96xf32, #tpu.memory_space<vmem>>, vector<1x32x96xf32>
    %845 = vector.shape_cast %844 : vector<1x32x96xf32> to vector<32x96xf32>
    %c1_339 = arith.constant 1 : index
    %c0_340 = arith.constant 0 : index
    %c0_341 = arith.constant 0 : index
    %846 = vector.load %arg29[%c1_339, %c0_340, %c0_341] : memref<2x1x96xf32, #tpu.memory_space<vmem>>, vector<1x1x96xf32>
    %847 = vector.shape_cast %846 : vector<1x1x96xf32> to vector<1x96xf32>
    %c1_342 = arith.constant 1 : index
    %c0_343 = arith.constant 0 : index
    %c0_344 = arith.constant 0 : index
    %848 = vector.load %arg30[%c1_342, %c0_343, %c0_344] : memref<2x32x32xf32, #tpu.memory_space<vmem>>, vector<1x32x32xf32>
    %849 = vector.shape_cast %848 : vector<1x32x32xf32> to vector<32x32xf32>
    %c1_345 = arith.constant 1 : index
    %c0_346 = arith.constant 0 : index
    %c0_347 = arith.constant 0 : index
    %850 = vector.load %arg31[%c1_345, %c0_346, %c0_347] : memref<2x1x32xf32, #tpu.memory_space<vmem>>, vector<1x1x32xf32>
    %851 = vector.shape_cast %850 : vector<1x1x32xf32> to vector<1x32xf32>
    %c1_348 = arith.constant 1 : index
    %c0_349 = arith.constant 0 : index
    %c0_350 = arith.constant 0 : index
    %852 = vector.load %arg32[%c1_348, %c0_349, %c0_350] : memref<2x1x32xf32, #tpu.memory_space<vmem>>, vector<1x1x32xf32>
    %853 = vector.shape_cast %852 : vector<1x1x32xf32> to vector<1x32xf32>
    %c1_351 = arith.constant 1 : index
    %c0_352 = arith.constant 0 : index
    %c0_353 = arith.constant 0 : index
    %854 = vector.load %arg33[%c1_351, %c0_352, %c0_353] : memref<2x1x32xf32, #tpu.memory_space<vmem>>, vector<1x1x32xf32>
    %855 = vector.shape_cast %854 : vector<1x1x32xf32> to vector<1x32xf32>
    %c1_354 = arith.constant 1 : index
    %c0_355 = arith.constant 0 : index
    %c0_356 = arith.constant 0 : index
    %856 = vector.load %arg34[%c1_354, %c0_355, %c0_356] : memref<2x32x128xf32, #tpu.memory_space<vmem>>, vector<1x32x128xf32>
    %857 = vector.shape_cast %856 : vector<1x32x128xf32> to vector<32x128xf32>
    %c1_357 = arith.constant 1 : index
    %c0_358 = arith.constant 0 : index
    %c0_359 = arith.constant 0 : index
    %858 = vector.load %arg35[%c1_357, %c0_358, %c0_359] : memref<2x1x128xf32, #tpu.memory_space<vmem>>, vector<1x1x128xf32>
    %859 = vector.shape_cast %858 : vector<1x1x128xf32> to vector<1x128xf32>
    %c1_360 = arith.constant 1 : index
    %c0_361 = arith.constant 0 : index
    %c0_362 = arith.constant 0 : index
    %860 = vector.load %arg36[%c1_360, %c0_361, %c0_362] : memref<2x128x32xf32, #tpu.memory_space<vmem>>, vector<1x128x32xf32>
    %861 = vector.shape_cast %860 : vector<1x128x32xf32> to vector<128x32xf32>
    %c1_363 = arith.constant 1 : index
    %c0_364 = arith.constant 0 : index
    %c0_365 = arith.constant 0 : index
    %862 = vector.load %arg37[%c1_363, %c0_364, %c0_365] : memref<2x1x32xf32, #tpu.memory_space<vmem>>, vector<1x1x32xf32>
    %863 = vector.shape_cast %862 : vector<1x1x32xf32> to vector<1x32xf32>
    %cst_366 = arith.constant dense<0.000000e+00> : vector<18xf32>
    %864 = vector.multi_reduction <add>, %839, %cst_366 [1] : vector<18x32xf32> to vector<18xf32>
    %865 = vector.shape_cast %864 : vector<18xf32> to vector<18x1xf32>
    %cst_367 = arith.constant 3.200000e+01 : f32
    %866 = vector.broadcast %cst_367 : f32 to vector<18x1xf32>
    %867 = arith.divf %865, %866 : vector<18x1xf32>
    %868 = vector.broadcast %867 : vector<18x1xf32> to vector<18x32xf32>
    %869 = arith.subf %839, %868 : vector<18x32xf32>
    %870 = arith.mulf %869, %869 : vector<18x32xf32>
    %cst_368 = arith.constant dense<0.000000e+00> : vector<18xf32>
    %871 = vector.multi_reduction <add>, %870, %cst_368 [1] : vector<18x32xf32> to vector<18xf32>
    %872 = vector.shape_cast %871 : vector<18xf32> to vector<18x1xf32>
    %cst_369 = arith.constant 3.200000e+01 : f32
    %873 = vector.broadcast %cst_369 : f32 to vector<18x1xf32>
    %874 = arith.divf %872, %873 : vector<18x1xf32>
    %875 = vector.broadcast %867 : vector<18x1xf32> to vector<18x32xf32>
    %876 = arith.subf %839, %875 : vector<18x32xf32>
    %cst_370 = arith.constant 9.99999974E-6 : f32
    %877 = vector.broadcast %cst_370 : f32 to vector<18x1xf32>
    %878 = arith.addf %874, %877 : vector<18x1xf32>
    %879 = math.rsqrt %878 : vector<18x1xf32>
    %880 = vector.broadcast %879 : vector<18x1xf32> to vector<18x32xf32>
    %881 = arith.mulf %876, %880 : vector<18x32xf32>
    %882 = vector.broadcast %841 : vector<1x32xf32> to vector<18x32xf32>
    %883 = arith.mulf %881, %882 : vector<18x32xf32>
    %884 = vector.broadcast %843 : vector<1x32xf32> to vector<18x32xf32>
    %885 = arith.addf %883, %884 : vector<18x32xf32>
    %cst_371 = arith.constant dense<0.000000e+00> : vector<18x96xf32>
    %886 = tpu.matmul %885, %845, %cst_371 {dimension_numbers = #tpu.dot_dimension_numbers<[1], [0], [0], [1], [0, 0, 1, 1], [], []>} : vector<18x32xf32>, vector<32x96xf32>, vector<18x96xf32> -> vector<18x96xf32>
    %887 = vector.broadcast %847 : vector<1x96xf32> to vector<18x96xf32>
    %888 = arith.addf %886, %887 : vector<18x96xf32>
    %889 = vector.extract_strided_slice %888 {offsets = [0, 0], sizes = [18, 32], strides = [1, 1]} : vector<18x96xf32> to vector<18x32xf32>
    %cst_372 = arith.constant 0.353553385 : f32
    %890 = vector.broadcast %cst_372 : f32 to vector<18x32xf32>
    %891 = arith.mulf %889, %890 : vector<18x32xf32>
    %892 = vector.extract_strided_slice %888 {offsets = [0, 32], sizes = [18, 32], strides = [1, 1]} : vector<18x96xf32> to vector<18x32xf32>
    %893 = vector.extract_strided_slice %888 {offsets = [0, 64], sizes = [18, 32], strides = [1, 1]} : vector<18x96xf32> to vector<18x32xf32>
    %894 = vector.extract_strided_slice %891 {offsets = [0, 0], sizes = [9, 32], strides = [1, 1]} : vector<18x32xf32> to vector<9x32xf32>
    %895 = vector.extract_strided_slice %892 {offsets = [0, 0], sizes = [9, 32], strides = [1, 1]} : vector<18x32xf32> to vector<9x32xf32>
    %896 = vector.extract_strided_slice %893 {offsets = [0, 0], sizes = [9, 32], strides = [1, 1]} : vector<18x32xf32> to vector<9x32xf32>
    %897 = vector.extract_strided_slice %894 {offsets = [0, 0], sizes = [9, 8], strides = [1, 1]} : vector<9x32xf32> to vector<9x8xf32>
    %898 = vector.extract_strided_slice %895 {offsets = [0, 0], sizes = [9, 8], strides = [1, 1]} : vector<9x32xf32> to vector<9x8xf32>
    %cst_373 = arith.constant dense<0.000000e+00> : vector<9x9xf32>
    %899 = tpu.matmul %897, %898, %cst_373 {dimension_numbers = #tpu.dot_dimension_numbers<[1], [1], [0], [0], [0, 0, 1, 0], [], []>} : vector<9x8xf32>, vector<9x8xf32>, vector<9x9xf32> -> vector<9x9xf32>
    %cst_374 = arith.constant dense<0xFF800000> : vector<9xf32>
    %900 = vector.multi_reduction <maximumf>, %899, %cst_374 [1] : vector<9x9xf32> to vector<9xf32>
    %901 = vector.shape_cast %900 : vector<9xf32> to vector<9x1xf32>
    %902 = vector.broadcast %901 : vector<9x1xf32> to vector<9x9xf32>
    %903 = arith.subf %899, %902 : vector<9x9xf32>
    %904 = math.exp %903 : vector<9x9xf32>
    %cst_375 = arith.constant dense<0.000000e+00> : vector<9xf32>
    %905 = vector.multi_reduction <add>, %904, %cst_375 [1] : vector<9x9xf32> to vector<9xf32>
    %906 = vector.shape_cast %905 : vector<9xf32> to vector<9x1xf32>
    %907 = tpu.reciprocal %906 {approx = true} : vector<9x1xf32> -> vector<9x1xf32>
    %908 = vector.broadcast %907 : vector<9x1xf32> to vector<9x9xf32>
    %909 = arith.mulf %904, %908 : vector<9x9xf32>
    %910 = vector.extract_strided_slice %896 {offsets = [0, 0], sizes = [9, 8], strides = [1, 1]} : vector<9x32xf32> to vector<9x8xf32>
    %cst_376 = arith.constant dense<0.000000e+00> : vector<9x8xf32>
    %911 = tpu.matmul %909, %910, %cst_376 {dimension_numbers = #tpu.dot_dimension_numbers<[1], [0], [0], [1], [0, 0, 1, 1], [], []>} : vector<9x9xf32>, vector<9x8xf32>, vector<9x8xf32> -> vector<9x8xf32>
    %912 = vector.extract_strided_slice %894 {offsets = [0, 8], sizes = [9, 8], strides = [1, 1]} : vector<9x32xf32> to vector<9x8xf32>
    %913 = vector.extract_strided_slice %895 {offsets = [0, 8], sizes = [9, 8], strides = [1, 1]} : vector<9x32xf32> to vector<9x8xf32>
    %cst_377 = arith.constant dense<0.000000e+00> : vector<9x9xf32>
    %914 = tpu.matmul %912, %913, %cst_377 {dimension_numbers = #tpu.dot_dimension_numbers<[1], [1], [0], [0], [0, 0, 1, 0], [], []>} : vector<9x8xf32>, vector<9x8xf32>, vector<9x9xf32> -> vector<9x9xf32>
    %cst_378 = arith.constant dense<0xFF800000> : vector<9xf32>
    %915 = vector.multi_reduction <maximumf>, %914, %cst_378 [1] : vector<9x9xf32> to vector<9xf32>
    %916 = vector.shape_cast %915 : vector<9xf32> to vector<9x1xf32>
    %917 = vector.broadcast %916 : vector<9x1xf32> to vector<9x9xf32>
    %918 = arith.subf %914, %917 : vector<9x9xf32>
    %919 = math.exp %918 : vector<9x9xf32>
    %cst_379 = arith.constant dense<0.000000e+00> : vector<9xf32>
    %920 = vector.multi_reduction <add>, %919, %cst_379 [1] : vector<9x9xf32> to vector<9xf32>
    %921 = vector.shape_cast %920 : vector<9xf32> to vector<9x1xf32>
    %922 = tpu.reciprocal %921 {approx = true} : vector<9x1xf32> -> vector<9x1xf32>
    %923 = vector.broadcast %922 : vector<9x1xf32> to vector<9x9xf32>
    %924 = arith.mulf %919, %923 : vector<9x9xf32>
    %925 = vector.extract_strided_slice %896 {offsets = [0, 8], sizes = [9, 8], strides = [1, 1]} : vector<9x32xf32> to vector<9x8xf32>
    %cst_380 = arith.constant dense<0.000000e+00> : vector<9x8xf32>
    %926 = tpu.matmul %924, %925, %cst_380 {dimension_numbers = #tpu.dot_dimension_numbers<[1], [0], [0], [1], [0, 0, 1, 1], [], []>} : vector<9x9xf32>, vector<9x8xf32>, vector<9x8xf32> -> vector<9x8xf32>
    %927 = vector.extract_strided_slice %894 {offsets = [0, 16], sizes = [9, 8], strides = [1, 1]} : vector<9x32xf32> to vector<9x8xf32>
    %928 = vector.extract_strided_slice %895 {offsets = [0, 16], sizes = [9, 8], strides = [1, 1]} : vector<9x32xf32> to vector<9x8xf32>
    %cst_381 = arith.constant dense<0.000000e+00> : vector<9x9xf32>
    %929 = tpu.matmul %927, %928, %cst_381 {dimension_numbers = #tpu.dot_dimension_numbers<[1], [1], [0], [0], [0, 0, 1, 0], [], []>} : vector<9x8xf32>, vector<9x8xf32>, vector<9x9xf32> -> vector<9x9xf32>
    %cst_382 = arith.constant dense<0xFF800000> : vector<9xf32>
    %930 = vector.multi_reduction <maximumf>, %929, %cst_382 [1] : vector<9x9xf32> to vector<9xf32>
    %931 = vector.shape_cast %930 : vector<9xf32> to vector<9x1xf32>
    %932 = vector.broadcast %931 : vector<9x1xf32> to vector<9x9xf32>
    %933 = arith.subf %929, %932 : vector<9x9xf32>
    %934 = math.exp %933 : vector<9x9xf32>
    %cst_383 = arith.constant dense<0.000000e+00> : vector<9xf32>
    %935 = vector.multi_reduction <add>, %934, %cst_383 [1] : vector<9x9xf32> to vector<9xf32>
    %936 = vector.shape_cast %935 : vector<9xf32> to vector<9x1xf32>
    %937 = tpu.reciprocal %936 {approx = true} : vector<9x1xf32> -> vector<9x1xf32>
    %938 = vector.broadcast %937 : vector<9x1xf32> to vector<9x9xf32>
    %939 = arith.mulf %934, %938 : vector<9x9xf32>
    %940 = vector.extract_strided_slice %896 {offsets = [0, 16], sizes = [9, 8], strides = [1, 1]} : vector<9x32xf32> to vector<9x8xf32>
    %cst_384 = arith.constant dense<0.000000e+00> : vector<9x8xf32>
    %941 = tpu.matmul %939, %940, %cst_384 {dimension_numbers = #tpu.dot_dimension_numbers<[1], [0], [0], [1], [0, 0, 1, 1], [], []>} : vector<9x9xf32>, vector<9x8xf32>, vector<9x8xf32> -> vector<9x8xf32>
    %942 = vector.extract_strided_slice %894 {offsets = [0, 24], sizes = [9, 8], strides = [1, 1]} : vector<9x32xf32> to vector<9x8xf32>
    %943 = vector.extract_strided_slice %895 {offsets = [0, 24], sizes = [9, 8], strides = [1, 1]} : vector<9x32xf32> to vector<9x8xf32>
    %cst_385 = arith.constant dense<0.000000e+00> : vector<9x9xf32>
    %944 = tpu.matmul %942, %943, %cst_385 {dimension_numbers = #tpu.dot_dimension_numbers<[1], [1], [0], [0], [0, 0, 1, 0], [], []>} : vector<9x8xf32>, vector<9x8xf32>, vector<9x9xf32> -> vector<9x9xf32>
    %cst_386 = arith.constant dense<0xFF800000> : vector<9xf32>
    %945 = vector.multi_reduction <maximumf>, %944, %cst_386 [1] : vector<9x9xf32> to vector<9xf32>
    %946 = vector.shape_cast %945 : vector<9xf32> to vector<9x1xf32>
    %947 = vector.broadcast %946 : vector<9x1xf32> to vector<9x9xf32>
    %948 = arith.subf %944, %947 : vector<9x9xf32>
    %949 = math.exp %948 : vector<9x9xf32>
    %cst_387 = arith.constant dense<0.000000e+00> : vector<9xf32>
    %950 = vector.multi_reduction <add>, %949, %cst_387 [1] : vector<9x9xf32> to vector<9xf32>
    %951 = vector.shape_cast %950 : vector<9xf32> to vector<9x1xf32>
    %952 = tpu.reciprocal %951 {approx = true} : vector<9x1xf32> -> vector<9x1xf32>
    %953 = vector.broadcast %952 : vector<9x1xf32> to vector<9x9xf32>
    %954 = arith.mulf %949, %953 : vector<9x9xf32>
    %955 = vector.extract_strided_slice %896 {offsets = [0, 24], sizes = [9, 8], strides = [1, 1]} : vector<9x32xf32> to vector<9x8xf32>
    %cst_388 = arith.constant dense<0.000000e+00> : vector<9x8xf32>
    %956 = tpu.matmul %954, %955, %cst_388 {dimension_numbers = #tpu.dot_dimension_numbers<[1], [0], [0], [1], [0, 0, 1, 1], [], []>} : vector<9x9xf32>, vector<9x8xf32>, vector<9x8xf32> -> vector<9x8xf32>
    %957 = tpu.concatenate %911, %926, %941, %956 in 1 : vector<9x8xf32>, vector<9x8xf32>, vector<9x8xf32>, vector<9x8xf32> -> vector<9x32xf32>
    %958 = vector.extract_strided_slice %891 {offsets = [9, 0], sizes = [9, 32], strides = [1, 1]} : vector<18x32xf32> to vector<9x32xf32>
    %959 = vector.extract_strided_slice %892 {offsets = [9, 0], sizes = [9, 32], strides = [1, 1]} : vector<18x32xf32> to vector<9x32xf32>
    %960 = vector.extract_strided_slice %893 {offsets = [9, 0], sizes = [9, 32], strides = [1, 1]} : vector<18x32xf32> to vector<9x32xf32>
    %961 = vector.extract_strided_slice %958 {offsets = [0, 0], sizes = [9, 8], strides = [1, 1]} : vector<9x32xf32> to vector<9x8xf32>
    %962 = vector.extract_strided_slice %959 {offsets = [0, 0], sizes = [9, 8], strides = [1, 1]} : vector<9x32xf32> to vector<9x8xf32>
    %cst_389 = arith.constant dense<0.000000e+00> : vector<9x9xf32>
    %963 = tpu.matmul %961, %962, %cst_389 {dimension_numbers = #tpu.dot_dimension_numbers<[1], [1], [0], [0], [0, 0, 1, 0], [], []>} : vector<9x8xf32>, vector<9x8xf32>, vector<9x9xf32> -> vector<9x9xf32>
    %cst_390 = arith.constant dense<0xFF800000> : vector<9xf32>
    %964 = vector.multi_reduction <maximumf>, %963, %cst_390 [1] : vector<9x9xf32> to vector<9xf32>
    %965 = vector.shape_cast %964 : vector<9xf32> to vector<9x1xf32>
    %966 = vector.broadcast %965 : vector<9x1xf32> to vector<9x9xf32>
    %967 = arith.subf %963, %966 : vector<9x9xf32>
    %968 = math.exp %967 : vector<9x9xf32>
    %cst_391 = arith.constant dense<0.000000e+00> : vector<9xf32>
    %969 = vector.multi_reduction <add>, %968, %cst_391 [1] : vector<9x9xf32> to vector<9xf32>
    %970 = vector.shape_cast %969 : vector<9xf32> to vector<9x1xf32>
    %971 = tpu.reciprocal %970 {approx = true} : vector<9x1xf32> -> vector<9x1xf32>
    %972 = vector.broadcast %971 : vector<9x1xf32> to vector<9x9xf32>
    %973 = arith.mulf %968, %972 : vector<9x9xf32>
    %974 = vector.extract_strided_slice %960 {offsets = [0, 0], sizes = [9, 8], strides = [1, 1]} : vector<9x32xf32> to vector<9x8xf32>
    %cst_392 = arith.constant dense<0.000000e+00> : vector<9x8xf32>
    %975 = tpu.matmul %973, %974, %cst_392 {dimension_numbers = #tpu.dot_dimension_numbers<[1], [0], [0], [1], [0, 0, 1, 1], [], []>} : vector<9x9xf32>, vector<9x8xf32>, vector<9x8xf32> -> vector<9x8xf32>
    %976 = vector.extract_strided_slice %958 {offsets = [0, 8], sizes = [9, 8], strides = [1, 1]} : vector<9x32xf32> to vector<9x8xf32>
    %977 = vector.extract_strided_slice %959 {offsets = [0, 8], sizes = [9, 8], strides = [1, 1]} : vector<9x32xf32> to vector<9x8xf32>
    %cst_393 = arith.constant dense<0.000000e+00> : vector<9x9xf32>
    %978 = tpu.matmul %976, %977, %cst_393 {dimension_numbers = #tpu.dot_dimension_numbers<[1], [1], [0], [0], [0, 0, 1, 0], [], []>} : vector<9x8xf32>, vector<9x8xf32>, vector<9x9xf32> -> vector<9x9xf32>
    %cst_394 = arith.constant dense<0xFF800000> : vector<9xf32>
    %979 = vector.multi_reduction <maximumf>, %978, %cst_394 [1] : vector<9x9xf32> to vector<9xf32>
    %980 = vector.shape_cast %979 : vector<9xf32> to vector<9x1xf32>
    %981 = vector.broadcast %980 : vector<9x1xf32> to vector<9x9xf32>
    %982 = arith.subf %978, %981 : vector<9x9xf32>
    %983 = math.exp %982 : vector<9x9xf32>
    %cst_395 = arith.constant dense<0.000000e+00> : vector<9xf32>
    %984 = vector.multi_reduction <add>, %983, %cst_395 [1] : vector<9x9xf32> to vector<9xf32>
    %985 = vector.shape_cast %984 : vector<9xf32> to vector<9x1xf32>
    %986 = tpu.reciprocal %985 {approx = true} : vector<9x1xf32> -> vector<9x1xf32>
    %987 = vector.broadcast %986 : vector<9x1xf32> to vector<9x9xf32>
    %988 = arith.mulf %983, %987 : vector<9x9xf32>
    %989 = vector.extract_strided_slice %960 {offsets = [0, 8], sizes = [9, 8], strides = [1, 1]} : vector<9x32xf32> to vector<9x8xf32>
    %cst_396 = arith.constant dense<0.000000e+00> : vector<9x8xf32>
    %990 = tpu.matmul %988, %989, %cst_396 {dimension_numbers = #tpu.dot_dimension_numbers<[1], [0], [0], [1], [0, 0, 1, 1], [], []>} : vector<9x9xf32>, vector<9x8xf32>, vector<9x8xf32> -> vector<9x8xf32>
    %991 = vector.extract_strided_slice %958 {offsets = [0, 16], sizes = [9, 8], strides = [1, 1]} : vector<9x32xf32> to vector<9x8xf32>
    %992 = vector.extract_strided_slice %959 {offsets = [0, 16], sizes = [9, 8], strides = [1, 1]} : vector<9x32xf32> to vector<9x8xf32>
    %cst_397 = arith.constant dense<0.000000e+00> : vector<9x9xf32>
    %993 = tpu.matmul %991, %992, %cst_397 {dimension_numbers = #tpu.dot_dimension_numbers<[1], [1], [0], [0], [0, 0, 1, 0], [], []>} : vector<9x8xf32>, vector<9x8xf32>, vector<9x9xf32> -> vector<9x9xf32>
    %cst_398 = arith.constant dense<0xFF800000> : vector<9xf32>
    %994 = vector.multi_reduction <maximumf>, %993, %cst_398 [1] : vector<9x9xf32> to vector<9xf32>
    %995 = vector.shape_cast %994 : vector<9xf32> to vector<9x1xf32>
    %996 = vector.broadcast %995 : vector<9x1xf32> to vector<9x9xf32>
    %997 = arith.subf %993, %996 : vector<9x9xf32>
    %998 = math.exp %997 : vector<9x9xf32>
    %cst_399 = arith.constant dense<0.000000e+00> : vector<9xf32>
    %999 = vector.multi_reduction <add>, %998, %cst_399 [1] : vector<9x9xf32> to vector<9xf32>
    %1000 = vector.shape_cast %999 : vector<9xf32> to vector<9x1xf32>
    %1001 = tpu.reciprocal %1000 {approx = true} : vector<9x1xf32> -> vector<9x1xf32>
    %1002 = vector.broadcast %1001 : vector<9x1xf32> to vector<9x9xf32>
    %1003 = arith.mulf %998, %1002 : vector<9x9xf32>
    %1004 = vector.extract_strided_slice %960 {offsets = [0, 16], sizes = [9, 8], strides = [1, 1]} : vector<9x32xf32> to vector<9x8xf32>
    %cst_400 = arith.constant dense<0.000000e+00> : vector<9x8xf32>
    %1005 = tpu.matmul %1003, %1004, %cst_400 {dimension_numbers = #tpu.dot_dimension_numbers<[1], [0], [0], [1], [0, 0, 1, 1], [], []>} : vector<9x9xf32>, vector<9x8xf32>, vector<9x8xf32> -> vector<9x8xf32>
    %1006 = vector.extract_strided_slice %958 {offsets = [0, 24], sizes = [9, 8], strides = [1, 1]} : vector<9x32xf32> to vector<9x8xf32>
    %1007 = vector.extract_strided_slice %959 {offsets = [0, 24], sizes = [9, 8], strides = [1, 1]} : vector<9x32xf32> to vector<9x8xf32>
    %cst_401 = arith.constant dense<0.000000e+00> : vector<9x9xf32>
    %1008 = tpu.matmul %1006, %1007, %cst_401 {dimension_numbers = #tpu.dot_dimension_numbers<[1], [1], [0], [0], [0, 0, 1, 0], [], []>} : vector<9x8xf32>, vector<9x8xf32>, vector<9x9xf32> -> vector<9x9xf32>
    %cst_402 = arith.constant dense<0xFF800000> : vector<9xf32>
    %1009 = vector.multi_reduction <maximumf>, %1008, %cst_402 [1] : vector<9x9xf32> to vector<9xf32>
    %1010 = vector.shape_cast %1009 : vector<9xf32> to vector<9x1xf32>
    %1011 = vector.broadcast %1010 : vector<9x1xf32> to vector<9x9xf32>
    %1012 = arith.subf %1008, %1011 : vector<9x9xf32>
    %1013 = math.exp %1012 : vector<9x9xf32>
    %cst_403 = arith.constant dense<0.000000e+00> : vector<9xf32>
    %1014 = vector.multi_reduction <add>, %1013, %cst_403 [1] : vector<9x9xf32> to vector<9xf32>
    %1015 = vector.shape_cast %1014 : vector<9xf32> to vector<9x1xf32>
    %1016 = tpu.reciprocal %1015 {approx = true} : vector<9x1xf32> -> vector<9x1xf32>
    %1017 = vector.broadcast %1016 : vector<9x1xf32> to vector<9x9xf32>
    %1018 = arith.mulf %1013, %1017 : vector<9x9xf32>
    %1019 = vector.extract_strided_slice %960 {offsets = [0, 24], sizes = [9, 8], strides = [1, 1]} : vector<9x32xf32> to vector<9x8xf32>
    %cst_404 = arith.constant dense<0.000000e+00> : vector<9x8xf32>
    %1020 = tpu.matmul %1018, %1019, %cst_404 {dimension_numbers = #tpu.dot_dimension_numbers<[1], [0], [0], [1], [0, 0, 1, 1], [], []>} : vector<9x9xf32>, vector<9x8xf32>, vector<9x8xf32> -> vector<9x8xf32>
    %1021 = tpu.concatenate %975, %990, %1005, %1020 in 1 : vector<9x8xf32>, vector<9x8xf32>, vector<9x8xf32>, vector<9x8xf32> -> vector<9x32xf32>
    %1022 = tpu.concatenate %957, %1021 in 0 : vector<9x32xf32>, vector<9x32xf32> -> vector<18x32xf32>
    %cst_405 = arith.constant dense<0.000000e+00> : vector<18x32xf32>
    %1023 = tpu.matmul %1022, %849, %cst_405 {dimension_numbers = #tpu.dot_dimension_numbers<[1], [0], [0], [1], [0, 0, 1, 1], [], []>} : vector<18x32xf32>, vector<32x32xf32>, vector<18x32xf32> -> vector<18x32xf32>
    %1024 = arith.addf %839, %1023 : vector<18x32xf32>
    %1025 = vector.broadcast %851 : vector<1x32xf32> to vector<18x32xf32>
    %1026 = arith.addf %1024, %1025 : vector<18x32xf32>
    %cst_406 = arith.constant dense<0.000000e+00> : vector<18xf32>
    %1027 = vector.multi_reduction <add>, %1026, %cst_406 [1] : vector<18x32xf32> to vector<18xf32>
    %1028 = vector.shape_cast %1027 : vector<18xf32> to vector<18x1xf32>
    %cst_407 = arith.constant 3.200000e+01 : f32
    %1029 = vector.broadcast %cst_407 : f32 to vector<18x1xf32>
    %1030 = arith.divf %1028, %1029 : vector<18x1xf32>
    %1031 = vector.broadcast %1030 : vector<18x1xf32> to vector<18x32xf32>
    %1032 = arith.subf %1026, %1031 : vector<18x32xf32>
    %1033 = arith.mulf %1032, %1032 : vector<18x32xf32>
    %cst_408 = arith.constant dense<0.000000e+00> : vector<18xf32>
    %1034 = vector.multi_reduction <add>, %1033, %cst_408 [1] : vector<18x32xf32> to vector<18xf32>
    %1035 = vector.shape_cast %1034 : vector<18xf32> to vector<18x1xf32>
    %cst_409 = arith.constant 3.200000e+01 : f32
    %1036 = vector.broadcast %cst_409 : f32 to vector<18x1xf32>
    %1037 = arith.divf %1035, %1036 : vector<18x1xf32>
    %1038 = vector.broadcast %1030 : vector<18x1xf32> to vector<18x32xf32>
    %1039 = arith.subf %1026, %1038 : vector<18x32xf32>
    %cst_410 = arith.constant 9.99999974E-6 : f32
    %1040 = vector.broadcast %cst_410 : f32 to vector<18x1xf32>
    %1041 = arith.addf %1037, %1040 : vector<18x1xf32>
    %1042 = math.rsqrt %1041 : vector<18x1xf32>
    %1043 = vector.broadcast %1042 : vector<18x1xf32> to vector<18x32xf32>
    %1044 = arith.mulf %1039, %1043 : vector<18x32xf32>
    %1045 = vector.broadcast %853 : vector<1x32xf32> to vector<18x32xf32>
    %1046 = arith.mulf %1044, %1045 : vector<18x32xf32>
    %1047 = vector.broadcast %855 : vector<1x32xf32> to vector<18x32xf32>
    %1048 = arith.addf %1046, %1047 : vector<18x32xf32>
    %cst_411 = arith.constant dense<0.000000e+00> : vector<18x128xf32>
    %1049 = tpu.matmul %1048, %857, %cst_411 {dimension_numbers = #tpu.dot_dimension_numbers<[1], [0], [0], [1], [0, 0, 1, 1], [], []>} : vector<18x32xf32>, vector<32x128xf32>, vector<18x128xf32> -> vector<18x128xf32>
    %1050 = vector.broadcast %859 : vector<1x128xf32> to vector<18x128xf32>
    %1051 = arith.addf %1049, %1050 : vector<18x128xf32>
    %cst_412 = arith.constant 5.000000e-01 : f32
    %1052 = vector.broadcast %cst_412 : f32 to vector<18x128xf32>
    %1053 = arith.mulf %1052, %1051 : vector<18x128xf32>
    %cst_413 = arith.constant 0.707106769 : f32
    %1054 = vector.broadcast %cst_413 : f32 to vector<18x128xf32>
    %1055 = arith.mulf %1051, %1054 : vector<18x128xf32>
    %1056 = math.absf %1055 : vector<18x128xf32>
    %cst_414 = arith.constant 0.327591091 : f32
    %1057 = vector.broadcast %cst_414 : f32 to vector<18x128xf32>
    %1058 = arith.mulf %1057, %1056 : vector<18x128xf32>
    %cst_415 = arith.constant 1.000000e+00 : f32
    %1059 = vector.broadcast %cst_415 : f32 to vector<18x128xf32>
    %1060 = arith.addf %1059, %1058 : vector<18x128xf32>
    %cst_416 = arith.constant 1.000000e+00 : f32
    %1061 = vector.broadcast %cst_416 : f32 to vector<18x128xf32>
    %1062 = arith.divf %1061, %1060 : vector<18x128xf32>
    %cst_417 = arith.constant 1.06140542 : f32
    %1063 = vector.broadcast %cst_417 : f32 to vector<18x128xf32>
    %1064 = arith.mulf %1063, %1062 : vector<18x128xf32>
    %cst_418 = arith.constant -1.45315206 : f32
    %1065 = vector.broadcast %cst_418 : f32 to vector<18x128xf32>
    %1066 = arith.addf %1064, %1065 : vector<18x128xf32>
    %1067 = arith.mulf %1066, %1062 : vector<18x128xf32>
    %cst_419 = arith.constant 1.42141378 : f32
    %1068 = vector.broadcast %cst_419 : f32 to vector<18x128xf32>
    %1069 = arith.addf %1067, %1068 : vector<18x128xf32>
    %1070 = arith.mulf %1069, %1062 : vector<18x128xf32>
    %cst_420 = arith.constant -0.284496725 : f32
    %1071 = vector.broadcast %cst_420 : f32 to vector<18x128xf32>
    %1072 = arith.addf %1070, %1071 : vector<18x128xf32>
    %1073 = arith.mulf %1072, %1062 : vector<18x128xf32>
    %cst_421 = arith.constant 0.254829586 : f32
    %1074 = vector.broadcast %cst_421 : f32 to vector<18x128xf32>
    %1075 = arith.addf %1073, %1074 : vector<18x128xf32>
    %1076 = arith.mulf %1075, %1062 : vector<18x128xf32>
    %cst_422 = arith.constant 0.000000e+00 : f32
    %1077 = vector.broadcast %cst_422 : f32 to vector<18x128xf32>
    %1078 = arith.subf %1077, %1056 : vector<18x128xf32>
    %1079 = arith.mulf %1078, %1056 : vector<18x128xf32>
    %1080 = math.exp %1079 : vector<18x128xf32>
    %1081 = arith.mulf %1076, %1080 : vector<18x128xf32>
    %cst_423 = arith.constant 1.000000e+00 : f32
    %1082 = vector.broadcast %cst_423 : f32 to vector<18x128xf32>
    %1083 = arith.subf %1082, %1081 : vector<18x128xf32>
    %cst_424 = arith.constant 0.000000e+00 : f32
    %1084 = vector.broadcast %cst_424 : f32 to vector<18x128xf32>
    %1085 = arith.cmpf oge, %1055, %1084 : vector<18x128xf32>
    %cst_425 = arith.constant 0.000000e+00 : f32
    %1086 = vector.broadcast %cst_425 : f32 to vector<18x128xf32>
    %1087 = arith.subf %1086, %1083 : vector<18x128xf32>
    %1088 = arith.select %1085, %1083, %1087 : vector<18x128xi1>, vector<18x128xf32>
    %cst_426 = arith.constant 1.000000e+00 : f32
    %1089 = vector.broadcast %cst_426 : f32 to vector<18x128xf32>
    %1090 = arith.addf %1089, %1088 : vector<18x128xf32>
    %1091 = arith.mulf %1053, %1090 : vector<18x128xf32>
    %cst_427 = arith.constant dense<0.000000e+00> : vector<18x32xf32>
    %1092 = tpu.matmul %1091, %861, %cst_427 {dimension_numbers = #tpu.dot_dimension_numbers<[1], [0], [0], [1], [0, 0, 1, 1], [], []>} : vector<18x128xf32>, vector<128x32xf32>, vector<18x32xf32> -> vector<18x32xf32>
    %1093 = vector.broadcast %863 : vector<1x32xf32> to vector<18x32xf32>
    %1094 = arith.addf %1092, %1093 : vector<18x32xf32>
    %1095 = arith.addf %1026, %1094 : vector<18x32xf32>
    %c0_428 = arith.constant 0 : index
    %c0_429 = arith.constant 0 : index
    %1096 = vector.load %arg38[%c0_428, %c0_429] : memref<1x32xf32, #tpu.memory_space<vmem>>, vector<1x32xf32>
    %c0_430 = arith.constant 0 : index
    %c0_431 = arith.constant 0 : index
    %1097 = vector.load %arg39[%c0_430, %c0_431] : memref<1x32xf32, #tpu.memory_space<vmem>>, vector<1x32xf32>
    %cst_432 = arith.constant dense<0.000000e+00> : vector<18xf32>
    %1098 = vector.multi_reduction <add>, %1095, %cst_432 [1] : vector<18x32xf32> to vector<18xf32>
    %1099 = vector.shape_cast %1098 : vector<18xf32> to vector<18x1xf32>
    %cst_433 = arith.constant 3.200000e+01 : f32
    %1100 = vector.broadcast %cst_433 : f32 to vector<18x1xf32>
    %1101 = arith.divf %1099, %1100 : vector<18x1xf32>
    %1102 = vector.broadcast %1101 : vector<18x1xf32> to vector<18x32xf32>
    %1103 = arith.subf %1095, %1102 : vector<18x32xf32>
    %1104 = arith.mulf %1103, %1103 : vector<18x32xf32>
    %cst_434 = arith.constant dense<0.000000e+00> : vector<18xf32>
    %1105 = vector.multi_reduction <add>, %1104, %cst_434 [1] : vector<18x32xf32> to vector<18xf32>
    %1106 = vector.shape_cast %1105 : vector<18xf32> to vector<18x1xf32>
    %cst_435 = arith.constant 3.200000e+01 : f32
    %1107 = vector.broadcast %cst_435 : f32 to vector<18x1xf32>
    %1108 = arith.divf %1106, %1107 : vector<18x1xf32>
    %1109 = vector.broadcast %1101 : vector<18x1xf32> to vector<18x32xf32>
    %1110 = arith.subf %1095, %1109 : vector<18x32xf32>
    %cst_436 = arith.constant 9.99999974E-6 : f32
    %1111 = vector.broadcast %cst_436 : f32 to vector<18x1xf32>
    %1112 = arith.addf %1108, %1111 : vector<18x1xf32>
    %1113 = math.rsqrt %1112 : vector<18x1xf32>
    %1114 = vector.broadcast %1113 : vector<18x1xf32> to vector<18x32xf32>
    %1115 = arith.mulf %1110, %1114 : vector<18x32xf32>
    %1116 = vector.broadcast %1096 : vector<1x32xf32> to vector<18x32xf32>
    %1117 = arith.mulf %1115, %1116 : vector<18x32xf32>
    %1118 = vector.broadcast %1097 : vector<1x32xf32> to vector<18x32xf32>
    %1119 = arith.addf %1117, %1118 : vector<18x32xf32>
    %c0_437 = arith.constant 0 : index
    %c0_438 = arith.constant 0 : index
    %1120 = vector.load %arg40[%c0_437, %c0_438] : memref<32x5xf32, #tpu.memory_space<vmem>>, vector<32x5xf32>
    %cst_439 = arith.constant dense<0.000000e+00> : vector<18x5xf32>
    %1121 = tpu.matmul %1119, %1120, %cst_439 {dimension_numbers = #tpu.dot_dimension_numbers<[1], [0], [0], [1], [0, 0, 1, 1], [], []>} : vector<18x32xf32>, vector<32x5xf32>, vector<18x5xf32> -> vector<18x5xf32>
    %c0_440 = arith.constant 0 : index
    %c0_441 = arith.constant 0 : index
    %1122 = vector.load %arg41[%c0_440, %c0_441] : memref<1x5xf32, #tpu.memory_space<vmem>>, vector<1x5xf32>
    %1123 = vector.broadcast %1122 : vector<1x5xf32> to vector<18x5xf32>
    %1124 = arith.addf %1121, %1123 : vector<18x5xf32>
    %1125 = vector.extract_strided_slice %1124 {offsets = [1, 0], sizes = [8, 5], strides = [1, 1]} : vector<18x5xf32> to vector<8x5xf32>
    %1126 = vector.extract_strided_slice %1124 {offsets = [10, 0], sizes = [8, 5], strides = [1, 1]} : vector<18x5xf32> to vector<8x5xf32>
    %1127 = tpu.concatenate %1125, %1126 in 0 : vector<8x5xf32>, vector<8x5xf32> -> vector<16x5xf32>
    %c0_442 = arith.constant 0 : index
    %c0_443 = arith.constant 0 : index
    %1128 = vector.load %arg43[%c0_442, %c0_443] : memref<16x5xf32, #tpu.memory_space<vmem>>, vector<16x5xf32>
    tpu.vector_store %arg43[%c0_442, %c0_443], %1127 {strides = array<i32>} : memref<16x5xf32, #tpu.memory_space<vmem>>, vector<16x5xf32>,
    %1129 = arith.subf %1127, %0 : vector<16x5xf32>
    %1130 = arith.mulf %1129, %1129 : vector<16x5xf32>
    %c0_444 = arith.constant 0 : index
    %c0_445 = arith.constant 0 : index
    %1131 = vector.load %arg3[%c0_444, %c0_445] : memref<16x1xf32, #tpu.memory_space<vmem>>, vector<16x1xf32>
    %1132 = vector.broadcast %1131 : vector<16x1xf32> to vector<16x5xf32>
    %1133 = arith.mulf %1130, %1132 : vector<16x5xf32>
    %cst_446 = arith.constant dense<0.000000e+00> : vector<16xf32>
    %1134 = vector.multi_reduction <add>, %1133, %cst_446 [1] : vector<16x5xf32> to vector<16xf32>
    %1135 = vector.shape_cast %1134 : vector<16xf32> to vector<16x1xf32>
    %cst_447 = arith.constant dense<0.000000e+00> : vector<1xf32>
    %1136 = vector.multi_reduction <add>, %1135, %cst_447 [0] : vector<16x1xf32> to vector<1xf32>
    %1137 = vector.shape_cast %1136 : vector<1xf32> to vector<1x1xf32>
    %cst_448 = arith.constant dense<0.000000e+00> : vector<16xf32>
    %1138 = vector.multi_reduction <add>, %1130, %cst_448 [1] : vector<16x5xf32> to vector<16xf32>
    %1139 = vector.shape_cast %1138 : vector<16xf32> to vector<16x1xf32>
    %cst_449 = arith.constant dense<0.000000e+00> : vector<1xf32>
    %1140 = vector.multi_reduction <add>, %1139, %cst_449 [0] : vector<16x1xf32> to vector<1xf32>
    %1141 = vector.shape_cast %1140 : vector<1xf32> to vector<1x1xf32>
    %cst_450 = arith.constant dense<0.000000e+00> : vector<1xf32>
    %1142 = vector.multi_reduction <add>, %1131, %cst_450 [0] : vector<16x1xf32> to vector<1xf32>
    %1143 = vector.shape_cast %1142 : vector<1xf32> to vector<1x1xf32>
    %cst_451 = arith.constant 5.000000e+00 : f32
    %1144 = vector.broadcast %cst_451 : f32 to vector<1x1xf32>
    %1145 = arith.mulf %1143, %1144 : vector<1x1xf32>
    %cst_452 = arith.constant 1.000000e+00 : f32
    %1146 = vector.broadcast %cst_452 : f32 to vector<1x1xf32>
    %1147 = arith.maximumf %1145, %1146 : vector<1x1xf32>
    %1148 = arith.divf %1137, %1147 : vector<1x1xf32>
    %cst_453 = arith.constant 1.250000e-02 : f32
    %1149 = vector.broadcast %cst_453 : f32 to vector<1x1xf32>
    %1150 = arith.mulf %1141, %1149 : vector<1x1xf32>
    %cst_454 = arith.constant 0.000000e+00 : f32
    %1151 = vector.broadcast %cst_454 : f32 to vector<1x1xf32>
    %1152 = arith.cmpf ogt, %1143, %1151 : vector<1x1xf32>
    %1153 = arith.select %1152, %1148, %1150 : vector<1x1xi1>, vector<1x1xf32>
    %c0_455 = arith.constant 0 : index
    %c0_456 = arith.constant 0 : index
    %1154 = vector.load %arg42[%c0_455, %c0_456] : memref<1x1xf32, #tpu.memory_space<vmem>>, vector<1x1xf32>
    tpu.vector_store %arg42[%c0_455, %c0_456], %1153 {strides = array<i32>} : memref<1x1xf32, #tpu.memory_space<vmem>>, vector<1x1xf32>,
    return
  }
}

</mosaic_0001>

<bundles_post_ra>
// kernel: mae_forward.1
= control target key start
LH: loop header
LB: loop body
LE: loop exit
PB: predicated region body
PF: predicated region fallthrough
CT: control target
= control target key end

     0   :  { %s11585_s6 = smov 1   ;;  %s11586_s10 = smov 2   ;;  %s13319_s0 = inlined_call_operand.smem [shape: u32[45], index: -1, kind: input, shape index: {}] }
   0x1   :  { %s11657_s5 = sld [smem:[%s13319_s0]]   ;;  %s11587_s14 = smov 3  }
   0x2   :  { %s11662_s9 = sld [smem:[%s13319_s0 + %s11585_s6]]   ;;  %s11588_s18 = smov 4  }
   0x3   :  { %s11667_s13 = sld [smem:[%s13319_s0 + %s11586_s10]]   ;;  %s11589_s22 = smov 5  }
   0x4   :  { %s11672_s17 = sld [smem:[%s13319_s0 + %s11587_s14]]   ;;  %s11590_s26 = smov 6  }
   0x5   :  { %s11677_s21 = sld [smem:[%s13319_s0 + %s11588_s18]]   ;;  %s11591_s30 = smov 7  }
   0x6   :  { %s11682_s25 = sld [smem:[%s13319_s0 + %s11589_s22]]   ;;  %s11592_s4 = smov 8  }
   0x7   :  { %s11687_s29 = sld [smem:[%s13319_s0 + %s11590_s26]]   ;;  %s11593_s10 = smov 9  }
   0x8   :  { %s11692_s3 = sld [smem:[%s13319_s0 + %s11591_s30]]   ;;  %s11594_s15 = smov 10  }
   0x9   :  { %13341 = sst [smem:[#allocation5_spill]] %s11667_s13  ;;  %s11595_s20 = smov 11  }
   0xa   :  { %13342 = sst [smem:[#allocation6_spill]] %s11672_s17  ;;  %s11596_s26 = smov 12  }
   0xb   :  { %s11697_s8 = sld [smem:[%s13319_s0 + %s11592_s4]]   ;;  %s11597_s1 = smov 13  }
   0xc   :  { %s11702_s14 = sld [smem:[%s13319_s0 + %s11593_s10]]   ;;  %s11598_s7 = smov 14  }
   0xd   :  { %s11707_s19 = sld [smem:[%s13319_s0 + %s11594_s15]]   ;;  %s11599_s15 = smov 15  }
   0xe   :  { %s11712_s24 = sld [smem:[%s13319_s0 + %s11595_s20]]   ;;  %s11600_s22 = smov 16  }
   0xf   :  { %s11717_s30 = sld [smem:[%s13319_s0 + %s11596_s26]]   ;;  %s11601_s28 = smov 17  }
  0x10   :  { %s11722_s6 = sld [smem:[%s13319_s0 + %s11597_s1]]  }
  0x11   :  { %s11727_s12 = sld [smem:[%s13319_s0 + %s11598_s7]]   ;;  %s11602_s7 = smov 18  }
  0x12   :  { %s11732_s20 = sld [smem:[%s13319_s0 + %s11599_s15]]   ;;  %s11603_s15 = smov 19  }
  0x13   :  { %s11737_s27 = sld [smem:[%s13319_s0 + %s11600_s22]]   ;;  %s11604_s22 = smov 20  }
  0x14   :  { %s11742_s4 = sld [smem:[%s13319_s0 + %s11601_s28]]   ;;  %s11605_s28 = smov 21  }
  0x15   :  { %s11747_s17 = sld [smem:[%s13319_s0 + %s11602_s7]]   ;;  %s11606_s7 = smov 22  }
  0x16   :  { %s11752_s13 = sld [smem:[%s13319_s0 + %s11603_s15]]   ;;  %s11607_s15 = smov 23  }
  0x18   :  { %13343 = sst [smem:[#allocation7_spill]] %s11732_s20 }
  0x19   :  { %s11757_s20 = sld [smem:[%s13319_s0 + %s11604_s22]]   ;;  %s11608_s22 = smov 24  }
  0x1a   :  { %13344 = sst [smem:[#allocation8_spill]] %s11742_s4 }
  0x1b   :  { %13345 = sst [smem:[#allocation9_spill]] %s11747_s17 }
  0x1c   :  { %13346 = sst [smem:[#allocation10_spill]] %s11752_s13 }
  0x1d   :  { %s11762_s4 = sld [smem:[%s13319_s0 + %s11605_s28]]   ;;  %s11609_s28 = smov 25  }
  0x1e   :  { %s11767_s17 = sld [smem:[%s13319_s0 + %s11606_s7]]   ;;  %s11610_s7 = smov 26  }
  0x1f   :  { %13347 = sst [smem:[#allocation11_spill]] %s11757_s20 }
  0x20   :  { %s11772_s13 = sld [smem:[%s13319_s0 + %s11607_s15]]   ;;  %s11611_s15 = smov 27  }
  0x21   :  { %s11777_s20 = sld [smem:[%s13319_s0 + %s11608_s22]]   ;;  %s11612_s22 = smov 28  }
  0x23   :  { %13348 = sst [smem:[#allocation12_spill]] %s11762_s4 }
  0x24   :  { %13349 = sst [smem:[#allocation13_spill]] %s11767_s17 }
  0x25   :  { %s11782_s4 = sld [smem:[%s13319_s0 + %s11609_s28]]   ;;  %s11613_s28 = smov 29  }
  0x26   :  { %13350 = sst [smem:[#allocation14_spill]] %s11772_s13 }
  0x27   :  { %13351 = sst [smem:[#allocation15_spill]] %s11777_s20 }
  0x28   :  { %s11787_s17 = sld [smem:[%s13319_s0 + %s11610_s7]]   ;;  %s11614_s7 = smov 30  }
  0x29   :  { %s11792_s13 = sld [smem:[%s13319_s0 + %s11611_s15]]   ;;  %s11615_s15 = smov 31  }
  0x2a   :  { %s11797_s20 = sld [smem:[%s13319_s0 + %s11612_s22]]   ;;  %s11616_s22 = smov 32  }
  0x2b   :  { %13352 = sst [smem:[#allocation16_spill]] %s11782_s4 }
  0x2c   :  { %s11802_s4 = sld [smem:[%s13319_s0 + %s11613_s28]]   ;;  %s11617_s28 = smov 33  }
  0x2e   :  { %13353 = sst [smem:[#allocation17_spill]] %s11787_s17 }
  0x2f   :  { %13354 = sst [smem:[#allocation18_spill]] %s11792_s13 }
  0x30   :  { %13355 = sst [smem:[#allocation19_spill]] %s11797_s20 }
  0x31   :  { %s11807_s17 = sld [smem:[%s13319_s0 + %s11614_s7]]   ;;  %s11618_s7 = smov 34  }
  0x32   :  { %13356 = sst [smem:[#allocation20_spill]] %s11802_s4 }
  0x33   :  { %s11812_s13 = sld [smem:[%s13319_s0 + %s11615_s15]]   ;;  %s11619_s15 = smov 35  }
  0x34   :  { %s11817_s20 = sld [smem:[%s13319_s0 + %s11616_s22]]   ;;  %s11620_s22 = smov 36  }
  0x35   :  { %s11822_s4 = sld [smem:[%s13319_s0 + %s11617_s28]]   ;;  %s11621_s28 = smov 37  }
  0x37   :  { %13357 = sst [smem:[#allocation21_spill]] %s11807_s17 }
  0x38   :  { %s11827_s17 = sld [smem:[%s13319_s0 + %s11618_s7]]   ;;  %s11622_s7 = smov 38  }
  0x39   :  { %13358 = sst [smem:[#allocation22_spill]] %s11812_s13 }
  0x3a   :  { %13359 = sst [smem:[#allocation23_spill]] %s11817_s20 }
  0x3b   :  { %13360 = sst [smem:[#allocation24_spill]] %s11822_s4 }
  0x3c   :  { %s11832_s13 = sld [smem:[%s13319_s0 + %s11619_s15]]   ;;  %s11623_s15 = smov 39  }
  0x3d   :  { %s11837_s20 = sld [smem:[%s13319_s0 + %s11620_s22]]   ;;  %s11624_s22 = smov 40  }
  0x3e   :  { %13361 = sst [smem:[#allocation25_spill]] %s11827_s17 }
  0x3f   :  { %s11842_s4 = sld [smem:[%s13319_s0 + %s11621_s28]]   ;;  %s11625_s28 = smov 41  }
  0x40   :  { %s11847_s17 = sld [smem:[%s13319_s0 + %s11622_s7]]   ;;  %s11626_s7 = smov 42  }
  0x42   :  { %13362 = sst [smem:[#allocation26_spill]] %s11832_s13 }
  0x43   :  { %13363 = sst [smem:[#allocation27_spill]] %s11837_s20 }
  0x44   :  { %s11852_s13 = sld [smem:[%s13319_s0 + %s11623_s15]]   ;;  %s11627_s15 = smov 43  }
  0x45   :  { %13364 = sst [smem:[#allocation28_spill]] %s11842_s4 }
  0x46   :  { %13365 = sst [smem:[#allocation29_spill]] %s11847_s17 }
  0x47   :  { %s11857_s20 = sld [smem:[%s13319_s0 + %s11624_s22]]   ;;  %s11628_s22 = smov 44  }
  0x48   :  { %s11862_s4 = sld [smem:[%s13319_s0 + %s11625_s28]]  }
  0x49   :  { %s11867_s17 = sld [smem:[%s13319_s0 + %s11626_s7]]  }
  0x4a   :  { %13366 = sst [smem:[#allocation30_spill]] %s11852_s13 }
  0x4b   :  { %s11872_s13 = sld [smem:[%s13319_s0 + %s11627_s15]]  }
  0x4d   :  { %13367 = sst [smem:[#allocation31_spill]] %s11857_s20 }
  0x4e   :  { %s11877_s20 = sld [smem:[%s13319_s0 + %s11628_s22]]  }
  0x4f   :  { %v182_v0 = vld [vmem:[%s11677_s21] sm:$0x1f]  ;;  %vm197_vm0 = vcmask 1044480   ;;  %vm190_vm1 = vcmask 39936   ;;  %v181_v2 = vld [vmem:[%s11657_s5 + $0x8] sm:$0xff] }
  0x50   :  { %v180_v1 = vld [vmem:[%s11657_s5] sm:$0xff]  ;;  %9938 = vmatprep.subr.msk.mxu0 %vm197_vm0, %v182_v0 }
  0x51   :  { %9940 = vmatprep.mubr.msk.f32.mxu0 %vm190_vm1, %v180_v1 }
  0x52   :  { %95 = vsyncpa [#allocation3], 0  ;;  %9939 = vmatpush3.msk.msra.mxu0 %vm197_vm0, %v182_v0  ;;  %v11629_v3 = vmov 0.0   ;;  %vm11630_vm2 = vmmov 0   ;;  %v9256_v4 = vld [vmem:[%s11682_s25] ss:$0 sm:$0xff] }
  0x53   :  { %9941 = vmatmul.mubr.msk.f32.vlgmr.msra.gmra.mrb[0].mxu0 %vm190_vm1, %v181_v2  ;;  %9948 = vmatprep.subr.mxu0 %v11629_v3  ;;  %v278_v5 = vld [vmem:[%s11662_s9] sm:$0xf]  ;;  %vm280_vm3 = vcmask 64512   ;;  %vm357_vm4 = vcmask 1040384   ;;  %vm440_vm5 = vcmask 1042432   ;;  %vm478_vm6 = vcmask 259072  }
  0x54   :  { %9943 = vmatprep.subr.mxu1 %v11629_v3  ;;  %9950 = vmatprep.mubr.msk.f32.mxu0 %vm11630_vm2, %v11629_v3  ;;  %v276_v7 = vld [vmem:[%s11687_s29] sm:$0xff]  ;;  %v360_v11 = vrot.slane %v278_v5, 2  ;;  %v445_v32 = vld [vmem:[%s11707_s19 + $0x8] sm:$0xff]  ;;  %v11631_v34 = vmov 0.0|0.0   ;;  %v446_v35 = vld [vmem:[%s11707_s19 + $0x10] sm:$0xff]  ;;  %vm513_vm7 = vcmask 261120  }
  0x55   :  { %9945 = vmatprep.mubr.msk.f32.mxu1 %vm11630_vm2, %v11629_v3  ;;  %v277_v14 = vld [vmem:[%s11692_s3] sm:$0x1]  ;;  %v447_v36 = vld [vmem:[%s11707_s19 + $0x18] sm:$0xff]  ;;  %s11632_s0 = smov 96   ;;  %s11633_s9 = smov 120   ;;  %vm666_vm8 = vcmask 18432   ;;  %vm12464_vm0 = vmpackc.low %vm280_vm3, %vm280_vm3 }
  0x56   :  { %v444_v31 = vld [vmem:[%s11707_s19] sm:$0xff]  ;;  %v10699_v37 = vpack.c.bf16 %v447_v36, %v446_v35  ;;  %s11634_s21 = smov 88   ;;  %s11635_s25 = smov 80   ;;  %vm680_vm9 = vcmask 23552   ;;  %vm1267_vm10 = vcmask 130048   ;;  %vm1269_vm11 = vcmask 195584  }
  0x57   :  { %v10696_v33 = vpack.c.bf16 %v445_v32, %v444_v31  ;;  %v9262_v42 = vld [vmem:[%s11697_s8] ss:$0 sm:$0xff]  ;;  %s11636_s29 = smov 112   ;;  %s11637_s3 = smov 72   ;;  %vm4181_vm14 = vcmask 1041408   ;;  %vm4396_vm15 = vcmask 254976  }
  0x58   :  { %v9263_v44 = vld [vmem:[%s11702_s14] ss:$0 sm:$0xff]  ;;  %s11638_s28 = smov 104   ;;  %s11639_s1 = smov 64  }
  0x59   :  { %v9264_v47 = vld [vmem:[%s11712_s24] ss:$0 sm:$0xff]  ;;  %s11640_s2 = smov 48   ;;  %s11641_s7 = smov 56  }
  0x5a   :  { %s11642_s10 = smov 40   ;;  %s11643_s11 = smov 8  }
  0x5b   :  { %s11644_s15 = smov 16   ;;  %s11645_s16 = smov 24  }
  0x5c   :  { %s13368_s18 = sld [smem:[#allocation7_spill]]  ;;  %s13369_s22 = sld [smem:[#allocation9_spill]] }
  0x5d   :  { %s13370_s23 = sld [smem:[#allocation8_spill]]  ;;  %s13371_s26 = sld [smem:[#allocation10_spill]] }
 0x126   :  { %v9942_v6 = vpop.f32.mrb[0].mxu0 }
 0x127   :  { %v273_v8 = vadd.f32 %v9942_v6, %v9256_v4  ;;  %v267_v9 = vpop.f32.mrb[1].mxu0 }
 0x128   :  { %v268_v10 = vadd.f32 %v9256_v4, %v267_v9 }
 0x129   :  { %v359_v12 = vadd.f32 %v276_v7, %v273_v8 }
 0x12a   :  { %v279_v13 = vadd.f32 %v276_v7, %v268_v10 }
 0x12b   :  { %9949 = vmatpush3.msra.mxu0 %v359_v12 }
 0x12c   :  { %9944 = vmatpush3.msra.mxu1 %v279_v13  ;;  %9951 = vmatmul.mubr.msk.f32.vlgmr.msra.gmra.mrb[2].mxu0 %vm280_vm3, %v360_v11 }
 0x12d   :  { %9946 = vmatmul.mubr.msk.f32.vlgmr.msra.gmra.mrb[0].mxu1 %vm280_vm3, %v278_v5  ;;  %9961 = vmatprep.mubr.msk.f32.mxu0 %vm11630_vm2, %v11629_v3 }
 0x12e   :  { %9974 = vmatprep.subr.mxu1 %v11629_v3  ;;  %9976 = vmatprep.mubr.msk.f32.mxu1 %vm11630_vm2, %v11629_v3 }
 0x12f   :  { %10695 = vmatprep.subr.bf16.mxu0 %v11631_v34 }
 0x130   :  { %10697 = vmatpush3.bf16.msra.mxu0 %v10696_v33 }
 0x131   :  { %10698 = vmatprep.subr.bf16.mxu0 %v11631_v34 }
 0x134   :  { %10700 = vmatpush3.bf16.msra.mxu0 %v10699_v37 }
 0x135   :  { %9964 = vmatprep.subr.mxu0 %v11629_v3 }
 0x1ff   :  { %v429_v15 = vpop.f32.mrb[2].mxu0 }
 0x200   :  { %v434_v16 = vrot.slane %v429_v15, 7  ;;  %v350_v17 = vpop.f32.mrb[0].mxu1  ;;  %v9952_v18 = vpop.f32.mrb[3].mxu0 }
 0x201   :  { %v355_v19 = vrot.slane %v350_v17, 7  ;;  %v9947_v20 = vpop.f32.mrb[1].mxu1 }
 0x202   :  { %v436_v21 = vsel %vm357_vm4, %v277_v14, %v434_v16 }
 0x203   :  { %v438_v22 = vrot.slane %v436_v21, 5  ;;  %v358_v23 = vsel %vm357_vm4, %v277_v14, %v355_v19 }
 0x205   :  { %v11904_v24 = vsel %vm440_vm5, %v358_v23, %v438_v22 }
 0x206   :  { %v479_v25 = vsel %vm478_vm6, %v11904_v24, 0.0 }
 0x207   :  { %480 = vadd.xlane.f32.xlu0 %v479_v25 }
 0x294   :  { %v481_v26 = vpop.xlane.xlu0 %480 }
 0x295   :  { %v483_v27 = vmul.f32 0.03125, %v481_v26 }
 0x297   :  { %v484_v28 = vsub.f32 %v11904_v24, %v483_v27 }
 0x299   :  { %v485_v29 = vmul.f32 %v484_v28, %v484_v28 }
 0x29b   :  { %v486_v30 = vsel %vm478_vm6, %v485_v29, 0.0 }
 0x29c   :  { %487 = vadd.xlane.f32.xlu0 %v486_v30 }
 0x329   :  { %v488_v38 = vpop.xlane.xlu0 %487 }
 0x32a   :  { %v489_v39 = vmul.f32 0.03125, %v488_v38 }
 0x32c   :  { %v490_v40 = vadd.f32 1e-05, %v489_v39 }
 0x32e   :  { %11293 = vrsqrt.f32 %v490_v40 }
 0x338   :  { %v11294_v41 = vpop.eup %11293 }
 0x339   :  { %v492_v43 = vmul.f32 %v11294_v41, %v484_v28 }
 0x33b   :  { %v499_v45 = vmul.f32 %v9262_v42, %v492_v43 }
 0x33d   :  { %v506_v46 = vadd.f32 %v9263_v44, %v499_v45 }
 0x33f   :  { %9962 = vmatmul.mubr.msk.f32.vlgmr.msra.gmra.mrb[4].mxu0 %vm513_vm7, %v506_v46 }
 0x340   :  { %9966 = vmatprep.mubr.msk.f32.mxu0 %vm11630_vm2, %v11629_v3 }
 0x412   :  { %v583_v48 = vpop.f32.mrb[4].mxu0 }
 0x413   :  { %v11923_v49 = vadd.f32 %v9264_v47, %v583_v48  ;;  %v9963_v50 = vpop.f32.mrb[5].mxu0 }
 0x415   :  { %589 = vrot.lane.b32.xlu1 %v11923_v49, %s11632_s0  ;;  %v587_v51 = vmul.f32 0.35355338, %v11923_v49  ;;  %v11941_v53 = vrot.slane %v11923_v49, 3 }
 0x417   :  { %756 = vrot.lane.b32.xlu0 %v587_v51, %s11633_s9  ;;  %v1271_v52 = vrot.slane %v587_v51, 3 }
 0x419   :  { %758 = vrot.lane.b32.xlu1 %v11923_v49, %s11634_s21 }
 0x41b   :  { %1437 = vrot.lane.b32.xlu0 %v1271_v52, %s11633_s9 }
 0x41d   :  { %924 = vrot.lane.b32.xlu1 %v11923_v49, %s11635_s25 }
 0x41f   :  { %1603 = vrot.lane.b32.xlu0 %v1271_v52, %s11636_s29 }
 0x421   :  { %1090 = vrot.lane.b32.xlu1 %v11923_v49, %s11637_s3 }
 0x423   :  { %1769 = vrot.lane.b32.xlu0 %v1271_v52, %s11638_s28 }
 0x425   :  { %922 = vrot.lane.b32.xlu1 %v587_v51, %s11636_s29 }
 0x429   :  { %1088 = vrot.lane.b32.xlu1 %v587_v51, %s11638_s28 }
 0x42d   :  { %1273 = vrot.lane.b32.xlu1 %v11941_v53, %s11632_s0 }
 0x431   :  { %1439 = vrot.lane.b32.xlu1 %v11941_v53, %s11634_s21 }
 0x435   :  { %1605 = vrot.lane.b32.xlu1 %v11941_v53, %s11635_s25 }
 0x439   :  { %1771 = vrot.lane.b32.xlu1 %v11941_v53, %s11637_s3 }
 0x43d   :  { %678 = vrot.lane.b32.xlu1 %v11923_v49, %s11639_s1 }
 0x487   :  { %v590_v54 = vpop.permute.xlu1 %589 }
 0x488   :  { %9965 = vmatpush3.xpose.msk.msra.mxu0 %vm280_vm3, %v590_v54 }
 0x489   :  { %9969 = vmatprep.subr.mxu0 %v11629_v3  ;;  %v757_v56 = vpop.permute.xlu0 %756 }
 0x48b   :  { %v759_v55 = vpop.permute.xlu1 %758  ;;  %9967 = vmatmul.mubr.msk.f32.vlgmr.msra.gmra.mrb[6].mxu0 %vm280_vm3, %v587_v51 }
 0x48c   :  { %9975 = vmatpush3.xpose.msk.msra.mxu1 %vm280_vm3, %v759_v55  ;;  %9971 = vmatprep.mubr.msk.f32.mxu0 %vm11630_vm2, %v11629_v3 }
 0x48d   :  { %9984 = vmatprep.subr.mxu1 %v11629_v3  ;;  %v1438_v62 = vpop.permute.xlu0 %1437 }
 0x48f   :  { %v925_v57 = vpop.permute.xlu1 %924  ;;  %9977 = vmatmul.mubr.msk.f32.vlgmr.msra.gmra.mrb[2].mxu1 %vm280_vm3, %v757_v56 }
 0x490   :  { %9985 = vmatpush3.xpose.msk.msra.mxu1 %vm280_vm3, %v925_v57  ;;  %9986 = vmatprep.mubr.msk.f32.mxu1 %vm11630_vm2, %v11629_v3 }
 0x491   :  { %9994 = vmatprep.subr.mxu1 %v11629_v3  ;;  %v1604_v1 = vpop.permute.xlu0 %1603 }
 0x493   :  { %v1091_v58 = vpop.permute.xlu1 %1090 }
 0x495   :  { %v1770_v4 = vpop.permute.xlu0 %1769 }
 0x497   :  { %v923_v59 = vpop.permute.xlu1 %922 }
 0x498   :  { %9987 = vmatmul.mubr.msk.f32.vlgmr.msra.gmra.mrb[4].mxu1 %vm280_vm3, %v923_v59 }
 0x499   :  { %9995 = vmatpush3.xpose.msk.msra.mxu1 %vm280_vm3, %v1091_v58  ;;  %9996 = vmatprep.mubr.msk.f32.mxu1 %vm11630_vm2, %v11629_v3 }
 0x49a   :  { %10004 = vmatprep.subr.mxu1 %v11629_v3 }
 0x49b   :  { %v1089_v60 = vpop.permute.xlu1 %1088 }
 0x49c   :  { %9997 = vmatmul.mubr.msk.f32.vlgmr.msra.gmra.mrb[6].mxu1 %vm280_vm3, %v1089_v60 }
 0x49d   :  { %10006 = vmatprep.mubr.msk.f32.mxu1 %vm11630_vm2, %v11629_v3 }
 0x49f   :  { %v1274_v61 = vpop.permute.xlu1 %1273 }
 0x4a0   :  { %10005 = vmatpush3.xpose.msk.msra.mxu1 %vm280_vm3, %v1274_v61 }
 0x4a1   :  { %10014 = vmatprep.subr.mxu1 %v11629_v3 }
 0x4a3   :  { %v1440_v63 = vpop.permute.xlu1 %1439  ;;  %10007 = vmatmul.mubr.msk.f32.vlgmr.msra.gmra.mrb[8].mxu1 %vm280_vm3, %v1271_v52 }
 0x4a4   :  { %10015 = vmatpush3.xpose.msk.msra.mxu1 %vm280_vm3, %v1440_v63  ;;  %10016 = vmatprep.mubr.msk.f32.mxu1 %vm11630_vm2, %v11629_v3 }
 0x4a5   :  { %10024 = vmatprep.subr.mxu1 %v11629_v3 }
 0x4a7   :  { %v1606_v0 = vpop.permute.xlu1 %1605  ;;  %10017 = vmatmul.mubr.msk.f32.vlgmr.msra.gmra.mrb[10].mxu1 %vm280_vm3, %v1438_v62 }
 0x4a8   :  { %10025 = vmatpush3.xpose.msk.msra.mxu1 %vm280_vm3, %v1606_v0  ;;  %10026 = vmatprep.mubr.msk.f32.mxu1 %vm11630_vm2, %v11629_v3 }
 0x4a9   :  { %10034 = vmatprep.subr.mxu1 %v11629_v3 }
 0x4ab   :  { %v1772_v2 = vpop.permute.xlu1 %1771  ;;  %10027 = vmatmul.mubr.msk.f32.vlgmr.msra.gmra.mrb[12].mxu1 %vm280_vm3, %v1604_v1 }
 0x4ac   :  { %10035 = vmatpush3.xpose.msk.msra.mxu1 %vm280_vm3, %v1772_v2  ;;  %10036 = vmatprep.mubr.msk.f32.mxu1 %vm11630_vm2, %v11629_v3 }
 0x4ad   :  { %10701 = vmatprep.subr.bf16.mxu1 %v11631_v34 }
 0x4af   :  { %v679_v5 = vpop.permute.xlu1 %678  ;;  %10037 = vmatmul.mubr.msk.f32.vlgmr.msra.gmra.mrb[14].mxu1 %vm280_vm3, %v1770_v4 }
 0x4b0   :  { %9970 = vmatpush3.msk.msra.mxu0 %vm440_vm5, %v679_v5  ;;  %10052 = vmatprep.mubr.msk.f32.mxu1 %vm11630_vm2, %v11629_v3 }
 0x4b1   :  { %9979 = vmatprep.subr.mxu0 %v11629_v3 }
 0x55e   :  { %v662_v6 = vpop.f32.mrb[6].mxu0 }
 0x55f   :  { %v9968_v7 = vpop.f32.mrb[7].mxu0  ;;  %v667_v8 = vsel %vm666_vm8, %v662_v6, -inf }
 0x560   :  { %668 = vmax.xlane.f32.xlu1 %v667_v8 }
 0x562   :  { %v830_v9 = vpop.f32.mrb[2].mxu1 }
 0x563   :  { %v9978_v10 = vpop.f32.mrb[3].mxu1  ;;  %v834_v11 = vsel %vm666_vm8, %v830_v9, -inf }
 0x564   :  { %835 = vmax.xlane.f32.xlu0 %v834_v11 }
 0x56b   :  { %v996_v12 = vpop.f32.mrb[4].mxu1 }
 0x56c   :  { %v9988_v13 = vpop.f32.mrb[5].mxu1  ;;  %v1000_v14 = vsel %vm666_vm8, %v996_v12, -inf }
 0x56d   :  { %1001 = vmax.xlane.f32.xlu0 %v1000_v14 }
 0x56f   :  { %v1162_v15 = vpop.f32.mrb[6].mxu1 }
 0x570   :  { %v9998_v16 = vpop.f32.mrb[7].mxu1  ;;  %v1166_v17 = vsel %vm666_vm8, %v1162_v15, -inf }
 0x571   :  { %1167 = vmax.xlane.f32.xlu1 %v1166_v17 }
 0x576   :  { %v1345_v18 = vpop.f32.mrb[8].mxu1 }
 0x577   :  { %v10008_v19 = vpop.f32.mrb[9].mxu1  ;;  %v1349_v20 = vsel %vm666_vm8, %v1345_v18, -inf }
 0x578   :  { %1350 = vmax.xlane.f32.xlu0 %v1349_v20 }
 0x57a   :  { %v1511_v21 = vpop.f32.mrb[10].mxu1 }
 0x57b   :  { %v10018_v22 = vpop.f32.mrb[11].mxu1  ;;  %v1515_v23 = vsel %vm666_vm8, %v1511_v21, -inf }
 0x57c   :  { %1516 = vmax.xlane.f32.xlu1 %v1515_v23 }
 0x57e   :  { %v1677_v25 = vpop.f32.mrb[12].mxu1 }
 0x57f   :  { %v10028_v26 = vpop.f32.mrb[13].mxu1  ;;  %v1681_v27 = vsel %vm666_vm8, %v1677_v25, -inf }
 0x580   :  { %1682 = vmax.xlane.f32.xlu0 %v1681_v27 }
 0x582   :  { %v1843_v28 = vpop.f32.mrb[14].mxu1 }
 0x583   :  { %v10038_v29 = vpop.f32.mrb[15].mxu1  ;;  %v1847_v30 = vsel %vm666_vm8, %v1843_v28, -inf }
 0x58d   :  { %1011 = vrot.lane.b32.xlu1 %v11923_v49, %s11640_s2 }
 0x596   :  { %845 = vrot.lane.b32.xlu0 %v11923_v49, %s11641_s7 }
 0x5b1   :  { %1848 = vmax.xlane.f32.xlu1 %v1847_v30 }
 0x5c2   :  { %1177 = vrot.lane.b32.xlu1 %v11923_v49, %s11642_s10 }
 0x5ed   :  { %v669_v31 = vpop.xlane.xlu1 %668 }
 0x5ee   :  { %v670_v32 = vsub.f32 %v662_v6, %v669_v31 }
 0x5f0   :  { %v671_v33 = vmul.f32 1.442695, %v670_v32 }
 0x5f1   :  { %v836_v35 = vpop.xlane.xlu0 %835 }
 0x5f2   :  { %11295 = vpow2.f32 %v671_v33  ;;  %v837_v36 = vsub.f32 %v830_v9, %v836_v35 }
 0x5f4   :  { %v838_v37 = vmul.f32 1.442695, %v837_v36 }
 0x5f6   :  { %11297 = vpow2.f32 %v838_v37 }
 0x5fa   :  { %v1002_v38 = vpop.xlane.xlu0 %1001 }
 0x5fb   :  { %v1003_v39 = vsub.f32 %v996_v12, %v1002_v38 }
 0x5fc   :  { %v11296_v40 = vpop.eup %11295 }
 0x5fd   :  { %v1004_v41 = vmul.f32 1.442695, %v1003_v39  ;;  %v673_v42 = vsel %vm666_vm8, %v11296_v40, 0.0 }
 0x5fe   :  { %674 = vadd.xlane.f32.xlu0 %v673_v42  ;;  %v1168_v47 = vpop.xlane.xlu1 %1167 }
 0x5ff   :  { %11299 = vpow2.f32 %v1004_v41  ;;  %v1169_v48 = vsub.f32 %v1162_v15, %v1168_v47 }
 0x600   :  { %v11298_v43 = vpop.eup %11297 }
 0x601   :  { %v840_v44 = vsel %vm666_vm8, %v11298_v43, 0.0  ;;  %v1170_v50 = vmul.f32 1.442695, %v1169_v48 }
 0x602   :  { %841 = vadd.xlane.f32.xlu1 %v840_v44 }
 0x603   :  { %11301 = vpow2.f32 %v1170_v50  ;;  %v449_v50 = vld [vmem:[%s11717_s30] sm:$0xff] }
 0x605   :  { %v1351_v52 = vpop.xlane.xlu0 %1350 }
 0x606   :  { %v1352_v55 = vsub.f32 %v1345_v18, %v1351_v52 }
 0x608   :  { %v1353_v57 = vmul.f32 1.442695, %v1352_v55 }
 0x609   :  { %v12011_v45 = vpop.eup %11299  ;;  %v1517_v49 = vpop.xlane.xlu1 %1516 }
 0x60a   :  { %v1006_v46 = vsel %vm666_vm8, %v12011_v45, 0.0  ;;  %v1518_v51 = vsub.f32 %v1511_v21, %v1517_v49 }
 0x60b   :  { %1007 = vadd.xlane.f32.xlu0 %v1006_v46 }
 0x60c   :  { %v1519_v54 = vmul.f32 1.442695, %v1518_v51  ;;  %v450_v51 = vld [vmem:[%s11717_s30 + $0x8] sm:$0xff] }
 0x60d   :  { %v1683_v56 = vpop.xlane.xlu0 %1682  ;;  %v11302_v60 = vpop.eup %11301  ;;  %v10702_v52 = vpack.c.bf16 %v450_v51, %v449_v50  ;;  %v467_v51 = vld [vmem:[%s13369_s22 + $0x30] sm:$0xff] }
 0x60e   :  { %11303 = vpow2.f32 %v1519_v54  ;;  %v1684_v58 = vsub.f32 %v1677_v25, %v1683_v56  ;;  %v1172_v61 = vsel %vm666_vm8, %v11302_v60, 0.0  ;;  %v1012_v63 = vpop.permute.xlu1 %1011 }
 0x60f   :  { %11305 = vpow2.f32 %v1353_v57  ;;  %10703 = vmatpush3.bf16.msra.mxu1 %v10702_v52  ;;  %v451_v57 = vld [vmem:[%s11717_s30 + $0x10] sm:$0xff]  ;;  %v468_v52 = vld [vmem:[%s13369_s22 + $0x38] sm:$0xff] }
 0x610   :  { %v1685_v59 = vmul.f32 1.442695, %v1684_v58  ;;  %10704 = vmatprep.subr.bf16.mxu1 %v11631_v34  ;;  %v452_v58 = vld [vmem:[%s11717_s30 + $0x18] sm:$0xff] }
 0x611   :  { %v846_v11 = vpop.permute.xlu0 %845 }
 0x612   :  { %11307 = vpow2.f32 %v1685_v59 }
 0x613   :  { %1360 = vrot.lane.b32.xlu1 %v11941_v53, %s11639_s1 }
 0x618   :  { %v12020_v62 = vpop.eup %11303 }
 0x619   :  { %v1521_v0 = vsel %vm666_vm8, %v12020_v62, 0.0  ;;  %v11306_v1 = vpop.eup %11305 }
 0x61a   :  { %v1355_v5 = vsel %vm666_vm8, %v11306_v1, 0.0 }
 0x61c   :  { %v12025_v6 = vpop.eup %11307 }
 0x61d   :  { %v1687_v8 = vsel %vm666_vm8, %v12025_v6, 0.0 }
 0x621   :  { %1526 = vrot.lane.b32.xlu0 %v11941_v53, %s11641_s7 }
 0x637   :  { %1173 = vadd.xlane.f32.xlu1 %v1172_v61 }
 0x63b   :  { %1522 = vadd.xlane.f32.xlu1 %v1521_v0 }
 0x63e   :  { %v1849_v2 = vpop.xlane.xlu1 %1848 }
 0x63f   :  { %v1850_v4 = vsub.f32 %v1843_v28, %v1849_v2 }
 0x640   :  { %1356 = vadd.xlane.f32.xlu0 %v1355_v5 }
 0x641   :  { %v1851_v7 = vmul.f32 1.442695, %v1850_v4 }
 0x642   :  { %v1178_v12 = vpop.permute.xlu1 %1177 }
 0x643   :  { %11309 = vpow2.f32 %v1851_v7 }
 0x644   :  { %1688 = vadd.xlane.f32.xlu0 %v1687_v8 }
 0x64c   :  { %1692 = vrot.lane.b32.xlu1 %v11941_v53, %s11640_s2 }
 0x64d   :  { %v12031_v9 = vpop.eup %11309 }
 0x64e   :  { %v1853_v10 = vsel %vm666_vm8, %v12031_v9, 0.0 }
 0x64f   :  { %1854 = vadd.xlane.f32.xlu0 %v1853_v10 }
 0x665   :  { %1858 = vrot.lane.b32.xlu0 %v11941_v53, %s11642_s10 }
 0x68b   :  { %v675_v13 = vpop.xlane.xlu0 %674 }
 0x68c   :  { %11311 = vrcp.f32 %v675_v13 }
 0x68f   :  { %v842_v14 = vpop.xlane.xlu1 %841 }
 0x690   :  { %11313 = vrcp.f32 %v842_v14 }
 0x693   :  { %v1361_v21 = vpop.permute.xlu1 %1360 }
 0x696   :  { %v11312_v15 = vpop.eup %11311 }
 0x697   :  { %v677_v16 = vmul.f32 %v11312_v15, %v11296_v40 }
 0x698   :  { %v1008_v17 = vpop.xlane.xlu0 %1007 }
 0x699   :  { %11315 = vrcp.f32 %v1008_v17  ;;  %9972 = vmatmul.mubr.msk.f32.vlgmr.msra.gmra.mrb[8].mxu0 %vm680_vm9, %v677_v16  ;;  %v9299_v16 = vld [vmem:[%s11722_s6] ss:$0 sm:$0xff] }
 0x69a   :  { %v11314_v18 = vpop.eup %11313  ;;  %9980 = vmatpush3.msk.msra.mxu0 %vm440_vm5, %v846_v11  ;;  %9981 = vmatprep.mubr.msk.f32.mxu0 %vm11630_vm2, %v11629_v3 }
 0x69b   :  { %9989 = vmatprep.subr.mxu0 %v11629_v3  ;;  %v844_v53 = vmul.f32 %v11314_v18, %v11298_v43 }
 0x69c   :  { %v1527_v23 = vpop.permute.xlu0 %1526 }
 0x69d   :  { %9982 = vmatmul.mubr.msk.f32.vlgmr.msra.gmra.mrb[10].mxu0 %vm680_vm9, %v844_v53 }
 0x69e   :  { %9990 = vmatpush3.msk.msra.mxu0 %vm440_vm5, %v1012_v63  ;;  %9991 = vmatprep.mubr.msk.f32.mxu0 %vm11630_vm2, %v11629_v3 }
 0x69f   :  { %9999 = vmatprep.subr.mxu0 %v11629_v3 }
 0x6a3   :  { %v11316_v19 = vpop.eup %11315 }
 0x6a4   :  { %v1010_v20 = vmul.f32 %v11316_v19, %v12011_v45 }
 0x6a6   :  { %9992 = vmatmul.mubr.msk.f32.vlgmr.msra.gmra.mrb[12].mxu0 %vm680_vm9, %v1010_v20 }
 0x6a7   :  { %10000 = vmatpush3.msk.msra.mxu0 %vm440_vm5, %v1178_v12  ;;  %10001 = vmatprep.mubr.msk.f32.mxu0 %vm11630_vm2, %v11629_v3 }
 0x6a8   :  { %10009 = vmatprep.subr.mxu0 %v11629_v3 }
 0x6c4   :  { %v1174_v22 = vpop.xlane.xlu1 %1173 }
 0x6c5   :  { %11317 = vrcp.f32 %v1174_v22 }
 0x6c8   :  { %v1523_v25 = vpop.xlane.xlu1 %1522 }
 0x6cc   :  { %v1693_v37 = vpop.permute.xlu1 %1692 }
 0x6cd   :  { %v1357_v26 = vpop.xlane.xlu0 %1356 }
 0x6ce   :  { %11319 = vrcp.f32 %v1357_v26 }
 0x6cf   :  { %v11318_v27 = vpop.eup %11317  ;;  %11321 = vrcp.f32 %v1523_v25 }
 0x6d0   :  { %v1176_v28 = vmul.f32 %v11318_v27, %v11302_v60  ;;  %v10705_v60 = vpack.c.bf16 %v452_v58, %v451_v57  ;;  %v456_v27 = vld [vmem:[%s11737_s27] sm:$0xff]  ;;  %v471_v58 = vld [vmem:[%s13369_s22 + $0x50] sm:$0xff] }
 0x6d1   :  { %v1689_v29 = vpop.xlane.xlu0 %1688 }
 0x6d2   :  { %10002 = vmatmul.mubr.msk.f32.vlgmr.msra.gmra.mrb[14].mxu0 %vm680_vm9, %v1176_v28  ;;  %11323 = vrcp.f32 %v1689_v29  ;;  %10706 = vmatpush3.bf16.msra.mxu1 %v10705_v60  ;;  %v457_v28 = vld [vmem:[%s11737_s27 + $0x8] sm:$0xff]  ;;  %v458_v29 = vld [vmem:[%s11737_s27 + $0x10] sm:$0xff] }
 0x6d3   :  { %10010 = vmatpush3.msk.msra.mxu0 %vm440_vm5, %v1361_v21  ;;  %10011 = vmatprep.mubr.msk.f32.mxu0 %vm11630_vm2, %v11629_v3 }
 0x6d4   :  { %10019 = vmatprep.subr.mxu0 %v11629_v3  ;;  %10713 = vmatprep.subr.bf16.mxu1 %v11631_v34 }
 0x6d8   :  { %v11320_v30 = vpop.eup %11319 }
 0x6d9   :  { %v1359_v31 = vmul.f32 %v11320_v30, %v11306_v1  ;;  %v11322_v32 = vpop.eup %11321  ;;  %v459_v30 = vld [vmem:[%s11737_s27 + $0x18] sm:$0xff] }
 0x6da   :  { %v1525_v35 = vmul.f32 %v11322_v32, %v12020_v62 }
 0x6db   :  { %10012 = vmatmul.mubr.msk.f32.vlgmr.msra.gmra.mrb[16].mxu0 %vm680_vm9, %v1359_v31  ;;  %v10711_v31 = vpack.c.bf16 %v459_v30, %v458_v29 }
 0x6dc   :  { %10020 = vmatpush3.msk.msra.mxu0 %vm440_vm5, %v1527_v23  ;;  %v1855_v33 = vpop.xlane.xlu0 %1854  ;;  %10021 = vmatprep.mubr.msk.f32.mxu0 %vm11630_vm2, %v11629_v3  ;;  %v11324_v36 = vpop.eup %11323 }
 0x6dd   :  { %11325 = vrcp.f32 %v1855_v33  ;;  %10029 = vmatprep.subr.mxu0 %v11629_v3  ;;  %v1691_v38 = vmul.f32 %v11324_v36, %v12025_v6 }
 0x6df   :  { %10022 = vmatmul.mubr.msk.f32.vlgmr.msra.gmra.mrb[18].mxu0 %vm680_vm9, %v1525_v35 }
 0x6e0   :  { %10030 = vmatpush3.msk.msra.mxu0 %vm440_vm5, %v1693_v37  ;;  %10031 = vmatprep.mubr.msk.f32.mxu0 %vm11630_vm2, %v11629_v3  ;;  %v1859_v39 = vpop.permute.xlu0 %1858  ;;  %v9300_v37 = vld [vmem:[%s11727_s12] ss:$0 sm:$0xff] }
 0x6e1   :  { %10039 = vmatprep.subr.mxu0 %v11629_v3 }
 0x6e3   :  { %10032 = vmatmul.mubr.msk.f32.vlgmr.msra.gmra.mrb[20].mxu0 %vm680_vm9, %v1691_v38 }
 0x6e4   :  { %10040 = vmatpush3.msk.msra.mxu0 %vm440_vm5, %v1859_v39  ;;  %10041 = vmatprep.mubr.msk.f32.mxu0 %vm11630_vm2, %v11629_v3  ;;  %v9301_v39 = vld [vmem:[%s13368_s18] ss:$0 sm:$0xff] }
 0x6e5   :  { %10707 = vmatprep.subr.bf16.mxu0 %v11631_v34 }
 0x6e7   :  { %v11326_v40 = vpop.eup %11325 }
 0x6e8   :  { %v1857_v41 = vmul.f32 %v11326_v40, %v12031_v9 }
 0x6ea   :  { %10042 = vmatmul.mubr.msk.f32.vlgmr.msra.gmra.mrb[22].mxu0 %vm680_vm9, %v1857_v41 }
 0x6eb   :  { %10063 = vmatprep.mubr.msk.f32.mxu0 %vm11630_vm2, %v11629_v3 }
 0x76c   :  { %v752_v42 = vpop.f32.mrb[8].mxu0 }
 0x76d   :  { %v9973_v43 = vpop.f32.mrb[9].mxu0 }
 0x76e   :  { %v462_v43 = vld [vmem:[%s13369_s22 + $0x8] sm:$0xff] }
 0x770   :  { %v918_v44 = vpop.f32.mrb[10].mxu0 }
 0x771   :  { %1255 = vrot.lane.b32.xlu1 %v918_v44, %s11643_s11  ;;  %v9983_v45 = vpop.f32.mrb[11].mxu0 }
 0x772   :  { %v463_v45 = vld [vmem:[%s13369_s22 + $0x10] sm:$0xff] }
 0x779   :  { %v1084_v46 = vpop.f32.mrb[12].mxu0 }
 0x77a   :  { %v9993_v47 = vpop.f32.mrb[13].mxu0 }
 0x7a5   :  { %v1250_v48 = vpop.f32.mrb[14].mxu0 }
 0x7a6   :  { %v10003_v49 = vpop.f32.mrb[15].mxu0 }
 0x7a7   :  { %v466_v49 = vld [vmem:[%s13369_s22 + $0x28] sm:$0xff] }
 0x7ae   :  { %v1433_v54 = vpop.f32.mrb[16].mxu0 }
 0x7af   :  { %v10013_v55 = vpop.f32.mrb[17].mxu0 }
 0x7b0   :  { %v469_v55 = vld [vmem:[%s13369_s22 + $0x40] sm:$0xff] }
 0x7b2   :  { %v1599_v56 = vpop.f32.mrb[18].mxu0 }
 0x7b3   :  { %1936 = vrot.lane.b32.xlu1 %v1599_v56, %s11643_s11  ;;  %v10023_v59 = vpop.f32.mrb[19].mxu0  ;;  %v470_v56 = vld [vmem:[%s13369_s22 + $0x48] sm:$0xff] }
 0x7b4   :  { %v10726_v57 = vpack.c.bf16 %v470_v56, %v469_v55  ;;  %v472_v59 = vld [vmem:[%s13369_s22 + $0x58] sm:$0xff]  ;;  %v9341_v55 = vld [vmem:[%s11697_s8 + $0x1] ss:$0 sm:$0xff]  ;;  %s13372_s8 = sld [smem:[#allocation13_spill]] }
 0x7b5   :  { %v10729_v60 = vpack.c.bf16 %v472_v59, %v471_v58 }
 0x7b6   :  { %v1765_v61 = vpop.f32.mrb[20].mxu0 }
 0x7b7   :  { %1259 = vrot.lane.b32.xlu1 %v1084_v46, %s11644_s15  ;;  %1940 = vrot.lane.b32.xlu0 %v1765_v61, %s11644_s15  ;;  %v10033_v62 = vpop.f32.mrb[21].mxu0  ;;  %v464_v46 = vld [vmem:[%s13369_s22 + $0x18] sm:$0xff]  ;;  %v473_v61 = vld [vmem:[%s13369_s22 + $0x60] sm:$0xff] }
 0x7b8   :  { %v10717_v47 = vpack.c.bf16 %v464_v46, %v463_v45  ;;  %v474_v62 = vld [vmem:[%s13369_s22 + $0x68] sm:$0xff]  ;;  %v9307_v45 = vld [vmem:[%s11707_s19 + $0x20] sm:$0xff] }
 0x7b9   :  { %v9308_v46 = vld [vmem:[%s11707_s19 + $0x28] sm:$0xff] }
 0x7bd   :  { %v1931_v63 = vpop.f32.mrb[22].mxu0 }
 0x7be   :  { %1944 = vrot.lane.b32.xlu0 %v1931_v63, %s11645_s16  ;;  %v10043_v0 = vpop.f32.mrb[23].mxu0  ;;  %v10732_v63 = vpack.c.bf16 %v474_v62, %v473_v61 }
 0x7bf   :  { %v475_v0 = vld [vmem:[%s13369_s22 + $0x70] sm:$0xff] }
 0x7c2   :  { %1263 = vrot.lane.b32.xlu0 %v1250_v48, %s11645_s16  ;;  %v465_v48 = vld [vmem:[%s13369_s22 + $0x20] sm:$0xff] }
 0x7c3   :  { %v10720_v50 = vpack.c.bf16 %v466_v49, %v465_v48  ;;  %v9310_v48 = vld [vmem:[%s11707_s19 + $0x38] sm:$0xff] }
 0x7e3   :  { %v1256_v1 = vpop.permute.xlu1 %1255 }
 0x7e4   :  { %v1266_v10 = vsel %vm280_vm3, %v752_v42, %v1256_v1  ;;  %v461_v42 = vld [vmem:[%s13369_s22] sm:$0xff]  ;;  %v476_v1 = vld [vmem:[%s13369_s22 + $0x78] sm:$0xff] }
 0x7e5   :  { %v10714_v44 = vpack.c.bf16 %v462_v43, %v461_v42 }
 0x825   :  { %v1937_v2 = vpop.permute.xlu1 %1936 }
 0x826   :  { %v1947_v5 = vsel %vm280_vm3, %v1433_v54, %v1937_v2  ;;  %v10723_v54 = vpack.c.bf16 %v468_v52, %v467_v51  ;;  %v10735_v2 = vpack.c.bf16 %v476_v1, %v475_v0 }
 0x829   :  { %v1941_v4 = vpop.permute.xlu0 %1940  ;;  %v1260_v8 = vpop.permute.xlu1 %1259 }
 0x82a   :  { %v1948_v6 = vsel %vm1267_vm10, %v1947_v5, %v1941_v4  ;;  %v1268_v11 = vsel %vm1267_vm10, %v1266_v10, %v1260_v8  ;;  %v9302_v4 = vld [vmem:[%s13370_s23] ss:$0 sm:$0xff] }
 0x830   :  { %v1945_v7 = vpop.permute.xlu0 %1944 }
 0x831   :  { %v1949_v9 = vsel %vm1269_vm11, %v1948_v6, %v1945_v7 }
 0x832   :  { %v1951_v12 = vrot.slane %v1949_v9, 5 }
 0x834   :  { %v1264_v13 = vpop.permute.xlu0 %1263 }
 0x835   :  { %v1270_v14 = vsel %vm1269_vm11, %v1268_v11, %v1264_v13 }
 0x836   :  { %v1953_v15 = vsel %vm440_vm5, %v1270_v14, %v1951_v12 }
 0x837   :  { %10053 = vmatmul.mubr.msk.f32.vlgmr.msra.gmra.mrb[16].mxu1 %vm513_vm7, %v1953_v15 }
 0x838   :  { %10098 = vmatprep.mubr.msk.f32.mxu1 %vm11630_vm2, %v11629_v3  ;;  %10715 = vmatpush3.bf16.msra.mxu1 %v10714_v44 }
 0x839   :  { %10716 = vmatprep.subr.bf16.mxu1 %v11631_v34 }
 0x83c   :  { %10718 = vmatpush3.bf16.msra.mxu1 %v10717_v47  ;;  %v10738_v47 = vpack.c.bf16 %v9308_v46, %v9307_v45 }
 0x83d   :  { %10719 = vmatprep.subr.bf16.mxu1 %v11631_v34 }
 0x840   :  { %10721 = vmatpush3.bf16.msra.mxu1 %v10720_v50 }
 0x841   :  { %10722 = vmatprep.subr.bf16.mxu1 %v11631_v34 }
 0x844   :  { %10724 = vmatpush3.bf16.msra.mxu1 %v10723_v54 }
 0x845   :  { %10725 = vmatprep.subr.bf16.mxu1 %v11631_v34 }
 0x848   :  { %10727 = vmatpush3.bf16.msra.mxu1 %v10726_v57  ;;  %v9342_v57 = vld [vmem:[%s11702_s14 + $0x1] ss:$0 sm:$0xff]  ;;  %s13373_s14 = sld [smem:[#allocation11_spill]] }
 0x849   :  { %10728 = vmatprep.subr.bf16.mxu1 %v11631_v34 }
 0x84c   :  { %10730 = vmatpush3.bf16.msra.mxu1 %v10729_v60  ;;  %v9343_v60 = vld [vmem:[%s11712_s24 + $0x1] ss:$0 sm:$0xff]  ;;  %s13375_s24 = sld [smem:[#allocation14_spill]] }
 0x84d   :  { %10731 = vmatprep.subr.bf16.mxu1 %v11631_v34 }
 0x850   :  { %10733 = vmatpush3.bf16.msra.mxu1 %v10732_v63 }
 0x851   :  { %10734 = vmatprep.subr.bf16.mxu1 %v11631_v34 }
 0x854   :  { %10736 = vmatpush3.bf16.msra.mxu1 %v10735_v2 }
 0x855   :  { %10142 = vmatprep.subr.mxu1 %v11629_v3 }
 0x90a   :  { %v2023_v17 = vpop.f32.mrb[16].mxu1 }
 0x90b   :  { %v2027_v18 = vadd.f32 %v2023_v17, %v11904_v24  ;;  %v10054_v53 = vpop.f32.mrb[17].mxu1  ;;  %v10708_v24 = vpack.c.bf16 %v457_v28, %v456_v27 }
 0x90d   :  { %v12103_v19 = vadd.f32 %v9299_v16, %v2027_v18  ;;  %10709 = vmatpush3.bf16.msra.mxu0 %v10708_v24 }
 0x90e   :  { %10710 = vmatprep.subr.bf16.mxu0 %v11631_v34 }
 0x90f   :  { %v2035_v20 = vsel %vm478_vm6, %v12103_v19, 0.0 }
 0x910   :  { %2036 = vadd.xlane.f32.xlu1 %v2035_v20 }
 0x911   :  { %10712 = vmatpush3.bf16.msra.mxu0 %v10711_v31 }
 0x912   :  { %10737 = vmatprep.subr.bf16.mxu0 %v11631_v34 }
 0x99d   :  { %v2037_v21 = vpop.xlane.xlu1 %2036 }
 0x99e   :  { %v2038_v22 = vmul.f32 0.03125, %v2037_v21 }
 0x9a0   :  { %v2039_v23 = vsub.f32 %v12103_v19, %v2038_v22 }
 0x9a2   :  { %v2040_v25 = vmul.f32 %v2039_v23, %v2039_v23 }
 0x9a4   :  { %v2041_v26 = vsel %vm478_vm6, %v2040_v25, 0.0 }
 0x9a5   :  { %2042 = vadd.xlane.f32.xlu0 %v2041_v26 }
 0xa32   :  { %v2043_v32 = vpop.xlane.xlu0 %2042 }
 0xa33   :  { %v2044_v33 = vmul.f32 0.03125, %v2043_v32 }
 0xa35   :  { %v2045_v35 = vadd.f32 1e-05, %v2044_v33  ;;  %v9304_v33 = vld [vmem:[%s13371_s26] ss:$0 sm:$0xff] }
 0xa37   :  { %11327 = vrsqrt.f32 %v2045_v35 }
 0xa41   :  { %v11328_v36 = vpop.eup %11327 }
 0xa42   :  { %v2047_v38 = vmul.f32 %v11328_v36, %v2039_v23 }
 0xa44   :  { %v2054_v40 = vmul.f32 %v9300_v37, %v2047_v38 }
 0xa46   :  { %v2061_v41 = vadd.f32 %v9301_v39, %v2054_v40 }
 0xa48   :  { %10064 = vmatmul.mubr.msk.f32.vlgmr.msra.gmra.mrb[24].mxu0 %vm513_vm7, %v2061_v41 }
 0xa49   :  { %10109 = vmatprep.mubr.msk.f32.mxu0 %vm11630_vm2, %v11629_v3  ;;  %10739 = vmatpush3.bf16.msra.mxu0 %v10738_v47 }
 0xa4a   :  { %10740 = vmatprep.subr.bf16.mxu0 %v11631_v34 }
 0xb1b   :  { %v2137_v5 = vpop.f32.mrb[24].mxu0 }
 0xb1c   :  { %v2138_v6 = vadd.f32 %v9302_v4, %v2137_v5  ;;  %v10065_v7 = vpop.f32.mrb[25].mxu0 }
 0xb1e   :  { %v2142_v8 = vmul.f32 0.70710677, %v2138_v6  ;;  %v2141_v30 = vmul.f32 0.5, %v2138_v6 }
 0xb20   :  { %v2143_v9 = vand.u32 2147483647, %v2142_v8  ;;  %vm2163_vm12 = vcmp.ge.f32.partialorder %v2142_v8, 0.0 }
 0xb22   :  { %v2144_v10 = vmul.f32 0.3275911, %v2143_v9  ;;  %v2157_v12 = vsub.f32 0.0, %v2143_v9 }
 0xb24   :  { %v2145_v11 = vadd.f32 1.0, %v2144_v10  ;;  %v2158_v14 = vmul.f32 %v2157_v12, %v2143_v9 }
 0xb26   :  { %11329 = vrcp.f32 %v2145_v11  ;;  %v2159_v17 = vmul.f32 1.442695, %v2158_v14 }
 0xb28   :  { %11331 = vpow2.f32 %v2159_v17 }
 0xb30   :  { %v11330_v13 = vpop.eup %11329 }
 0xb31   :  { %v2148_v15 = vmul.f32 1.0614054, %v11330_v13 }
 0xb32   :  { %v11332_v26 = vpop.eup %11331 }
 0xb33   :  { %v2149_v16 = vadd.f32 -1.4531521, %v2148_v15 }
 0xb35   :  { %v2150_v18 = vmul.f32 %v11330_v13, %v2149_v16 }
 0xb37   :  { %v2151_v53 = vadd.f32 1.4214138, %v2150_v18 }
 0xb39   :  { %v2152_v20 = vmul.f32 %v11330_v13, %v2151_v53 }
 0xb3b   :  { %v2153_v21 = vadd.f32 -0.28449672, %v2152_v20 }
 0xb3d   :  { %v2154_v22 = vmul.f32 %v11330_v13, %v2153_v21 }
 0xb3f   :  { %v2155_v23 = vadd.f32 0.2548296, %v2154_v22 }
 0xb41   :  { %v2156_v25 = vmul.f32 %v11330_v13, %v2155_v23 }
 0xb43   :  { %v2161_v27 = vmul.f32 %v11332_v26, %v2156_v25 }
 0xb45   :  { %v2162_v28 = vsub.f32 1.0, %v2161_v27 }
 0xb47   :  { %v2164_v24 = vsub.f32 0.0, %v2162_v28 }
 0xb49   :  { %v2165_v29 = vsel %vm2163_vm12, %v2162_v28, %v2164_v24 }
 0xb4a   :  { %v2166_v31 = vadd.f32 1.0, %v2165_v29 }
 0xb4c   :  { %v2167_v32 = vmul.f32 %v2166_v31, %v2141_v30 }
 0xb4e   :  { %10099 = vmatmul.mubr.f32.vlgmr.msra.gmra.mrb[18].mxu1 %v2167_v32 }
 0xb4f   :  { %10144 = vmatprep.mubr.msk.f32.mxu1 %vm11630_vm2, %v11629_v3 }
 0xc21   :  { %v2240_v35 = vpop.f32.mrb[18].mxu1 }
 0xc22   :  { %v2241_v36 = vadd.f32 %v9304_v33, %v2240_v35  ;;  %v10100_v37 = vpop.f32.mrb[19].mxu1 }
 0xc24   :  { %v12149_v38 = vadd.f32 %v2241_v36, %v12103_v19  ;;  %v9309_v19 = vld [vmem:[%s11707_s19 + $0x30] sm:$0xff]  ;;  %s13374_s19 = sld [smem:[#allocation12_spill]] }
 0xc25   :  { %v10741_v49 = vpack.c.bf16 %v9310_v48, %v9309_v19 }
 0xc26   :  { %v2293_v39 = vsel %vm478_vm6, %v12149_v38, 0.0 }
 0xc27   :  { %2294 = vadd.xlane.f32.xlu0 %v2293_v39  ;;  %10742 = vmatpush3.bf16.msra.mxu0 %v10741_v49 }
 0xc28   :  { %10112 = vmatprep.subr.mxu0 %v11629_v3 }
 0xcb4   :  { %v2295_v40 = vpop.xlane.xlu0 %2294 }
 0xcb5   :  { %v2296_v41 = vmul.f32 0.03125, %v2295_v40 }
 0xcb7   :  { %v2297_v42 = vsub.f32 %v12149_v38, %v2296_v41 }
 0xcb9   :  { %v2298_v43 = vmul.f32 %v2297_v42, %v2297_v42 }
 0xcbb   :  { %v2299_v44 = vsel %vm478_vm6, %v2298_v43, 0.0 }
 0xcbc   :  { %2300 = vadd.xlane.f32.xlu1 %v2299_v44 }
 0xd49   :  { %v2301_v50 = vpop.xlane.xlu1 %2300 }
 0xd4a   :  { %v2302_v51 = vmul.f32 0.03125, %v2301_v50 }
 0xd4c   :  { %v2303_v52 = vadd.f32 1e-05, %v2302_v51 }
 0xd4e   :  { %11333 = vrsqrt.f32 %v2303_v52 }
 0xd58   :  { %v11334_v54 = vpop.eup %11333 }
 0xd59   :  { %v2305_v56 = vmul.f32 %v11334_v54, %v2297_v42 }
 0xd5b   :  { %v2312_v58 = vmul.f32 %v9341_v55, %v2305_v56 }
 0xd5d   :  { %v2319_v59 = vadd.f32 %v9342_v57, %v2312_v58 }
 0xd5f   :  { %10110 = vmatmul.mubr.msk.f32.vlgmr.msra.gmra.mrb[26].mxu0 %vm513_vm7, %v2319_v59 }
 0xd60   :  { %10114 = vmatprep.mubr.msk.f32.mxu0 %vm11630_vm2, %v11629_v3 }
 0xe32   :  { %v2395_v61 = vpop.f32.mrb[26].mxu0 }
 0xe33   :  { %v12167_v62 = vadd.f32 %v9343_v60, %v2395_v61  ;;  %v10111_v63 = vpop.f32.mrb[27].mxu0 }
 0xe35   :  { %2401 = vrot.lane.b32.xlu0 %v12167_v62, %s11632_s0  ;;  %v2399_v0 = vmul.f32 0.35355338, %v12167_v62  ;;  %v12202_v22 = vrot.slane %v12167_v62, 3 }
 0xe37   :  { %v3079_v24 = vrot.slane %v2399_v0, 3 }
 0xe39   :  { %2568 = vrot.lane.b32.xlu0 %v12167_v62, %s11634_s21 }
 0xe3d   :  { %2566 = vrot.lane.b32.xlu0 %v2399_v0, %s11633_s9 }
 0xea7   :  { %v2402_v1 = vpop.permute.xlu0 %2401 }
 0xea8   :  { %10113 = vmatpush3.xpose.msk.msra.mxu0 %vm280_vm3, %v2402_v1 }
 0xea9   :  { %10117 = vmatprep.subr.mxu0 %v11629_v3 }
 0xeab   :  { %10115 = vmatmul.mubr.msk.f32.vlgmr.msra.gmra.mrb[28].mxu0 %vm280_vm3, %v2399_v0  ;;  %v2569_v14 = vpop.permute.xlu0 %2568 }
 0xeac   :  { %10119 = vmatprep.mubr.msk.f32.mxu0 %vm11630_vm2, %v11629_v3 }
 0xeaf   :  { %v2567_v16 = vpop.permute.xlu0 %2566 }
 0xf7e   :  { %v2474_v2 = vpop.f32.mrb[28].mxu0 }
 0xf7f   :  { %v10116_v4 = vpop.f32.mrb[29].mxu0  ;;  %v2478_v5 = vsel %vm666_vm8, %v2474_v2, -inf }
 0xf80   :  { %2479 = vmax.xlane.f32.xlu1 %v2478_v5 }
0x100d   :  { %v2480_v6 = vpop.xlane.xlu1 %2479 }
0x100e   :  { %v2481_v7 = vsub.f32 %v2474_v2, %v2480_v6 }
0x1010   :  { %v2482_v8 = vmul.f32 1.442695, %v2481_v7 }
0x1012   :  { %11335 = vpow2.f32 %v2482_v8 }
0x101c   :  { %v11336_v9 = vpop.eup %11335 }
0x101d   :  { %v2484_v10 = vsel %vm666_vm8, %v11336_v9, 0.0 }
0x101e   :  { %2485 = vadd.xlane.f32.xlu1 %v2484_v10 }
0x102f   :  { %2489 = vrot.lane.b32.xlu1 %v12167_v62, %s11639_s1 }
0x10ab   :  { %v2486_v11 = vpop.xlane.xlu1 %2485 }
0x10ac   :  { %11337 = vrcp.f32 %v2486_v11 }
0x10af   :  { %v2490_v12 = vpop.permute.xlu1 %2489 }
0x10b0   :  { %10118 = vmatpush3.msk.msra.mxu0 %vm440_vm5, %v2490_v12 }
0x10b1   :  { %10122 = vmatprep.subr.mxu0 %v11629_v3 }
0x10b6   :  { %v11338_v13 = vpop.eup %11337 }
0x10b7   :  { %v2488_v15 = vmul.f32 %v11338_v13, %v11336_v9 }
0x10b9   :  { %10120 = vmatmul.mubr.msk.f32.vlgmr.msra.gmra.mrb[30].mxu0 %vm680_vm9, %v2488_v15 }
0x10ba   :  { %10123 = vmatpush3.xpose.msk.msra.mxu0 %vm280_vm3, %v2569_v14  ;;  %10124 = vmatprep.mubr.msk.f32.mxu0 %vm11630_vm2, %v11629_v3 }
0x10bb   :  { %10127 = vmatprep.subr.mxu0 %v11629_v3 }
0x10bd   :  { %10125 = vmatmul.mubr.msk.f32.vlgmr.msra.gmra.mrb[32].mxu0 %vm280_vm3, %v2567_v16 }
0x10be   :  { %10129 = vmatprep.mubr.msk.f32.mxu0 %vm11630_vm2, %v11629_v3 }
0x118c   :  { %v12194_v17 = vpop.f32.mrb[30].mxu0 }
0x118d   :  { %v10121_v18 = vpop.f32.mrb[31].mxu0 }
0x1190   :  { %v2640_v53 = vpop.f32.mrb[32].mxu0 }
0x1191   :  { %v10126_v20 = vpop.f32.mrb[33].mxu0  ;;  %v2644_v21 = vsel %vm666_vm8, %v2640_v53, -inf }
0x1192   :  { %2645 = vmax.xlane.f32.xlu1 %v2644_v21 }
0x11a3   :  { %2734 = vrot.lane.b32.xlu1 %v12167_v62, %s11635_s25 }
0x11a7   :  { %2732 = vrot.lane.b32.xlu1 %v2399_v0, %s11636_s29 }
0x11ab   :  { %2898 = vrot.lane.b32.xlu1 %v2399_v0, %s11638_s28 }
0x11af   :  { %3247 = vrot.lane.b32.xlu1 %v12202_v22, %s11634_s21 }
0x11b3   :  { %3413 = vrot.lane.b32.xlu1 %v12202_v22, %s11635_s25 }
0x11b7   :  { %3579 = vrot.lane.b32.xlu1 %v12202_v22, %s11637_s3 }
0x121f   :  { %v2646_v23 = vpop.xlane.xlu1 %2645 }
0x1220   :  { %v2647_v25 = vsub.f32 %v2640_v53, %v2646_v23 }
0x1222   :  { %v2648_v26 = vmul.f32 1.442695, %v2647_v25 }
0x1223   :  { %v2735_v29 = vpop.permute.xlu1 %2734 }
0x1224   :  { %11339 = vpow2.f32 %v2648_v26 }
0x1227   :  { %v2733_v30 = vpop.permute.xlu1 %2732 }
0x122b   :  { %v2899_v33 = vpop.permute.xlu1 %2898 }
0x122e   :  { %v11340_v27 = vpop.eup %11339 }
0x122f   :  { %v2650_v28 = vsel %vm666_vm8, %v11340_v27, 0.0  ;;  %v3248_v37 = vpop.permute.xlu1 %3247 }
0x1230   :  { %2651 = vadd.xlane.f32.xlu0 %v2650_v28 }
0x1233   :  { %v3414_v42 = vpop.permute.xlu1 %3413 }
0x1237   :  { %v3580_v44 = vpop.permute.xlu1 %3579 }
0x1246   :  { %2655 = vrot.lane.b32.xlu0 %v12167_v62, %s11641_s7 }
0x124a   :  { %2900 = vrot.lane.b32.xlu0 %v12167_v62, %s11637_s3 }
0x124e   :  { %3081 = vrot.lane.b32.xlu0 %v12202_v22, %s11632_s0 }
0x1252   :  { %3245 = vrot.lane.b32.xlu0 %v3079_v24, %s11633_s9 }
0x1256   :  { %3411 = vrot.lane.b32.xlu0 %v3079_v24, %s11636_s29 }
0x125a   :  { %3577 = vrot.lane.b32.xlu0 %v3079_v24, %s11638_s28 }
0x12bd   :  { %v2652_v31 = vpop.xlane.xlu0 %2651 }
0x12be   :  { %11341 = vrcp.f32 %v2652_v31 }
0x12c1   :  { %v2656_v32 = vpop.permute.xlu0 %2655 }
0x12c2   :  { %10128 = vmatpush3.msk.msra.mxu0 %vm440_vm5, %v2656_v32 }
0x12c3   :  { %10132 = vmatprep.subr.mxu0 %v11629_v3 }
0x12c5   :  { %v2901_v35 = vpop.permute.xlu0 %2900 }
0x12c6   :  { %10143 = vmatpush3.xpose.msk.msra.mxu1 %vm280_vm3, %v2901_v35 }
0x12c7   :  { %10152 = vmatprep.subr.mxu1 %v11629_v3 }
0x12c8   :  { %v11342_v36 = vpop.eup %11341 }
0x12c9   :  { %v3082_v39 = vpop.permute.xlu0 %3081  ;;  %10145 = vmatmul.mubr.msk.f32.vlgmr.msra.gmra.mrb[20].mxu1 %vm280_vm3, %v2899_v33  ;;  %v2654_v40 = vmul.f32 %v11342_v36, %v11340_v27 }
0x12ca   :  { %10153 = vmatpush3.xpose.msk.msra.mxu1 %vm280_vm3, %v3082_v39  ;;  %10154 = vmatprep.mubr.msk.f32.mxu1 %vm11630_vm2, %v11629_v3 }
0x12cb   :  { %10130 = vmatmul.mubr.msk.f32.vlgmr.msra.gmra.mrb[34].mxu0 %vm680_vm9, %v2654_v40  ;;  %10162 = vmatprep.subr.mxu1 %v11629_v3 }
0x12cc   :  { %10133 = vmatpush3.xpose.msk.msra.mxu0 %vm280_vm3, %v2735_v29  ;;  %10134 = vmatprep.mubr.msk.f32.mxu0 %vm11630_vm2, %v11629_v3 }
0x12cd   :  { %v3246_v41 = vpop.permute.xlu0 %3245  ;;  %10155 = vmatmul.mubr.msk.f32.vlgmr.msra.gmra.mrb[22].mxu1 %vm280_vm3, %v3079_v24  ;;  %10137 = vmatprep.subr.mxu0 %v11629_v3 }
0x12ce   :  { %10163 = vmatpush3.xpose.msk.msra.mxu1 %vm280_vm3, %v3248_v37  ;;  %10164 = vmatprep.mubr.msk.f32.mxu1 %vm11630_vm2, %v11629_v3 }
0x12cf   :  { %10135 = vmatmul.mubr.msk.f32.vlgmr.msra.gmra.mrb[36].mxu0 %vm280_vm3, %v2733_v30  ;;  %10172 = vmatprep.subr.mxu1 %v11629_v3 }
0x12d0   :  { %10139 = vmatprep.mubr.msk.f32.mxu0 %vm11630_vm2, %v11629_v3 }
0x12d1   :  { %10165 = vmatmul.mubr.msk.f32.vlgmr.msra.gmra.mrb[24].mxu1 %vm280_vm3, %v3246_v41  ;;  %v3412_v43 = vpop.permute.xlu0 %3411 }
0x12d2   :  { %10173 = vmatpush3.xpose.msk.msra.mxu1 %vm280_vm3, %v3414_v42  ;;  %10174 = vmatprep.mubr.msk.f32.mxu1 %vm11630_vm2, %v11629_v3 }
0x12d3   :  { %10182 = vmatprep.subr.mxu1 %v11629_v3 }
0x12d5   :  { %10175 = vmatmul.mubr.msk.f32.vlgmr.msra.gmra.mrb[26].mxu1 %vm280_vm3, %v3412_v43  ;;  %v3578_v45 = vpop.permute.xlu0 %3577 }
0x12d6   :  { %10183 = vmatpush3.xpose.msk.msra.mxu1 %vm280_vm3, %v3580_v44  ;;  %10184 = vmatprep.mubr.msk.f32.mxu1 %vm11630_vm2, %v11629_v3 }
0x12d7   :  { %10743 = vmatprep.subr.bf16.mxu1 %v11631_v34 }
0x12d9   :  { %10185 = vmatmul.mubr.msk.f32.vlgmr.msra.gmra.mrb[28].mxu1 %vm280_vm3, %v3578_v45 }
0x12da   :  { %10200 = vmatprep.mubr.msk.f32.mxu1 %vm11630_vm2, %v11629_v3 }
0x139c   :  { %v2972_v46 = vpop.f32.mrb[20].mxu1 }
0x139d   :  { %v10146_v47 = vpop.f32.mrb[21].mxu1  ;;  %v2976_v19 = vsel %vm666_vm8, %v2972_v46, -inf }
0x139e   :  { %v12256_v48 = vpop.f32.mrb[34].mxu0  ;;  %2977 = vmax.xlane.f32.xlu0 %v2976_v19 }
0x139f   :  { %v10131_v49 = vpop.f32.mrb[35].mxu0 }
0x13a0   :  { %v3153_v50 = vpop.f32.mrb[22].mxu1 }
0x13a1   :  { %v10156_v51 = vpop.f32.mrb[23].mxu1  ;;  %v3157_v52 = vsel %vm666_vm8, %v3153_v50, -inf }
0x13a2   :  { %v2806_v54 = vpop.f32.mrb[36].mxu0  ;;  %3158 = vmax.xlane.f32.xlu0 %v3157_v52 }
0x13a3   :  { %v10136_v55 = vpop.f32.mrb[37].mxu0  ;;  %v2810_v56 = vsel %vm666_vm8, %v2806_v54, -inf }
0x13a4   :  { %2811 = vmax.xlane.f32.xlu1 %v2810_v56  ;;  %v3319_v57 = vpop.f32.mrb[24].mxu1 }
0x13a5   :  { %v10166_v58 = vpop.f32.mrb[25].mxu1  ;;  %v3323_v59 = vsel %vm666_vm8, %v3319_v57, -inf }
0x13a8   :  { %3324 = vmax.xlane.f32.xlu1 %v3323_v59  ;;  %v3485_v60 = vpop.f32.mrb[26].mxu1 }
0x13a9   :  { %v10176_v61 = vpop.f32.mrb[27].mxu1  ;;  %v3489_v63 = vsel %vm666_vm8, %v3485_v60, -inf }
0x13aa   :  { %3490 = vmax.xlane.f32.xlu0 %v3489_v63 }
0x13ac   :  { %v3651_v0 = vpop.f32.mrb[28].mxu1 }
0x13ad   :  { %v10186_v1 = vpop.f32.mrb[29].mxu1  ;;  %v3655_v2 = vsel %vm666_vm8, %v3651_v0, -inf }
0x13ae   :  { %3656 = vmax.xlane.f32.xlu1 %v3655_v2  ;;  %v9313_v1 = vld [vmem:[%s11717_s30 + $0x28] sm:$0xff] }
0x142b   :  { %v2978_v4 = vpop.xlane.xlu0 %2977 }
0x142c   :  { %v2979_v5 = vsub.f32 %v2972_v46, %v2978_v4 }
0x142e   :  { %v2980_v6 = vmul.f32 1.442695, %v2979_v5 }
0x142f   :  { %v3159_v7 = vpop.xlane.xlu0 %3158 }
0x1430   :  { %11343 = vpow2.f32 %v2980_v6  ;;  %v3160_v8 = vsub.f32 %v3153_v50, %v3159_v7  ;;  %v9314_v7 = vld [vmem:[%s11717_s30 + $0x30] sm:$0xff] }
0x1431   :  { %v2812_v9 = vpop.xlane.xlu1 %2811 }
0x1432   :  { %v3161_v10 = vmul.f32 1.442695, %v3160_v8  ;;  %v2813_v12 = vsub.f32 %v2806_v54, %v2812_v9  ;;  %v9315_v8 = vld [vmem:[%s11717_s30 + $0x38] sm:$0xff] }
0x1433   :  { %v10747_v9 = vpack.c.bf16 %v9315_v8, %v9314_v7  ;;  %v9333_v7 = vld [vmem:[%s13369_s22 + $0xc8] sm:$0xff] }
0x1434   :  { %11345 = vpow2.f32 %v3161_v10  ;;  %v2814_v53 = vmul.f32 1.442695, %v2813_v12 }
0x1435   :  { %v3325_v11 = vpop.xlane.xlu1 %3324 }
0x1436   :  { %v3326_v13 = vsub.f32 %v3319_v57, %v3325_v11 }
0x1437   :  { %v3491_v14 = vpop.xlane.xlu0 %3490 }
0x1438   :  { %v3327_v15 = vmul.f32 1.442695, %v3326_v13  ;;  %v3492_v16 = vsub.f32 %v3485_v60, %v3491_v14 }
0x143a   :  { %v11344_v18 = vpop.eup %11343  ;;  %11347 = vpow2.f32 %v3327_v15  ;;  %v3493_v20 = vmul.f32 1.442695, %v3492_v16 }
0x143b   :  { %v3657_v21 = vpop.xlane.xlu1 %3656  ;;  %v2982_v23 = vsel %vm666_vm8, %v11344_v18, 0.0 }
0x143c   :  { %11349 = vpow2.f32 %v3493_v20  ;;  %v3658_v25 = vsub.f32 %v3651_v0, %v3657_v21  ;;  %2983 = vadd.xlane.f32.xlu1 %v2982_v23  ;;  %v9312_v0 = vld [vmem:[%s11717_s30 + $0x20] sm:$0xff]  ;;  %s13376_s30 = sld [smem:[#allocation15_spill]] }
0x143d   :  { %11351 = vpow2.f32 %v2814_v53  ;;  %v10744_v4 = vpack.c.bf16 %v9313_v1, %v9312_v0  ;;  %v9329_v0 = vld [vmem:[%s13369_s22 + $0xa8] sm:$0xff] }
0x143e   :  { %v11346_v26 = vpop.eup %11345  ;;  %v3659_v27 = vmul.f32 1.442695, %v3658_v25 }
0x143f   :  { %v3163_v28 = vsel %vm666_vm8, %v11346_v26, 0.0  ;;  %10745 = vmatpush3.bf16.msra.mxu1 %v10744_v4  ;;  %v9331_v4 = vld [vmem:[%s13369_s22 + $0xb8] sm:$0xff] }
0x1440   :  { %11353 = vpow2.f32 %v3659_v27  ;;  %3164 = vadd.xlane.f32.xlu0 %v3163_v28  ;;  %10746 = vmatprep.subr.bf16.mxu1 %v11631_v34 }
0x1443   :  { %10748 = vmatpush3.bf16.msra.mxu1 %v10747_v9  ;;  %v9334_v9 = vld [vmem:[%s13369_s22 + $0xd0] sm:$0xff] }
0x1444   :  { %v11348_v24 = vpop.eup %11347  ;;  %10755 = vmatprep.subr.bf16.mxu1 %v11631_v34 }
0x1445   :  { %v3329_v29 = vsel %vm666_vm8, %v11348_v24, 0.0 }
0x1446   :  { %v11350_v30 = vpop.eup %11349  ;;  %3330 = vadd.xlane.f32.xlu1 %v3329_v29 }
0x1447   :  { %v3495_v31 = vsel %vm666_vm8, %v11350_v30, 0.0  ;;  %v11352_v32 = vpop.eup %11351 }
0x1448   :  { %3496 = vadd.xlane.f32.xlu0 %v3495_v31  ;;  %v2816_v35 = vsel %vm666_vm8, %v11352_v32, 0.0 }
0x144a   :  { %v11354_v33 = vpop.eup %11353 }
0x144b   :  { %v3661_v36 = vsel %vm666_vm8, %v11354_v33, 0.0  ;;  %vm4641_vm8 = vcmask 65536  }
0x144c   :  { %2817 = vadd.xlane.f32.xlu0 %v2816_v35  ;;  %3662 = vadd.xlane.f32.xlu1 %v3661_v36 }
0x145d   :  { %2987 = vrot.lane.b32.xlu1 %v12167_v62, %s11642_s10 }
0x1461   :  { %3168 = vrot.lane.b32.xlu1 %v12202_v22, %s11639_s1 }
0x1462   :  { %2821 = vrot.lane.b32.xlu0 %v12167_v62, %s11640_s2 }
0x1465   :  { %3500 = vrot.lane.b32.xlu1 %v12202_v22, %s11640_s2 }
0x1466   :  { %3334 = vrot.lane.b32.xlu0 %v12202_v22, %s11641_s7 }
0x1469   :  { %3065 = vrot.lane.b32.xlu1 %v12256_v48, %s11643_s11 }
0x146a   :  { %3666 = vrot.lane.b32.xlu0 %v12202_v22, %s11642_s10 }
0x14c9   :  { %v2984_v40 = vpop.xlane.xlu1 %2983 }
0x14cd   :  { %v3165_v37 = vpop.xlane.xlu0 %3164 }
0x14d3   :  { %v3331_v42 = vpop.xlane.xlu1 %3330 }
0x14d5   :  { %v3497_v39 = vpop.xlane.xlu0 %3496 }
0x14d9   :  { %v2818_v41 = vpop.xlane.xlu0 %2817  ;;  %v3663_v43 = vpop.xlane.xlu1 %3662 }
0x14da   :  { %11355 = vrcp.f32 %v2818_v41 }
0x14db   :  { %11357 = vrcp.f32 %v2984_v40 }
0x14dc   :  { %11359 = vrcp.f32 %v3165_v37 }
0x14dd   :  { %v2822_v62 = vpop.permute.xlu0 %2821  ;;  %11361 = vrcp.f32 %v3331_v42  ;;  %v2988_v45 = vpop.permute.xlu1 %2987 }
0x14de   :  { %10138 = vmatpush3.msk.msra.mxu0 %vm440_vm5, %v2822_v62  ;;  %11363 = vrcp.f32 %v3497_v39 }
0x14df   :  { %10147 = vmatprep.subr.mxu0 %v11629_v3  ;;  %11365 = vrcp.f32 %v3663_v43  ;;  %v9319_v43 = vld [vmem:[%s11737_s27 + $0x20] sm:$0xff] }
0x14e1   :  { %v3169_v48 = vpop.permute.xlu1 %3168  ;;  %v3335_v51 = vpop.permute.xlu0 %3334 }
0x14e4   :  { %v11356_v44 = vpop.eup %11355 }
0x14e5   :  { %v2820_v46 = vmul.f32 %v11356_v44, %v11352_v32  ;;  %v11358_v47 = vpop.eup %11357  ;;  %v3501_v55 = vpop.permute.xlu1 %3500  ;;  %v9378_v32 = vld [vmem:[%s11722_s6 + $0x1] ss:$0 sm:$0xff]  ;;  %v9320_v44 = vld [vmem:[%s11737_s27 + $0x28] sm:$0xff]  ;;  %s13377_s6 = sld [smem:[#allocation5_spill]] }
0x14e6   :  { %v2986_v22 = vmul.f32 %v11358_v47, %v11344_v18  ;;  %v11360_v19 = vpop.eup %11359  ;;  %v3667_v58 = vpop.permute.xlu0 %3666 }
0x14e7   :  { %10140 = vmatmul.mubr.msk.f32.vlgmr.msra.gmra.mrb[38].mxu0 %vm680_vm9, %v2820_v46  ;;  %v3167_v49 = vmul.f32 %v11360_v19, %v11346_v26  ;;  %v11362_v50 = vpop.eup %11361  ;;  %v9322_v46 = vld [vmem:[%s11737_s27 + $0x38] sm:$0xff] }
0x14e8   :  { %10148 = vmatpush3.msk.msra.mxu0 %vm440_vm5, %v2988_v45  ;;  %10149 = vmatprep.mubr.msk.f32.mxu0 %vm11630_vm2, %v11629_v3  ;;  %v3333_v52 = vmul.f32 %v11362_v50, %v11348_v24  ;;  %v11364_v54 = vpop.eup %11363  ;;  %v9321_v45 = vld [vmem:[%s11737_s27 + $0x30] sm:$0xff]  ;;  %v9379_v50 = vld [vmem:[%s11727_s12 + $0x1] ss:$0 sm:$0xff]  ;;  %s13378_s12 = sld [smem:[#allocation16_spill]]  ;;  %s13380_s27 = sld [smem:[#allocation17_spill]] }
0x14e9   :  { %10157 = vmatprep.subr.mxu0 %v11629_v3  ;;  %v3499_v56 = vmul.f32 %v11364_v54, %v11350_v30  ;;  %v11366_v57 = vpop.eup %11365  ;;  %v3066_v16 = vpop.permute.xlu1 %3065  ;;  %v10753_v47 = vpack.c.bf16 %v9322_v46, %v9321_v45 }
0x14ea   :  { %v3665_v59 = vmul.f32 %v11366_v57, %v11354_v33  ;;  %v3076_v27 = vsel %vm280_vm3, %v12194_v17, %v3066_v16  ;;  %v9325_v57 = vld [vmem:[%s13369_s22 + $0x88] sm:$0xff]  ;;  %v9339_v16 = vld [vmem:[%s13369_s22 + $0xf8] sm:$0xff] }
0x14eb   :  { %10150 = vmatmul.mubr.msk.f32.vlgmr.msra.gmra.mrb[40].mxu0 %vm680_vm9, %v2986_v22 }
0x14ec   :  { %10158 = vmatpush3.msk.msra.mxu0 %vm440_vm5, %v3169_v48  ;;  %10159 = vmatprep.mubr.msk.f32.mxu0 %vm11630_vm2, %v11629_v3 }
0x14ed   :  { %10167 = vmatprep.subr.mxu0 %v11629_v3 }
0x14ef   :  { %10160 = vmatmul.mubr.msk.f32.vlgmr.msra.gmra.mrb[42].mxu0 %vm680_vm9, %v3167_v49 }
0x14f0   :  { %10168 = vmatpush3.msk.msra.mxu0 %vm440_vm5, %v3335_v51  ;;  %10169 = vmatprep.mubr.msk.f32.mxu0 %vm11630_vm2, %v11629_v3 }
0x14f1   :  { %10177 = vmatprep.subr.mxu0 %v11629_v3 }
0x14f3   :  { %10170 = vmatmul.mubr.msk.f32.vlgmr.msra.gmra.mrb[44].mxu0 %vm680_vm9, %v3333_v52  ;;  %v9380_v52 = vld [vmem:[%s13368_s18 + $0x1] ss:$0 sm:$0xff]  ;;  %s13381_s18 = sld [smem:[#allocation18_spill]] }
0x14f4   :  { %10178 = vmatpush3.msk.msra.mxu0 %vm440_vm5, %v3501_v55  ;;  %10179 = vmatprep.mubr.msk.f32.mxu0 %vm11630_vm2, %v11629_v3 }
0x14f5   :  { %10187 = vmatprep.subr.mxu0 %v11629_v3 }
0x14f7   :  { %10180 = vmatmul.mubr.msk.f32.vlgmr.msra.gmra.mrb[46].mxu0 %vm680_vm9, %v3499_v56  ;;  %v9324_v56 = vld [vmem:[%s13369_s22 + $0x80] sm:$0xff] }
0x14f8   :  { %10188 = vmatpush3.msk.msra.mxu0 %vm440_vm5, %v3667_v58  ;;  %10189 = vmatprep.mubr.msk.f32.mxu0 %vm11630_vm2, %v11629_v3  ;;  %v10756_v58 = vpack.c.bf16 %v9325_v57, %v9324_v56 }
0x14f9   :  { %10749 = vmatprep.subr.bf16.mxu0 %v11631_v34 }
0x14fb   :  { %10190 = vmatmul.mubr.msk.f32.vlgmr.msra.gmra.mrb[48].mxu0 %vm680_vm9, %v3665_v59  ;;  %v9326_v59 = vld [vmem:[%s13369_s22 + $0x90] sm:$0xff]  ;;  %vm11646_vm9 = vmmov 1  }
0x14fc   :  { %10211 = vmatprep.mubr.msk.f32.mxu0 %vm11630_vm2, %v11629_v3  ;;  %vm12487_vm12 = vmpackc.low %vm357_vm4, %vm11646_vm9 }
0x15ba   :  { %v2894_v60 = vpop.f32.mrb[38].mxu0 }
0x15bb   :  { %v10141_v61 = vpop.f32.mrb[39].mxu0 }
0x15be   :  { %v3060_v63 = vpop.f32.mrb[40].mxu0 }
0x15bf   :  { %v10151_v2 = vpop.f32.mrb[41].mxu0 }
0x15c0   :  { %v9330_v2 = vld [vmem:[%s13369_s22 + $0xb0] sm:$0xff] }
0x15c2   :  { %v3241_v5 = vpop.f32.mrb[42].mxu0 }
0x15c3   :  { %v10161_v6 = vpop.f32.mrb[43].mxu0 }
0x15c4   :  { %v9332_v6 = vld [vmem:[%s13369_s22 + $0xc0] sm:$0xff] }
0x15c5   :  { %v10768_v8 = vpack.c.bf16 %v9333_v7, %v9332_v6  ;;  %v9384_v6 = vld [vmem:[%s13373_s14] ss:$0 sm:$0xff]  ;;  %s13390_s14 = sld [smem:[#allocation23_spill]] }
0x15c6   :  { %v3407_v10 = vpop.f32.mrb[44].mxu0 }
0x15c7   :  { %3744 = vrot.lane.b32.xlu1 %v3407_v10, %s11643_s11  ;;  %v10171_v11 = vpop.f32.mrb[45].mxu0  ;;  %v9335_v10 = vld [vmem:[%s13369_s22 + $0xd8] sm:$0xff] }
0x15c8   :  { %v10771_v11 = vpack.c.bf16 %v9335_v10, %v9334_v9 }
0x15ca   :  { %v3573_v12 = vpop.f32.mrb[46].mxu0 }
0x15cb   :  { %3069 = vrot.lane.b32.xlu1 %v2894_v60, %s11644_s15  ;;  %3748 = vrot.lane.b32.xlu0 %v3573_v12, %s11644_s15  ;;  %v10181_v13 = vpop.f32.mrb[47].mxu0  ;;  %v9327_v60 = vld [vmem:[%s13369_s22 + $0x98] sm:$0xff]  ;;  %v9336_v12 = vld [vmem:[%s13369_s22 + $0xe0] sm:$0xff] }
0x15cc   :  { %v10759_v61 = vpack.c.bf16 %v9327_v60, %v9326_v59  ;;  %v9337_v13 = vld [vmem:[%s13369_s22 + $0xe8] sm:$0xff]  ;;  %v4083_v59 = vld [vmem:[%s13372_s8] sm:$0xff] }
0x15cd   :  { %v4084_v60 = vld [vmem:[%s13372_s8 + $0x8] sm:$0xff] }
0x15ce   :  { %v3739_v14 = vpop.f32.mrb[48].mxu0 }
0x15cf   :  { %3752 = vrot.lane.b32.xlu0 %v3739_v14, %s11645_s16  ;;  %v10191_v15 = vpop.f32.mrb[49].mxu0  ;;  %v10774_v14 = vpack.c.bf16 %v9337_v13, %v9336_v12 }
0x15d0   :  { %v9338_v15 = vld [vmem:[%s13369_s22 + $0xf0] sm:$0xff] }
0x15d3   :  { %3073 = vrot.lane.b32.xlu0 %v3060_v63, %s11645_s16  ;;  %v9328_v63 = vld [vmem:[%s13369_s22 + $0xa0] sm:$0xff]  ;;  %s13382_s22 = sld [smem:[#allocation20_spill]] }
0x15d4   :  { %v10762_v1 = vpack.c.bf16 %v9329_v0, %v9328_v63  ;;  %v4085_v63 = vld [vmem:[%s13372_s8 + $0x10] sm:$0xff]  ;;  %v4086_v0 = vld [vmem:[%s13372_s8 + $0x18] sm:$0xff]  ;;  %s13389_s8 = sld [smem:[#allocation25_spill]] }
0x1639   :  { %v3745_v18 = vpop.permute.xlu1 %3744 }
0x163a   :  { %v3755_v20 = vsel %vm280_vm3, %v3241_v5, %v3745_v18  ;;  %v10765_v5 = vpack.c.bf16 %v9331_v4, %v9330_v2  ;;  %v10777_v18 = vpack.c.bf16 %v9339_v16, %v9338_v15  ;;  %v9388_v15 = vld [vmem:[%s13376_s30] ss:$0 sm:$0xff]  ;;  %s13393_s30 = sld [smem:[#allocation26_spill]] }
0x163d   :  { %v3749_v53 = vpop.permute.xlu0 %3748  ;;  %v3070_v25 = vpop.permute.xlu1 %3069 }
0x163e   :  { %v3756_v21 = vsel %vm1267_vm10, %v3755_v20, %v3749_v53  ;;  %v3077_v28 = vsel %vm1267_vm10, %v3076_v27, %v3070_v25  ;;  %v9381_v53 = vld [vmem:[%s13370_s23 + $0x1] ss:$0 sm:$0xff]  ;;  %s13387_s23 = sld [smem:[#allocation21_spill]] }
0x1641   :  { %v3753_v23 = vpop.permute.xlu0 %3752 }
0x1642   :  { %v3757_v26 = vsel %vm1269_vm11, %v3756_v21, %v3753_v23 }
0x1643   :  { %v3759_v24 = vrot.slane %v3757_v26, 5 }
0x1645   :  { %v3074_v29 = vpop.permute.xlu0 %3073 }
0x1646   :  { %v3078_v30 = vsel %vm1269_vm11, %v3077_v28, %v3074_v29 }
0x1647   :  { %v3761_v31 = vsel %vm440_vm5, %v3078_v30, %v3759_v24  ;;  %vm5383_vm5 = vcmask 1046528  }
0x1648   :  { %10201 = vmatmul.mubr.msk.f32.vlgmr.msra.gmra.mrb[30].mxu1 %vm513_vm7, %v3761_v31 }
0x1649   :  { %10246 = vmatprep.mubr.msk.f32.mxu1 %vm11630_vm2, %v11629_v3  ;;  %10757 = vmatpush3.bf16.msra.mxu1 %v10756_v58 }
0x164a   :  { %10758 = vmatprep.subr.bf16.mxu1 %v11631_v34 }
0x164d   :  { %10760 = vmatpush3.bf16.msra.mxu1 %v10759_v61  ;;  %v10780_v61 = vpack.c.bf16 %v4084_v60, %v4083_v59 }
0x164e   :  { %10761 = vmatprep.subr.bf16.mxu1 %v11631_v34 }
0x1651   :  { %10763 = vmatpush3.bf16.msra.mxu1 %v10762_v1 }
0x1652   :  { %10764 = vmatprep.subr.bf16.mxu1 %v11631_v34 }
0x1655   :  { %10766 = vmatpush3.bf16.msra.mxu1 %v10765_v5 }
0x1656   :  { %10767 = vmatprep.subr.bf16.mxu1 %v11631_v34 }
0x1659   :  { %10769 = vmatpush3.bf16.msra.mxu1 %v10768_v8  ;;  %v9385_v8 = vld [vmem:[%s13374_s19] ss:$0 sm:$0xff]  ;;  %s13391_s19 = sld [smem:[#allocation24_spill]] }
0x165a   :  { %10770 = vmatprep.subr.bf16.mxu1 %v11631_v34 }
0x165d   :  { %10772 = vmatpush3.bf16.msra.mxu1 %v10771_v11  ;;  %v9386_v11 = vld [vmem:[%s13375_s24] ss:$0 sm:$0xff]  ;;  %s13392_s24 = sld [smem:[#allocation27_spill]] }
0x165e   :  { %10773 = vmatprep.subr.bf16.mxu1 %v11631_v34 }
0x1661   :  { %10775 = vmatpush3.bf16.msra.mxu1 %v10774_v14 }
0x1662   :  { %10776 = vmatprep.subr.bf16.mxu1 %v11631_v34 }
0x1665   :  { %10778 = vmatpush3.bf16.msra.mxu1 %v10777_v18 }
0x171b   :  { %v3831_v33 = vpop.f32.mrb[30].mxu1 }
0x171c   :  { %v3835_v17 = vadd.f32 %v3831_v33, %v12149_v38  ;;  %v10202_v35 = vpop.f32.mrb[31].mxu1  ;;  %v10750_v38 = vpack.c.bf16 %v9320_v44, %v9319_v43 }
0x171e   :  { %v12337_v36 = vadd.f32 %v9378_v32, %v3835_v17  ;;  %10751 = vmatpush3.bf16.msra.mxu0 %v10750_v38 }
0x171f   :  { %10752 = vmatprep.subr.bf16.mxu0 %v11631_v34 }
0x1720   :  { %v3843_v37 = vsel %vm478_vm6, %v12337_v36, 0.0 }
0x1721   :  { %3844 = vadd.xlane.f32.xlu1 %v3843_v37 }
0x1722   :  { %10754 = vmatpush3.bf16.msra.mxu0 %v10753_v47 }
0x1723   :  { %10779 = vmatprep.subr.bf16.mxu0 %v11631_v34 }
0x17ae   :  { %v3845_v39 = vpop.xlane.xlu1 %3844 }
0x17af   :  { %v3846_v40 = vmul.f32 0.03125, %v3845_v39 }
0x17b1   :  { %v3847_v41 = vsub.f32 %v12337_v36, %v3846_v40 }
0x17b3   :  { %v3848_v42 = vmul.f32 %v3847_v41, %v3847_v41 }
0x17b5   :  { %v3849_v62 = vsel %vm478_vm6, %v3848_v42, 0.0 }
0x17b6   :  { %3850 = vadd.xlane.f32.xlu0 %v3849_v62 }
0x1843   :  { %v3851_v22 = vpop.xlane.xlu0 %3850 }
0x1844   :  { %v3852_v19 = vmul.f32 0.03125, %v3851_v22 }
0x1846   :  { %v3853_v48 = vadd.f32 1e-05, %v3852_v19  ;;  %v9383_v19 = vld [vmem:[%s13371_s26 + $0x1] ss:$0 sm:$0xff]  ;;  %s13388_s26 = sld [smem:[#allocation22_spill]] }
0x1848   :  { %11367 = vrsqrt.f32 %v3853_v48 }
0x1852   :  { %v11368_v49 = vpop.eup %11367 }
0x1853   :  { %v3855_v51 = vmul.f32 %v11368_v49, %v3847_v41 }
0x1855   :  { %v3862_v54 = vmul.f32 %v9379_v50, %v3855_v51 }
0x1857   :  { %v3869_v55 = vadd.f32 %v9380_v52, %v3862_v54 }
0x1859   :  { %10212 = vmatmul.mubr.msk.f32.vlgmr.msra.gmra.mrb[50].mxu0 %vm513_vm7, %v3869_v55 }
0x185a   :  { %10257 = vmatprep.mubr.msk.f32.mxu0 %vm11630_vm2, %v11629_v3  ;;  %10781 = vmatpush3.bf16.msra.mxu0 %v10780_v61 }
0x185b   :  { %10782 = vmatprep.subr.bf16.mxu0 %v11631_v34 }
0x192c   :  { %v3945_v20 = vpop.f32.mrb[50].mxu0 }
0x192d   :  { %v3946_v21 = vadd.f32 %v9381_v53, %v3945_v20  ;;  %v10213_v23 = vpop.f32.mrb[51].mxu0  ;;  %v4174_v53 = vld [vmem:[%s13377_s6] sm:$0xff] }
0x192e   :  { %v4175_v23 = vld [vmem:[%s13377_s6 + $0x8] sm:$0xff]  ;;  %s13394_s6 = sld [smem:[#allocation28_spill]] }
0x192f   :  { %v3950_v25 = vmul.f32 0.70710677, %v3946_v21  ;;  %v3949_v46 = vmul.f32 0.5, %v3946_v21 }
0x1931   :  { %v3951_v26 = vand.u32 2147483647, %v3950_v25  ;;  %vm3971_vm13 = vcmp.ge.f32.partialorder %v3950_v25, 0.0 }
0x1933   :  { %v3952_v27 = vmul.f32 0.3275911, %v3951_v26  ;;  %v3965_v24 = vsub.f32 0.0, %v3951_v26 }
0x1935   :  { %v3953_v28 = vadd.f32 1.0, %v3952_v27  ;;  %v3966_v30 = vmul.f32 %v3965_v24, %v3951_v26 }
0x1937   :  { %11369 = vrcp.f32 %v3953_v28  ;;  %v3967_v33 = vmul.f32 1.442695, %v3966_v30  ;;  %v4176_v28 = vld [vmem:[%s13378_s12] sm:$0xff] }
0x1939   :  { %11371 = vpow2.f32 %v3967_v33 }
0x1941   :  { %v11370_v29 = vpop.eup %11369 }
0x1942   :  { %v3956_v31 = vmul.f32 1.0614054, %v11370_v29 }
0x1943   :  { %v11372_v62 = vpop.eup %11371 }
0x1944   :  { %v3957_v32 = vadd.f32 -1.4531521, %v3956_v31 }
0x1946   :  { %v3958_v17 = vmul.f32 %v11370_v29, %v3957_v32 }
0x1948   :  { %v3959_v35 = vadd.f32 1.4214138, %v3958_v17  ;;  %v4177_v17 = vld [vmem:[%s13378_s12 + $0x8] sm:$0x1] }
0x194a   :  { %v3960_v37 = vmul.f32 %v11370_v29, %v3959_v35 }
0x194c   :  { %v3961_v39 = vadd.f32 -0.28449672, %v3960_v37 }
0x194e   :  { %v3962_v40 = vmul.f32 %v11370_v29, %v3961_v39 }
0x1950   :  { %v3963_v41 = vadd.f32 0.2548296, %v3962_v40 }
0x1952   :  { %v3964_v42 = vmul.f32 %v11370_v29, %v3963_v41 }
0x1954   :  { %v3969_v43 = vmul.f32 %v11372_v62, %v3964_v42 }
0x1956   :  { %v3970_v44 = vsub.f32 1.0, %v3969_v43 }
0x1958   :  { %v3972_v38 = vsub.f32 0.0, %v3970_v44 }
0x195a   :  { %v3973_v45 = vsel %vm3971_vm13, %v3970_v44, %v3972_v38 }
0x195b   :  { %v3974_v47 = vadd.f32 1.0, %v3973_v45 }
0x195d   :  { %v3975_v22 = vmul.f32 %v3974_v47, %v3949_v46 }
0x195f   :  { %10247 = vmatmul.mubr.f32.vlgmr.msra.gmra.mrb[32].mxu1 %v3975_v22 }
0x1a32   :  { %v4048_v48 = vpop.f32.mrb[32].mxu1 }
0x1a33   :  { %v4049_v49 = vadd.f32 %v9383_v19, %v4048_v48  ;;  %v10248_v50 = vpop.f32.mrb[33].mxu1 }
0x1a35   :  { %v4052_v51 = vadd.f32 %v4049_v49, %v12337_v36  ;;  %v10783_v36 = vpack.c.bf16 %v4086_v0, %v4085_v63 }
0x1a37   :  { %v4055_v52 = vsel %vm478_vm6, %v4052_v51, 0.0  ;;  %10784 = vmatpush3.bf16.msra.mxu0 %v10783_v36 }
0x1a38   :  { %4056 = vadd.xlane.f32.xlu0 %v4055_v52  ;;  %10260 = vmatprep.subr.mxu0 %v11629_v3 }
0x1ac5   :  { %v4057_v54 = vpop.xlane.xlu0 %4056 }
0x1ac6   :  { %v4058_v55 = vmul.f32 0.03125, %v4057_v54 }
0x1ac8   :  { %v4059_v56 = vsub.f32 %v4052_v51, %v4058_v55 }
0x1aca   :  { %v4060_v57 = vmul.f32 %v4059_v56, %v4059_v56 }
0x1acc   :  { %v4061_v58 = vsel %vm478_vm6, %v4060_v57, 0.0 }
0x1acd   :  { %4062 = vadd.xlane.f32.xlu1 %v4061_v58 }
0x1b5a   :  { %v4063_v1 = vpop.xlane.xlu1 %4062 }
0x1b5b   :  { %v4064_v2 = vmul.f32 0.03125, %v4063_v1 }
0x1b5d   :  { %v4065_v4 = vadd.f32 1e-05, %v4064_v2 }
0x1b5f   :  { %11373 = vrsqrt.f32 %v4065_v4 }
0x1b69   :  { %v11374_v5 = vpop.eup %11373 }
0x1b6a   :  { %v4067_v7 = vmul.f32 %v11374_v5, %v4059_v56 }
0x1b6c   :  { %v4074_v9 = vmul.f32 %v9384_v6, %v4067_v7 }
0x1b6e   :  { %v4081_v10 = vadd.f32 %v9385_v8, %v4074_v9 }
0x1b70   :  { %4082 = vst.msk [vmem:[%s11877_s20] sm:$0x3f] %vm478_vm6, %v4081_v10  ;;  %10258 = vmatmul.mubr.msk.f32.vlgmr.msra.gmra.mrb[52].mxu0 %vm513_vm7, %v4081_v10  ;;  %s13379_s20 = sld [smem:[#allocation19_spill]]  ;;  %v9391_v10 = vld [vmem:[%s13380_s27] ss:$0 sm:$0xff]  ;;  %vm4637_vm6 = vcmask 72704  }
0x1b71   :  { %10262 = vmatprep.mubr.msk.f32.mxu0 %vm11630_vm2, %v11629_v3 }
0x1b76   :  { %v4356_v55 = vld [vmem:[%s13379_s20] sm:$0xff]  ;;  %v4357_v56 = vld [vmem:[%s13379_s20 + $0x8] sm:$0xff]  ;;  %v4358_v58 = vld [vmem:[%s13379_s20 + $0x10] sm:$0xff] }
0x1b77   :  { %v10786_v57 = vpack.c.bf16 %v4357_v56, %v4356_v55  ;;  %v4359_v59 = vld [vmem:[%s13379_s20 + $0x18] sm:$0xff] }
0x1b78   :  { %v10789_v60 = vpack.c.bf16 %v4359_v59, %v4358_v58 }
0x1c43   :  { %v4163_v12 = vpop.f32.mrb[52].mxu0 }
0x1c44   :  { %v4164_v13 = vadd.f32 %v9386_v11, %v4163_v12  ;;  %v10259_v14 = vpop.f32.mrb[53].mxu0  ;;  %v9392_v12 = vld [vmem:[%s13381_s18] ss:$0 sm:$0xff] }
0x1c46   :  { %v4179_v16 = vrot.slane %v4164_v13, 1  ;;  %v4262_v18 = vrot.slane %v4164_v13, 4  ;;  %v4338_v31 = vrot.slane %v4164_v13, 3 }
0x1c48   :  { %v4182_v20 = vsel %vm4181_vm14, %v4179_v16, %v9388_v15  ;;  %v4264_v21 = vsel %vm4181_vm14, %v4262_v18, %v9388_v15 }
0x1c49   :  { %10261 = vmatpush3.msra.mxu0 %v4182_v20 }
0x1c4a   :  { %10263 = vmatmul.mubr.msk.f32.vlgmr.msra.gmra.mrb[54].mxu0 %vm280_vm3, %v4174_v53  ;;  %10265 = vmatprep.subr.mxu0 %v11629_v3 }
0x1c4b   :  { %10266 = vmatpush3.msra.mxu0 %v4264_v21  ;;  %10267 = vmatprep.mubr.msk.f32.mxu0 %vm11630_vm2, %v11629_v3 }
0x1c4c   :  { %10785 = vmatprep.subr.bf16.mxu0 %v11631_v34 }
0x1c4e   :  { %10268 = vmatmul.mubr.msk.f32.vlgmr.msra.gmra.mrb[56].mxu0 %vm280_vm3, %v4175_v23 }
0x1c4f   :  { %10278 = vmatprep.mubr.msk.f32.mxu0 %vm11630_vm2, %v11629_v3  ;;  %10787 = vmatpush3.bf16.msra.mxu0 %v10786_v57 }
0x1c50   :  { %10788 = vmatprep.subr.bf16.mxu0 %v11631_v34 }
0x1c53   :  { %10790 = vmatpush3.bf16.msra.mxu0 %v10789_v60 }
0x1d1d   :  { %v4252_v25 = vpop.f32.mrb[54].mxu0 }
0x1d1e   :  { %v4257_v26 = vrot.slane %v4252_v25, 7  ;;  %v10264_v27 = vpop.f32.mrb[55].mxu0 }
0x1d20   :  { %v4259_v24 = vsel %vm357_vm4, %v4164_v13, %v4257_v26  ;;  %v4261_v42 = vadd.f32 %v4257_v26, %v4177_v17 }
0x1d21   :  { %v4334_v29 = vpop.f32.mrb[56].mxu0  ;;  %v12409_v30 = vadd.f32 %v4259_v24, %v4176_v28  ;;  %v9393_v24 = vld [vmem:[%s13382_s22] ss:$0 sm:$0xff] }
0x1d22   :  { %v4341_v32 = vrot.slane %v4334_v29, 7  ;;  %v10269_v33 = vpop.f32.mrb[57].mxu0 }
0x1d23   :  { %v4390_v35 = vsel %vm513_vm7, %v12409_v30, 0.0 }
0x1d24   :  { %v4343_v37 = vsel %vm357_vm4, %v4338_v31, %v4341_v32  ;;  %v4345_v39 = vadd.f32 %v4341_v32, %v4177_v17  ;;  %4391 = vadd.xlane.f32.xlu0 %v4390_v35 }
0x1d25   :  { %v4344_v40 = vadd.f32 %v4343_v37, %v4176_v28 }
0x1d26   :  { %v4349_v41 = vrot.slane %v4345_v39, 7 }
0x1d27   :  { %v4348_v62 = vrot.slane %v4344_v40, 7 }
0x1d29   :  { %v12416_v43 = vsel %vm357_vm4, %v4261_v42, %v4348_v62  ;;  %v12419_v44 = vsel %vm357_vm4, %v4348_v62, %v4349_v41 }
0x1d2a   :  { %v4393_v38 = vsel %vm513_vm7, %v12416_v43, 0.0  ;;  %v4397_v51 = vsel %vm4396_vm15, %v12419_v44, 0.0 }
0x1d2b   :  { %4394 = vadd.xlane.f32.xlu1 %v4393_v38 }
0x1db1   :  { %v4392_v45 = vpop.xlane.xlu0 %4391 }
0x1db2   :  { %v4400_v46 = vmul.f32 0.03125, %v4392_v45 }
0x1db4   :  { %v4403_v47 = vsub.f32 %v12409_v30, %v4400_v46 }
0x1db6   :  { %v4406_v22 = vmul.f32 %v4403_v47, %v4403_v47 }
0x1db8   :  { %v4395_v19 = vpop.xlane.xlu1 %4394  ;;  %v4409_v48 = vsel %vm513_vm7, %v4406_v22, 0.0 }
0x1db9   :  { %v4401_v49 = vmul.f32 0.03125, %v4395_v19  ;;  %4410 = vadd.xlane.f32.xlu0 %v4409_v48 }
0x1dbb   :  { %v4404_v50 = vsub.f32 %v12416_v43, %v4401_v49 }
0x1dbd   :  { %4398 = vadd.xlane.f32.xlu0 %v4397_v51  ;;  %v4407_v52 = vmul.f32 %v4404_v50, %v4404_v50 }
0x1dbf   :  { %v4412_v54 = vsel %vm513_vm7, %v4407_v52, 0.0 }
0x1dc0   :  { %4413 = vadd.xlane.f32.xlu1 %v4412_v54 }
0x1e46   :  { %v4411_v61 = vpop.xlane.xlu0 %4410 }
0x1e47   :  { %v4418_v63 = vmul.f32 0.03125, %v4411_v61 }
0x1e49   :  { %v4421_v0 = vadd.f32 1e-05, %v4418_v63 }
0x1e4a   :  { %v4399_v36 = vpop.xlane.xlu0 %4398 }
0x1e4b   :  { %11375 = vrsqrt.f32 %v4421_v0  ;;  %v4402_v1 = vmul.f32 0.03125, %v4399_v36 }
0x1e4d   :  { %v4405_v2 = vsub.f32 %v12419_v44, %v4402_v1  ;;  %v4414_v4 = vpop.xlane.xlu1 %4413 }
0x1e4e   :  { %v4419_v5 = vmul.f32 0.03125, %v4414_v4 }
0x1e4f   :  { %v4408_v6 = vmul.f32 %v4405_v2, %v4405_v2 }
0x1e50   :  { %v4422_v7 = vadd.f32 1e-05, %v4419_v5 }
0x1e51   :  { %v4415_v8 = vsel %vm4396_vm15, %v4408_v6, 0.0 }
0x1e52   :  { %11377 = vrsqrt.f32 %v4422_v7  ;;  %4416 = vadd.xlane.f32.xlu1 %v4415_v8 }
0x1e55   :  { %v11376_v9 = vpop.eup %11375 }
0x1e56   :  { %v4427_v11 = vmul.f32 %v11376_v9, %v4403_v47 }
0x1e58   :  { %v4436_v13 = vmul.f32 %v9391_v10, %v4427_v11 }
0x1e5a   :  { %v4445_v14 = vadd.f32 %v9392_v12, %v4436_v13 }
0x1e5c   :  { %v11378_v15 = vpop.eup %11377  ;;  %10279 = vmatmul.mubr.msk.f32.vlgmr.msra.gmra.mrb[58].mxu0 %vm513_vm7, %v4445_v14 }
0x1e5d   :  { %10281 = vmatprep.mubr.msk.f32.mxu0 %vm11630_vm2, %v11629_v3  ;;  %v4428_v16 = vmul.f32 %v11378_v15, %v4404_v50 }
0x1e5f   :  { %v4437_v18 = vmul.f32 %v9391_v10, %v4428_v16 }
0x1e61   :  { %v4446_v53 = vadd.f32 %v9392_v12, %v4437_v18 }
0x1e63   :  { %10282 = vmatmul.mubr.msk.f32.gmra.mrb[60].mxu0 %vm513_vm7, %v4446_v53 }
0x1e64   :  { %10284 = vmatprep.mubr.msk.f32.mxu0 %vm11630_vm2, %v11629_v3 }
0x1edf   :  { %v4417_v20 = vpop.xlane.xlu1 %4416 }
0x1ee0   :  { %v4420_v21 = vmul.f32 0.03125, %v4417_v20 }
0x1ee2   :  { %v4423_v23 = vadd.f32 1e-05, %v4420_v21 }
0x1ee4   :  { %11379 = vrsqrt.f32 %v4423_v23 }
0x1eee   :  { %v11380_v25 = vpop.eup %11379 }
0x1eef   :  { %v4429_v26 = vmul.f32 %v11380_v25, %v4405_v2 }
0x1ef1   :  { %v4438_v27 = vmul.f32 %v9391_v10, %v4429_v26 }
0x1ef3   :  { %v4447_v28 = vadd.f32 %v9392_v12, %v4438_v27 }
0x1ef5   :  { %10285 = vmatmul.mubr.msk.f32.gmra.mrb[62].mxu0 %vm513_vm7, %v4447_v28 }
0x1f2f   :  { %v4529_v29 = vpop.f32.mrb[58].mxu0 }
0x1f30   :  { %v4530_v31 = vadd.f32 %v9393_v24, %v4529_v29  ;;  %v10280_v32 = vpop.f32.mrb[59].mxu0 }
0x1f32   :  { %v12446_v33 = vmul.f32 0.35355338, %v4530_v31 }
0x1f34   :  { %10291 = vmatprep.mubr.msk.f32.mxu0 %vm280_vm3, %v12446_v33 }
0x1f36   :  { %v4534_v17 = vpop.f32.mrb[60].mxu0 }
0x1f37   :  { %v4535_v35 = vadd.f32 %v9393_v24, %v4534_v17  ;;  %v10283_v37 = vpop.f32.mrb[61].mxu0 }
0x1f39   :  { %v12450_v39 = vpack.i.bf16 %v4535_v35, %v4530_v31  ;;  %v12458_v40 = vmul.f32 0.35355338, %v4535_v35  ;;  %v5388_v48 = vrot.slane %v4535_v35, 1 }
0x1f3b   :  { %11132 = vrot.lane.b32.xlu0 %v12450_v39, %s11632_s0 }
0x1f3f   :  { %11142 = vrot.lane.b32.xlu0 %v12450_v39, %s11634_s21 }
0x1f43   :  { %4749 = vrot.lane.b32.xlu0 %v12446_v33, %s11633_s9 }
0x1f47   :  { %4751 = vrot.lane.b32.xlu0 %v12458_v40, %s11633_s9 }
0x1fad   :  { %v11133_v41 = vpop.permute.xlu0 %11132 }
0x1fae   :  { %v11135_v42 = vunpack.i.h.bf16 %v11133_v41  ;;  %v11134_v62 = vunpack.i.l.bf16 %v11133_v41 }
0x1fb0   :  { %v10791_v45 = vpack.c.bf16 %v11135_v42, %v11134_v62 }
0x1fb1   :  { %v11143_v5 = vpop.permute.xlu0 %11142 }
0x1fb2   :  { %10793 = vmatprep.subr.msk.bf16.mxu0 %vm12464_vm0, %v10791_v45  ;;  %v11145_v7 = vunpack.i.h.bf16 %v11143_v5  ;;  %v11144_v8 = vunpack.i.l.bf16 %v11143_v5 }
0x1fb3   :  { %10796 = vmatpush3.bf16.xpose.msk.msra.mxu0 %vm12464_vm0, %v10791_v45 }
0x1fb4   :  { %v10803_v13 = vpack.c.bf16 %v11145_v7, %v11144_v8 }
0x1fb5   :  { %v4750_v53 = vpop.permute.xlu0 %4749 }
0x1fb9   :  { %v4752_v20 = vpop.permute.xlu0 %4751 }
0x1fba   :  { %10292 = vmatmul.mubr.msk.f32.vlgmr.msra.gmra.mrb[64].mxu0 %vm280_vm3, %v12458_v40 }
0x1fc8   :  { %v4539_v46 = vpop.f32.mrb[62].mxu0 }
0x1fc9   :  { %v12474_v47 = vadd.f32 %v9393_v24, %v4539_v46  ;;  %v10286_v22 = vpop.f32.mrb[63].mxu0 }
0x1fcb   :  { %v5389_v19 = vrot.slane %v12474_v47, 1 }
0x1fcd   :  { %v5390_v49 = vsel %vm5383_vm5, %v5388_v48, %v5389_v19 }
0x1fce   :  { %v12478_v50 = vpack.i.bf16 %v5389_v19, %v5390_v49 }
0x208d   :  { %v10293_v51 = vpop.f32.mrb[64].mxu0 }
0x208e   :  { %v4628_v52 = vpop.f32.mrb[65].mxu0  ;;  %v4642_v55 = vsel %vm4641_vm8, %v10293_v51, -inf }
0x208f   :  { %v4638_v54 = vsel %vm4637_vm6, %v4628_v52, -inf }
0x2090   :  { %4639 = vmax.xlane.f32.xlu1 %v4638_v54 }
0x2094   :  { %4643 = vmax.xlane.f32.xlu1 %v4642_v55 }
0x211d   :  { %v4640_v56 = vpop.xlane.xlu1 %4639 }
0x211e   :  { %v4645_v57 = vsub.f32 %v4628_v52, %v4640_v56 }
0x2120   :  { %v4647_v60 = vmul.f32 1.442695, %v4645_v57 }
0x2121   :  { %v4644_v58 = vpop.xlane.xlu1 %4643 }
0x2122   :  { %v4646_v59 = vsub.f32 %v10293_v51, %v4644_v58 }
0x2124   :  { %v4649_v61 = vmul.f32 1.442695, %v4646_v59 }
0x2126   :  { %11381 = vpow2.f32 %v4649_v61 }
0x2127   :  { %11383 = vpow2.f32 %v4647_v60 }
0x2130   :  { %v11382_v63 = vpop.eup %11381 }
0x2131   :  { %v4654_v0 = vsel %vm4641_vm8, %v11382_v63, 0.0  ;;  %v11384_v36 = vpop.eup %11383 }
0x2132   :  { %4655 = vadd.xlane.f32.xlu1 %v4654_v0  ;;  %v4651_v1 = vsel %vm4637_vm6, %v11384_v36, 0.0 }
0x2136   :  { %4652 = vadd.xlane.f32.xlu1 %v4651_v1 }
0x2147   :  { %11137 = vrot.lane.b32.xlu1 %v12450_v39, %s11639_s1 }
0x21bf   :  { %v4656_v2 = vpop.xlane.xlu1 %4655 }
0x21c0   :  { %11385 = vrcp.f32 %v4656_v2 }
0x21c3   :  { %v4653_v4 = vpop.xlane.xlu1 %4652 }
0x21c4   :  { %11387 = vrcp.f32 %v4653_v4 }
0x21c7   :  { %v11138_v6 = vpop.permute.xlu1 %11137 }
0x21c8   :  { %v11140_v9 = vunpack.i.h.bf16 %v11138_v6  ;;  %v11139_v10 = vunpack.i.l.bf16 %v11138_v6 }
0x21ca   :  { %v10797_v12 = vpack.c.bf16 %v11140_v9, %v11139_v10  ;;  %v11386_v14 = vpop.eup %11385 }
0x21cb   :  { %v4660_v18 = vmul.f32 %v11386_v14, %v11382_v63 }
0x21cc   :  { %10799 = vmatprep.subr.msk.bf16.mxu1 %vm12487_vm12, %v10797_v12 }
0x21cd   :  { %10802 = vmatpush3.bf16.msk.msra.mxu1 %vm12487_vm12, %v10797_v12 }
0x21ce   :  { %v11388_v15 = vpop.eup %11387  ;;  %10805 = vmatprep.subr.msk.bf16.mxu1 %vm12464_vm0, %v10803_v13 }
0x21cf   :  { %v4659_v16 = vmul.f32 %v11388_v15, %v11384_v36 }
0x21d1   :  { %10298 = vmatprep.mubr.msk.f32.mxu1 %vm4637_vm6, %v4659_v16 }
0x21d2   :  { %10299 = vmatmul.mubr.msk.f32.vlgmr.msra.gmra.mrb[34].mxu1 %vm4637_vm6, %v4660_v18 }
0x21d3   :  { %10305 = vmatprep.mubr.msk.f32.mxu1 %vm280_vm3, %v4750_v53 }
0x21d6   :  { %10808 = vmatpush3.bf16.xpose.msk.msra.mxu1 %vm12464_vm0, %v10803_v13 }
0x21dd   :  { %10306 = vmatmul.mubr.msk.f32.vlgmr.msra.gmra.mrb[36].mxu1 %vm280_vm3, %v4752_v20 }
0x22a5   :  { %v12503_v21 = vpop.f32.mrb[34].mxu1 }
0x22a6   :  { %v12505_v23 = vpop.f32.mrb[35].mxu1 }
0x22b0   :  { %v10307_v25 = vpop.f32.mrb[36].mxu1 }
0x22b1   :  { %v4831_v26 = vpop.f32.mrb[37].mxu1  ;;  %v4843_v27 = vsel %vm4641_vm8, %v10307_v25, -inf }
0x22b2   :  { %4844 = vmax.xlane.f32.xlu1 %v4843_v27  ;;  %v4840_v28 = vsel %vm4637_vm6, %v4831_v26, -inf }
0x22b3   :  { %4841 = vmax.xlane.f32.xlu0 %v4840_v28 }
0x22c3   :  { %11147 = vrot.lane.b32.xlu1 %v12450_v39, %s11641_s7 }
0x22c7   :  { %4950 = vrot.lane.b32.xlu1 %v12446_v33, %s11636_s29 }
0x22cb   :  { %4952 = vrot.lane.b32.xlu1 %v12458_v40, %s11636_s29 }
0x233f   :  { %v4845_v24 = vpop.xlane.xlu1 %4844 }
0x2340   :  { %v4847_v29 = vsub.f32 %v10307_v25, %v4845_v24  ;;  %v4842_v31 = vpop.xlane.xlu0 %4841 }
0x2341   :  { %v4846_v32 = vsub.f32 %v4831_v26, %v4842_v31 }
0x2342   :  { %v4850_v17 = vmul.f32 1.442695, %v4847_v29 }
0x2343   :  { %v4848_v35 = vmul.f32 1.442695, %v4846_v32  ;;  %v11148_v37 = vpop.permute.xlu1 %11147 }
0x2344   :  { %11389 = vpow2.f32 %v4850_v17  ;;  %v11150_v41 = vunpack.i.h.bf16 %v11148_v37  ;;  %v11149_v42 = vunpack.i.l.bf16 %v11148_v37 }
0x2345   :  { %11391 = vpow2.f32 %v4848_v35 }
0x2346   :  { %v10809_v62 = vpack.c.bf16 %v11150_v41, %v11149_v42 }
0x2347   :  { %v4951_v60 = vpop.permute.xlu1 %4950 }
0x2348   :  { %10811 = vmatprep.subr.msk.bf16.mxu0 %vm12487_vm12, %v10809_v62 }
0x2349   :  { %10814 = vmatpush3.bf16.msk.msra.mxu0 %vm12487_vm12, %v10809_v62 }
0x234b   :  { %v4953_v61 = vpop.permute.xlu1 %4952 }
0x234e   :  { %v11390_v45 = vpop.eup %11389 }
0x234f   :  { %v4855_v46 = vsel %vm4641_vm8, %v11390_v45, 0.0  ;;  %v11392_v22 = vpop.eup %11391 }
0x2350   :  { %4856 = vadd.xlane.f32.xlu0 %v4855_v46  ;;  %v4852_v19 = vsel %vm4637_vm6, %v11392_v22, 0.0 }
0x2354   :  { %4853 = vadd.xlane.f32.xlu0 %v4852_v19 }
0x236a   :  { %11152 = vrot.lane.b32.xlu0 %v12450_v39, %s11635_s25 }
0x23dd   :  { %v4857_v48 = vpop.xlane.xlu0 %4856 }
0x23de   :  { %11393 = vrcp.f32 %v4857_v48 }
0x23e1   :  { %v4854_v49 = vpop.xlane.xlu0 %4853 }
0x23e2   :  { %11395 = vrcp.f32 %v4854_v49 }
0x23e5   :  { %v11153_v51 = vpop.permute.xlu0 %11152 }
0x23e6   :  { %v11155_v52 = vunpack.i.h.bf16 %v11153_v51  ;;  %v11154_v54 = vunpack.i.l.bf16 %v11153_v51 }
0x23e8   :  { %v10815_v55 = vpack.c.bf16 %v11155_v52, %v11154_v54  ;;  %v11394_v56 = vpop.eup %11393 }
0x23e9   :  { %v4861_v59 = vmul.f32 %v11394_v56, %v11390_v45 }
0x23ea   :  { %10817 = vmatprep.subr.msk.bf16.mxu0 %vm12464_vm0, %v10815_v55 }
0x23ec   :  { %v11396_v57 = vpop.eup %11395 }
0x23ed   :  { %v4860_v58 = vmul.f32 %v11396_v57, %v11392_v22 }
0x23ef   :  { %10312 = vmatprep.mubr.msk.f32.mxu0 %vm4637_vm6, %v4860_v58 }
0x23f0   :  { %10313 = vmatmul.mubr.msk.f32.vlgmr.msra.gmra.mrb[66].mxu0 %vm4637_vm6, %v4861_v59 }
0x23f1   :  { %10820 = vmatpush3.bf16.xpose.msk.msra.mxu0 %vm12464_vm0, %v10815_v55  ;;  %10319 = vmatprep.mubr.msk.f32.mxu0 %vm280_vm3, %v4951_v60 }
0x23f8   :  { %10320 = vmatmul.mubr.msk.f32.vlgmr.msra.gmra.mrb[68].mxu0 %vm280_vm3, %v4953_v61 }
0x24c3   :  { %v12531_v63 = vpop.f32.mrb[66].mxu0 }
0x24c4   :  { %v12533_v0 = vpop.f32.mrb[67].mxu0 }
0x24cb   :  { %v10321_v36 = vpop.f32.mrb[68].mxu0 }
0x24cc   :  { %v5032_v1 = vpop.f32.mrb[69].mxu0  ;;  %v5044_v2 = vsel %vm4641_vm8, %v10321_v36, -inf }
0x24cd   :  { %5045 = vmax.xlane.f32.xlu1 %v5044_v2  ;;  %v5041_v4 = vsel %vm4637_vm6, %v5032_v1, -inf }
0x24ce   :  { %5042 = vmax.xlane.f32.xlu0 %v5041_v4 }
0x24de   :  { %11157 = vrot.lane.b32.xlu1 %v12450_v39, %s11640_s2 }
0x24e2   :  { %5151 = vrot.lane.b32.xlu1 %v12446_v33, %s11638_s28 }
0x24e6   :  { %5153 = vrot.lane.b32.xlu1 %v12458_v40, %s11638_s28 }
0x255a   :  { %v5046_v5 = vpop.xlane.xlu1 %5045 }
0x255b   :  { %v5048_v6 = vsub.f32 %v10321_v36, %v5046_v5  ;;  %v5043_v7 = vpop.xlane.xlu0 %5042 }
0x255c   :  { %v5047_v8 = vsub.f32 %v5032_v1, %v5043_v7 }
0x255d   :  { %v5051_v9 = vmul.f32 1.442695, %v5048_v6  ;;  %v4545_v6 = vmul.f32 0.35355338, %v12474_v47 }
0x255e   :  { %v5049_v10 = vmul.f32 1.442695, %v5047_v8  ;;  %v11158_v12 = vpop.permute.xlu1 %11157 }
0x255f   :  { %11397 = vpow2.f32 %v5051_v9  ;;  %v11160_v13 = vunpack.i.h.bf16 %v11158_v12  ;;  %v11159_v14 = vunpack.i.l.bf16 %v11158_v12 }
0x2560   :  { %11399 = vpow2.f32 %v5049_v10  ;;  %v12578_v10 = vrot.slane %v4545_v6, 1 }
0x2561   :  { %v10821_v15 = vpack.c.bf16 %v11160_v13, %v11159_v14  ;;  %v5384_v14 = vrot.slane %v12458_v40, 1 }
0x2562   :  { %v5152_v35 = vpop.permute.xlu1 %5151 }
0x2563   :  { %10823 = vmatprep.subr.msk.bf16.mxu1 %vm12487_vm12, %v10821_v15 }
0x2564   :  { %10826 = vmatpush3.bf16.msk.msra.mxu1 %vm12487_vm12, %v10821_v15  ;;  %v12585_v15 = vsel %vm5383_vm5, %v5384_v14, %v12578_v10 }
0x2566   :  { %v5154_v37 = vpop.permute.xlu1 %5153 }
0x2569   :  { %v11398_v33 = vpop.eup %11397 }
0x256a   :  { %v5056_v16 = vsel %vm4641_vm8, %v11398_v33, 0.0  ;;  %v11400_v18 = vpop.eup %11399 }
0x256b   :  { %5057 = vadd.xlane.f32.xlu0 %v5056_v16  ;;  %v5053_v53 = vsel %vm4637_vm6, %v11400_v18, 0.0 }
0x256f   :  { %5054 = vadd.xlane.f32.xlu0 %v5053_v53 }
0x2585   :  { %11162 = vrot.lane.b32.xlu0 %v12450_v39, %s11637_s3 }
0x25f8   :  { %v5058_v20 = vpop.xlane.xlu0 %5057 }
0x25f9   :  { %11401 = vrcp.f32 %v5058_v20 }
0x25fc   :  { %v5055_v25 = vpop.xlane.xlu0 %5054 }
0x25fd   :  { %11403 = vrcp.f32 %v5055_v25 }
0x2600   :  { %v11163_v26 = vpop.permute.xlu0 %11162 }
0x2601   :  { %v11165_v27 = vunpack.i.h.bf16 %v11163_v26  ;;  %v11164_v28 = vunpack.i.l.bf16 %v11163_v26 }
0x2603   :  { %v10827_v24 = vpack.c.bf16 %v11165_v27, %v11164_v28  ;;  %v11402_v29 = vpop.eup %11401 }
0x2604   :  { %v5062_v17 = vmul.f32 %v11402_v29, %v11398_v33 }
0x2605   :  { %10829 = vmatprep.subr.msk.bf16.mxu1 %vm12464_vm0, %v10827_v24 }
0x2607   :  { %v11404_v31 = vpop.eup %11403 }
0x2608   :  { %v5061_v32 = vmul.f32 %v11404_v31, %v11400_v18 }
0x260a   :  { %10326 = vmatprep.mubr.msk.f32.mxu1 %vm4637_vm6, %v5061_v32 }
0x260b   :  { %10327 = vmatmul.mubr.msk.f32.vlgmr.msra.gmra.mrb[38].mxu1 %vm4637_vm6, %v5062_v17 }
0x260c   :  { %10832 = vmatpush3.bf16.xpose.msk.msra.mxu1 %vm12464_vm0, %v10827_v24  ;;  %10333 = vmatprep.mubr.msk.f32.mxu1 %vm280_vm3, %v5152_v35 }
0x2613   :  { %10334 = vmatmul.mubr.msk.f32.vlgmr.msra.gmra.mrb[40].mxu1 %vm280_vm3, %v5154_v37 }
0x26de   :  { %v12559_v41 = vpop.f32.mrb[38].mxu1 }
0x26df   :  { %v12561_v42 = vpop.f32.mrb[39].mxu1 }
0x26e6   :  { %v10335_v62 = vpop.f32.mrb[40].mxu1 }
0x26e7   :  { %v5233_v45 = vpop.f32.mrb[41].mxu1  ;;  %v5245_v46 = vsel %vm4641_vm8, %v10335_v62, -inf }
0x26e8   :  { %5246 = vmax.xlane.f32.xlu1 %v5245_v46  ;;  %v5242_v22 = vsel %vm4637_vm6, %v5233_v45, -inf }
0x26e9   :  { %5243 = vmax.xlane.f32.xlu0 %v5242_v22 }
0x26f9   :  { %11167 = vrot.lane.b32.xlu1 %v12450_v39, %s11642_s10 }
0x2775   :  { %v5247_v19 = vpop.xlane.xlu1 %5246 }
0x2776   :  { %v5249_v48 = vsub.f32 %v10335_v62, %v5247_v19  ;;  %v5244_v49 = vpop.xlane.xlu0 %5243 }
0x2777   :  { %v5248_v51 = vsub.f32 %v5233_v45, %v5244_v49 }
0x2778   :  { %v5252_v52 = vmul.f32 1.442695, %v5249_v48 }
0x2779   :  { %v5250_v54 = vmul.f32 1.442695, %v5248_v51  ;;  %v11168_v55 = vpop.permute.xlu1 %11167 }
0x277a   :  { %11405 = vpow2.f32 %v5252_v52  ;;  %v11170_v56 = vunpack.i.h.bf16 %v11168_v55  ;;  %v11169_v57 = vunpack.i.l.bf16 %v11168_v55 }
0x277b   :  { %11407 = vpow2.f32 %v5250_v54 }
0x277c   :  { %v10833_v58 = vpack.c.bf16 %v11170_v56, %v11169_v57 }
0x277e   :  { %10835 = vmatprep.subr.msk.bf16.mxu0 %vm12487_vm12, %v10833_v58 }
0x277f   :  { %10838 = vmatpush3.bf16.msk.msra.mxu0 %vm12487_vm12, %v10833_v58 }
0x2784   :  { %v11406_v59 = vpop.eup %11405 }
0x2785   :  { %v5257_v39 = vsel %vm4641_vm8, %v11406_v59, 0.0  ;;  %v11408_v60 = vpop.eup %11407 }
0x2786   :  { %5258 = vadd.xlane.f32.xlu0 %v5257_v39  ;;  %v5254_v61 = vsel %vm4637_vm6, %v11408_v60, 0.0 }
0x278a   :  { %5255 = vadd.xlane.f32.xlu0 %v5254_v61 }
0x27a0   :  { %11172 = vrot.lane.b32.xlu0 %v12478_v50, %s11632_s0 }
0x2813   :  { %v5259_v36 = vpop.xlane.xlu0 %5258 }
0x2814   :  { %11409 = vrcp.f32 %v5259_v36 }
0x2817   :  { %v5256_v1 = vpop.xlane.xlu0 %5255 }
0x2818   :  { %11411 = vrcp.f32 %v5256_v1 }
0x281b   :  { %v11173_v2 = vpop.permute.xlu0 %11172 }
0x281c   :  { %v11175_v4 = vunpack.i.h.bf16 %v11173_v2  ;;  %v11174_v5 = vunpack.i.l.bf16 %v11173_v2 }
0x281e   :  { %v10839_v7 = vpack.c.bf16 %v11175_v4, %v11174_v5  ;;  %v11410_v8 = vpop.eup %11409 }
0x281f   :  { %v5263_v13 = vmul.f32 %v11410_v8, %v11406_v59 }
0x2820   :  { %10841 = vmatprep.subr.msk.bf16.mxu0 %vm12464_vm0, %v10839_v7 }
0x2822   :  { %v11412_v9 = vpop.eup %11411 }
0x2823   :  { %v5262_v12 = vmul.f32 %v11412_v9, %v11408_v60 }
0x2825   :  { %10340 = vmatprep.mubr.msk.f32.mxu0 %vm4637_vm6, %v5262_v12 }
0x2826   :  { %10341 = vmatmul.mubr.msk.f32.vlgmr.msra.gmra.mrb[70].mxu0 %vm4637_vm6, %v5263_v13 }
0x2827   :  { %10844 = vmatpush3.bf16.xpose.msk.msra.mxu0 %vm12464_vm0, %v10839_v7  ;;  %10347 = vmatprep.mubr.msk.f32.mxu0 %vm280_vm3, %v12585_v15 }
0x282e   :  { %10348 = vmatmul.mubr.msk.f32.vlgmr.msra.gmra.mrb[72].mxu0 %vm280_vm3, %v12578_v10 }
0x28f9   :  { %v12593_v47 = vpop.f32.mrb[70].mxu0 }
0x28fa   :  { %v12595_v40 = vpop.f32.mrb[71].mxu0 }
0x2901   :  { %v10349_v33 = vpop.f32.mrb[72].mxu0 }
0x2902   :  { %v5469_v16 = vpop.f32.mrb[73].mxu0  ;;  %v5481_v18 = vsel %vm4641_vm8, %v10349_v33, -inf }
0x2903   :  { %5482 = vmax.xlane.f32.xlu0 %v5481_v18  ;;  %v5478_v53 = vsel %vm4637_vm6, %v5469_v16, -inf }
0x2904   :  { %5479 = vmax.xlane.f32.xlu1 %v5478_v53 }
0x2915   :  { %11177 = vrot.lane.b32.xlu1 %v12478_v50, %s11639_s1 }
0x2919   :  { %5588 = vrot.lane.b32.xlu1 %v12585_v15, %s11633_s9 }
0x2990   :  { %v5483_v20 = vpop.xlane.xlu0 %5482 }
0x2991   :  { %v5485_v25 = vsub.f32 %v10349_v33, %v5483_v20  ;;  %v5480_v26 = vpop.xlane.xlu1 %5479 }
0x2992   :  { %v5484_v27 = vsub.f32 %v5469_v16, %v5480_v26 }
0x2993   :  { %v5488_v28 = vmul.f32 1.442695, %v5485_v25 }
0x2994   :  { %v5486_v24 = vmul.f32 1.442695, %v5484_v27 }
0x2995   :  { %11413 = vpow2.f32 %v5488_v28  ;;  %v11178_v29 = vpop.permute.xlu1 %11177 }
0x2996   :  { %11415 = vpow2.f32 %v5486_v24  ;;  %v11180_v31 = vunpack.i.h.bf16 %v11178_v29  ;;  %v11179_v32 = vunpack.i.l.bf16 %v11178_v29 }
0x2998   :  { %v10845_v17 = vpack.c.bf16 %v11180_v31, %v11179_v32 }
0x2999   :  { %v5589_v46 = vpop.permute.xlu1 %5588 }
0x299a   :  { %10847 = vmatprep.subr.msk.bf16.mxu1 %vm12487_vm12, %v10845_v17 }
0x299b   :  { %10850 = vmatpush3.bf16.msk.msra.mxu1 %vm12487_vm12, %v10845_v17 }
0x299f   :  { %v11414_v35 = vpop.eup %11413 }
0x29a0   :  { %v11416_v37 = vpop.eup %11415  ;;  %v5493_v62 = vsel %vm4641_vm8, %v11414_v35, 0.0 }
0x29a1   :  { %5494 = vadd.xlane.f32.xlu0 %v5493_v62  ;;  %v5490_v45 = vsel %vm4637_vm6, %v11416_v37, 0.0 }
0x29a2   :  { %5491 = vadd.xlane.f32.xlu1 %v5490_v45 }
0x29b3   :  { %5590 = vrot.lane.b32.xlu1 %v12578_v10, %s11633_s9 }
0x29b7   :  { %11182 = vrot.lane.b32.xlu0 %v12478_v50, %s11634_s21 }
0x2a2e   :  { %v5495_v22 = vpop.xlane.xlu0 %5494 }
0x2a2f   :  { %11417 = vrcp.f32 %v5495_v22  ;;  %v5492_v19 = vpop.xlane.xlu1 %5491 }
0x2a30   :  { %11419 = vrcp.f32 %v5492_v19 }
0x2a32   :  { %v11183_v48 = vpop.permute.xlu0 %11182 }
0x2a33   :  { %v11185_v49 = vunpack.i.h.bf16 %v11183_v48  ;;  %v11184_v51 = vunpack.i.l.bf16 %v11183_v48  ;;  %v5591_v58 = vpop.permute.xlu1 %5590 }
0x2a35   :  { %v10851_v52 = vpack.c.bf16 %v11185_v49, %v11184_v51 }
0x2a37   :  { %10853 = vmatprep.subr.msk.bf16.mxu1 %vm12464_vm0, %v10851_v52 }
0x2a39   :  { %v11418_v54 = vpop.eup %11417 }
0x2a3a   :  { %v11420_v55 = vpop.eup %11419  ;;  %v5499_v57 = vmul.f32 %v11418_v54, %v11414_v35 }
0x2a3b   :  { %v5498_v56 = vmul.f32 %v11420_v55, %v11416_v37 }
0x2a3d   :  { %10354 = vmatprep.mubr.msk.f32.mxu1 %vm4637_vm6, %v5498_v56 }
0x2a3e   :  { %10355 = vmatmul.mubr.msk.f32.vlgmr.msra.gmra.mrb[42].mxu1 %vm4637_vm6, %v5499_v57 }
0x2a3f   :  { %10856 = vmatpush3.bf16.xpose.msk.msra.mxu1 %vm12464_vm0, %v10851_v52  ;;  %10361 = vmatprep.mubr.msk.f32.mxu1 %vm280_vm3, %v5589_v46 }
0x2a46   :  { %10362 = vmatmul.mubr.msk.f32.vlgmr.msra.gmra.mrb[44].mxu1 %vm280_vm3, %v5591_v58 }
0x2b11   :  { %v12621_v59 = vpop.f32.mrb[42].mxu1 }
0x2b12   :  { %v12623_v39 = vpop.f32.mrb[43].mxu1 }
0x2b19   :  { %v10363_v60 = vpop.f32.mrb[44].mxu1 }
0x2b1a   :  { %v5670_v61 = vpop.f32.mrb[45].mxu1  ;;  %v5682_v36 = vsel %vm4641_vm8, %v10363_v60, -inf }
0x2b1b   :  { %5683 = vmax.xlane.f32.xlu1 %v5682_v36  ;;  %v5679_v1 = vsel %vm4637_vm6, %v5670_v61, -inf }
0x2b1c   :  { %5680 = vmax.xlane.f32.xlu0 %v5679_v1 }
0x2b2c   :  { %11187 = vrot.lane.b32.xlu1 %v12478_v50, %s11641_s7 }
0x2b30   :  { %5789 = vrot.lane.b32.xlu1 %v12585_v15, %s11636_s29 }
0x2b34   :  { %5791 = vrot.lane.b32.xlu1 %v12578_v10, %s11636_s29 }
0x2ba8   :  { %v5684_v2 = vpop.xlane.xlu1 %5683 }
0x2ba9   :  { %v5686_v4 = vsub.f32 %v10363_v60, %v5684_v2  ;;  %v5681_v5 = vpop.xlane.xlu0 %5680 }
0x2baa   :  { %v5685_v6 = vsub.f32 %v5670_v61, %v5681_v5 }
0x2bab   :  { %v5689_v7 = vmul.f32 1.442695, %v5686_v4 }
0x2bac   :  { %v5687_v8 = vmul.f32 1.442695, %v5685_v6  ;;  %v11188_v9 = vpop.permute.xlu1 %11187 }
0x2bad   :  { %11421 = vpow2.f32 %v5689_v7  ;;  %v11190_v12 = vunpack.i.h.bf16 %v11188_v9  ;;  %v11189_v13 = vunpack.i.l.bf16 %v11188_v9 }
0x2bae   :  { %11423 = vpow2.f32 %v5687_v8 }
0x2baf   :  { %v10857_v14 = vpack.c.bf16 %v11190_v12, %v11189_v13 }
0x2bb0   :  { %v5790_v35 = vpop.permute.xlu1 %5789 }
0x2bb1   :  { %10859 = vmatprep.subr.msk.bf16.mxu0 %vm12487_vm12, %v10857_v14 }
0x2bb2   :  { %10862 = vmatpush3.bf16.msk.msra.mxu0 %vm12487_vm12, %v10857_v14 }
0x2bb4   :  { %v5792_v37 = vpop.permute.xlu1 %5791 }
0x2bb7   :  { %v11422_v33 = vpop.eup %11421 }
0x2bb8   :  { %v5694_v16 = vsel %vm4641_vm8, %v11422_v33, 0.0  ;;  %v11424_v18 = vpop.eup %11423 }
0x2bb9   :  { %5695 = vadd.xlane.f32.xlu0 %v5694_v16  ;;  %v5691_v53 = vsel %vm4637_vm6, %v11424_v18, 0.0 }
0x2bbd   :  { %5692 = vadd.xlane.f32.xlu0 %v5691_v53 }
0x2bd3   :  { %11192 = vrot.lane.b32.xlu0 %v12478_v50, %s11635_s25 }
0x2c46   :  { %v5696_v20 = vpop.xlane.xlu0 %5695 }
0x2c47   :  { %11425 = vrcp.f32 %v5696_v20 }
0x2c4a   :  { %v5693_v25 = vpop.xlane.xlu0 %5692 }
0x2c4b   :  { %11427 = vrcp.f32 %v5693_v25 }
0x2c4e   :  { %v11193_v26 = vpop.permute.xlu0 %11192 }
0x2c4f   :  { %v11195_v27 = vunpack.i.h.bf16 %v11193_v26  ;;  %v11194_v28 = vunpack.i.l.bf16 %v11193_v26 }
0x2c51   :  { %v10863_v24 = vpack.c.bf16 %v11195_v27, %v11194_v28  ;;  %v11426_v29 = vpop.eup %11425 }
0x2c52   :  { %v5700_v17 = vmul.f32 %v11426_v29, %v11422_v33 }
0x2c53   :  { %10865 = vmatprep.subr.msk.bf16.mxu0 %vm12464_vm0, %v10863_v24 }
0x2c55   :  { %v11428_v31 = vpop.eup %11427 }
0x2c56   :  { %v5699_v32 = vmul.f32 %v11428_v31, %v11424_v18 }
0x2c58   :  { %10368 = vmatprep.mubr.msk.f32.mxu0 %vm4637_vm6, %v5699_v32 }
0x2c59   :  { %10369 = vmatmul.mubr.msk.f32.vlgmr.msra.gmra.mrb[74].mxu0 %vm4637_vm6, %v5700_v17 }
0x2c5a   :  { %10868 = vmatpush3.bf16.xpose.msk.msra.mxu0 %vm12464_vm0, %v10863_v24  ;;  %10375 = vmatprep.mubr.msk.f32.mxu0 %vm280_vm3, %v5790_v35 }
0x2c61   :  { %10376 = vmatmul.mubr.msk.f32.vlgmr.msra.gmra.mrb[76].mxu0 %vm280_vm3, %v5792_v37 }
0x2d2c   :  { %v12649_v62 = vpop.f32.mrb[74].mxu0 }
0x2d2d   :  { %v5780_v45 = vpop.f32.mrb[75].mxu0 }
0x2d34   :  { %v10377_v46 = vpop.f32.mrb[76].mxu0 }
0x2d35   :  { %v5871_v22 = vpop.f32.mrb[77].mxu0  ;;  %v5883_v19 = vsel %vm4641_vm8, %v10377_v46, -inf }
0x2d36   :  { %5884 = vmax.xlane.f32.xlu1 %v5883_v19  ;;  %v5880_v48 = vsel %vm4637_vm6, %v5871_v22, -inf }
0x2d37   :  { %5881 = vmax.xlane.f32.xlu0 %v5880_v48 }
0x2d47   :  { %11197 = vrot.lane.b32.xlu1 %v12478_v50, %s11640_s2 }
0x2d4b   :  { %5990 = vrot.lane.b32.xlu1 %v12585_v15, %s11638_s28 }
0x2d4f   :  { %5992 = vrot.lane.b32.xlu1 %v12578_v10, %s11638_s28 }
0x2dc3   :  { %v5885_v49 = vpop.xlane.xlu1 %5884 }
0x2dc4   :  { %v5887_v51 = vsub.f32 %v10377_v46, %v5885_v49  ;;  %v5882_v52 = vpop.xlane.xlu0 %5881 }
0x2dc5   :  { %v5886_v54 = vsub.f32 %v5871_v22, %v5882_v52 }
0x2dc6   :  { %v5890_v55 = vmul.f32 1.442695, %v5887_v51 }
0x2dc7   :  { %v5888_v56 = vmul.f32 1.442695, %v5886_v54  ;;  %v11198_v57 = vpop.permute.xlu1 %11197  ;;  %v4361_v54 = vld [vmem:[%s13387_s23] sm:$0xff] }
0x2dc8   :  { %11429 = vpow2.f32 %v5890_v55  ;;  %v11200_v58 = vunpack.i.h.bf16 %v11198_v57  ;;  %v11199_v60 = vunpack.i.l.bf16 %v11198_v57  ;;  %v4362_v55 = vld [vmem:[%s13387_s23 + $0x8] sm:$0xff] }
0x2dc9   :  { %11431 = vpow2.f32 %v5888_v56 }
0x2dca   :  { %v10869_v61 = vpack.c.bf16 %v11200_v58, %v11199_v60  ;;  %v4363_v58 = vld [vmem:[%s13387_s23 + $0x10] sm:$0xff] }
0x2dcb   :  { %v5991_v33 = vpop.permute.xlu1 %5990 }
0x2dcc   :  { %10871 = vmatprep.subr.msk.bf16.mxu1 %vm12487_vm12, %v10869_v61 }
0x2dcd   :  { %10874 = vmatpush3.bf16.msk.msra.mxu1 %vm12487_vm12, %v10869_v61 }
0x2dcf   :  { %v5993_v16 = vpop.permute.xlu1 %5992 }
0x2dd2   :  { %v11430_v15 = vpop.eup %11429 }
0x2dd3   :  { %v5895_v10 = vsel %vm4641_vm8, %v11430_v15, 0.0  ;;  %v11432_v36 = vpop.eup %11431 }
0x2dd4   :  { %5896 = vadd.xlane.f32.xlu0 %v5895_v10  ;;  %v5892_v1 = vsel %vm4637_vm6, %v11432_v36, 0.0 }
0x2dd8   :  { %5893 = vadd.xlane.f32.xlu0 %v5892_v1 }
0x2dee   :  { %11202 = vrot.lane.b32.xlu0 %v12478_v50, %s11637_s3 }
0x2e61   :  { %v5897_v2 = vpop.xlane.xlu0 %5896 }
0x2e62   :  { %11433 = vrcp.f32 %v5897_v2 }
0x2e65   :  { %v5894_v4 = vpop.xlane.xlu0 %5893 }
0x2e66   :  { %11435 = vrcp.f32 %v5894_v4 }
0x2e69   :  { %v11203_v5 = vpop.permute.xlu0 %11202 }
0x2e6a   :  { %v11205_v6 = vunpack.i.h.bf16 %v11203_v5  ;;  %v11204_v7 = vunpack.i.l.bf16 %v11203_v5 }
0x2e6c   :  { %v10875_v8 = vpack.c.bf16 %v11205_v6, %v11204_v7  ;;  %v11434_v9 = vpop.eup %11433 }
0x2e6d   :  { %v5901_v14 = vmul.f32 %v11434_v9, %v11430_v15 }
0x2e6e   :  { %10877 = vmatprep.subr.msk.bf16.mxu1 %vm12464_vm0, %v10875_v8 }
0x2e70   :  { %v11436_v12 = vpop.eup %11435 }
0x2e71   :  { %v5900_v13 = vmul.f32 %v11436_v12, %v11432_v36 }
0x2e73   :  { %10382 = vmatprep.mubr.msk.f32.mxu1 %vm4637_vm6, %v5900_v13 }
0x2e74   :  { %10383 = vmatmul.mubr.msk.f32.vlgmr.msra.gmra.mrb[46].mxu1 %vm4637_vm6, %v5901_v14 }
0x2e75   :  { %10880 = vmatpush3.bf16.xpose.msk.msra.mxu1 %vm12464_vm0, %v10875_v8  ;;  %10389 = vmatprep.mubr.msk.f32.mxu1 %vm280_vm3, %v5991_v33 }
0x2e76   :  { %10893 = vmatprep.subr.bf16.mxu1 %v11631_v34 }
0x2e7c   :  { %10390 = vmatmul.mubr.msk.f32.vlgmr.msra.gmra.mrb[48].mxu1 %vm280_vm3, %v5993_v16 }
0x2e7d   :  { %10424 = vmatprep.mubr.msk.f32.mxu1 %vm11630_vm2, %v11629_v3 }
0x2f47   :  { %v12678_v18 = vpop.f32.mrb[46].mxu1 }
0x2f48   :  { %v5981_v53 = vpop.f32.mrb[47].mxu1 }
0x2f4f   :  { %v10391_v20 = vpop.f32.mrb[48].mxu1 }
0x2f50   :  { %v6072_v25 = vpop.f32.mrb[49].mxu1  ;;  %v6084_v26 = vsel %vm4641_vm8, %v10391_v20, -inf }
0x2f51   :  { %6085 = vmax.xlane.f32.xlu1 %v6084_v26  ;;  %v6081_v27 = vsel %vm4637_vm6, %v6072_v25, -inf }
0x2f52   :  { %6082 = vmax.xlane.f32.xlu0 %v6081_v27 }
0x2f62   :  { %11207 = vrot.lane.b32.xlu1 %v12478_v50, %s11642_s10 }
0x2f66   :  { %5362 = vrot.lane.b32.xlu1 %v12561_v42, %s11644_s15 }
0x2f6a   :  { %6193 = vrot.lane.b32.xlu1 %v5780_v45, %s11643_s11 }
0x2f6e   :  { %6201 = vrot.lane.b32.xlu1 %v5981_v53, %s11644_s15 }
0x2fde   :  { %v6086_v28 = vpop.xlane.xlu1 %6085 }
0x2fdf   :  { %v6088_v24 = vsub.f32 %v10391_v20, %v6086_v28  ;;  %v6083_v29 = vpop.xlane.xlu0 %6082 }
0x2fe0   :  { %v6087_v31 = vsub.f32 %v6072_v25, %v6083_v29 }
0x2fe1   :  { %v6091_v32 = vmul.f32 1.442695, %v6088_v24 }
0x2fe2   :  { %v6089_v17 = vmul.f32 1.442695, %v6087_v31  ;;  %v11208_v35 = vpop.permute.xlu1 %11207 }
0x2fe3   :  { %v11210_v37 = vunpack.i.h.bf16 %v11208_v35  ;;  %v11209_v46 = vunpack.i.l.bf16 %v11208_v35 }
0x2fe4   :  { %11437 = vpow2.f32 %v6089_v17 }
0x2fe5   :  { %v10881_v22 = vpack.c.bf16 %v11210_v37, %v11209_v46  ;;  %11439 = vpow2.f32 %v6091_v32 }
0x2fe6   :  { %v5363_v15 = vpop.permute.xlu1 %5362 }
0x2fe7   :  { %10883 = vmatprep.subr.msk.bf16.mxu0 %vm12487_vm12, %v10881_v22 }
0x2fe8   :  { %10886 = vmatpush3.bf16.msk.msra.mxu0 %vm12487_vm12, %v10881_v22  ;;  %v4368_v22 = vld [vmem:[%s13389_s8] sm:$0xff] }
0x2fe9   :  { %10887 = vmatprep.subr.bf16.mxu0 %v11631_v34 }
0x2fee   :  { %v11438_v50 = vpop.eup %11437 }
0x2fef   :  { %v6093_v42 = vsel %vm4637_vm6, %v11438_v50, 0.0  ;;  %v11440_v45 = vpop.eup %11439 }
0x2ff0   :  { %6094 = vadd.xlane.f32.xlu0 %v6093_v42  ;;  %v6096_v19 = vsel %vm4641_vm8, %v11440_v45, 0.0 }
0x2ff4   :  { %6097 = vadd.xlane.f32.xlu0 %v6096_v19  ;;  %v4371_v19 = vld [vmem:[%s13389_s8 + $0x18] sm:$0xff] }
0x300a   :  { %5354 = vrot.lane.b32.xlu0 %v12533_v0, %s11643_s11 }
0x300e   :  { %5370 = vrot.lane.b32.xlu0 %v12595_v40, %s11645_s16  ;;  %v10888_v40 = vpack.c.bf16 %v4362_v55, %v4361_v54  ;;  %v12766_v55 = vld [vmem:[%s13390_s14] ss:$0 sm:$0xff] }
0x3012   :  { %5356 = vrot.lane.b32.xlu0 %v12531_v63, %s11643_s11  ;;  %v4364_v63 = vld [vmem:[%s13387_s23 + $0x18] sm:$0xff] }
0x3016   :  { %5364 = vrot.lane.b32.xlu0 %v12559_v41, %s11644_s15  ;;  %v10891_v41 = vpack.c.bf16 %v4364_v63, %v4363_v58 }
0x307d   :  { %v6095_v48 = vpop.xlane.xlu0 %6094 }
0x307e   :  { %11441 = vrcp.f32 %v6095_v48 }
0x3081   :  { %v6098_v49 = vpop.xlane.xlu0 %6097 }
0x3082   :  { %11443 = vrcp.f32 %v6098_v49 }
0x3085   :  { %v5355_v56 = vpop.permute.xlu0 %5354 }
0x3086   :  { %v5376_v60 = vsel %vm280_vm3, %v12505_v23, %v5355_v56  ;;  %v12724_v23 = vld [vmem:[%s13388_s26] ss:$0 sm:$0xff] }
0x3087   :  { %v5378_v10 = vsel %vm1267_vm10, %v5376_v60, %v5363_v15 }
0x3088   :  { %v11442_v51 = vpop.eup %11441 }
0x3089   :  { %v6101_v52 = vmul.f32 %v11442_v51, %v11438_v50  ;;  %v5371_v61 = vpop.permute.xlu0 %5370  ;;  %v4369_v50 = vld [vmem:[%s13389_s8 + $0x8] sm:$0xff] }
0x308a   :  { %v5380_v36 = vsel %vm1269_vm11, %v5378_v10, %v5371_v61  ;;  %v10894_v42 = vpack.c.bf16 %v4369_v50, %v4368_v22 }
0x308b   :  { %10396 = vmatprep.mubr.msk.f32.mxu0 %vm4637_vm6, %v6101_v52 }
0x308c   :  { %v11444_v0 = vpop.eup %11443  ;;  %10895 = vmatpush3.bf16.msra.mxu1 %v10894_v42 }
0x308d   :  { %v6102_v57 = vmul.f32 %v11444_v0, %v11440_v45  ;;  %v5357_v9 = vpop.permute.xlu0 %5356  ;;  %10896 = vmatprep.subr.bf16.mxu1 %v11631_v34  ;;  %v4370_v45 = vld [vmem:[%s13389_s8 + $0x10] sm:$0xff] }
0x308e   :  { %v5377_v16 = vsel %vm280_vm3, %v12503_v21, %v5357_v9  ;;  %v10897_v48 = vpack.c.bf16 %v4371_v19, %v4370_v45  ;;  %v4379_v9 = vld [vmem:[%s13392_s24 + $0x30] sm:$0xff] }
0x308f   :  { %10397 = vmatmul.mubr.msk.f32.vlgmr.msra.gmra.mrb[78].mxu0 %vm4637_vm6, %v6102_v57 }
0x3090   :  { %10889 = vmatpush3.bf16.msra.mxu0 %v10888_v40  ;;  %10407 = vmatprep.mubr.msk.f32.mxu0 %vm11630_vm2, %v11629_v3  ;;  %v12769_v40 = vld [vmem:[%s13391_s19] ss:$0 sm:$0xff] }
0x3091   :  { %10890 = vmatprep.subr.bf16.mxu0 %v11631_v34  ;;  %v5365_v14 = vpop.permute.xlu0 %5364  ;;  %10898 = vmatpush3.bf16.msra.mxu1 %v10897_v48 }
0x3092   :  { %v5379_v53 = vsel %vm1267_vm10, %v5377_v16, %v5365_v14  ;;  %10923 = vmatprep.subr.bf16.mxu1 %v11631_v34  ;;  %v4384_v16 = vld [vmem:[%s13392_s24 + $0x58] sm:$0xff] }
0x3094   :  { %10892 = vmatpush3.bf16.msra.mxu0 %v10891_v41 }
0x3095   :  { %10899 = vmatprep.subr.bf16.mxu0 %v11631_v34 }
0x3097   :  { %10408 = vmatmul.mubr.msk.f32.vlgmr.msra.gmra.mrb[80].mxu0 %vm513_vm7, %v5380_v36  ;;  %v4373_v36 = vld [vmem:[%s13392_s24] sm:$0xff] }
0x3098   :  { %10410 = vmatprep.mubr.msk.f32.mxu0 %vm11630_vm2, %v11629_v3 }
0x3162   :  { %v10398_v1 = vpop.f32.mrb[78].mxu0 }
0x3163   :  { %v6182_v2 = vpop.f32.mrb[79].mxu0 }
0x3164   :  { %6209 = vrot.lane.b32.xlu1 %v6182_v2, %s11645_s16 }
0x3168   :  { %5372 = vrot.lane.b32.xlu1 %v12593_v47, %s11645_s16  ;;  %v6194_v47 = vpop.permute.xlu1 %6193 }
0x316a   :  { %v6302_v4 = vpop.f32.mrb[80].mxu0 }
0x316b   :  { %v6316_v5 = vadd.f32 %v6302_v4, %v12409_v30  ;;  %v10409_v6 = vpop.f32.mrb[81].mxu0  ;;  %v6215_v30 = vsel %vm280_vm3, %v12623_v39, %v6194_v47  ;;  %v4376_v4 = vld [vmem:[%s13392_s24 + $0x18] sm:$0xff] }
0x316c   :  { %6195 = vrot.lane.b32.xlu1 %v12649_v62, %s11643_s11  ;;  %v6202_v12 = vpop.permute.xlu1 %6201  ;;  %v4377_v6 = vld [vmem:[%s13392_s24 + $0x20] sm:$0xff] }
0x316d   :  { %v12730_v7 = vadd.f32 %v12724_v23, %v6316_v5  ;;  %v6217_v62 = vsel %vm1267_vm10, %v6215_v30, %v6202_v12  ;;  %v4380_v12 = vld [vmem:[%s13392_s24 + $0x38] sm:$0xff] }
0x316e   :  { %v10909_v30 = vpack.c.bf16 %v4380_v12, %v4379_v9 }
0x316f   :  { %v6328_v8 = vsel %vm513_vm7, %v12730_v7, 0.0 }
0x3170   :  { %6329 = vadd.xlane.f32.xlu0 %v6328_v8  ;;  %6203 = vrot.lane.b32.xlu1 %v12678_v18, %s11644_s15  ;;  %v4378_v8 = vld [vmem:[%s13392_s24 + $0x28] sm:$0xff] }
0x3171   :  { %v10906_v47 = vpack.c.bf16 %v4378_v8, %v4377_v6 }
0x3174   :  { %6211 = vrot.lane.b32.xlu1 %v10398_v1, %s11645_s16  ;;  %v4374_v1 = vld [vmem:[%s13392_s24 + $0x8] sm:$0xff] }
0x3175   :  { %v10900_v2 = vpack.c.bf16 %v4374_v1, %v4373_v36 }
0x3177   :  { %10901 = vmatpush3.bf16.msra.mxu0 %v10900_v2 }
0x3178   :  { %10902 = vmatprep.subr.bf16.mxu0 %v11631_v34 }
0x31d6   :  { %v6210_v13 = vpop.permute.xlu1 %6209 }
0x31d7   :  { %v6219_v33 = vsel %vm1269_vm11, %v6217_v62, %v6210_v13  ;;  %v4381_v62 = vld [vmem:[%s13392_s24 + $0x40] sm:$0xff]  ;;  %v4382_v13 = vld [vmem:[%s13392_s24 + $0x48] sm:$0xff] }
0x31d8   :  { %v6223_v18 = vrot.slane %v6219_v33, 7  ;;  %v10912_v14 = vpack.c.bf16 %v4382_v13, %v4381_v62  ;;  %v4383_v33 = vld [vmem:[%s13392_s24 + $0x50] sm:$0xff] }
0x31da   :  { %v5373_v20 = vpop.permute.xlu1 %5372 }
0x31db   :  { %v5381_v25 = vsel %vm1269_vm11, %v5379_v53, %v5373_v20  ;;  %v10915_v53 = vpack.c.bf16 %v4384_v16, %v4383_v33  ;;  %v4386_v20 = vld [vmem:[%s13392_s24 + $0x68] sm:$0xff] }
0x31dc   :  { %v6227_v26 = vsel %vm357_vm4, %v5381_v25, %v6223_v18 }
0x31dd   :  { %10411 = vmatmul.mubr.msk.f32.gmra.mrb[82].mxu0 %vm513_vm7, %v6227_v26  ;;  %v4387_v26 = vld [vmem:[%s13392_s24 + $0x70] sm:$0xff] }
0x31de   :  { %v6196_v39 = vpop.permute.xlu1 %6195  ;;  %10413 = vmatprep.mubr.msk.f32.mxu0 %vm11630_vm2, %v11629_v3 }
0x31df   :  { %v6216_v21 = vsel %vm280_vm3, %v12621_v59, %v6196_v39  ;;  %v4388_v39 = vld [vmem:[%s13392_s24 + $0x78] sm:$0xff] }
0x31e2   :  { %v6204_v27 = vpop.permute.xlu1 %6203 }
0x31e3   :  { %v6218_v28 = vsel %vm1267_vm10, %v6216_v21, %v6204_v27  ;;  %v10921_v27 = vpack.c.bf16 %v4388_v39, %v4387_v26 }
0x31e6   :  { %v6212_v24 = vpop.permute.xlu1 %6211 }
0x31e7   :  { %v6220_v29 = vsel %vm1269_vm11, %v6218_v28, %v6212_v24 }
0x31e8   :  { %v6224_v31 = vrot.slane %v6220_v29, 7 }
0x31ea   :  { %v6225_v32 = vsel %vm357_vm4, %v6223_v18, %v6224_v31  ;;  %v4385_v18 = vld [vmem:[%s13392_s24 + $0x60] sm:$0xff] }
0x31eb   :  { %10414 = vmatmul.mubr.msk.f32.gmra.mrb[84].mxu0 %vm513_vm7, %v6225_v32  ;;  %v10918_v25 = vpack.c.bf16 %v4386_v20, %v4385_v18 }
0x31ec   :  { %10465 = vmatprep.mubr.msk.f32.mxu0 %vm11630_vm2, %v11629_v3 }
0x31fd   :  { %v6330_v17 = vpop.xlane.xlu0 %6329 }
0x31fe   :  { %v6337_v35 = vmul.f32 0.03125, %v6330_v17 }
0x3200   :  { %v6340_v37 = vsub.f32 %v12730_v7, %v6337_v35 }
0x3202   :  { %v6343_v59 = vmul.f32 %v6340_v37, %v6340_v37 }
0x3204   :  { %v6346_v46 = vsel %vm513_vm7, %v6343_v59, 0.0 }
0x3205   :  { %6347 = vadd.xlane.f32.xlu0 %v6346_v46 }
0x3292   :  { %v6348_v49 = vpop.xlane.xlu0 %6347 }
0x3293   :  { %v6355_v51 = vmul.f32 0.03125, %v6348_v49 }
0x3295   :  { %v6358_v52 = vadd.f32 1e-05, %v6355_v51 }
0x3297   :  { %11445 = vrsqrt.f32 %v6358_v52 }
0x32a1   :  { %v11446_v54 = vpop.eup %11445 }
0x32a2   :  { %v6364_v0 = vmul.f32 %v11446_v54, %v6340_v37  ;;  %v12814_v37 = vld [vmem:[%s13393_s30] ss:$0 sm:$0xff] }
0x32a4   :  { %v6373_v56 = vmul.f32 %v12766_v55, %v6364_v0 }
0x32a6   :  { %v6382_v57 = vadd.f32 %v12769_v40, %v6373_v56 }
0x32a8   :  { %10425 = vmatmul.mubr.msk.f32.vlgmr.msra.gmra.mrb[50].mxu1 %vm513_vm7, %v6382_v57 }
0x32a9   :  { %10427 = vmatprep.mubr.msk.f32.mxu1 %vm11630_vm2, %v11629_v3 }
0x32b0   :  { %v6307_v58 = vpop.f32.mrb[82].mxu0 }
0x32b1   :  { %v6317_v63 = vadd.f32 %v6307_v58, %v12416_v43  ;;  %v10412_v41 = vpop.f32.mrb[83].mxu0  ;;  %v4375_v43 = vld [vmem:[%s13392_s24 + $0x10] sm:$0xff] }
0x32b2   :  { %v10903_v5 = vpack.c.bf16 %v4376_v4, %v4375_v43 }
0x32b3   :  { %v12778_v60 = vadd.f32 %v12724_v23, %v6317_v63 }
0x32b4   :  { %10904 = vmatpush3.bf16.msra.mxu0 %v10903_v5 }
0x32b5   :  { %v6331_v61 = vsel %vm513_vm7, %v12778_v60, 0.0  ;;  %10905 = vmatprep.subr.bf16.mxu0 %v11631_v34 }
0x32b6   :  { %6332 = vadd.xlane.f32.xlu1 %v6331_v61 }
0x32b8   :  { %10907 = vmatpush3.bf16.msra.mxu0 %v10906_v47 }
0x32b9   :  { %10908 = vmatprep.subr.bf16.mxu0 %v11631_v34 }
0x32bc   :  { %10910 = vmatpush3.bf16.msra.mxu0 %v10909_v30 }
0x32bd   :  { %10911 = vmatprep.subr.bf16.mxu0 %v11631_v34 }
0x32be   :  { %v6312_v15 = vpop.f32.mrb[84].mxu0 }
0x32bf   :  { %v10415_v10 = vpop.f32.mrb[85].mxu0  ;;  %v6318_v24 = vadd.f32 %v6312_v15, %v12419_v44 }
0x32c0   :  { %10913 = vmatpush3.bf16.msra.mxu0 %v10912_v14 }
0x32c1   :  { %10914 = vmatprep.subr.bf16.mxu0 %v11631_v34  ;;  %v12808_v32 = vadd.f32 %v12724_v23, %v6318_v24 }
0x32c3   :  { %v6334_v35 = vsel %vm4396_vm15, %v12808_v32, 0.0 }
0x32c4   :  { %10916 = vmatpush3.bf16.msra.mxu0 %v10915_v53 }
0x32c5   :  { %10917 = vmatprep.subr.bf16.mxu0 %v11631_v34 }
0x32c8   :  { %10919 = vmatpush3.bf16.msra.mxu0 %v10918_v25  ;;  %v12827_v25 = vld [vmem:[%s13394_s6] ss:$0 sm:$0xff] }
0x32c9   :  { %10920 = vmatprep.subr.bf16.mxu0 %v11631_v34 }
0x32cc   :  { %10922 = vmatpush3.bf16.msra.mxu0 %v10921_v27 }
0x3343   :  { %v6333_v21 = vpop.xlane.xlu1 %6332 }
0x3344   :  { %v6338_v28 = vmul.f32 0.03125, %v6333_v21 }
0x3346   :  { %v6341_v29 = vsub.f32 %v12778_v60, %v6338_v28 }
0x3348   :  { %v6344_v31 = vmul.f32 %v6341_v29, %v6341_v29 }
0x334a   :  { %v6349_v17 = vsel %vm513_vm7, %v6344_v31, 0.0 }
0x334b   :  { %6350 = vadd.xlane.f32.xlu0 %v6349_v17 }
0x334f   :  { %6335 = vadd.xlane.f32.xlu0 %v6334_v35 }
0x337b   :  { %v6466_v59 = vpop.f32.mrb[50].mxu1 }
0x337c   :  { %v6467_v46 = vadd.f32 %v12814_v37, %v6466_v59  ;;  %v10426_v22 = vpop.f32.mrb[51].mxu1 }
0x337e   :  { %v6483_v44 = vmul.f32 0.70710677, %v6467_v46  ;;  %v6480_v2 = vmul.f32 0.5, %v6467_v46 }
0x3380   :  { %v6486_v50 = vand.u32 2147483647, %v6483_v44  ;;  %vm6546_vm13 = vcmp.ge.f32.partialorder %v6483_v44, 0.0 }
0x3382   :  { %v6489_v42 = vmul.f32 0.3275911, %v6486_v50  ;;  %v6528_v23 = vsub.f32 0.0, %v6486_v50 }
0x3384   :  { %v6492_v45 = vadd.f32 1.0, %v6489_v42  ;;  %v6531_v48 = vmul.f32 %v6528_v23, %v6486_v50 }
0x3386   :  { %11447 = vrcp.f32 %v6492_v45  ;;  %v6534_v52 = vmul.f32 1.442695, %v6531_v48 }
0x3388   :  { %11449 = vpow2.f32 %v6534_v52 }
0x3390   :  { %v11448_v19 = vpop.eup %11447 }
0x3391   :  { %v6501_v49 = vmul.f32 1.0614054, %v11448_v19 }
0x3392   :  { %v11450_v61 = vpop.eup %11449 }
0x3393   :  { %v6504_v51 = vadd.f32 -1.4531521, %v6501_v49 }
0x3395   :  { %v6507_v54 = vmul.f32 %v11448_v19, %v6504_v51 }
0x3397   :  { %v6510_v0 = vadd.f32 1.4214138, %v6507_v54 }
0x3399   :  { %v6513_v56 = vmul.f32 %v11448_v19, %v6510_v0 }
0x339b   :  { %v6516_v57 = vadd.f32 -0.28449672, %v6513_v56 }
0x339d   :  { %v6519_v58 = vmul.f32 %v11448_v19, %v6516_v57 }
0x339f   :  { %v6522_v63 = vadd.f32 0.2548296, %v6519_v58 }
0x33a1   :  { %v6525_v41 = vmul.f32 %v11448_v19, %v6522_v63 }
0x33a3   :  { %v6540_v15 = vmul.f32 %v11450_v61, %v6525_v41 }
0x33a5   :  { %v6543_v10 = vsub.f32 1.0, %v6540_v15 }
0x33a7   :  { %v6549_v36 = vsub.f32 0.0, %v6543_v10 }
0x33a9   :  { %v6552_v1 = vsel %vm6546_vm13, %v6543_v10, %v6549_v36 }
0x33aa   :  { %v6555_v43 = vadd.f32 1.0, %v6552_v1 }
0x33ac   :  { %v6558_v4 = vmul.f32 %v6555_v43, %v6480_v2 }
0x33ae   :  { %10466 = vmatmul.mubr.f32.vlgmr.msra.gmra.mrb[86].mxu0 %v6558_v4 }
0x33af   :  { %10468 = vmatprep.mubr.msk.f32.mxu0 %vm11630_vm2, %v11629_v3 }
0x33d8   :  { %v6351_v5 = vpop.xlane.xlu0 %6350 }
0x33d9   :  { %v6356_v6 = vmul.f32 0.03125, %v6351_v5 }
0x33db   :  { %v6359_v8 = vadd.f32 1e-05, %v6356_v6  ;;  %v9466_v6 = vld [vmem:[%s13379_s20 + $0x20] sm:$0xff] }
0x33dc   :  { %v6336_v47 = vpop.xlane.xlu0 %6335 }
0x33dd   :  { %11451 = vrsqrt.f32 %v6359_v8  ;;  %v6339_v9 = vmul.f32 0.03125, %v6336_v47  ;;  %v9467_v8 = vld [vmem:[%s13379_s20 + $0x28] sm:$0xff] }
0x33de   :  { %v10924_v47 = vpack.c.bf16 %v9467_v8, %v9466_v6 }
0x33df   :  { %v6342_v12 = vsub.f32 %v12808_v32, %v6339_v9  ;;  %v9468_v9 = vld [vmem:[%s13379_s20 + $0x30] sm:$0xff] }
0x33e0   :  { %10925 = vmatpush3.bf16.msra.mxu1 %v10924_v47 }
0x33e1   :  { %v6345_v30 = vmul.f32 %v6342_v12, %v6342_v12  ;;  %10926 = vmatprep.subr.bf16.mxu1 %v11631_v34 }
0x33e3   :  { %v6352_v62 = vsel %vm4396_vm15, %v6345_v30, 0.0 }
0x33e4   :  { %6353 = vadd.xlane.f32.xlu0 %v6352_v62 }
0x33e7   :  { %v11452_v13 = vpop.eup %11451 }
0x33e8   :  { %v6365_v14 = vmul.f32 %v11452_v13, %v6341_v29 }
0x33ea   :  { %v6374_v33 = vmul.f32 %v12766_v55, %v6365_v14 }
0x33ec   :  { %v6383_v16 = vadd.f32 %v12769_v40, %v6374_v33 }
0x33ee   :  { %10428 = vmatmul.mubr.msk.f32.gmra.mrb[52].mxu1 %vm513_vm7, %v6383_v16 }
0x33ef   :  { %10430 = vmatprep.mubr.msk.f32.mxu1 %vm11630_vm2, %v11629_v3 }
0x3471   :  { %v6354_v53 = vpop.xlane.xlu0 %6353 }
0x3472   :  { %v6357_v18 = vmul.f32 0.03125, %v6354_v53 }
0x3474   :  { %v6360_v20 = vadd.f32 1e-05, %v6357_v18 }
0x3476   :  { %11453 = vrsqrt.f32 %v6360_v20 }
0x3480   :  { %v11454_v26 = vpop.eup %11453 }
0x3481   :  { %v6633_v39 = vpop.f32.mrb[86].mxu0  ;;  %v6366_v27 = vmul.f32 %v11454_v26, %v6342_v12  ;;  %v9469_v12 = vld [vmem:[%s13379_s20 + $0x38] sm:$0xff] }
0x3482   :  { %v6634_v21 = vadd.f32 %v12827_v25, %v6633_v39  ;;  %v10467_v28 = vpop.f32.mrb[87].mxu0  ;;  %v10927_v30 = vpack.c.bf16 %v9469_v12, %v9468_v9 }
0x3483   :  { %v6375_v24 = vmul.f32 %v12766_v55, %v6366_v27 }
0x3484   :  { %v12832_v29 = vadd.f32 %v6634_v21, %v12730_v7  ;;  %10928 = vmatpush3.bf16.msra.mxu1 %v10927_v30 }
0x3485   :  { %v6384_v31 = vadd.f32 %v12769_v40, %v6375_v24 }
0x3486   :  { %v6698_v17 = vsel %vm513_vm7, %v12832_v29, 0.0 }
0x3487   :  { %6699 = vadd.xlane.f32.xlu0 %v6698_v17  ;;  %10431 = vmatmul.mubr.msk.f32.gmra.mrb[54].mxu1 %vm513_vm7, %v6384_v31 }
0x3488   :  { %10482 = vmatprep.mubr.msk.f32.mxu1 %vm11630_vm2, %v11629_v3 }
0x34c1   :  { %v6471_v35 = vpop.f32.mrb[52].mxu1 }
0x34c2   :  { %v6472_v59 = vadd.f32 %v12814_v37, %v6471_v35  ;;  %v10429_v46 = vpop.f32.mrb[53].mxu1 }
0x34c4   :  { %v6484_v22 = vmul.f32 0.70710677, %v6472_v59  ;;  %v6481_v15 = vmul.f32 0.5, %v6472_v59 }
0x34c6   :  { %v6487_v55 = vand.u32 2147483647, %v6484_v22  ;;  %vm6547_vm14 = vcmp.ge.f32.partialorder %v6484_v22, 0.0 }
0x34c8   :  { %v6490_v44 = vmul.f32 0.3275911, %v6487_v55  ;;  %v6529_v50 = vsub.f32 0.0, %v6487_v55 }
0x34ca   :  { %v6493_v7 = vadd.f32 1.0, %v6490_v44  ;;  %v6532_v42 = vmul.f32 %v6529_v50, %v6487_v55 }
0x34cc   :  { %11455 = vrcp.f32 %v6493_v7  ;;  %v6536_v19 = vmul.f32 1.442695, %v6532_v42 }
0x34ce   :  { %11457 = vpow2.f32 %v6536_v19 }
0x34d6   :  { %v11456_v40 = vpop.eup %11455 }
0x34d7   :  { %v6502_v45 = vmul.f32 1.0614054, %v11456_v40 }
0x34d8   :  { %v11458_v57 = vpop.eup %11457 }
0x34d9   :  { %v6505_v23 = vadd.f32 -1.4531521, %v6502_v45 }
0x34db   :  { %v6508_v48 = vmul.f32 %v11456_v40, %v6505_v23 }
0x34dd   :  { %v6511_v49 = vadd.f32 1.4214138, %v6508_v48 }
0x34df   :  { %v6514_v51 = vmul.f32 %v11456_v40, %v6511_v49 }
0x34e1   :  { %v6517_v52 = vadd.f32 -0.28449672, %v6514_v51  ;;  %v9500_v51 = vld [vmem:[%s13380_s27 + $0x1] ss:$0 sm:$0xff] }
0x34e3   :  { %v6520_v54 = vmul.f32 %v11456_v40, %v6517_v52 }
0x34e5   :  { %v6523_v0 = vadd.f32 0.2548296, %v6520_v54  ;;  %v9501_v54 = vld [vmem:[%s13381_s18 + $0x1] ss:$0 sm:$0xff] }
0x34e7   :  { %v6526_v56 = vmul.f32 %v11456_v40, %v6523_v0 }
0x34e9   :  { %v6541_v58 = vmul.f32 %v11458_v57, %v6526_v56 }
0x34eb   :  { %v6544_v63 = vsub.f32 1.0, %v6541_v58 }
0x34ed   :  { %v6550_v41 = vsub.f32 0.0, %v6544_v63 }
0x34ef   :  { %v6553_v61 = vsel %vm6547_vm14, %v6544_v63, %v6550_v41 }
0x34f0   :  { %v6556_v10 = vadd.f32 1.0, %v6553_v61 }
0x34f2   :  { %v6559_v36 = vmul.f32 %v6556_v10, %v6481_v15 }
0x34f4   :  { %10469 = vmatmul.mubr.f32.gmra.mrb[88].mxu0 %v6559_v36 }
0x34f5   :  { %10471 = vmatprep.mubr.msk.f32.mxu0 %vm11630_vm2, %v11629_v3 }
0x3514   :  { %v6700_v1 = vpop.xlane.xlu0 %6699 }
0x3515   :  { %v6707_v2 = vmul.f32 0.03125, %v6700_v1 }
0x3517   :  { %v6710_v43 = vsub.f32 %v12832_v29, %v6707_v2 }
0x3519   :  { %v6713_v4 = vmul.f32 %v6710_v43, %v6710_v43 }
0x351b   :  { %v6716_v5 = vsel %vm513_vm7, %v6713_v4, 0.0 }
0x351c   :  { %6717 = vadd.xlane.f32.xlu0 %v6716_v5 }
0x355a   :  { %v6476_v62 = vpop.f32.mrb[54].mxu1 }
0x355b   :  { %v6477_v13 = vadd.f32 %v12814_v37, %v6476_v62  ;;  %v10432_v14 = vpop.f32.mrb[55].mxu1 }
0x355d   :  { %v6485_v33 = vmul.f32 0.70710677, %v6477_v13  ;;  %v6482_v40 = vmul.f32 0.5, %v6477_v13 }
0x355f   :  { %v6488_v16 = vand.u32 2147483647, %v6485_v33  ;;  %vm6548_vm9 = vcmp.ge.f32.partialorder %v6485_v33, 0.0 }
0x3561   :  { %v6491_v53 = vmul.f32 0.3275911, %v6488_v16  ;;  %v6530_v20 = vsub.f32 0.0, %v6488_v16 }
0x3563   :  { %v6494_v18 = vadd.f32 1.0, %v6491_v53  ;;  %v6533_v39 = vmul.f32 %v6530_v20, %v6488_v16 }
0x3565   :  { %11459 = vrcp.f32 %v6494_v18  ;;  %v6538_v28 = vmul.f32 1.442695, %v6533_v39 }
0x3567   :  { %11461 = vpow2.f32 %v6538_v28 }
0x356f   :  { %v11460_v26 = vpop.eup %11459 }
0x3570   :  { %v6503_v27 = vmul.f32 1.0614054, %v11460_v26 }
0x3571   :  { %v11462_v22 = vpop.eup %11461 }
0x3572   :  { %v6506_v21 = vadd.f32 -1.4531521, %v6503_v27  ;;  %v9502_v27 = vld [vmem:[%s13382_s22 + $0x1] ss:$0 sm:$0xff] }
0x3574   :  { %v6509_v24 = vmul.f32 %v11460_v26, %v6506_v21 }
0x3576   :  { %v6512_v31 = vadd.f32 1.4214138, %v6509_v24 }
0x3578   :  { %v6515_v17 = vmul.f32 %v11460_v26, %v6512_v31 }
0x357a   :  { %v6518_v35 = vadd.f32 -0.28449672, %v6515_v17 }
0x357c   :  { %v6521_v59 = vmul.f32 %v11460_v26, %v6518_v35 }
0x357e   :  { %v6524_v46 = vadd.f32 0.2548296, %v6521_v59 }
0x3580   :  { %v6527_v37 = vmul.f32 %v11460_v26, %v6524_v46 }
0x3582   :  { %v6542_v55 = vmul.f32 %v11462_v22, %v6527_v37 }
0x3584   :  { %v6545_v44 = vsub.f32 1.0, %v6542_v55 }
0x3586   :  { %v6551_v7 = vsub.f32 0.0, %v6545_v44 }
0x3588   :  { %v6554_v50 = vsel %vm6548_vm9, %v6545_v44, %v6551_v7 }
0x3589   :  { %v6557_v42 = vadd.f32 1.0, %v6554_v50 }
0x358b   :  { %v6560_v45 = vmul.f32 %v6557_v42, %v6482_v40 }
0x358d   :  { %10472 = vmatmul.mubr.f32.gmra.mrb[90].mxu0 %v6560_v45 }
0x35a9   :  { %v6718_v23 = vpop.xlane.xlu0 %6717 }
0x35aa   :  { %v6725_v19 = vmul.f32 0.03125, %v6718_v23 }
0x35ac   :  { %v6728_v48 = vadd.f32 1e-05, %v6725_v19 }
0x35ae   :  { %11463 = vrsqrt.f32 %v6728_v48 }
0x35b8   :  { %v11464_v49 = vpop.eup %11463 }
0x35b9   :  { %v6734_v52 = vmul.f32 %v11464_v49, %v6710_v43 }
0x35bb   :  { %v6743_v0 = vmul.f32 %v9500_v51, %v6734_v52 }
0x35bd   :  { %v6752_v56 = vadd.f32 %v9501_v54, %v6743_v0 }
0x35bf   :  { %10483 = vmatmul.mubr.msk.f32.vlgmr.msra.gmra.mrb[56].mxu1 %vm513_vm7, %v6752_v56 }
0x35c0   :  { %10485 = vmatprep.mubr.msk.f32.mxu1 %vm11630_vm2, %v11629_v3 }
0x35c7   :  { %v6638_v57 = vpop.f32.mrb[88].mxu0 }
0x35c8   :  { %v6639_v58 = vadd.f32 %v12827_v25, %v6638_v57  ;;  %v10470_v63 = vpop.f32.mrb[89].mxu0 }
0x35ca   :  { %v12858_v41 = vadd.f32 %v6639_v58, %v12778_v60 }
0x35cc   :  { %v6701_v61 = vsel %vm513_vm7, %v12858_v41, 0.0 }
0x35cd   :  { %6702 = vadd.xlane.f32.xlu1 %v6701_v61 }
0x365a   :  { %v6703_v15 = vpop.xlane.xlu1 %6702 }
0x365b   :  { %v6708_v10 = vmul.f32 0.03125, %v6703_v15 }
0x365d   :  { %v6711_v36 = vsub.f32 %v12858_v41, %v6708_v10 }
0x365f   :  { %v6714_v1 = vmul.f32 %v6711_v36, %v6711_v36 }
0x3660   :  { %v6643_v2 = vpop.f32.mrb[90].mxu0 }
0x3661   :  { %v6644_v43 = vadd.f32 %v12827_v25, %v6643_v2  ;;  %v10473_v4 = vpop.f32.mrb[91].mxu0  ;;  %v6719_v5 = vsel %vm513_vm7, %v6714_v1, 0.0 }
0x3662   :  { %6720 = vadd.xlane.f32.xlu1 %v6719_v5 }
0x3663   :  { %v12866_v6 = vadd.f32 %v6644_v43, %v12808_v32 }
0x3665   :  { %v6704_v60 = vsel %vm4396_vm15, %v12866_v6, 0.0 }
0x3666   :  { %6705 = vadd.xlane.f32.xlu0 %v6704_v60 }
0x3692   :  { %v6836_v8 = vpop.f32.mrb[56].mxu1 }
0x3693   :  { %v10484_v47 = vpop.f32.mrb[57].mxu1  ;;  %v6837_v24 = vadd.f32 %v9502_v27, %v6836_v8 }
0x3695   :  { %v12876_v35 = vmul.f32 0.35355338, %v6837_v24 }
0x36ef   :  { %v6721_v9 = vpop.xlane.xlu1 %6720 }
0x36f0   :  { %v6726_v12 = vmul.f32 0.03125, %v6721_v9 }
0x36f2   :  { %v6729_v30 = vadd.f32 1e-05, %v6726_v12 }
0x36f3   :  { %v6706_v62 = vpop.xlane.xlu0 %6705 }
0x36f4   :  { %11465 = vrsqrt.f32 %v6729_v30  ;;  %v6709_v25 = vmul.f32 0.03125, %v6706_v62 }
0x36f6   :  { %v6712_v13 = vsub.f32 %v12866_v6, %v6709_v25 }
0x36f8   :  { %v6715_v14 = vmul.f32 %v6712_v13, %v6712_v13 }
0x36fa   :  { %v6722_v33 = vsel %vm4396_vm15, %v6715_v14, 0.0 }
0x36fb   :  { %6723 = vadd.xlane.f32.xlu1 %v6722_v33 }
0x36fe   :  { %v11466_v32 = vpop.eup %11465 }
0x36ff   :  { %v6735_v16 = vmul.f32 %v11466_v32, %v6711_v36 }
0x3701   :  { %v6744_v53 = vmul.f32 %v9500_v51, %v6735_v16 }
0x3703   :  { %v6753_v18 = vadd.f32 %v9501_v54, %v6744_v53 }
0x3705   :  { %10486 = vmatmul.mubr.msk.f32.gmra.mrb[58].mxu1 %vm513_vm7, %v6753_v18 }
0x3706   :  { %10488 = vmatprep.mubr.msk.f32.mxu1 %vm11630_vm2, %v11629_v3 }
0x3788   :  { %v6724_v20 = vpop.xlane.xlu1 %6723 }
0x3789   :  { %v6727_v26 = vmul.f32 0.03125, %v6724_v20 }
0x378b   :  { %v6730_v39 = vadd.f32 1e-05, %v6727_v26 }
0x378d   :  { %11467 = vrsqrt.f32 %v6730_v39 }
0x3797   :  { %v11468_v21 = vpop.eup %11467 }
0x3798   :  { %v6736_v28 = vmul.f32 %v11468_v21, %v6712_v13 }
0x379a   :  { %v6745_v31 = vmul.f32 %v9500_v51, %v6736_v28 }
0x379c   :  { %v6754_v17 = vadd.f32 %v9501_v54, %v6745_v31 }
0x379e   :  { %10489 = vmatmul.mubr.msk.f32.gmra.mrb[60].mxu1 %vm513_vm7, %v6754_v17 }
0x379f   :  { %10495 = vmatprep.mubr.msk.f32.mxu1 %vm280_vm3, %v12876_v35 }
0x37d8   :  { %v6841_v59 = vpop.f32.mrb[58].mxu1 }
0x37d9   :  { %v6842_v46 = vadd.f32 %v9502_v27, %v6841_v59  ;;  %v10487_v37 = vpop.f32.mrb[59].mxu1 }
0x37db   :  { %v12881_v22 = vpack.i.bf16 %v6842_v46, %v6837_v24  ;;  %v12891_v55 = vmul.f32 0.35355338, %v6842_v46  ;;  %v7692_v15 = vrot.slane %v6842_v46, 1 }
0x37dd   :  { %11212 = vrot.lane.b32.xlu0 %v12881_v22, %s11632_s0 }
0x37e1   :  { %11222 = vrot.lane.b32.xlu0 %v12881_v22, %s11634_s21 }
0x37e5   :  { %11227 = vrot.lane.b32.xlu0 %v12881_v22, %s11635_s25 }
0x37e9   :  { %7054 = vrot.lane.b32.xlu0 %v12876_v35, %s11633_s9 }
0x37ed   :  { %7056 = vrot.lane.b32.xlu0 %v12891_v55, %s11633_s9 }
0x37f1   :  { %11232 = vrot.lane.b32.xlu0 %v12881_v22, %s11637_s3 }
0x37f5   :  { %7456 = vrot.lane.b32.xlu0 %v12876_v35, %s11638_s28 }
0x384f   :  { %v11213_v44 = vpop.permute.xlu0 %11212 }
0x3850   :  { %v11215_v7 = vunpack.i.h.bf16 %v11213_v44  ;;  %v11214_v50 = vunpack.i.l.bf16 %v11213_v44 }
0x3852   :  { %v10929_v40 = vpack.c.bf16 %v11215_v7, %v11214_v50 }
0x3853   :  { %v11223_v42 = vpop.permute.xlu0 %11222 }
0x3854   :  { %10931 = vmatprep.subr.msk.bf16.mxu1 %vm12464_vm0, %v10929_v40  ;;  %v11225_v30 = vunpack.i.h.bf16 %v11223_v42  ;;  %v11224_v25 = vunpack.i.l.bf16 %v11223_v42 }
0x3855   :  { %10934 = vmatpush3.bf16.xpose.msk.msra.mxu1 %vm12464_vm0, %v10929_v40 }
0x3856   :  { %v10941_v32 = vpack.c.bf16 %v11225_v30, %v11224_v25 }
0x3857   :  { %v11228_v45 = vpop.permute.xlu0 %11227 }
0x3858   :  { %v11230_v23 = vunpack.i.h.bf16 %v11228_v45  ;;  %v11229_v19 = vunpack.i.l.bf16 %v11228_v45 }
0x385a   :  { %v10953_v48 = vpack.c.bf16 %v11230_v23, %v11229_v19 }
0x385b   :  { %v12903_v49 = vpop.permute.xlu0 %7054 }
0x385c   :  { %10496 = vmatmul.mubr.msk.f32.vlgmr.msra.gmra.mrb[62].mxu1 %vm280_vm3, %v12891_v55  ;;  %10955 = vmatprep.subr.msk.bf16.mxu0 %vm12464_vm0, %v10953_v48 }
0x385d   :  { %10958 = vmatpush3.bf16.xpose.msk.msra.mxu0 %vm12464_vm0, %v10953_v48 }
0x385f   :  { %v12911_v51 = vpop.permute.xlu0 %7056 }
0x3863   :  { %v11233_v52 = vpop.permute.xlu0 %11232 }
0x3864   :  { %v11235_v54 = vunpack.i.h.bf16 %v11233_v52  ;;  %v11234_v0 = vunpack.i.l.bf16 %v11233_v52 }
0x3866   :  { %v10965_v56 = vpack.c.bf16 %v11235_v54, %v11234_v0 }
0x3867   :  { %v7457_v28 = vpop.permute.xlu0 %7456 }
0x3868   :  { %10967 = vmatprep.subr.msk.bf16.mxu0 %vm12464_vm0, %v10965_v56 }
0x3871   :  { %v6846_v57 = vpop.f32.mrb[60].mxu1 }
0x3872   :  { %v12915_v58 = vadd.f32 %v9502_v27, %v6846_v57  ;;  %v10490_v63 = vpop.f32.mrb[61].mxu1 }
0x3874   :  { %v7693_v61 = vrot.slane %v12915_v58, 1 }
0x3876   :  { %v7694_v10 = vsel %vm5383_vm5, %v7692_v15, %v7693_v61 }
0x3877   :  { %v12919_v36 = vpack.i.bf16 %v7693_v61, %v7694_v10 }
0x392f   :  { %v10497_v1 = vpop.f32.mrb[62].mxu1 }
0x3930   :  { %v6935_v2 = vpop.f32.mrb[63].mxu1  ;;  %v6947_v4 = vsel %vm4641_vm8, %v10497_v1, -inf }
0x3931   :  { %v6944_v43 = vsel %vm4637_vm6, %v6935_v2, -inf }
0x3932   :  { %6945 = vmax.xlane.f32.xlu1 %v6944_v43 }
0x3936   :  { %6948 = vmax.xlane.f32.xlu1 %v6947_v4 }
0x3947   :  { %11217 = vrot.lane.b32.xlu1 %v12881_v22, %s11639_s1 }
0x39bf   :  { %v6946_v5 = vpop.xlane.xlu1 %6945 }
0x39c0   :  { %v6950_v60 = vsub.f32 %v6935_v2, %v6946_v5 }
0x39c2   :  { %v6952_v9 = vmul.f32 1.442695, %v6950_v60 }
0x39c3   :  { %v6949_v8 = vpop.xlane.xlu1 %6948 }
0x39c4   :  { %v6951_v47 = vsub.f32 %v10497_v1, %v6949_v8 }
0x39c6   :  { %v6954_v12 = vmul.f32 1.442695, %v6951_v47 }
0x39c7   :  { %v11218_v62 = vpop.permute.xlu1 %11217 }
0x39c8   :  { %11469 = vpow2.f32 %v6954_v12  ;;  %v11220_v13 = vunpack.i.h.bf16 %v11218_v62  ;;  %v11219_v14 = vunpack.i.l.bf16 %v11218_v62 }
0x39c9   :  { %11471 = vpow2.f32 %v6952_v9 }
0x39ca   :  { %v10935_v33 = vpack.c.bf16 %v11220_v13, %v11219_v14 }
0x39cc   :  { %10937 = vmatprep.subr.msk.bf16.mxu1 %vm12487_vm12, %v10935_v33 }
0x39cd   :  { %10940 = vmatpush3.bf16.msk.msra.mxu1 %vm12487_vm12, %v10935_v33 }
0x39ce   :  { %10943 = vmatprep.subr.msk.bf16.mxu1 %vm12464_vm0, %v10941_v32 }
0x39d2   :  { %v11470_v16 = vpop.eup %11469 }
0x39d3   :  { %v6959_v53 = vsel %vm4641_vm8, %v11470_v16, 0.0  ;;  %v11472_v18 = vpop.eup %11471 }
0x39d4   :  { %6960 = vadd.xlane.f32.xlu1 %v6959_v53  ;;  %v6956_v20 = vsel %vm4637_vm6, %v11472_v18, 0.0 }
0x39d8   :  { %6957 = vadd.xlane.f32.xlu1 %v6956_v20 }
0x39e9   :  { %7255 = vrot.lane.b32.xlu1 %v12876_v35, %s11636_s29 }
0x39ed   :  { %7257 = vrot.lane.b32.xlu1 %v12891_v55, %s11636_s29 }
0x39f1   :  { %7458 = vrot.lane.b32.xlu1 %v12891_v55, %s11638_s28 }
0x3a61   :  { %v6961_v26 = vpop.xlane.xlu1 %6960 }
0x3a62   :  { %11473 = vrcp.f32 %v6961_v26 }
0x3a65   :  { %v6958_v39 = vpop.xlane.xlu1 %6957 }
0x3a66   :  { %11475 = vrcp.f32 %v6958_v39 }
0x3a69   :  { %v7256_v27 = vpop.permute.xlu1 %7255 }
0x3a6a   :  { %10523 = vmatprep.mubr.msk.f32.mxu0 %vm280_vm3, %v7256_v27 }
0x3a6c   :  { %v11474_v24 = vpop.eup %11473 }
0x3a6d   :  { %v7258_v21 = vpop.permute.xlu1 %7257  ;;  %v6965_v35 = vmul.f32 %v11474_v24, %v11470_v16 }
0x3a6e   :  { %10524 = vmatmul.mubr.msk.f32.vlgmr.msra.gmra.mrb[92].mxu0 %vm280_vm3, %v7258_v21 }
0x3a6f   :  { %10970 = vmatpush3.bf16.xpose.msk.msra.mxu0 %vm12464_vm0, %v10965_v56  ;;  %10537 = vmatprep.mubr.msk.f32.mxu0 %vm280_vm3, %v7457_v28 }
0x3a70   :  { %v11476_v31 = vpop.eup %11475 }
0x3a71   :  { %v6964_v17 = vmul.f32 %v11476_v31, %v11472_v18  ;;  %v7459_v59 = vpop.permute.xlu1 %7458 }
0x3a73   :  { %10502 = vmatprep.mubr.msk.f32.mxu1 %vm4637_vm6, %v6964_v17 }
0x3a74   :  { %10503 = vmatmul.mubr.msk.f32.vlgmr.msra.gmra.mrb[64].mxu1 %vm4637_vm6, %v6965_v35 }
0x3a75   :  { %10946 = vmatpush3.bf16.xpose.msk.msra.mxu1 %vm12464_vm0, %v10941_v32  ;;  %10509 = vmatprep.mubr.msk.f32.mxu1 %vm280_vm3, %v12903_v49 }
0x3a76   :  { %10538 = vmatmul.mubr.msk.f32.vlgmr.msra.gmra.mrb[94].mxu0 %vm280_vm3, %v7459_v59 }
0x3a7c   :  { %10510 = vmatmul.mubr.msk.f32.vlgmr.msra.gmra.mrb[66].mxu1 %vm280_vm3, %v12911_v51 }
0x3b41   :  { %v10525_v46 = vpop.f32.mrb[92].mxu0 }
0x3b42   :  { %v7337_v37 = vpop.f32.mrb[93].mxu0  ;;  %v7349_v51 = vsel %vm4641_vm8, %v10525_v46, -inf }
0x3b43   :  { %v7346_v49 = vsel %vm4637_vm6, %v7337_v37, -inf }
0x3b47   :  { %v12953_v44 = vpop.f32.mrb[64].mxu1 }
0x3b48   :  { %v12955_v7 = vpop.f32.mrb[65].mxu1 }
0x3b49   :  { %v10539_v50 = vpop.f32.mrb[94].mxu0 }
0x3b4a   :  { %v7538_v40 = vpop.f32.mrb[95].mxu0  ;;  %v7550_v52 = vsel %vm4641_vm8, %v10539_v50, -inf }
0x3b4b   :  { %v7547_v48 = vsel %vm4637_vm6, %v7538_v40, -inf }
0x3b4f   :  { %v10511_v42 = vpop.f32.mrb[66].mxu1 }
0x3b50   :  { %v7136_v45 = vpop.f32.mrb[67].mxu1  ;;  %v7148_v23 = vsel %vm4641_vm8, %v10511_v42, -inf }
0x3b51   :  { %7149 = vmax.xlane.f32.xlu1 %v7148_v23  ;;  %v7145_v19 = vsel %vm4637_vm6, %v7136_v45, -inf }
0x3b52   :  { %7146 = vmax.xlane.f32.xlu0 %v7145_v19 }
0x3b55   :  { %7548 = vmax.xlane.f32.xlu1 %v7547_v48 }
0x3b56   :  { %7347 = vmax.xlane.f32.xlu0 %v7346_v49 }
0x3b5a   :  { %7350 = vmax.xlane.f32.xlu0 %v7349_v51 }
0x3b5e   :  { %7551 = vmax.xlane.f32.xlu0 %v7550_v52 }
0x3bde   :  { %v7150_v54 = vpop.xlane.xlu1 %7149 }
0x3bdf   :  { %v7147_v0 = vpop.xlane.xlu0 %7146  ;;  %v7152_v43 = vsub.f32 %v10511_v42, %v7150_v54 }
0x3be0   :  { %v7151_v53 = vsub.f32 %v7136_v45, %v7147_v0 }
0x3be1   :  { %v7155_v8 = vmul.f32 1.442695, %v7152_v43 }
0x3be2   :  { %v7549_v56 = vpop.xlane.xlu1 %7548  ;;  %v7153_v18 = vmul.f32 1.442695, %v7151_v53 }
0x3be3   :  { %v7553_v57 = vsub.f32 %v7538_v40, %v7549_v56  ;;  %v7348_v63 = vpop.xlane.xlu0 %7347 }
0x3be4   :  { %v7352_v61 = vsub.f32 %v7337_v37, %v7348_v63  ;;  %v6852_v63 = vmul.f32 0.35355338, %v12915_v58 }
0x3be5   :  { %v7555_v15 = vmul.f32 1.442695, %v7553_v57 }
0x3be6   :  { %v7354_v10 = vmul.f32 1.442695, %v7352_v61 }
0x3be7   :  { %v7351_v1 = vpop.xlane.xlu0 %7350 }
0x3be8   :  { %11477 = vpow2.f32 %v7354_v10  ;;  %v7353_v2 = vsub.f32 %v10525_v46, %v7351_v1 }
0x3be9   :  { %11479 = vpow2.f32 %v7555_v15 }
0x3bea   :  { %v7356_v4 = vmul.f32 1.442695, %v7353_v2 }
0x3beb   :  { %v7552_v5 = vpop.xlane.xlu0 %7551 }
0x3bec   :  { %11481 = vpow2.f32 %v7356_v4  ;;  %v7554_v60 = vsub.f32 %v10539_v50, %v7552_v5  ;;  %v13002_v4 = vrot.slane %v6852_v63, 1 }
0x3bee   :  { %v7557_v47 = vmul.f32 1.442695, %v7554_v60  ;;  %v7688_v60 = vrot.slane %v12891_v55, 1 }
0x3bf0   :  { %11483 = vpow2.f32 %v7557_v47 }
0x3bf1   :  { %11485 = vpow2.f32 %v7155_v8  ;;  %v13015_v8 = vsel %vm5383_vm5, %v7688_v60, %v13002_v4 }
0x3bf2   :  { %v11478_v9 = vpop.eup %11477  ;;  %11487 = vpow2.f32 %v7153_v18 }
0x3bf3   :  { %v7358_v12 = vsel %vm4637_vm6, %v11478_v9, 0.0  ;;  %v12964_v30 = vpop.eup %11479 }
0x3bf4   :  { %7359 = vadd.xlane.f32.xlu1 %v7358_v12  ;;  %v7559_v25 = vsel %vm4637_vm6, %v12964_v30, 0.0 }
0x3bf6   :  { %v12966_v62 = vpop.eup %11481 }
0x3bf7   :  { %v7361_v13 = vsel %vm4641_vm8, %v12966_v62, 0.0 }
0x3bf8   :  { %7560 = vadd.xlane.f32.xlu1 %v7559_v25  ;;  %7362 = vadd.xlane.f32.xlu0 %v7361_v13 }
0x3bfa   :  { %v12972_v14 = vpop.eup %11483 }
0x3bfb   :  { %v7562_v33 = vsel %vm4641_vm8, %v12972_v14, 0.0  ;;  %v11486_v32 = vpop.eup %11485 }
0x3bfc   :  { %7563 = vadd.xlane.f32.xlu0 %v7562_v33  ;;  %v7160_v16 = vsel %vm4641_vm8, %v11486_v32, 0.0  ;;  %v11488_v20 = vpop.eup %11487 }
0x3bfd   :  { %v7157_v26 = vsel %vm4637_vm6, %v11488_v20, 0.0 }
0x3c00   :  { %7161 = vadd.xlane.f32.xlu0 %v7160_v16 }
0x3c09   :  { %11237 = vrot.lane.b32.xlu1 %v12881_v22, %s11641_s7 }
0x3c16   :  { %11242 = vrot.lane.b32.xlu0 %v12881_v22, %s11640_s2 }
0x3c2d   :  { %7158 = vadd.xlane.f32.xlu1 %v7157_v26 }
0x3c3e   :  { %11247 = vrot.lane.b32.xlu1 %v12881_v22, %s11642_s10 }
0x3c42   :  { %11252 = vrot.lane.b32.xlu1 %v12919_v36, %s11632_s0  ;;  %s13395_s0 = sld [smem:[#allocation31_spill]] }
0x3c81   :  { %v7360_v39 = vpop.xlane.xlu1 %7359 }
0x3c82   :  { %11489 = vrcp.f32 %v7360_v39 }
0x3c85   :  { %v7561_v27 = vpop.xlane.xlu1 %7560  ;;  %v7363_v21 = vpop.xlane.xlu0 %7362 }
0x3c89   :  { %v11238_v28 = vpop.permute.xlu1 %11237  ;;  %v7564_v24 = vpop.xlane.xlu0 %7563 }
0x3c8a   :  { %v11240_v31 = vunpack.i.h.bf16 %v11238_v28  ;;  %v11239_v17 = vunpack.i.l.bf16 %v11238_v28 }
0x3c8c   :  { %v10947_v35 = vpack.c.bf16 %v11240_v31, %v11239_v17  ;;  %v11490_v45 = vpop.eup %11489 }
0x3c8d   :  { %v7162_v59 = vpop.xlane.xlu0 %7161  ;;  %v7366_v56 = vmul.f32 %v11490_v45, %v11478_v9 }
0x3c8e   :  { %10949 = vmatprep.subr.msk.bf16.mxu1 %vm12487_vm12, %v10947_v35  ;;  %11491 = vrcp.f32 %v7162_v59 }
0x3c8f   :  { %10952 = vmatpush3.bf16.msk.msra.mxu1 %vm12487_vm12, %v10947_v35 }
0x3c91   :  { %v11243_v46 = vpop.permute.xlu0 %11242 }
0x3c92   :  { %v11245_v22 = vunpack.i.h.bf16 %v11243_v46  ;;  %v11244_v37 = vunpack.i.l.bf16 %v11243_v46 }
0x3c94   :  { %v10959_v50 = vpack.c.bf16 %v11245_v22, %v11244_v37 }
0x3c96   :  { %10961 = vmatprep.subr.msk.bf16.mxu1 %vm12487_vm12, %v10959_v50 }
0x3c98   :  { %v11492_v23 = vpop.eup %11491 }
0x3c99   :  { %v7166_v54 = vmul.f32 %v11492_v23, %v11486_v32 }
0x3cba   :  { %v7159_v40 = vpop.xlane.xlu1 %7158 }
0x3cbb   :  { %11493 = vrcp.f32 %v7159_v40 }
0x3cbc   :  { %11495 = vrcp.f32 %v7363_v21 }
0x3cbd   :  { %11497 = vrcp.f32 %v7561_v27 }
0x3cbe   :  { %v11248_v42 = vpop.permute.xlu1 %11247  ;;  %11499 = vrcp.f32 %v7564_v24 }
0x3cbf   :  { %v11250_v48 = vunpack.i.h.bf16 %v11248_v42  ;;  %v11249_v49 = vunpack.i.l.bf16 %v11248_v42 }
0x3cc1   :  { %v10971_v61 = vpack.c.bf16 %v11250_v48, %v11249_v49 }
0x3cc2   :  { %v11253_v51 = vpop.permute.xlu1 %11252 }
0x3cc3   :  { %v11255_v15 = vunpack.i.h.bf16 %v11253_v51  ;;  %v11254_v10 = vunpack.i.l.bf16 %v11253_v51 }
0x3cc5   :  { %v11494_v19 = vpop.eup %11493  ;;  %v10977_v58 = vpack.c.bf16 %v11255_v15, %v11254_v10 }
0x3cc6   :  { %v7165_v52 = vmul.f32 %v11494_v19, %v11488_v20  ;;  %v11496_v0 = vpop.eup %11495 }
0x3cc7   :  { %v11498_v57 = vpop.eup %11497  ;;  %v7367_v1 = vmul.f32 %v11496_v0, %v12966_v62 }
0x3cc8   :  { %10516 = vmatprep.mubr.msk.f32.mxu1 %vm4637_vm6, %v7165_v52  ;;  %v11500_v2 = vpop.eup %11499  ;;  %v7567_v43 = vmul.f32 %v11498_v57, %v12964_v30 }
0x3cc9   :  { %10517 = vmatmul.mubr.msk.f32.vlgmr.msra.gmra.mrb[68].mxu1 %vm4637_vm6, %v7166_v54  ;;  %v7568_v5 = vmul.f32 %v11500_v2, %v12972_v14 }
0x3cca   :  { %10964 = vmatpush3.bf16.msk.msra.mxu1 %vm12487_vm12, %v10959_v50  ;;  %10530 = vmatprep.mubr.msk.f32.mxu1 %vm4637_vm6, %v7366_v56 }
0x3ccb   :  { %10973 = vmatprep.subr.msk.bf16.mxu1 %vm12487_vm12, %v10971_v61 }
0x3ccd   :  { %10531 = vmatmul.mubr.msk.f32.vlgmr.msra.gmra.mrb[70].mxu1 %vm4637_vm6, %v7367_v1 }
0x3cce   :  { %10976 = vmatpush3.bf16.msk.msra.mxu1 %vm12487_vm12, %v10971_v61  ;;  %10544 = vmatprep.mubr.msk.f32.mxu1 %vm4637_vm6, %v7567_v43 }
0x3ccf   :  { %10979 = vmatprep.subr.msk.bf16.mxu1 %vm12464_vm0, %v10977_v58 }
0x3cd1   :  { %10545 = vmatmul.mubr.msk.f32.vlgmr.msra.gmra.mrb[72].mxu1 %vm4637_vm6, %v7568_v5 }
0x3cd2   :  { %10551 = vmatprep.mubr.msk.f32.mxu1 %vm280_vm3, %v13015_v8 }
0x3cd7   :  { %10982 = vmatpush3.bf16.xpose.msk.msra.mxu1 %vm12464_vm0, %v10977_v58 }
0x3cde   :  { %10552 = vmatmul.mubr.msk.f32.vlgmr.msra.gmra.mrb[74].mxu1 %vm280_vm3, %v13002_v4 }
0x3d9c   :  { %v13023_v47 = vpop.f32.mrb[68].mxu1 }
0x3d9d   :  { %v13025_v9 = vpop.f32.mrb[69].mxu1 }
0x3da0   :  { %v13027_v55 = vpop.f32.mrb[70].mxu1 }
0x3da1   :  { %v13029_v12 = vpop.f32.mrb[71].mxu1 }
0x3da4   :  { %v13031_v30 = vpop.f32.mrb[72].mxu1 }
0x3da5   :  { %v13033_v62 = vpop.f32.mrb[73].mxu1 }
0x3db1   :  { %v10553_v25 = vpop.f32.mrb[74].mxu1 }
0x3db2   :  { %v7773_v13 = vpop.f32.mrb[75].mxu1  ;;  %v7785_v14 = vsel %vm4641_vm8, %v10553_v25, -inf }
0x3db3   :  { %7786 = vmax.xlane.f32.xlu1 %v7785_v14  ;;  %v7782_v33 = vsel %vm4637_vm6, %v7773_v13, -inf }
0x3db4   :  { %7783 = vmax.xlane.f32.xlu0 %v7782_v33 }
0x3dc4   :  { %11257 = vrot.lane.b32.xlu1 %v12919_v36, %s11639_s1 }
0x3dc8   :  { %7892 = vrot.lane.b32.xlu1 %v13015_v8, %s11633_s9 }
0x3dcc   :  { %7894 = vrot.lane.b32.xlu1 %v13002_v4, %s11633_s9  ;;  %s13396_s9 = sld [smem:[#allocation29_spill]] }
0x3e40   :  { %v7787_v32 = vpop.xlane.xlu1 %7786 }
0x3e41   :  { %v7789_v16 = vsub.f32 %v10553_v25, %v7787_v32  ;;  %v7784_v53 = vpop.xlane.xlu0 %7783 }
0x3e42   :  { %v7788_v18 = vsub.f32 %v7773_v13, %v7784_v53 }
0x3e43   :  { %v7792_v20 = vmul.f32 1.442695, %v7789_v16 }
0x3e44   :  { %v7790_v26 = vmul.f32 1.442695, %v7788_v18  ;;  %v11258_v39 = vpop.permute.xlu1 %11257 }
0x3e45   :  { %11501 = vpow2.f32 %v7792_v20  ;;  %v11260_v27 = vunpack.i.h.bf16 %v11258_v39  ;;  %v11259_v21 = vunpack.i.l.bf16 %v11258_v39 }
0x3e46   :  { %11503 = vpow2.f32 %v7790_v26 }
0x3e47   :  { %v10983_v28 = vpack.c.bf16 %v11260_v27, %v11259_v21 }
0x3e48   :  { %v7893_v48 = vpop.permute.xlu1 %7892 }
0x3e49   :  { %10985 = vmatprep.subr.msk.bf16.mxu0 %vm12487_vm12, %v10983_v28 }
0x3e4a   :  { %10988 = vmatpush3.bf16.msk.msra.mxu0 %vm12487_vm12, %v10983_v28 }
0x3e4c   :  { %v7895_v49 = vpop.permute.xlu1 %7894 }
0x3e4f   :  { %v11502_v24 = vpop.eup %11501 }
0x3e50   :  { %v7797_v31 = vsel %vm4641_vm8, %v11502_v24, 0.0  ;;  %v11504_v17 = vpop.eup %11503 }
0x3e51   :  { %7798 = vadd.xlane.f32.xlu0 %v7797_v31  ;;  %v7794_v35 = vsel %vm4637_vm6, %v11504_v17, 0.0 }
0x3e55   :  { %7795 = vadd.xlane.f32.xlu0 %v7794_v35 }
0x3e6b   :  { %11262 = vrot.lane.b32.xlu0 %v12919_v36, %s11634_s21  ;;  %s13397_s21 = sld [smem:[#allocation30_spill]] }
0x3ede   :  { %v7799_v59 = vpop.xlane.xlu0 %7798 }
0x3edf   :  { %11505 = vrcp.f32 %v7799_v59 }
0x3ee2   :  { %v7796_v46 = vpop.xlane.xlu0 %7795 }
0x3ee3   :  { %11507 = vrcp.f32 %v7796_v46 }
0x3ee6   :  { %v11263_v22 = vpop.permute.xlu0 %11262 }
0x3ee7   :  { %v11265_v37 = vunpack.i.h.bf16 %v11263_v22  ;;  %v11264_v50 = vunpack.i.l.bf16 %v11263_v22 }
0x3ee9   :  { %v10989_v40 = vpack.c.bf16 %v11265_v37, %v11264_v50  ;;  %v11506_v42 = vpop.eup %11505 }
0x3eea   :  { %v7803_v19 = vmul.f32 %v11506_v42, %v11502_v24 }
0x3eeb   :  { %10991 = vmatprep.subr.msk.bf16.mxu0 %vm12464_vm0, %v10989_v40 }
0x3eed   :  { %v11508_v45 = vpop.eup %11507 }
0x3eee   :  { %v7802_v23 = vmul.f32 %v11508_v45, %v11504_v17 }
0x3ef0   :  { %10558 = vmatprep.mubr.msk.f32.mxu0 %vm4637_vm6, %v7802_v23 }
0x3ef1   :  { %10559 = vmatmul.mubr.msk.f32.vlgmr.msra.gmra.mrb[96].mxu0 %vm4637_vm6, %v7803_v19 }
0x3ef2   :  { %10994 = vmatpush3.bf16.xpose.msk.msra.mxu0 %vm12464_vm0, %v10989_v40  ;;  %10565 = vmatprep.mubr.msk.f32.mxu0 %vm280_vm3, %v7893_v48 }
0x3ef9   :  { %10566 = vmatmul.mubr.msk.f32.vlgmr.msra.gmra.mrb[98].mxu0 %vm280_vm3, %v7895_v49 }
0x3fc4   :  { %v13059_v51 = vpop.f32.mrb[96].mxu0 }
0x3fc5   :  { %v13061_v52 = vpop.f32.mrb[97].mxu0 }
0x3fcc   :  { %v10567_v54 = vpop.f32.mrb[98].mxu0 }
0x3fcd   :  { %v7974_v0 = vpop.f32.mrb[99].mxu0  ;;  %v7986_v56 = vsel %vm4641_vm8, %v10567_v54, -inf }
0x3fce   :  { %7987 = vmax.xlane.f32.xlu1 %v7986_v56  ;;  %v7983_v57 = vsel %vm4637_vm6, %v7974_v0, -inf }
0x3fcf   :  { %7984 = vmax.xlane.f32.xlu0 %v7983_v57 }
0x3fdf   :  { %11267 = vrot.lane.b32.xlu1 %v12919_v36, %s11641_s7 }
0x3fe3   :  { %8093 = vrot.lane.b32.xlu1 %v13015_v8, %s11636_s29 }
0x3fe7   :  { %8095 = vrot.lane.b32.xlu1 %v13002_v4, %s11636_s29 }
0x405b   :  { %v7988_v63 = vpop.xlane.xlu1 %7987 }
0x405c   :  { %v7990_v61 = vsub.f32 %v10567_v54, %v7988_v63  ;;  %v7985_v15 = vpop.xlane.xlu0 %7984 }
0x405d   :  { %v7989_v10 = vsub.f32 %v7974_v0, %v7985_v15 }
0x405e   :  { %v7993_v1 = vmul.f32 1.442695, %v7990_v61 }
0x405f   :  { %v7991_v2 = vmul.f32 1.442695, %v7989_v10  ;;  %v11268_v43 = vpop.permute.xlu1 %11267 }
0x4060   :  { %11509 = vpow2.f32 %v7993_v1  ;;  %v11270_v58 = vunpack.i.h.bf16 %v11268_v43  ;;  %v11269_v5 = vunpack.i.l.bf16 %v11268_v43 }
0x4061   :  { %11511 = vpow2.f32 %v7991_v2 }
0x4062   :  { %v10995_v60 = vpack.c.bf16 %v11270_v58, %v11269_v5 }
0x4063   :  { %v8094_v24 = vpop.permute.xlu1 %8093 }
0x4064   :  { %10997 = vmatprep.subr.msk.bf16.mxu1 %vm12487_vm12, %v10995_v60 }
0x4065   :  { %11000 = vmatpush3.bf16.msk.msra.mxu1 %vm12487_vm12, %v10995_v60 }
0x4067   :  { %v8096_v31 = vpop.permute.xlu1 %8095 }
0x406a   :  { %v11510_v25 = vpop.eup %11509 }
0x406b   :  { %v7998_v13 = vsel %vm4641_vm8, %v11510_v25, 0.0  ;;  %v11512_v14 = vpop.eup %11511 }
0x406c   :  { %7999 = vadd.xlane.f32.xlu0 %v7998_v13  ;;  %v7995_v33 = vsel %vm4637_vm6, %v11512_v14, 0.0 }
0x4070   :  { %7996 = vadd.xlane.f32.xlu0 %v7995_v33 }
0x4086   :  { %11272 = vrot.lane.b32.xlu0 %v12919_v36, %s11635_s25  ;;  %s13398_s25 = sld [smem:[#allocation6_spill]] }
0x40f9   :  { %v8000_v32 = vpop.xlane.xlu0 %7999 }
0x40fa   :  { %11513 = vrcp.f32 %v8000_v32 }
0x40fd   :  { %v7997_v16 = vpop.xlane.xlu0 %7996 }
0x40fe   :  { %11515 = vrcp.f32 %v7997_v16 }
0x4101   :  { %v11273_v53 = vpop.permute.xlu0 %11272 }
0x4102   :  { %v11275_v18 = vunpack.i.h.bf16 %v11273_v53  ;;  %v11274_v20 = vunpack.i.l.bf16 %v11273_v53 }
0x4104   :  { %v11001_v26 = vpack.c.bf16 %v11275_v18, %v11274_v20  ;;  %v11514_v39 = vpop.eup %11513 }
0x4105   :  { %v8004_v28 = vmul.f32 %v11514_v39, %v11510_v25 }
0x4106   :  { %11003 = vmatprep.subr.msk.bf16.mxu1 %vm12464_vm0, %v11001_v26 }
0x4108   :  { %v11516_v27 = vpop.eup %11515 }
0x4109   :  { %v8003_v21 = vmul.f32 %v11516_v27, %v11512_v14 }
0x410b   :  { %10572 = vmatprep.mubr.msk.f32.mxu1 %vm4637_vm6, %v8003_v21 }
0x410c   :  { %10573 = vmatmul.mubr.msk.f32.vlgmr.msra.gmra.mrb[76].mxu1 %vm4637_vm6, %v8004_v28 }
0x410d   :  { %11006 = vmatpush3.bf16.xpose.msk.msra.mxu1 %vm12464_vm0, %v11001_v26  ;;  %10579 = vmatprep.mubr.msk.f32.mxu1 %vm280_vm3, %v8094_v24 }
0x4114   :  { %10580 = vmatmul.mubr.msk.f32.vlgmr.msra.gmra.mrb[78].mxu1 %vm280_vm3, %v8096_v31 }
0x41df   :  { %v13087_v17 = vpop.f32.mrb[76].mxu1 }
0x41e0   :  { %v8084_v35 = vpop.f32.mrb[77].mxu1 }
0x41e7   :  { %v10581_v59 = vpop.f32.mrb[78].mxu1 }
0x41e8   :  { %v8175_v46 = vpop.f32.mrb[79].mxu1  ;;  %v8187_v22 = vsel %vm4641_vm8, %v10581_v59, -inf }
0x41e9   :  { %8188 = vmax.xlane.f32.xlu1 %v8187_v22  ;;  %v8184_v37 = vsel %vm4637_vm6, %v8175_v46, -inf }
0x41ea   :  { %8185 = vmax.xlane.f32.xlu0 %v8184_v37  ;;  %v9471_v37 = vld [vmem:[%s13387_s23 + $0x20] sm:$0xff] }
0x41fa   :  { %11277 = vrot.lane.b32.xlu1 %v12919_v36, %s11640_s2 }
0x41fe   :  { %8294 = vrot.lane.b32.xlu1 %v13015_v8, %s11638_s28 }
0x4202   :  { %8296 = vrot.lane.b32.xlu1 %v13002_v4, %s11638_s28 }
0x4276   :  { %v8189_v50 = vpop.xlane.xlu1 %8188 }
0x4277   :  { %v8191_v40 = vsub.f32 %v10581_v59, %v8189_v50  ;;  %v8186_v42 = vpop.xlane.xlu0 %8185  ;;  %v9472_v50 = vld [vmem:[%s13387_s23 + $0x28] sm:$0xff] }
0x4278   :  { %v8190_v45 = vsub.f32 %v8175_v46, %v8186_v42 }
0x4279   :  { %v8194_v23 = vmul.f32 1.442695, %v8191_v40 }
0x427a   :  { %v8192_v19 = vmul.f32 1.442695, %v8190_v45  ;;  %v11278_v48 = vpop.permute.xlu1 %11277  ;;  %v9473_v45 = vld [vmem:[%s13387_s23 + $0x30] sm:$0xff] }
0x427b   :  { %11517 = vpow2.f32 %v8194_v23  ;;  %v11280_v49 = vunpack.i.h.bf16 %v11278_v48  ;;  %v11279_v54 = vunpack.i.l.bf16 %v11278_v48 }
0x427c   :  { %11519 = vpow2.f32 %v8192_v19 }
0x427d   :  { %v11007_v0 = vpack.c.bf16 %v11280_v49, %v11279_v54 }
0x427e   :  { %v8295_v25 = vpop.permute.xlu1 %8294 }
0x427f   :  { %11009 = vmatprep.subr.msk.bf16.mxu0 %vm12487_vm12, %v11007_v0 }
0x4280   :  { %11012 = vmatpush3.bf16.msk.msra.mxu0 %vm12487_vm12, %v11007_v0 }
0x4282   :  { %v8297_v13 = vpop.permute.xlu1 %8296 }
0x4285   :  { %v11518_v8 = vpop.eup %11517 }
0x4286   :  { %v8199_v4 = vsel %vm4641_vm8, %v11518_v8, 0.0  ;;  %v11520_v56 = vpop.eup %11519 }
0x4287   :  { %8200 = vadd.xlane.f32.xlu0 %v8199_v4  ;;  %v8196_v57 = vsel %vm4637_vm6, %v11520_v56, 0.0 }
0x428b   :  { %8197 = vadd.xlane.f32.xlu0 %v8196_v57  ;;  %v9565_v57 = vld [vmem:[%s13388_s26 + $0x1] ss:$0 sm:$0xff] }
0x42a1   :  { %11282 = vrot.lane.b32.xlu0 %v12919_v36, %s11637_s3 }
0x4314   :  { %v8201_v63 = vpop.xlane.xlu0 %8200 }
0x4315   :  { %11521 = vrcp.f32 %v8201_v63 }
0x4318   :  { %v8198_v61 = vpop.xlane.xlu0 %8197 }
0x4319   :  { %11523 = vrcp.f32 %v8198_v61 }
0x431c   :  { %v11283_v15 = vpop.permute.xlu0 %11282 }
0x431d   :  { %v11285_v10 = vunpack.i.h.bf16 %v11283_v15  ;;  %v11284_v1 = vunpack.i.l.bf16 %v11283_v15 }
0x431f   :  { %v11013_v2 = vpack.c.bf16 %v11285_v10, %v11284_v1  ;;  %v11522_v43 = vpop.eup %11521 }
0x4320   :  { %v8205_v60 = vmul.f32 %v11522_v43, %v11518_v8 }
0x4321   :  { %11015 = vmatprep.subr.msk.bf16.mxu0 %vm12464_vm0, %v11013_v2 }
0x4323   :  { %v11524_v58 = vpop.eup %11523 }
0x4324   :  { %v8204_v5 = vmul.f32 %v11524_v58, %v11520_v56 }
0x4326   :  { %10586 = vmatprep.mubr.msk.f32.mxu0 %vm4637_vm6, %v8204_v5 }
0x4327   :  { %10587 = vmatmul.mubr.msk.f32.vlgmr.msra.gmra.mrb[100].mxu0 %vm4637_vm6, %v8205_v60 }
0x4328   :  { %11018 = vmatpush3.bf16.xpose.msk.msra.mxu0 %vm12464_vm0, %v11013_v2  ;;  %10593 = vmatprep.mubr.msk.f32.mxu0 %vm280_vm3, %v8295_v25 }
0x4329   :  { %11031 = vmatprep.subr.bf16.mxu0 %v11631_v34 }
0x432f   :  { %10594 = vmatmul.mubr.msk.f32.vlgmr.msra.gmra.mrb[102].mxu0 %vm280_vm3, %v8297_v13 }
0x4330   :  { %10628 = vmatprep.mubr.msk.f32.mxu0 %vm11630_vm2, %v11629_v3 }
0x43fa   :  { %v13116_v14 = vpop.f32.mrb[100].mxu0 }
0x43fb   :  { %v8285_v33 = vpop.f32.mrb[101].mxu0 }
0x4402   :  { %v10595_v32 = vpop.f32.mrb[102].mxu0 }
0x4403   :  { %v8376_v16 = vpop.f32.mrb[103].mxu0  ;;  %v8388_v53 = vsel %vm4641_vm8, %v10595_v32, -inf }
0x4404   :  { %8389 = vmax.xlane.f32.xlu1 %v8388_v53  ;;  %v8385_v38 = vsel %vm4637_vm6, %v8376_v16, -inf }
0x4405   :  { %8386 = vmax.xlane.f32.xlu0 %v8385_v38 }
0x4415   :  { %11287 = vrot.lane.b32.xlu1 %v12919_v36, %s11642_s10 }
0x4419   :  { %7667 = vrot.lane.b32.xlu1 %v13029_v12, %s11644_s15 }
0x441d   :  { %8497 = vrot.lane.b32.xlu1 %v8084_v35, %s11643_s11 }
0x4421   :  { %8505 = vrot.lane.b32.xlu1 %v8285_v33, %s11644_s15 }
0x4425   :  { %7677 = vrot.lane.b32.xlu1 %v13031_v30, %s11645_s16 }
0x4491   :  { %v8390_v18 = vpop.xlane.xlu1 %8389 }
0x4492   :  { %v8392_v20 = vsub.f32 %v10595_v32, %v8390_v18  ;;  %v8387_v26 = vpop.xlane.xlu0 %8386 }
0x4493   :  { %v8391_v39 = vsub.f32 %v8376_v16, %v8387_v26 }
0x4494   :  { %v8395_v27 = vmul.f32 1.442695, %v8392_v20 }
0x4495   :  { %v8393_v21 = vmul.f32 1.442695, %v8391_v39  ;;  %v11288_v28 = vpop.permute.xlu1 %11287 }
0x4496   :  { %v11290_v24 = vunpack.i.h.bf16 %v11288_v28  ;;  %v11289_v31 = vunpack.i.l.bf16 %v11288_v28 }
0x4497   :  { %11525 = vpow2.f32 %v8393_v21 }
0x4498   :  { %v11019_v36 = vpack.c.bf16 %v11290_v24, %v11289_v31  ;;  %11527 = vpow2.f32 %v8395_v27  ;;  %v9478_v24 = vld [vmem:[%s13389_s8 + $0x20] sm:$0xff]  ;;  %v9479_v31 = vld [vmem:[%s13389_s8 + $0x28] sm:$0xff] }
0x4499   :  { %v7668_v48 = vpop.permute.xlu1 %7667 }
0x449a   :  { %11021 = vmatprep.subr.msk.bf16.mxu1 %vm12487_vm12, %v11019_v36 }
0x449b   :  { %11024 = vmatpush3.bf16.msk.msra.mxu1 %vm12487_vm12, %v11019_v36  ;;  %v11032_v36 = vpack.c.bf16 %v9479_v31, %v9478_v24 }
0x449c   :  { %11025 = vmatprep.subr.bf16.mxu1 %v11631_v34 }
0x449d   :  { %v8498_v15 = vpop.permute.xlu1 %8497  ;;  %11033 = vmatpush3.bf16.msra.mxu0 %v11032_v36 }
0x449e   :  { %v8519_v58 = vsel %vm280_vm3, %v13061_v52, %v8498_v15  ;;  %11034 = vmatprep.subr.bf16.mxu0 %v11631_v34  ;;  %v9489_v15 = vld [vmem:[%s13392_s24 + $0xb0] sm:$0xff] }
0x44a1   :  { %v11526_v12 = vpop.eup %11525  ;;  %v8506_v1 = vpop.permute.xlu1 %8505 }
0x44a2   :  { %v8397_v30 = vsel %vm4637_vm6, %v11526_v12, 0.0  ;;  %v11528_v35 = vpop.eup %11527 }
0x44a3   :  { %8398 = vadd.xlane.f32.xlu0 %v8397_v30  ;;  %v8400_v59 = vsel %vm4641_vm8, %v11528_v35, 0.0  ;;  %v9481_v30 = vld [vmem:[%s13389_s8 + $0x38] sm:$0xff] }
0x44a5   :  { %v7678_v43 = vpop.permute.xlu1 %7677 }
0x44a7   :  { %8401 = vadd.xlane.f32.xlu0 %v8400_v59 }
0x44bd   :  { %7659 = vrot.lane.b32.xlu0 %v13025_v9, %s11643_s11 }
0x44c1   :  { %7675 = vrot.lane.b32.xlu0 %v13033_v62, %s11645_s16 }
0x44c5   :  { %7661 = vrot.lane.b32.xlu0 %v13023_v47, %s11643_s11  ;;  %v11026_v47 = vpack.c.bf16 %v9472_v50, %v9471_v37 }
0x44c9   :  { %7669 = vrot.lane.b32.xlu0 %v13027_v55, %s11644_s15  ;;  %v9474_v55 = vld [vmem:[%s13387_s23 + $0x38] sm:$0xff] }
0x44cd   :  { %8499 = vrot.lane.b32.xlu0 %v13087_v17, %s11643_s11  ;;  %v11029_v17 = vpack.c.bf16 %v9474_v55, %v9473_v45 }
0x4530   :  { %v8399_v11 = vpop.xlane.xlu0 %8398 }
0x4531   :  { %11529 = vrcp.f32 %v8399_v11 }
0x4534   :  { %v8402_v46 = vpop.xlane.xlu0 %8401 }
0x4535   :  { %11531 = vrcp.f32 %v8402_v46 }
0x4538   :  { %v7660_v42 = vpop.permute.xlu0 %7659 }
0x4539   :  { %v7681_v23 = vsel %vm280_vm3, %v12955_v7, %v7660_v42 }
0x453a   :  { %v7683_v49 = vsel %vm1267_vm10, %v7681_v23, %v7668_v48 }
0x453b   :  { %v11530_v22 = vpop.eup %11529 }
0x453c   :  { %v8405_v9 = vmul.f32 %v11530_v22, %v11526_v12  ;;  %v7676_v19 = vpop.permute.xlu0 %7675  ;;  %v9480_v12 = vld [vmem:[%s13389_s8 + $0x30] sm:$0xff] }
0x453d   :  { %v7685_v54 = vsel %vm1269_vm11, %v7683_v49, %v7676_v19  ;;  %v13214_v19 = vld [vmem:[%s13391_s19 + $0x1] ss:$0 sm:$0xff] }
0x453e   :  { %10600 = vmatprep.mubr.msk.f32.mxu1 %vm4637_vm6, %v8405_v9  ;;  %v9483_v49 = vld [vmem:[%s13392_s24 + $0x80] sm:$0xff] }
0x453f   :  { %v11532_v62 = vpop.eup %11531 }
0x4540   :  { %v8406_v40 = vmul.f32 %v11532_v62, %v11528_v35  ;;  %v7662_v10 = vpop.permute.xlu0 %7661  ;;  %v11035_v35 = vpack.c.bf16 %v9481_v30, %v9480_v12 }
0x4541   :  { %v7682_v5 = vsel %vm280_vm3, %v12953_v44, %v7662_v10  ;;  %v9490_v10 = vld [vmem:[%s13392_s24 + $0xb8] sm:$0xff] }
0x4542   :  { %10601 = vmatmul.mubr.msk.f32.vlgmr.msra.gmra.mrb[80].mxu1 %vm4637_vm6, %v8406_v40  ;;  %11036 = vmatpush3.bf16.msra.mxu0 %v11035_v35 }
0x4543   :  { %11027 = vmatpush3.bf16.msra.mxu1 %v11026_v47  ;;  %10611 = vmatprep.mubr.msk.f32.mxu1 %vm11630_vm2, %v11629_v3 }
0x4544   :  { %11028 = vmatprep.subr.bf16.mxu1 %v11631_v34  ;;  %v7670_v2 = vpop.permute.xlu0 %7669  ;;  %11061 = vmatprep.subr.bf16.mxu0 %v11631_v34 }
0x4545   :  { %v7684_v60 = vsel %vm1267_vm10, %v7682_v5, %v7670_v2  ;;  %v9491_v2 = vld [vmem:[%s13392_s24 + $0xc0] sm:$0xff]  ;;  %v9493_v5 = vld [vmem:[%s13392_s24 + $0xd0] sm:$0xff] }
0x4546   :  { %v7686_v32 = vsel %vm1269_vm11, %v7684_v60, %v7678_v43  ;;  %v9492_v43 = vld [vmem:[%s13392_s24 + $0xc8] sm:$0xff] }
0x4547   :  { %11030 = vmatpush3.bf16.msra.mxu1 %v11029_v17  ;;  %v13211_v17 = vld [vmem:[%s13390_s14 + $0x1] ss:$0 sm:$0xff] }
0x4548   :  { %11037 = vmatprep.subr.bf16.mxu1 %v11631_v34  ;;  %v8500_v13 = vpop.permute.xlu0 %8499 }
0x4549   :  { %v8520_v16 = vsel %vm280_vm3, %v13059_v51, %v8500_v13  ;;  %v9495_v13 = vld [vmem:[%s13392_s24 + $0xe0] sm:$0xff] }
0x454a   :  { %10612 = vmatmul.mubr.msk.f32.vlgmr.msra.gmra.mrb[82].mxu1 %vm513_vm7, %v7685_v54  ;;  %v9484_v54 = vld [vmem:[%s13392_s24 + $0x88] sm:$0xff] }
0x454b   :  { %10614 = vmatprep.mubr.msk.f32.mxu1 %vm11630_vm2, %v11629_v3 }
0x4615   :  { %v10602_v0 = vpop.f32.mrb[80].mxu1 }
0x4616   :  { %8515 = vrot.lane.b32.xlu0 %v10602_v0, %s11645_s16  ;;  %v8486_v8 = vpop.f32.mrb[81].mxu1  ;;  %v11038_v0 = vpack.c.bf16 %v9484_v54, %v9483_v49 }
0x4617   :  { %8513 = vrot.lane.b32.xlu1 %v8486_v8, %s11645_s16  ;;  %v9485_v8 = vld [vmem:[%s13392_s24 + $0x90] sm:$0xff] }
0x4618   :  { %11039 = vmatpush3.bf16.msra.mxu1 %v11038_v0 }
0x4619   :  { %11040 = vmatprep.subr.bf16.mxu1 %v11631_v34 }
0x461b   :  { %8507 = vrot.lane.b32.xlu1 %v13116_v14, %s11644_s15 }
0x461d   :  { %v8606_v7 = vpop.f32.mrb[82].mxu1 }
0x461e   :  { %v10613_v4 = vpop.f32.mrb[83].mxu1  ;;  %v8620_v56 = vadd.f32 %v8606_v7, %v12832_v29  ;;  %v8521_v29 = vsel %vm1267_vm10, %v8519_v58, %v8506_v1  ;;  %v9486_v7 = vld [vmem:[%s13392_s24 + $0x98] sm:$0xff]  ;;  %v11047_v1 = vpack.c.bf16 %v9490_v10, %v9489_v15  ;;  %v11050_v58 = vpack.c.bf16 %v9492_v43, %v9491_v2 }
0x461f   :  { %v11041_v4 = vpack.c.bf16 %v9486_v7, %v9485_v8 }
0x4620   :  { %v13168_v63 = vadd.f32 %v9565_v57, %v8620_v56  ;;  %v9487_v56 = vld [vmem:[%s13392_s24 + $0xa0] sm:$0xff] }
0x4621   :  { %11042 = vmatpush3.bf16.msra.mxu1 %v11041_v4 }
0x4622   :  { %v8632_v61 = vsel %vm513_vm7, %v13168_v63, 0.0  ;;  %11043 = vmatprep.subr.bf16.mxu1 %v11631_v34 }
0x463f   :  { %8633 = vadd.xlane.f32.xlu1 %v8632_v61 }
0x4688   :  { %v8516_v38 = vpop.permute.xlu0 %8515 }
0x4689   :  { %v8514_v25 = vpop.permute.xlu1 %8513 }
0x468a   :  { %v8523_v14 = vsel %vm1269_vm11, %v8521_v29, %v8514_v25  ;;  %v9494_v29 = vld [vmem:[%s13392_s24 + $0xd8] sm:$0xff] }
0x468b   :  { %v8527_v33 = vrot.slane %v8523_v14, 7  ;;  %v11053_v60 = vpack.c.bf16 %v9494_v29, %v9493_v5  ;;  %v9496_v14 = vld [vmem:[%s13392_s24 + $0xe8] sm:$0xff] }
0x468d   :  { %v8508_v53 = vpop.permute.xlu1 %8507  ;;  %v8531_v52 = vsel %vm357_vm4, %v7686_v32, %v8527_v33  ;;  %v11056_v32 = vpack.c.bf16 %v9496_v14, %v9495_v13  ;;  %v13265_v14 = vld [vmem:[%s13394_s6 + $0x1] ss:$0 sm:$0xff] }
0x468e   :  { %v8522_v44 = vsel %vm1267_vm10, %v8520_v16, %v8508_v53  ;;  %10615 = vmatmul.mubr.msk.f32.gmra.mrb[84].mxu1 %vm513_vm7, %v8531_v52  ;;  %v9497_v53 = vld [vmem:[%s13392_s24 + $0xf0] sm:$0xff]  ;;  %v9498_v52 = vld [vmem:[%s13392_s24 + $0xf8] sm:$0xff] }
0x468f   :  { %v8524_v18 = vsel %vm1269_vm11, %v8522_v44, %v8516_v38  ;;  %10617 = vmatprep.mubr.msk.f32.mxu1 %vm11630_vm2, %v11629_v3  ;;  %vm9171_vm11 = vcmask 7168  }
0x4690   :  { %v8528_v20 = vrot.slane %v8524_v18, 7  ;;  %v11059_v18 = vpack.c.bf16 %v9498_v52, %v9497_v53 }
0x4692   :  { %v8529_v51 = vsel %vm357_vm4, %v8527_v33, %v8528_v20 }
0x4693   :  { %10618 = vmatmul.mubr.msk.f32.gmra.mrb[86].mxu1 %vm513_vm7, %v8529_v51 }
0x4694   :  { %10669 = vmatprep.mubr.msk.f32.mxu1 %vm11630_vm2, %v11629_v3 }
0x46cc   :  { %v8634_v26 = vpop.xlane.xlu1 %8633 }
0x46cd   :  { %v8641_v39 = vmul.f32 0.03125, %v8634_v26 }
0x46cf   :  { %v8644_v27 = vsub.f32 %v13168_v63, %v8641_v39 }
0x46d1   :  { %v8647_v21 = vmul.f32 %v8644_v27, %v8644_v27 }
0x46d3   :  { %v8650_v28 = vsel %vm513_vm7, %v8647_v21, 0.0  ;;  %v13249_v21 = vld [vmem:[%s13393_s30 + $0x1] ss:$0 sm:$0xff] }
0x46d4   :  { %8651 = vadd.xlane.f32.xlu1 %v8650_v28 }
0x4761   :  { %v8652_v59 = vpop.xlane.xlu1 %8651  ;;  %v8611_v11 = vpop.f32.mrb[84].mxu1 }
0x4762   :  { %v8659_v46 = vmul.f32 0.03125, %v8652_v59  ;;  %v8621_v22 = vadd.f32 %v8611_v11, %v12858_v41  ;;  %v10616_v9 = vpop.f32.mrb[85].mxu1 }
0x4764   :  { %v8662_v37 = vadd.f32 1e-05, %v8659_v46  ;;  %v13201_v50 = vadd.f32 %v9565_v57, %v8621_v22 }
0x4766   :  { %11533 = vrsqrt.f32 %v8662_v37  ;;  %v8616_v62 = vpop.f32.mrb[86].mxu1  ;;  %v8635_v47 = vsel %vm513_vm7, %v13201_v50, 0.0 }
0x4767   :  { %v8622_v40 = vadd.f32 %v8616_v62, %v12866_v6  ;;  %8636 = vadd.xlane.f32.xlu0 %v8635_v47  ;;  %v10619_v42 = vpop.f32.mrb[87].mxu1 }
0x4769   :  { %v13206_v45 = vadd.f32 %v9565_v57, %v8622_v40  ;;  %v9488_v57 = vld [vmem:[%s13392_s24 + $0xa8] sm:$0xff] }
0x476a   :  { %v11044_v61 = vpack.c.bf16 %v9488_v57, %v9487_v56 }
0x476b   :  { %v8638_v41 = vsel %vm4396_vm15, %v13206_v45, 0.0 }
0x476c   :  { %8639 = vadd.xlane.f32.xlu0 %v8638_v41  ;;  %11045 = vmatpush3.bf16.msra.mxu1 %v11044_v61 }
0x476d   :  { %11046 = vmatprep.subr.bf16.mxu1 %v11631_v34 }
0x4770   :  { %v11534_v55 = vpop.eup %11533  ;;  %11048 = vmatpush3.bf16.msra.mxu1 %v11047_v1 }
0x4771   :  { %v8668_v23 = vmul.f32 %v11534_v55, %v8644_v27  ;;  %11049 = vmatprep.subr.bf16.mxu1 %v11631_v34 }
0x4773   :  { %v8677_v6 = vmul.f32 %v13211_v17, %v8668_v23 }
0x4774   :  { %11051 = vmatpush3.bf16.msra.mxu1 %v11050_v58 }
0x4775   :  { %v8686_v48 = vadd.f32 %v13214_v19, %v8677_v6  ;;  %11052 = vmatprep.subr.bf16.mxu1 %v11631_v34 }
0x4777   :  { %10629 = vmatmul.mubr.msk.f32.vlgmr.msra.gmra.mrb[104].mxu0 %vm513_vm7, %v8686_v48 }
0x4778   :  { %10631 = vmatprep.mubr.msk.f32.mxu0 %vm11630_vm2, %v11629_v3  ;;  %11054 = vmatpush3.bf16.msra.mxu1 %v11053_v60 }
0x4779   :  { %11055 = vmatprep.subr.bf16.mxu1 %v11631_v34 }
0x477c   :  { %11057 = vmatpush3.bf16.msra.mxu1 %v11056_v32 }
0x477d   :  { %11058 = vmatprep.subr.bf16.mxu1 %v11631_v34 }
0x4780   :  { %11060 = vmatpush3.bf16.msra.mxu1 %v11059_v18 }
0x47f4   :  { %v8637_v25 = vpop.xlane.xlu0 %8636 }
0x47f5   :  { %v8642_v33 = vmul.f32 0.03125, %v8637_v25 }
0x47f7   :  { %v8645_v16 = vsub.f32 %v13201_v50, %v8642_v33 }
0x47f9   :  { %v8640_v38 = vpop.xlane.xlu0 %8639  ;;  %v8648_v44 = vmul.f32 %v8645_v16, %v8645_v16 }
0x47fa   :  { %v8643_v20 = vmul.f32 0.03125, %v8640_v38 }
0x47fb   :  { %v8653_v51 = vsel %vm513_vm7, %v8648_v44, 0.0 }
0x47fc   :  { %v8646_v26 = vsub.f32 %v13206_v45, %v8643_v20  ;;  %8654 = vadd.xlane.f32.xlu0 %v8653_v51 }
0x47fe   :  { %v8649_v39 = vmul.f32 %v8646_v26, %v8646_v26 }
0x4800   :  { %v8656_v27 = vsel %vm4396_vm15, %v8649_v39, 0.0 }
0x4801   :  { %8657 = vadd.xlane.f32.xlu1 %v8656_v27 }
0x484a   :  { %v8770_v28 = vpop.f32.mrb[104].mxu0 }
0x484b   :  { %v8771_v24 = vadd.f32 %v13249_v21, %v8770_v28  ;;  %v10630_v31 = vpop.f32.mrb[105].mxu0 }
0x484d   :  { %v8787_v36 = vmul.f32 0.70710677, %v8771_v24  ;;  %v8784_v8 = vmul.f32 0.5, %v8771_v24 }
0x484f   :  { %v8790_v12 = vand.u32 2147483647, %v8787_v36  ;;  %vm8850_vm3 = vcmp.ge.f32.partialorder %v8787_v36, 0.0 }
0x4851   :  { %v8793_v30 = vmul.f32 0.3275911, %v8790_v12  ;;  %v8832_v59 = vsub.f32 0.0, %v8790_v12 }
0x4853   :  { %v8796_v35 = vadd.f32 1.0, %v8793_v30  ;;  %v8835_v46 = vmul.f32 %v8832_v59, %v8790_v12 }
0x4855   :  { %11535 = vrcp.f32 %v8796_v35  ;;  %v8838_v37 = vmul.f32 1.442695, %v8835_v46 }
0x4857   :  { %11537 = vpow2.f32 %v8838_v37 }
0x485f   :  { %v11536_v11 = vpop.eup %11535 }
0x4860   :  { %v8805_v22 = vmul.f32 1.0614054, %v11536_v11 }
0x4861   :  { %v11538_v6 = vpop.eup %11537 }
0x4862   :  { %v8808_v9 = vadd.f32 -1.4531521, %v8805_v22 }
0x4864   :  { %v8811_v62 = vmul.f32 %v11536_v11, %v8808_v9 }
0x4866   :  { %v8814_v47 = vadd.f32 1.4214138, %v8811_v62 }
0x4868   :  { %v8817_v40 = vmul.f32 %v11536_v11, %v8814_v47 }
0x486a   :  { %v8820_v42 = vadd.f32 -0.28449672, %v8817_v40 }
0x486c   :  { %v8823_v41 = vmul.f32 %v11536_v11, %v8820_v42 }
0x486e   :  { %v8826_v55 = vadd.f32 0.2548296, %v8823_v41 }
0x4870   :  { %v8829_v23 = vmul.f32 %v11536_v11, %v8826_v55 }
0x4872   :  { %v8844_v48 = vmul.f32 %v11538_v6, %v8829_v23 }
0x4874   :  { %v8847_v49 = vsub.f32 1.0, %v8844_v48 }
0x4876   :  { %v8853_v54 = vsub.f32 0.0, %v8847_v49 }
0x4878   :  { %v8856_v0 = vsel %vm8850_vm3, %v8847_v49, %v8853_v54 }
0x4879   :  { %v8859_v7 = vadd.f32 1.0, %v8856_v0 }
0x487b   :  { %v8862_v4 = vmul.f32 %v8859_v7, %v8784_v8 }
0x487d   :  { %10670 = vmatmul.mubr.f32.vlgmr.msra.gmra.mrb[88].mxu1 %v8862_v4 }
0x487e   :  { %10672 = vmatprep.mubr.msk.f32.mxu1 %vm11630_vm2, %v11629_v3 }
0x4889   :  { %v8655_v56 = vpop.xlane.xlu0 %8654 }
0x488a   :  { %v8660_v57 = vmul.f32 0.03125, %v8655_v56 }
0x488c   :  { %v8663_v61 = vadd.f32 1e-05, %v8660_v57 }
0x488e   :  { %11539 = vrsqrt.f32 %v8663_v61  ;;  %v8658_v15 = vpop.xlane.xlu1 %8657 }
0x488f   :  { %v8661_v10 = vmul.f32 0.03125, %v8658_v15 }
0x4891   :  { %v8664_v1 = vadd.f32 1e-05, %v8661_v10 }
0x4893   :  { %11541 = vrsqrt.f32 %v8664_v1 }
0x4898   :  { %v11540_v2 = vpop.eup %11539 }
0x4899   :  { %v8669_v43 = vmul.f32 %v11540_v2, %v8645_v16 }
0x489b   :  { %v8678_v58 = vmul.f32 %v13211_v17, %v8669_v43 }
0x489d   :  { %v11542_v5 = vpop.eup %11541  ;;  %v8687_v29 = vadd.f32 %v13214_v19, %v8678_v58 }
0x489e   :  { %v8670_v60 = vmul.f32 %v11542_v5, %v8646_v26 }
0x489f   :  { %10632 = vmatmul.mubr.msk.f32.gmra.mrb[106].mxu0 %vm513_vm7, %v8687_v29 }
0x48a0   :  { %10634 = vmatprep.mubr.msk.f32.mxu0 %vm11630_vm2, %v11629_v3  ;;  %v8679_v25 = vmul.f32 %v13211_v17, %v8670_v60 }
0x48a2   :  { %v8688_v13 = vadd.f32 %v13214_v19, %v8679_v25 }
0x48a4   :  { %10635 = vmatmul.mubr.msk.f32.gmra.mrb[108].mxu0 %vm513_vm7, %v8688_v13 }
0x48a5   :  { %10686 = vmatprep.mubr.msk.f32.mxu0 %vm11630_vm2, %v11629_v3 }
0x4950   :  { %v8937_v33 = vpop.f32.mrb[88].mxu1 }
0x4951   :  { %v8938_v32 = vadd.f32 %v13265_v14, %v8937_v33  ;;  %v10671_v16 = vpop.f32.mrb[89].mxu1 }
0x4953   :  { %v13269_v53 = vadd.f32 %v8938_v32, %v13168_v63 }
0x4955   :  { %v8956_v52 = vsel %vm513_vm7, %v13269_v53, 0.0 }
0x4956   :  { %8957 = vadd.xlane.f32.xlu0 %v8956_v52 }
0x4972   :  { %v8775_v17 = vpop.f32.mrb[106].mxu0 }
0x4973   :  { %v8776_v19 = vadd.f32 %v13249_v21, %v8775_v17  ;;  %v10633_v38 = vpop.f32.mrb[107].mxu0 }
0x4975   :  { %v8788_v44 = vmul.f32 0.70710677, %v8776_v19  ;;  %v8785_v43 = vmul.f32 0.5, %v8776_v19 }
0x4977   :  { %v8791_v18 = vand.u32 2147483647, %v8788_v44  ;;  %v8780_v20 = vpop.f32.mrb[108].mxu0  ;;  %vm8851_vm4 = vcmp.ge.f32.partialorder %v8788_v44, 0.0 }
0x4978   :  { %v8781_v51 = vadd.f32 %v13249_v21, %v8780_v20  ;;  %v10636_v26 = vpop.f32.mrb[109].mxu0 }
0x4979   :  { %v8794_v39 = vmul.f32 0.3275911, %v8791_v18  ;;  %v8833_v36 = vsub.f32 0.0, %v8791_v18 }
0x497a   :  { %v8789_v27 = vmul.f32 0.70710677, %v8781_v51  ;;  %v8786_v13 = vmul.f32 0.5, %v8781_v51 }
0x497b   :  { %v8797_v28 = vadd.f32 1.0, %v8794_v39  ;;  %v8836_v30 = vmul.f32 %v8833_v36, %v8791_v18  ;;  %v9015_v36 = vld [vmem:[%s13395_s0 + $0x10] sm:$0xff] }
0x497c   :  { %v8792_v24 = vand.u32 2147483647, %v8789_v27  ;;  %vm8852_vm10 = vcmp.ge.f32.partialorder %v8789_v27, 0.0 }
0x497d   :  { %11543 = vrcp.f32 %v8797_v28  ;;  %v8840_v46 = vmul.f32 1.442695, %v8836_v30 }
0x497e   :  { %v8795_v63 = vmul.f32 0.3275911, %v8792_v24  ;;  %v8834_v35 = vsub.f32 0.0, %v8792_v24 }
0x4980   :  { %v8798_v31 = vadd.f32 1.0, %v8795_v63  ;;  %v8837_v9 = vmul.f32 %v8834_v35, %v8792_v24  ;;  %v9013_v63 = vld [vmem:[%s13395_s0] sm:$0xff] }
0x4982   :  { %11545 = vrcp.f32 %v8798_v31  ;;  %v8842_v40 = vmul.f32 1.442695, %v8837_v9 }
0x4983   :  { %11547 = vpow2.f32 %v8840_v46 }
0x4984   :  { %11549 = vpow2.f32 %v8842_v40 }
0x4987   :  { %v11544_v12 = vpop.eup %11543 }
0x4988   :  { %v8806_v59 = vmul.f32 1.0614054, %v11544_v12 }
0x498a   :  { %v8809_v11 = vadd.f32 -1.4531521, %v8806_v59 }
0x498c   :  { %v11546_v22 = vpop.eup %11545  ;;  %v8812_v37 = vmul.f32 %v11544_v12, %v8809_v11 }
0x498d   :  { %v8807_v21 = vmul.f32 1.0614054, %v11546_v22  ;;  %v11548_v8 = vpop.eup %11547 }
0x498e   :  { %v8815_v62 = vadd.f32 1.4214138, %v8812_v37  ;;  %v11550_v15 = vpop.eup %11549 }
0x498f   :  { %v8810_v47 = vadd.f32 -1.4531521, %v8807_v21 }
0x4990   :  { %v8818_v42 = vmul.f32 %v11544_v12, %v8815_v62 }
0x4991   :  { %v8813_v41 = vmul.f32 %v11546_v22, %v8810_v47 }
0x4992   :  { %v8821_v55 = vadd.f32 -0.28449672, %v8818_v42  ;;  %v9573_v42 = vld [vmem:[%s13396_s9] ss:$0 sm:$0xff] }
0x4993   :  { %v8816_v23 = vadd.f32 1.4214138, %v8813_v41 }
0x4994   :  { %v8824_v6 = vmul.f32 %v11544_v12, %v8821_v55  ;;  %v9574_v55 = vld [vmem:[%s13397_s21] ss:$0 sm:$0xff] }
0x4995   :  { %v8819_v48 = vmul.f32 %v11546_v22, %v8816_v23 }
0x4996   :  { %v8827_v49 = vadd.f32 0.2548296, %v8824_v6 }
0x4997   :  { %v8822_v54 = vadd.f32 -0.28449672, %v8819_v48  ;;  %v9131_v48 = vld [vmem:[%s13398_s25] sm:$0xff] }
0x4998   :  { %v8830_v0 = vmul.f32 %v11544_v12, %v8827_v49  ;;  %v9016_v12 = vld [vmem:[%s13395_s0 + $0x18] sm:$0xff]  ;;  %v9132_v49 = vld [vmem:[%s13398_s25 + $0x8] sm:$0xff] }
0x4999   :  { %v8825_v7 = vmul.f32 %v11546_v22, %v8822_v54  ;;  %v11065_v30 = vpack.c.bf16 %v9016_v12, %v9015_v36  ;;  %v11647_v54 = vmov 0  }
0x499a   :  { %v8845_v4 = vmul.f32 %v11548_v8, %v8830_v0  ;;  %11291 = vset.pattern.permute.xlu0 %v11647_v54  ;;  %v9172_v0 = vsel %vm9171_vm11, %v9131_v48, 0.0  ;;  %11292 = vset.pattern.permute.xlu1 %v11647_v54  ;;  %v9173_v8 = vsel %vm9171_vm11, %v9132_v49, 0.0 }
0x499b   :  { %v8828_v56 = vadd.f32 0.2548296, %v8825_v7  ;;  %v9174_v7 = vadd.f32 %v9173_v8, %v9172_v0 }
0x499c   :  { %v8848_v57 = vsub.f32 1.0, %v8845_v4 }
0x499d   :  { %v8831_v61 = vmul.f32 %v11546_v22, %v8828_v56 }
0x499e   :  { %v8854_v10 = vsub.f32 0.0, %v8848_v57 }
0x499f   :  { %v8846_v1 = vmul.f32 %v11550_v15, %v8831_v61 }
0x49a0   :  { %v8857_v2 = vsel %vm8851_vm4, %v8848_v57, %v8854_v10 }
0x49a1   :  { %v8860_v58 = vadd.f32 1.0, %v8857_v2  ;;  %v8849_v5 = vsub.f32 1.0, %v8846_v1 }
0x49a3   :  { %v8863_v29 = vmul.f32 %v8860_v58, %v8785_v43  ;;  %v8855_v60 = vsub.f32 0.0, %v8849_v5 }
0x49a5   :  { %10673 = vmatmul.mubr.f32.gmra.mrb[90].mxu1 %v8863_v29  ;;  %v8858_v25 = vsel %vm8852_vm10, %v8849_v5, %v8855_v60 }
0x49a6   :  { %10675 = vmatprep.mubr.msk.f32.mxu1 %vm11630_vm2, %v11629_v3  ;;  %v8861_v33 = vadd.f32 1.0, %v8858_v25 }
0x49a8   :  { %v8864_v32 = vmul.f32 %v8861_v33, %v8786_v13 }
0x49aa   :  { %10676 = vmatmul.mubr.f32.gmra.mrb[92].mxu1 %v8864_v32  ;;  %v9575_v32 = vld [vmem:[%s11862_s4] ss:$0 sm:$0xff] }
0x49e3   :  { %v8958_v16 = vpop.xlane.xlu0 %8957 }
0x49e4   :  { %v8965_v52 = vmul.f32 0.03125, %v8958_v16 }
0x49e6   :  { %v8968_v19 = vsub.f32 %v13269_v53, %v8965_v52 }
0x49e8   :  { %v8971_v26 = vmul.f32 %v8968_v19, %v8968_v19 }
0x49ea   :  { %v8974_v53 = vsel %vm513_vm7, %v8971_v26, 0.0  ;;  %v11559_v26 = vld [vmem:[%s11657_s5] sm:$0xff] }
0x4a78   :  { %v8942_v17 = vpop.f32.mrb[90].mxu1 }
0x4a79   :  { %v8943_v38 = vadd.f32 %v13265_v14, %v8942_v17  ;;  %v10674_v44 = vpop.f32.mrb[91].mxu1 }
0x4a7b   :  { %v8952_v18 = vadd.f32 %v8943_v38, %v13201_v50  ;;  %v9014_v50 = vld [vmem:[%s13395_s0 + $0x8] sm:$0xff] }
0x4a7c   :  { %v11062_v31 = vpack.c.bf16 %v9014_v50, %v9013_v63 }
0x4a7d   :  { %v8947_v20 = vpop.f32.mrb[92].mxu1  ;;  %v8959_v51 = vsel %vm513_vm7, %v8952_v18, 0.0 }
0x4a7e   :  { %v8948_v39 = vadd.f32 %v13265_v14, %v8947_v20  ;;  %8960 = vadd.xlane.f32.xlu1 %v8959_v51  ;;  %v10677_v27 = vpop.f32.mrb[93].mxu1  ;;  %11063 = vmatpush3.bf16.msra.mxu0 %v11062_v31  ;;  %v11560_v31 = vld [vmem:[%s11657_s5 + $0x8] sm:$0xff]  ;;  %s11648_s5 = smov [#allocation2]  }
0x4a7f   :  { %11064 = vmatprep.subr.bf16.mxu0 %v11631_v34 }
0x4a80   :  { %v8953_v28 = vadd.f32 %v8948_v39, %v13206_v45 }
0x4a82   :  { %8975 = vadd.xlane.f32.xlu1 %v8974_v53  ;;  %v8962_v24 = vsel %vm4396_vm15, %v8953_v28, 0.0  ;;  %11066 = vmatpush3.bf16.msra.mxu0 %v11065_v30 }
0x4a83   :  { %8963 = vadd.xlane.f32.xlu0 %v8962_v24 }
0x4b0b   :  { %v8961_v14 = vpop.xlane.xlu1 %8960 }
0x4b0c   :  { %v8966_v35 = vmul.f32 0.03125, %v8961_v14 }
0x4b0e   :  { %v8969_v45 = vsub.f32 %v8952_v18, %v8966_v35 }
0x4b0f   :  { %v8976_v59 = vpop.xlane.xlu1 %8975 }
0x4b10   :  { %v8983_v11 = vmul.f32 0.03125, %v8976_v59  ;;  %v8964_v46 = vpop.xlane.xlu0 %8963  ;;  %v8972_v22 = vmul.f32 %v8969_v45, %v8969_v45 }
0x4b11   :  { %v8967_v9 = vmul.f32 0.03125, %v8964_v46  ;;  %v9175_v46 = vrot.slane %v9174_v7, 4 }
0x4b12   :  { %v8986_v37 = vadd.f32 1e-05, %v8983_v11  ;;  %v8977_v21 = vsel %vm513_vm7, %v8972_v22, 0.0 }
0x4b13   :  { %v8970_v62 = vsub.f32 %v8953_v28, %v8967_v9  ;;  %8978 = vadd.xlane.f32.xlu0 %v8977_v21  ;;  %v9176_v22 = vadd.f32 %v9175_v46, %v9174_v7 }
0x4b14   :  { %11551 = vrsqrt.f32 %v8986_v37 }
0x4b15   :  { %v8973_v34 = vmul.f32 %v8970_v62, %v8970_v62  ;;  %v9177_v9 = vrot.slane %v9176_v22, 2 }
0x4b17   :  { %v8980_v47 = vsel %vm4396_vm15, %v8973_v34, 0.0  ;;  %v9178_v37 = vadd.f32 %v9177_v9, %v9176_v22 }
0x4b18   :  { %8981 = vadd.xlane.f32.xlu1 %v8980_v47 }
0x4b19   :  { %v9179_v21 = vrot.slane %v9178_v37, 1 }
0x4b1e   :  { %v11552_v40 = vpop.eup %11551 }
0x4b1f   :  { %v8992_v41 = vmul.f32 %v11552_v40, %v8968_v19 }
0x4b21   :  { %v9001_v23 = vmul.f32 %v9573_v42, %v8992_v41 }
0x4b23   :  { %v9010_v6 = vadd.f32 %v9574_v55, %v9001_v23 }
0x4b25   :  { %10687 = vmatmul.mubr.msk.f32.vlgmr.msra.gmra.mrb[110].mxu0 %vm513_vm7, %v9010_v6 }
0x4b26   :  { %10689 = vmatprep.mubr.msk.f32.mxu0 %vm11630_vm2, %v11629_v3 }
0x4b29   :  { %9135 = vperm.xlu0 %11291, %v9131_v48   ;;  %9140 = vperm.xlu1 %11292, %v9132_v49  }
0x4ba0   :  { %v8979_v4 = vpop.xlane.xlu0 %8978 }
0x4ba1   :  { %v8984_v56 = vmul.f32 0.03125, %v8979_v4 }
0x4ba3   :  { %v8987_v57 = vadd.f32 1e-05, %v8984_v56 }
0x4ba5   :  { %11553 = vrsqrt.f32 %v8987_v57  ;;  %v8982_v61 = vpop.xlane.xlu1 %8981 }
0x4ba6   :  { %v8985_v15 = vmul.f32 0.03125, %v8982_v61 }
0x4ba8   :  { %v8988_v10 = vadd.f32 1e-05, %v8985_v15  ;;  %v9136_v27 = vpop.permute.xlu0 %9135 }
0x4ba9   :  { %v9141_v30 = vpop.permute.xlu1 %9140 }
0x4baa   :  { %11555 = vrsqrt.f32 %v8988_v10 }
0x4baf   :  { %v11554_v1 = vpop.eup %11553 }
0x4bb0   :  { %v8993_v2 = vmul.f32 %v11554_v1, %v8969_v45 }
0x4bb2   :  { %v9002_v43 = vmul.f32 %v9573_v42, %v8993_v2 }
0x4bb4   :  { %v11556_v58 = vpop.eup %11555  ;;  %v9011_v5 = vadd.f32 %v9574_v55, %v9002_v43 }
0x4bb5   :  { %v8994_v29 = vmul.f32 %v11556_v58, %v8970_v62  ;;  %v9180_v62 = vadd.f32 %v9179_v21, %v9178_v37 }
0x4bb6   :  { %10690 = vmatmul.mubr.msk.f32.gmra.mrb[112].mxu0 %vm513_vm7, %v9011_v5 }
0x4bb7   :  { %10692 = vmatprep.mubr.msk.f32.mxu0 %vm11630_vm2, %v11629_v3  ;;  %v9003_v60 = vmul.f32 %v9573_v42, %v8994_v29  ;;  %vm9120_vm2 = vcmask 1045504   ;;  %v9181_v47 = vmul.f32 5.0, %v9180_v62 }
0x4bb9   :  { %v9012_v25 = vadd.f32 %v9574_v55, %v9003_v60  ;;  %v9182_v55 = vmax.f32 %v9181_v47, 1.0 }
0x4bbb   :  { %10693 = vmatmul.mubr.msk.f32.gmra.mrb[114].mxu0 %vm513_vm7, %v9012_v25  ;;  %11557 = vrcp.f32 %v9182_v55  ;;  %vm9188_vm7 = vcmask 0  }
0x4bc5   :  { %v11558_v10 = vpop.eup %11557 }
0x4bf8   :  { %v9099_v13 = vpop.f32.mrb[110].mxu0 }
0x4bf9   :  { %v10688_v33 = vpop.f32.mrb[111].mxu0  ;;  %v9100_v16 = vadd.f32 %v9575_v32, %v9099_v13 }
0x4bfb   :  { %v9115_v38 = vrot.slane %v9100_v16, 1 }
0x4c89   :  { %v9104_v52 = vpop.f32.mrb[112].mxu0 }
0x4c8a   :  { %v9105_v17 = vadd.f32 %v9575_v32, %v9104_v52  ;;  %v10691_v19 = vpop.f32.mrb[113].mxu0 }
0x4c8c   :  { %v9116_v44 = vrot.slane %v9105_v17, 1  ;;  %v9121_v28 = vrot.slane %v9105_v17, 2 }
0x4c8e   :  { %v9109_v18 = vpop.f32.mrb[114].mxu0  ;;  %v9117_v3 = vsel %vm5383_vm5, %v9115_v38, %v9116_v44 }
0x4c8f   :  { %v9110_v20 = vadd.f32 %v9575_v32, %v9109_v18  ;;  %v10694_v51 = vpop.f32.mrb[115].mxu0  ;;  %9125 = vst.msk [vmem:[%s11872_s13] sm:$0xff] %vm190_vm1, %v9117_v3  ;;  %v9127_v39 = vsub.f32 %v9117_v3, %v11559_v26 }
0x4c91   :  { %v9122_v53 = vrot.slane %v9110_v20, 2  ;;  %v9129_v24 = vmul.f32 %v9127_v39, %v9127_v39 }
0x4c93   :  { %v9143_v63 = vmul.f32 %v9136_v27, %v9129_v24  ;;  %v9123_v50 = vsel %vm9120_vm2, %v9121_v28, %v9122_v53  ;;  %v9158_v45 = vsel %vm190_vm1, %v9129_v24, 0.0 }
0x4c94   :  { %9126 = vst.msk [vmem:[%s11872_s13 + $0x8] sm:$0xff] %vm190_vm1, %v9123_v50  ;;  %v9128_v36 = vsub.f32 %v9123_v50, %v11560_v31  ;;  %s9196_s13 = sshll.u32 %s11648_s5, 4  ;;  %s9197_s13 = int_to_ptr.vmem [resolvable:$true] %s9196_s13 }
0x4c95   :  { %v9145_v12 = vsel %vm190_vm1, %v9143_v63, 0.0  ;;  %s11561_s4 = scalar_lea.vmem %s9197_s13, 16  ;;  %s11565_s29 = scalar_lea.vmem %s9197_s13, 32 }
0x4c96   :  { %9146 = vadd.xlane.f32.xlu1 %v9145_v12  ;;  %v9130_v14 = vmul.f32 %v9128_v36, %v9128_v36  ;;  %p11562_p0 = scmp.ne.s32.totalorder %s9197_s13, %s11561_s4  ;;  %p11566_p1 = scmp.lt.s32.totalorder %s9197_s13, %s9197_s13 }
0x4c97   :  { %p11567_p2 = scmp.lt.s32.totalorder %s11565_s29, %s11561_s4 }
0x4c98   :  { %v9144_v35 = vmul.f32 %v9141_v30, %v9130_v14  ;;  %v9161_v11 = vsel %vm190_vm1, %v9130_v14, 0.0 }
0x4c99   :  { %p11568_p3 = por %p11567_p2, %p11566_p1 }
0x4c9a   :  { %9159 = vadd.xlane.f32.xlu1 %v9158_v45  ;;  %v9148_v59 = vsel %vm190_vm1, %v9144_v35, 0.0  ;;  %vm9186_vm1 = vcmp.gt.f32.partialorder %v9180_v62, 0.0 }
0x4c9b   :  { %9149 = vadd.xlane.f32.xlu0 %v9148_v59  ;;  %p11569_p4 = pnand %p11568_p3, %p11562_p0 }
0x4c9e   :  { %9162 = vadd.xlane.f32.xlu1 %v9161_v11 }
0x4d23   :  { %v9147_v34 = vpop.xlane.xlu1 %9146 }
0x4d27   :  { %v9160_v40 = vpop.xlane.xlu1 %9159 }
0x4d28   :  { %v9150_v42 = vpop.xlane.xlu0 %9149 }
0x4d29   :  { %v9151_v41 = vadd.f32 %v9150_v42, %v9147_v34 }
0x4d2b   :  { %v9152_v23 = vrot.slane %v9151_v41, 4  ;;  %v9163_v6 = vpop.xlane.xlu1 %9162 }
0x4d2c   :  { %v9164_v48 = vadd.f32 %v9163_v6, %v9160_v40 }
0x4d2d   :  { %v9153_v49 = vadd.f32 %v9152_v23, %v9151_v41 }
0x4d2e   :  { %v9165_v54 = vrot.slane %v9164_v48, 4 }
0x4d2f   :  { %v9154_v0 = vrot.slane %v9153_v49, 2 }
0x4d30   :  { %v9166_v8 = vadd.f32 %v9165_v54, %v9164_v48 }
0x4d31   :  { %v9155_v4 = vadd.f32 %v9154_v0, %v9153_v49 }
0x4d32   :  { %v9167_v7 = vrot.slane %v9166_v8, 2 }
0x4d33   :  { %v9156_v56 = vrot.slane %v9155_v4, 1 }
0x4d34   :  { %v9168_v57 = vadd.f32 %v9167_v7, %v9166_v8 }
0x4d35   :  { %v9157_v61 = vadd.f32 %v9156_v56, %v9155_v4 }
0x4d36   :  { %v9169_v15 = vrot.slane %v9168_v57, 1 }
0x4d37   :  { %v9184_v43 = vmul.f32 %v11558_v10, %v9157_v61 }
0x4d38   :  { %v9170_v1 = vadd.f32 %v9169_v15, %v9168_v57 }
0x4d3a   :  { %v9185_v2 = vmul.f32 0.0125, %v9170_v1 }
0x4d3c   :  { %v9187_v58 = vsel %vm9186_vm1, %v9184_v43, %v9185_v2 }
0x4d3d   :  { %9189 = vst.msk [vmem:[#allocation2] sm:$0x1] %vm9188_vm7, %v9187_v58 }
0x4d3e   :  { %11572 = shalt.err (!%p11569_p4)
}
0x4d3f   :  { %s11573_s3 = scalar_lea.hbm %s11867_s17, 16 }
0x4d40   :  { %p11574_p5 = scmp.ne.s32.totalorder %s11867_s17, %s11573_s3  ;;  %p11577_p6 = scmp.lt.u32.totalorder %s11573_s3, %s11867_s17 }
0x4d42   :  { %p11579_p7 = pnand %p11577_p6, %p11574_p5 }
0x4d44   :  { %11582 = shalt.err (!%p11579_p7)
}
0x4d45   :  { %9199 = dma.vmem_to_hbm [thread:$0]  %s9197_s13, 16, %s11867_s17, [#allocation3]  }
0x4d46   :  { %11583 = dma.done.wait [#allocation3], 16  }
0x4d47   :  { %11584 = vsyncadd [#allocation3], 4294967280 }
0x4d48   :  { %9211 = vsyncpa [#allocation3], 1 }

</bundles_post_ra>
